<compile_context>
chip_gen: v7x
topology: tpu7x:2x2x1
jax: 0.10.0
libtpu: 0.0.40
codegen_flags: <defaults>
</compile_context>

<pallas_src>
import jax
import jax.numpy as jnp
from jax.experimental import pallas as pl
from jax.experimental.pallas import tpu as pltpu


def my_conv_forward(x_nchw, conv1_weight_oihw, conv_bias):
    """x_nchw: (N, 3, H, W) f32 -> (N, 16, H-2, W-2) f32 (NCHW, like nn.Conv2d)."""
    N, Cin, H, W = x_nchw.shape
    Cout, Cin_w, KH, KW = conv1_weight_oihw.shape
    assert Cin_w == Cin
    Ho, Wo = H - KH + 1, W - KW + 1
    M = Ho * Wo            # spatial (lane) axis of the matmul
    K = Cin * KH * KW      # contraction axis

    # Row-major flattens only (no transposes): k = ci*KH*KW + kh*KW + kw.
    w2d = conv1_weight_oihw.reshape(Cout, K)
    b2d = conv_bias.reshape(Cout, 1)

    def kernel(x_ref, w_ref, b_ref, o_ref):
        # x_ref: (N, Cin, H, W)  w_ref: (Cout, K)  b_ref: (Cout, 1)
        # o_ref: (N, Cout, M)    with M = Ho*Wo on the lane axis.

        # Hoisted once: forward() semantics -> effective weight = conv1.weight + 1.
        w_eff = w_ref[...] + jnp.float32(1.0)               # (Cout, K)
        bias = b_ref[...]                                   # (Cout, 1)
        x = x_ref[...]                                      # (N, Cin, H, W)

        # im2col: build (N, K, M) patches whose k-order (ci, kh, kw) matches the
        # row-major-flattened OIHW weight.
        taps = []
        for kh in range(KH):                                # static 3x3 unroll
            for kw in range(KW):
                win = x[:, :, kh:kh + Ho, kw:kw + Wo]       # (N, Cin, Ho, Wo)
                taps.append(win.reshape(N, Cin, 1, M))
        patches = jnp.concatenate(taps, axis=2).reshape(N, K, M)

        # One (Cout, K) x (K, M) MXU matmul per image; lane-dense output stores.
        for n in range(N):                                  # static unroll, N small
            out_n = jnp.dot(w_eff, patches[n],
                            preferred_element_type=jnp.float32)   # (Cout, M)
            o_ref[n] = (out_n + bias).astype(o_ref.dtype)

    out3d = pl.pallas_call(
        kernel,
        out_shape=jax.ShapeDtypeStruct((N, Cout, M), x_nchw.dtype),
        in_specs=[
            pl.BlockSpec(memory_space=pltpu.MemorySpace.VMEM),   # x (whole array)
            pl.BlockSpec(memory_space=pltpu.MemorySpace.VMEM),   # flattened weight
            pl.BlockSpec(memory_space=pltpu.MemorySpace.VMEM),   # bias
        ],
        out_specs=pl.BlockSpec(memory_space=pltpu.MemorySpace.VMEM),
    )(x_nchw, w2d, b2d)

    # Row-major split of the last dim only — no transpose needed.
    return out3d.reshape(N, Cout, Ho, Wo)


if __name__ == "__main__":
    key = jax.random.PRNGKey(0)
    k_x, k_w, k_b = jax.random.split(key, 3)

    N, Cin, H, W = 2, 3, 16, 16
    Cout, KH, KW = 16, 3, 3

    # Deterministic synthetic parameters (shapes from nn.Conv2d(3, 16, 3)).
    x = jax.random.normal(k_x, (N, Cin, H, W), jnp.float32)
    conv1_weight = 0.1 * jax.random.normal(k_w, (Cout, Cin, KH, KW), jnp.float32)
    conv_bias = 0.1 * jax.random.normal(k_b, (Cout,), jnp.float32)

    out = jax.jit(my_conv_forward)(x, conv1_weight, conv_bias)
    out = jax.block_until_ready(out)

    # Reference: XLA conv with (conv1.weight + 1) and conv.bias.
    ref = jax.lax.conv_general_dilated(
        x, conv1_weight + 1.0, window_strides=(1, 1), padding="VALID",
        dimension_numbers=("NCHW", "OIHW", "NCHW"),
    ) + conv_bias.reshape(1, Cout, 1, 1)
    assert out.shape == (N, Cout, H - KH + 1, W - KW + 1)
    assert jnp.allclose(out, ref, rtol=1e-4, atol=1e-4)

    print("KERNEL_OK")
</pallas_src>

<mosaic_0001>
module attributes {stable_mosaic.version = 11 : i64} {
  func.func @kernel(%arg0: memref<2x3x16x16xf32, #tpu.memory_space<vmem>>, %arg1: memref<16x27xf32, #tpu.memory_space<vmem>>, %arg2: memref<16x1xf32, #tpu.memory_space<vmem>>, %arg3: memref<2x16x196xf32, #tpu.memory_space<vmem>>) attributes {dimension_semantics = [], scalar_prefetch = 0 : i64, scratch_operands = 0 : i64, tpu.core_type = #tpu.core_type<tc>} {
    %c0 = arith.constant 0 : index
    %c0_0 = arith.constant 0 : index
    %0 = vector.load %arg1[%c0, %c0_0] : memref<16x27xf32, #tpu.memory_space<vmem>>, vector<16x27xf32>
    %cst = arith.constant 1.000000e+00 : f32
    %1 = vector.broadcast %cst : f32 to vector<16x27xf32>
    %2 = arith.addf %0, %1 : vector<16x27xf32>
    %c0_1 = arith.constant 0 : index
    %c0_2 = arith.constant 0 : index
    %3 = vector.load %arg2[%c0_1, %c0_2] : memref<16x1xf32, #tpu.memory_space<vmem>>, vector<16x1xf32>
    %c0_3 = arith.constant 0 : index
    %c0_4 = arith.constant 0 : index
    %c0_5 = arith.constant 0 : index
    %c0_6 = arith.constant 0 : index
    %4 = vector.load %arg0[%c0_3, %c0_4, %c0_5, %c0_6] : memref<2x3x16x16xf32, #tpu.memory_space<vmem>>, vector<2x3x16x16xf32>
    %5 = vector.extract_strided_slice %4 {offsets = [0, 0, 0, 0], sizes = [2, 3, 14, 14], strides = [1, 1, 1, 1]} : vector<2x3x16x16xf32> to vector<2x3x14x14xf32>
    %6 = vector.shape_cast %5 : vector<2x3x14x14xf32> to vector<2x3x1x196xf32>
    %7 = vector.extract_strided_slice %4 {offsets = [0, 0, 0, 1], sizes = [2, 3, 14, 14], strides = [1, 1, 1, 1]} : vector<2x3x16x16xf32> to vector<2x3x14x14xf32>
    %8 = vector.shape_cast %7 : vector<2x3x14x14xf32> to vector<2x3x1x196xf32>
    %9 = vector.extract_strided_slice %4 {offsets = [0, 0, 0, 2], sizes = [2, 3, 14, 14], strides = [1, 1, 1, 1]} : vector<2x3x16x16xf32> to vector<2x3x14x14xf32>
    %10 = vector.shape_cast %9 : vector<2x3x14x14xf32> to vector<2x3x1x196xf32>
    %11 = vector.extract_strided_slice %4 {offsets = [0, 0, 1, 0], sizes = [2, 3, 14, 14], strides = [1, 1, 1, 1]} : vector<2x3x16x16xf32> to vector<2x3x14x14xf32>
    %12 = vector.shape_cast %11 : vector<2x3x14x14xf32> to vector<2x3x1x196xf32>
    %13 = vector.extract_strided_slice %4 {offsets = [0, 0, 1, 1], sizes = [2, 3, 14, 14], strides = [1, 1, 1, 1]} : vector<2x3x16x16xf32> to vector<2x3x14x14xf32>
    %14 = vector.shape_cast %13 : vector<2x3x14x14xf32> to vector<2x3x1x196xf32>
    %15 = vector.extract_strided_slice %4 {offsets = [0, 0, 1, 2], sizes = [2, 3, 14, 14], strides = [1, 1, 1, 1]} : vector<2x3x16x16xf32> to vector<2x3x14x14xf32>
    %16 = vector.shape_cast %15 : vector<2x3x14x14xf32> to vector<2x3x1x196xf32>
    %17 = vector.extract_strided_slice %4 {offsets = [0, 0, 2, 0], sizes = [2, 3, 14, 14], strides = [1, 1, 1, 1]} : vector<2x3x16x16xf32> to vector<2x3x14x14xf32>
    %18 = vector.shape_cast %17 : vector<2x3x14x14xf32> to vector<2x3x1x196xf32>
    %19 = vector.extract_strided_slice %4 {offsets = [0, 0, 2, 1], sizes = [2, 3, 14, 14], strides = [1, 1, 1, 1]} : vector<2x3x16x16xf32> to vector<2x3x14x14xf32>
    %20 = vector.shape_cast %19 : vector<2x3x14x14xf32> to vector<2x3x1x196xf32>
    %21 = vector.extract_strided_slice %4 {offsets = [0, 0, 2, 2], sizes = [2, 3, 14, 14], strides = [1, 1, 1, 1]} : vector<2x3x16x16xf32> to vector<2x3x14x14xf32>
    %22 = vector.shape_cast %21 : vector<2x3x14x14xf32> to vector<2x3x1x196xf32>
    %23 = tpu.concatenate %6, %8, %10, %12, %14, %16, %18, %20, %22 in 2 : vector<2x3x1x196xf32>, vector<2x3x1x196xf32>, vector<2x3x1x196xf32>, vector<2x3x1x196xf32>, vector<2x3x1x196xf32>, vector<2x3x1x196xf32>, vector<2x3x1x196xf32>, vector<2x3x1x196xf32>, vector<2x3x1x196xf32> -> vector<2x3x9x196xf32>
    %24 = vector.shape_cast %23 : vector<2x3x9x196xf32> to vector<2x27x196xf32>
    %25 = vector.extract_strided_slice %24 {offsets = [0, 0, 0], sizes = [1, 27, 196], strides = [1, 1, 1]} : vector<2x27x196xf32> to vector<1x27x196xf32>
    %26 = vector.shape_cast %25 : vector<1x27x196xf32> to vector<27x196xf32>
    %cst_7 = arith.constant dense<0.000000e+00> : vector<16x196xf32>
    %27 = tpu.matmul %2, %26, %cst_7 {dimension_numbers = #tpu.dot_dimension_numbers<[1], [0], [0], [1], [0, 0, 1, 1], [], []>} : vector<16x27xf32>, vector<27x196xf32>, vector<16x196xf32> -> vector<16x196xf32>
    %28 = vector.broadcast %3 : vector<16x1xf32> to vector<16x196xf32>
    %29 = arith.addf %27, %28 : vector<16x196xf32>
    %c0_8 = arith.constant 0 : index
    %c0_9 = arith.constant 0 : index
    %c0_10 = arith.constant 0 : index
    %30 = vector.load %arg3[%c0_8, %c0_9, %c0_10] : memref<2x16x196xf32, #tpu.memory_space<vmem>>, vector<1x16x196xf32>
    %31 = vector.shape_cast %30 : vector<1x16x196xf32> to vector<16x196xf32>
    %32 = vector.shape_cast %29 : vector<16x196xf32> to vector<1x16x196xf32>
    tpu.vector_store %arg3[%c0_8, %c0_9, %c0_10], %32 {strides = array<i32>} : memref<2x16x196xf32, #tpu.memory_space<vmem>>, vector<1x16x196xf32>,
    %33 = vector.extract_strided_slice %24 {offsets = [1, 0, 0], sizes = [1, 27, 196], strides = [1, 1, 1]} : vector<2x27x196xf32> to vector<1x27x196xf32>
    %34 = vector.shape_cast %33 : vector<1x27x196xf32> to vector<27x196xf32>
    %cst_11 = arith.constant dense<0.000000e+00> : vector<16x196xf32>
    %35 = tpu.matmul %2, %34, %cst_11 {dimension_numbers = #tpu.dot_dimension_numbers<[1], [0], [0], [1], [0, 0, 1, 1], [], []>} : vector<16x27xf32>, vector<27x196xf32>, vector<16x196xf32> -> vector<16x196xf32>
    %36 = vector.broadcast %3 : vector<16x1xf32> to vector<16x196xf32>
    %37 = arith.addf %35, %36 : vector<16x196xf32>
    %c1 = arith.constant 1 : index
    %c0_12 = arith.constant 0 : index
    %c0_13 = arith.constant 0 : index
    %38 = vector.load %arg3[%c1, %c0_12, %c0_13] : memref<2x16x196xf32, #tpu.memory_space<vmem>>, vector<1x16x196xf32>
    %39 = vector.shape_cast %38 : vector<1x16x196xf32> to vector<16x196xf32>
    %40 = vector.shape_cast %37 : vector<16x196xf32> to vector<1x16x196xf32>
    tpu.vector_store %arg3[%c1, %c0_12, %c0_13], %40 {strides = array<i32>} : memref<2x16x196xf32, #tpu.memory_space<vmem>>, vector<1x16x196xf32>,
    return
  }
}

</mosaic_0001>

<bundles_post_ra>
// kernel: my_conv_forward.1
= control target key start
LH: loop header
LB: loop body
LE: loop exit
PB: predicated region body
PF: predicated region fallthrough
CT: control target
= control target key end

     0   :  { %v36_v0 = vlaneseq  ;;  %v9777_v1 = vmov 1983009808   ;;  %v9778_v3 = vmov 1934713408   ;;  %v16029_v5 = vmov 0.0   ;;  %s9780_s24 = smov 14   ;;  %s16025_s0 = inlined_call_operand.vmem [shape: f32[2,3,16,16], index: 0, kind: input, shape index: {}]   ;;  %s16026_s2 = inlined_call_operand.vmem [shape: f32[16,1], index: 2, kind: input, shape index: {}]   ;;  %s16027_s1 = inlined_call_operand.vmem [shape: f32[16,27], index: 1, kind: input, shape index: {}]   ;;  %s16028_s3 = inlined_call_operand.vmem [shape: f32[2,16,196], index: 3, kind: output, shape index: {}]  }
   0x1   :  { %v34_v2 = vunpack.c.l.s4 %v9777_v1  ;;  %v49_v4 = vunpack.c.l.s4 %v9778_v3  ;;  %9669 = vmatprep.mubr.f32.mxu1 %v16029_v5  ;;  %9348 = vmatprep.mubr.f32.mxu0 %v16029_v5  ;;  %v9824_v7 = vld [vmem:[%s16025_s0 + $0x20] sm:$0xff]  ;;  %v9834_v11 = vld [vmem:[%s16025_s0 + $0x30] sm:$0xff]  ;;  %s9781_s25 = smov 28   ;;  %s9782_s26 = smov 42   ;;  %vm16096_vm0 = vcmask 1046528   ;;  %vm836_vm1 = vcmask 113664  }
   0x2   :  { %v9819_v6 = vshrl.u32 %v36_v0, 7  ;;  %v9829_v10 = vld [vmem:[%s16025_s0] sm:$0xff]  ;;  %v9839_v12 = vld [vmem:[%s16025_s0 + $0x10] sm:$0xff]  ;;  %v278_v54 = vcombine.high %v9834_v11, %v16029_v5  ;;  %v196_v55 = vcombine.high %v9824_v7, %v16029_v5  ;;  %s9783_s27 = smov 56   ;;  %s9784_s28 = smov 70   ;;  %vm843_vm2 = vcmask 228352  }
   0x3   :  { %v35_v8 = vunpack.c.0.s8 %v34_v2  ;;  %v50_v9 = vunpack.c.0.s8 %v49_v4  ;;  %v9850_v15 = vld [vmem:[%s16025_s0 + $0x50] sm:$0xff]  ;;  %v9855_v16 = vld [vmem:[%s16025_s0 + $0x40] sm:$0xff]  ;;  %v114_v49 = vcombine.high %v9839_v12, %v16029_v5  ;;  %v32_v52 = vcombine.high %v9829_v10, %v16029_v5  ;;  %s9785_s29 = smov 84   ;;  %s9786_s30 = smov 98  }
   0x4   :  { %16146 = vst [vmem:[#allocation2_spill] sm:$0xff] %v9819_v6  ;;  %v442_v60 = vcombine.high %v9850_v15, %v16029_v5  ;;  %v360_v61 = vcombine.high %v9855_v16, %v16029_v5  ;;  %s9787_s16 = smov 112   ;;  %s9788_s17 = smov 126   ;;  %vm850_vm3 = vcmask 343040   ;;  %vm857_vm4 = vcmask 457728  }
   0x5   :  { %v9842_v13 = vsub.s32 %v35_v8, %v9819_v6  ;;  %v9845_v14 = vsub.s32 %v50_v9, %v9819_v6  ;;  %s9789_s18 = smov 12   ;;  %s9790_s19 = smov 26   ;;  %vm864_vm5 = vcmask 572416   ;;  %vm871_vm6 = vcmask 687104  }
   0x6   :  { %s9791_s20 = smov 40   ;;  %s9792_s21 = smov 54   ;;  %vm878_vm7 = vcmask 801792   ;;  %vm885_vm8 = vcmask 916480   ;;  %vm16141_vm9 = vcmask 1031168   ;;  %vm8525_vm10 = vcmask 1040384  }
   0x7   :  { %16147 = vst [vmem:[#allocation3_spill] sm:$0xff] %v9842_v13  ;;  %v203_v17 = vrot.slane %v9824_v7, %v9842_v13  ;;  %v39_v18 = vrot.slane %v9829_v10, %v9842_v13  ;;  %v285_v19 = vrot.slane %v9834_v11, %v9842_v13  ;;  %v121_v20 = vrot.slane %v9839_v12, %v9842_v13  ;;  %s9793_s22 = smov 127  }
   0x8   :  { %v449_v21 = vrot.slane %v9850_v15, %v9842_v13  ;;  %v367_v22 = vrot.slane %v9855_v16, %v9842_v13  ;;  %v128_v53 = vrot.slane %v114_v49, %v9842_v13  ;;  %v46_v58 = vrot.slane %v32_v52, %v9842_v13  ;;  %v10027_v52 = vld [vmem:[%s16025_s0 + $0x28] sm:$0xff] }
   0x9   :  { %v9870_v23 = vrot.slane %v203_v17, %v9845_v14  ;;  %v9873_v24 = vrot.slane %v39_v18, %v9845_v14  ;;  %v9876_v25 = vrot.slane %v285_v19, %v9845_v14  ;;  %v9879_v26 = vrot.slane %v121_v20, %v9845_v14 }
   0xa   :  { %v9886_v29 = vrot.slane %v449_v21, %v9845_v14  ;;  %v9895_v32 = vrot.slane %v367_v22, %v9845_v14  ;;  %v129_v33 = vcombine.high %v121_v20, %v16029_v5  ;;  %v47_v36 = vcombine.high %v39_v18, %v16029_v5 }
   0xb   :  { %16148 = vst [vmem:[#allocation4_spill] sm:$0xff] %v9873_v24  ;;  %16149 = vst [vmem:[#allocation5_spill] sm:$0xff] %v9876_v25  ;;  %v241_v27 = vcombine.high %v9870_v23, %v16029_v5  ;;  %v77_v28 = vcombine.high %v9873_v24, %v16029_v5  ;;  %v323_v30 = vcombine.high %v9876_v25, %v16029_v5  ;;  %vm16097_vm11 = vcmask 1041408  }
   0xc   :  { %16150 = vst [vmem:[#allocation6_spill] sm:$0xff] %v9879_v26  ;;  %v159_v31 = vcombine.high %v9879_v26, %v16029_v5  ;;  %16151 = vst [vmem:[#allocation7_spill] sm:$0xff] %v9895_v32  ;;  %v487_v34 = vcombine.high %v9886_v29, %v16029_v5  ;;  %v405_v35 = vcombine.high %v9895_v32, %v16029_v5  ;;  %vm899_vm12 = vcmask 97280  }
   0xd   :  { %534 = vrot.lane.b32.xlu1 %v241_v27, %s9780_s24  ;;  %530 = vrot.lane.b32.xlu0 %v77_v28, %s9780_s24  ;;  %v143_v37 = vrot.slane %v129_v33, %v9845_v14  ;;  %v61_v38 = vrot.slane %v47_v36, %v9845_v14  ;;  %v293_v39 = vcombine.high %v285_v19, %v16029_v5  ;;  %vm906_vm13 = vcmask 211968  }
   0xe   :  { %v211_v40 = vcombine.high %v203_v17, %v16029_v5  ;;  %v457_v41 = vcombine.high %v449_v21, %v16029_v5  ;;  %v375_v44 = vcombine.high %v367_v22, %v16029_v5  ;;  %v151_v59 = vrot.slane %v128_v53, %v9845_v14 }
   0xf   :  { %v307_v42 = vrot.slane %v293_v39, %v9845_v14  ;;  %v160_v47 = vcombine.high %v143_v37, %v16029_v5  ;;  %v78_v48 = vcombine.high %v61_v38, %v16029_v5  ;;  %v69_v62 = vrot.slane %v46_v58, %v9845_v14 }
  0x10   :  { %v225_v43 = vrot.slane %v211_v40, %v9845_v14  ;;  %v471_v45 = vrot.slane %v457_v41, %v9845_v14  ;;  %v389_v46 = vrot.slane %v375_v44, %v9845_v14  ;;  %v292_v63 = vrot.slane %v278_v54, %v9842_v13 }
  0x11   :  { %536 = vrot.lane.b32.xlu1 %v323_v30, %s9780_s24  ;;  %532 = vrot.lane.b32.xlu0 %v159_v31, %s9780_s24  ;;  %v324_v50 = vcombine.high %v307_v42, %v16029_v5  ;;  %v210_v0 = vrot.slane %v196_v55, %v9842_v13  ;;  %v456_v1 = vrot.slane %v442_v60, %v9842_v13  ;;  %vm913_vm14 = vcmask 326656  }
  0x12   :  { %v242_v51 = vcombine.high %v225_v43, %v16029_v5  ;;  %v488_v56 = vcombine.high %v471_v45, %v16029_v5  ;;  %v406_v57 = vcombine.high %v389_v46, %v16029_v5  ;;  %v315_v2 = vrot.slane %v292_v63, %v9845_v14 }
  0x13   :  { %v233_v3 = vrot.slane %v210_v0, %v9845_v14  ;;  %v374_v4 = vrot.slane %v360_v61, %v9842_v13  ;;  %v479_v8 = vrot.slane %v456_v1, %v9845_v14  ;;  %v161_v17 = vcombine.high %v151_v59, %v16029_v5 }
  0x14   :  { %v79_v18 = vcombine.high %v69_v62, %v16029_v5  ;;  %v325_v19 = vcombine.high %v315_v2, %v16029_v5  ;;  %v144_v21 = vcombine.high %v128_v53, %v16029_v5  ;;  %v62_v28 = vcombine.high %v46_v58, %v16029_v5  ;;  %v10045_v58 = vld [vmem:[%s16025_s0 + $0x48] sm:$0xff] }
  0x15   :  { %540 = vrot.lane.b32.xlu1 %v487_v34, %s9780_s24  ;;  %538 = vrot.lane.b32.xlu0 %v405_v35, %s9780_s24  ;;  %v397_v9 = vrot.slane %v374_v4, %v9845_v14  ;;  %v243_v20 = vcombine.high %v233_v3, %v16029_v5  ;;  %v489_v22 = vcombine.high %v479_v8, %v16029_v5  ;;  %vm920_vm15 = vcmask 441344  }
  0x16   :  { %v158_v30 = vrot.slane %v144_v21, %v9845_v14  ;;  %v76_v31 = vrot.slane %v62_v28, %v9845_v14  ;;  %v308_v33 = vcombine.high %v292_v63, %v16029_v5  ;;  %v226_v34 = vcombine.high %v210_v0, %v16029_v5 }
  0x17   :  { %v407_v27 = vcombine.high %v397_v9, %v16029_v5  ;;  %v472_v35 = vcombine.high %v456_v1, %v16029_v5 }
  0x18   :  { %v322_v36 = vrot.slane %v308_v33, %v9845_v14  ;;  %v162_v41 = vcombine.high %v158_v30, %v16029_v5 }
  0x19   :  { %556 = vrot.lane.b32.xlu1 %v143_v37, %s9781_s25  ;;  %554 = vrot.lane.b32.xlu0 %v61_v38, %s9781_s25  ;;  %v240_v37 = vrot.slane %v226_v34, %v9845_v14  ;;  %v390_v38 = vcombine.high %v374_v4, %v16029_v5  ;;  %v486_v39 = vrot.slane %v472_v35, %v9845_v14 }
  0x1b   :  { %v404_v40 = vrot.slane %v390_v38, %v9845_v14  ;;  %v244_v44 = vcombine.high %v240_v37, %v16029_v5 }
  0x1d   :  { %560 = vrot.lane.b32.xlu1 %v307_v42, %s9781_s25  ;;  %558 = vrot.lane.b32.xlu0 %v225_v43, %s9781_s25  ;;  %v80_v42 = vcombine.high %v76_v31, %v16029_v5  ;;  %v326_v43 = vcombine.high %v322_v36, %v16029_v5  ;;  %v408_v49 = vcombine.high %v404_v40, %v16029_v5 }
  0x21   :  { %564 = vrot.lane.b32.xlu1 %v471_v45, %s9781_s25  ;;  %562 = vrot.lane.b32.xlu0 %v389_v46, %s9781_s25  ;;  %v10004_v45 = vld [vmem:[%s16025_s0 + $0x18] sm:$0xff]  ;;  %v10009_v46 = vld [vmem:[%s16025_s0 + $0x8] sm:$0xff] }
  0x25   :  { %580 = vrot.lane.b32.xlu1 %v160_v47, %s9782_s26  ;;  %578 = vrot.lane.b32.xlu0 %v78_v48, %s9782_s26  ;;  %v169_v47 = vrot.slane %v10004_v45, %v9842_v13  ;;  %v490_v48 = vcombine.high %v486_v39, %v16029_v5 }
  0x27   :  { %v177_v53 = vrot.slane %v169_v47, %v9845_v14 }
  0x29   :  { %584 = vrot.lane.b32.xlu1 %v324_v50, %s9782_s26  ;;  %582 = vrot.lane.b32.xlu0 %v242_v51, %s9782_s26  ;;  %v87_v50 = vrot.slane %v10009_v46, %v9842_v13  ;;  %v10022_v51 = vld [vmem:[%s16025_s0 + $0x38] sm:$0xff]  ;;  %v193_v1 = vcombine.high %v177_v53, %v16029_v5 }
  0x2a   :  { %v333_v55 = vrot.slane %v10022_v51, %v9842_v13 }
  0x2b   :  { %v95_v54 = vrot.slane %v87_v50, %v9845_v14 }
  0x2c   :  { %v341_v60 = vrot.slane %v333_v55, %v9845_v14 }
  0x2d   :  { %588 = vrot.lane.b32.xlu1 %v488_v56, %s9782_s26  ;;  %586 = vrot.lane.b32.xlu0 %v406_v57, %s9782_s26  ;;  %v251_v56 = vrot.slane %v10027_v52, %v9842_v13  ;;  %v10040_v57 = vld [vmem:[%s16025_s0 + $0x58] sm:$0xff] }
  0x2f   :  { %v259_v61 = vrot.slane %v251_v56, %v9845_v14 }
  0x31   :  { %604 = vrot.lane.b32.xlu1 %v151_v59, %s9783_s27  ;;  %602 = vrot.lane.b32.xlu0 %v69_v62, %s9783_s27  ;;  %v497_v59 = vrot.slane %v10040_v57, %v9842_v13  ;;  %v415_v62 = vrot.slane %v10045_v58, %v9842_v13  ;;  %v275_v4 = vcombine.high %v259_v61, %v16029_v5 }
  0x33   :  { %v505_v63 = vrot.slane %v497_v59, %v9845_v14  ;;  %v423_v0 = vrot.slane %v415_v62, %v9845_v14 }
  0x35   :  { %608 = vrot.lane.b32.xlu1 %v315_v2, %s9783_s27  ;;  %606 = vrot.lane.b32.xlu0 %v233_v3, %s9783_s27  ;;  %v111_v2 = vcombine.high %v95_v54, %v16029_v5  ;;  %v357_v3 = vcombine.high %v341_v60, %v16029_v5 }
  0x39   :  { %612 = vrot.lane.b32.xlu1 %v479_v8, %s9783_s27  ;;  %610 = vrot.lane.b32.xlu0 %v397_v9, %s9783_s27  ;;  %v88_v8 = vcombine.high %v87_v50, %v16029_v5  ;;  %v521_v9 = vcombine.high %v505_v63, %v16029_v5  ;;  %v185_v50 = vcombine.high %v10004_v45, %v16029_v5 }
  0x3d   :  { %628 = vrot.lane.b32.xlu1 %v161_v17, %s9784_s28  ;;  %626 = vrot.lane.b32.xlu0 %v79_v18, %s9784_s28  ;;  %v439_v17 = vcombine.high %v423_v0, %v16029_v5  ;;  %v170_v18 = vcombine.high %v169_v47, %v16029_v5  ;;  %v103_v47 = vcombine.high %v10009_v46, %v16029_v5 }
  0x3f   :  { %v184_v21 = vrot.slane %v170_v18, %v9845_v14 }
  0x41   :  { %632 = vrot.lane.b32.xlu1 %v325_v19, %s9784_s28  ;;  %630 = vrot.lane.b32.xlu0 %v243_v20, %s9784_s28  ;;  %v102_v19 = vrot.slane %v88_v8, %v9845_v14  ;;  %v252_v20 = vcombine.high %v251_v56, %v16029_v5  ;;  %v194_v38 = vcombine.high %v184_v21, %v16029_v5 }
  0x42   :  { %v267_v56 = vcombine.high %v10027_v52, %v16029_v5 }
  0x43   :  { %v266_v28 = vrot.slane %v252_v20, %v9845_v14 }
  0x45   :  { %636 = vrot.lane.b32.xlu1 %v489_v22, %s9784_s28  ;;  %634 = vrot.lane.b32.xlu0 %v407_v27, %s9784_s28  ;;  %v334_v22 = vcombine.high %v333_v55, %v16029_v5  ;;  %v416_v27 = vcombine.high %v415_v62, %v16029_v5  ;;  %v431_v62 = vcombine.high %v10045_v58, %v16029_v5 }
  0x47   :  { %v430_v33 = vrot.slane %v416_v27, %v9845_v14 }
  0x49   :  { %652 = vrot.lane.b32.xlu1 %v158_v30, %s9785_s29  ;;  %650 = vrot.lane.b32.xlu0 %v76_v31, %s9785_s29  ;;  %v348_v30 = vrot.slane %v334_v22, %v9845_v14  ;;  %v498_v31 = vcombine.high %v497_v59, %v16029_v5  ;;  %v192_v59 = vrot.slane %v185_v50, %v9845_v14 }
  0x4b   :  { %v512_v34 = vrot.slane %v498_v31, %v9845_v14 }
  0x4d   :  { %656 = vrot.lane.b32.xlu1 %v322_v36, %s9785_s29  ;;  %654 = vrot.lane.b32.xlu0 %v240_v37, %s9785_s29  ;;  %v112_v37 = vcombine.high %v102_v19, %v16029_v5 }
  0x51   :  { %660 = vrot.lane.b32.xlu1 %v486_v39, %s9785_s29  ;;  %658 = vrot.lane.b32.xlu0 %v404_v40, %s9785_s29 }
  0x55   :  { %676 = vrot.lane.b32.xlu1 %v162_v41, %s9786_s30  ;;  %674 = vrot.lane.b32.xlu0 %v80_v42, %s9786_s30  ;;  %v276_v41 = vcombine.high %v266_v28, %v16029_v5  ;;  %v358_v42 = vcombine.high %v348_v30, %v16029_v5 }
  0x59   :  { %680 = vrot.lane.b32.xlu1 %v326_v43, %s9786_s30  ;;  %678 = vrot.lane.b32.xlu0 %v244_v44, %s9786_s30 }
  0x5d   :  { %684 = vrot.lane.b32.xlu1 %v490_v48, %s9786_s30  ;;  %682 = vrot.lane.b32.xlu0 %v408_v49, %s9786_s30  ;;  %v440_v48 = vcombine.high %v430_v33, %v16029_v5  ;;  %v522_v49 = vcombine.high %v512_v34, %v16029_v5 }
  0x61   :  { %700 = vrot.lane.b32.xlu1 %v177_v53, %s9787_s16  ;;  %698 = vrot.lane.b32.xlu0 %v95_v54, %s9787_s16  ;;  %v110_v54 = vrot.slane %v103_v47, %v9845_v14 }
  0x63   :  { %v113_v18 = vcombine.high %v110_v54, %v16029_v5 }
  0x65   :  { %704 = vrot.lane.b32.xlu1 %v341_v60, %s9787_s16  ;;  %702 = vrot.lane.b32.xlu0 %v259_v61, %s9787_s16  ;;  %v349_v60 = vcombine.high %v10022_v51, %v16029_v5 }
  0x69   :  { %708 = vrot.lane.b32.xlu1 %v505_v63, %s9787_s16  ;;  %706 = vrot.lane.b32.xlu0 %v423_v0, %s9787_s16  ;;  %v274_v63 = vrot.slane %v267_v56, %v9845_v14  ;;  %v356_v0 = vrot.slane %v349_v60, %v9845_v14 }
  0x6b   :  { %v359_v22 = vcombine.high %v356_v0, %v16029_v5 }
  0x6d   :  { %724 = vrot.lane.b32.xlu1 %v193_v1, %s9788_s17  ;;  %722 = vrot.lane.b32.xlu0 %v111_v2, %s9788_s17  ;;  %v513_v1 = vcombine.high %v10040_v57, %v16029_v5 }
  0x6f   :  { %v520_v8 = vrot.slane %v513_v1, %v9845_v14 }
  0x71   :  { %728 = vrot.lane.b32.xlu1 %v357_v3, %s9788_s17  ;;  %726 = vrot.lane.b32.xlu0 %v275_v4, %s9788_s17  ;;  %v438_v4 = vrot.slane %v431_v62, %v9845_v14  ;;  %v523_v31 = vcombine.high %v520_v8, %v16029_v5 }
  0x75   :  { %732 = vrot.lane.b32.xlu1 %v521_v9, %s9788_s17  ;;  %730 = vrot.lane.b32.xlu0 %v439_v17, %s9788_s17 }
  0x79   :  { %746 = vrot.lane.b32.xlu0 %v102_v19, %s9789_s18  ;;  %748 = vrot.lane.b32.xlu1 %v184_v21, %s9789_s18  ;;  %v195_v19 = vcombine.high %v192_v59, %v16029_v5  ;;  %v277_v21 = vcombine.high %v274_v63, %v16029_v5 }
  0x7d   :  { %750 = vrot.lane.b32.xlu0 %v266_v28, %s9789_s18  ;;  %752 = vrot.lane.b32.xlu1 %v348_v30, %s9789_s18  ;;  %v441_v30 = vcombine.high %v438_v4, %v16029_v5 }
  0x7f   :  { %v10089_v35 = vpop.permute.xlu1 %534  ;;  %v10091_v36 = vpop.permute.xlu0 %530 }
  0x80   :  { %16152 = vst [vmem:[#allocation8_spill] sm:$0xff] %v10091_v36 }
  0x81   :  { %754 = vrot.lane.b32.xlu0 %v430_v33, %s9789_s18  ;;  %756 = vrot.lane.b32.xlu1 %v512_v34, %s9789_s18 }
  0x83   :  { %v10097_v39 = vpop.permute.xlu1 %536  ;;  %v10099_v40 = vpop.permute.xlu0 %532 }
  0x84   :  { %16153 = vst [vmem:[#allocation9_spill] sm:$0xff] %v10097_v39  ;;  %16154 = vst [vmem:[#allocation10_spill] sm:$0xff] %v10099_v40 }
  0x85   :  { %770 = vrot.lane.b32.xlu0 %v112_v37, %s9790_s19  ;;  %772 = vrot.lane.b32.xlu1 %v194_v38, %s9790_s19 }
  0x87   :  { %v10105_v43 = vpop.permute.xlu1 %540  ;;  %v10107_v44 = vpop.permute.xlu0 %538 }
  0x88   :  { %16155 = vst [vmem:[#allocation11_spill] sm:$0xff] %v10107_v44 }
  0x89   :  { %774 = vrot.lane.b32.xlu0 %v276_v41, %s9790_s19  ;;  %776 = vrot.lane.b32.xlu1 %v358_v42, %s9790_s19 }
  0x8b   :  { %v10117_v53 = vpop.permute.xlu0 %554  ;;  %v10120_v55 = vpop.permute.xlu1 %556 }
  0x8c   :  { %16156 = vst [vmem:[#allocation12_spill] sm:$0xff] %v10117_v53  ;;  %16157 = vst [vmem:[#allocation13_spill] sm:$0xff] %v10120_v55 }
  0x8d   :  { %778 = vrot.lane.b32.xlu0 %v440_v48, %s9790_s19  ;;  %780 = vrot.lane.b32.xlu1 %v522_v49, %s9790_s19 }
  0x8f   :  { %v10129_v61 = vpop.permute.xlu0 %558  ;;  %v10139_v2 = vpop.permute.xlu1 %560 }
  0x90   :  { %16158 = vst [vmem:[#allocation14_spill] sm:$0xff] %v10139_v2 }
  0x91   :  { %794 = vrot.lane.b32.xlu0 %v110_v54, %s9791_s20  ;;  %796 = vrot.lane.b32.xlu1 %v192_v59, %s9791_s20 }
  0x93   :  { %v10141_v3 = vpop.permute.xlu0 %562  ;;  %v10149_v17 = vpop.permute.xlu1 %564 }
  0x94   :  { %16159 = vst [vmem:[#allocation15_spill] sm:$0xff] %v10141_v3 }
  0x95   :  { %798 = vrot.lane.b32.xlu0 %v274_v63, %s9791_s20  ;;  %800 = vrot.lane.b32.xlu1 %v356_v0, %s9791_s20 }
  0x97   :  { %v10147_v9 = vpop.permute.xlu0 %578  ;;  %v10161_v27 = vpop.permute.xlu1 %580 }
  0x98   :  { %16160 = vst [vmem:[#allocation16_spill] sm:$0xff] %v10147_v9  ;;  %16161 = vst [vmem:[#allocation17_spill] sm:$0xff] %v10161_v27 }
  0x99   :  { %802 = vrot.lane.b32.xlu0 %v438_v4, %s9791_s20  ;;  %804 = vrot.lane.b32.xlu1 %v520_v8, %s9791_s20 }
  0x9b   :  { %v10155_v20 = vpop.permute.xlu0 %582  ;;  %v10171_v34 = vpop.permute.xlu1 %584 }
  0x9c   :  { %16164 = vst [vmem:[#allocation20_spill] sm:$0xff] %v10171_v34 }
  0x9d   :  { %818 = vrot.lane.b32.xlu0 %v113_v18, %s9792_s21  ;;  %820 = vrot.lane.b32.xlu1 %v195_v19, %s9792_s21 }
  0x9f   :  { %v10163_v28 = vpop.permute.xlu0 %586  ;;  %v10181_v38 = vpop.permute.xlu1 %588 }
  0xa0   :  { %16162 = vst [vmem:[#allocation18_spill] sm:$0xff] %v10163_v28 }
  0xa1   :  { %822 = vrot.lane.b32.xlu0 %v277_v21, %s9792_s21  ;;  %824 = vrot.lane.b32.xlu1 %v359_v22, %s9792_s21 }
  0xa3   :  { %v10169_v33 = vpop.permute.xlu0 %602  ;;  %v10191_v47 = vpop.permute.xlu1 %604 }
  0xa4   :  { %16163 = vst [vmem:[#allocation19_spill] sm:$0xff] %v10169_v33  ;;  %16167 = vst [vmem:[#allocation23_spill] sm:$0xff] %v10191_v47 }
  0xa5   :  { %826 = vrot.lane.b32.xlu0 %v441_v30, %s9792_s21  ;;  %828 = vrot.lane.b32.xlu1 %v523_v31, %s9792_s21 }
  0xa7   :  { %v10175_v37 = vpop.permute.xlu0 %606 }
  0xa9   :  { %939 = vrot.lane.b32.xlu0 %v9829_v10, %s9793_s22  ;;  %941 = vrot.lane.b32.xlu1 %v10009_v46, %s9793_s22 }
  0xab   :  { %v10183_v41 = vpop.permute.xlu0 %610 }
  0xac   :  { %16165 = vst [vmem:[#allocation21_spill] sm:$0xff] %v10183_v41 }
  0xad   :  { %943 = vrot.lane.b32.xlu0 %v9839_v12, %s9793_s22  ;;  %945 = vrot.lane.b32.xlu1 %v10004_v45, %s9793_s22  ;;  %v10203_v12 = vpop.permute.xlu1 %608 }
  0xae   :  { %16168 = vst [vmem:[#allocation24_spill] sm:$0xff] %v10203_v12 }
  0xaf   :  { %v10189_v42 = vpop.permute.xlu0 %626 }
  0xb0   :  { %16166 = vst [vmem:[#allocation22_spill] sm:$0xff] %v10189_v42 }
  0xb1   :  { %947 = vrot.lane.b32.xlu0 %v9824_v7, %s9793_s22  ;;  %949 = vrot.lane.b32.xlu1 %v10027_v52, %s9793_s22  ;;  %v10213_v49 = vpop.permute.xlu1 %612 }
  0xb3   :  { %v10197_v10 = vpop.permute.xlu0 %630 }
  0xb5   :  { %951 = vrot.lane.b32.xlu0 %v9834_v11, %s9793_s22  ;;  %953 = vrot.lane.b32.xlu1 %v10022_v51, %s9793_s22  ;;  %v10221_v50 = vpop.permute.xlu1 %628 }
  0xb6   :  { %16171 = vst [vmem:[#allocation27_spill] sm:$0xff] %v10221_v50 }
  0xb7   :  { %v10205_v48 = vpop.permute.xlu0 %634 }
  0xb8   :  { %16169 = vst [vmem:[#allocation25_spill] sm:$0xff] %v10205_v48 }
  0xb9   :  { %955 = vrot.lane.b32.xlu0 %v9855_v16, %s9793_s22  ;;  %957 = vrot.lane.b32.xlu1 %v10045_v58, %s9793_s22  ;;  %v10227_v56 = vpop.permute.xlu1 %632 }
  0xba   :  { %16174 = vst [vmem:[#allocation30_spill] sm:$0xff] %v10227_v56 }
  0xbb   :  { %v10211_v7 = vpop.permute.xlu0 %650 }
  0xbc   :  { %16170 = vst [vmem:[#allocation26_spill] sm:$0xff] %v10211_v7 }
  0xbd   :  { %959 = vrot.lane.b32.xlu0 %v9850_v15, %s9793_s22  ;;  %961 = vrot.lane.b32.xlu1 %v10040_v57, %s9793_s22  ;;  %v10231_v60 = vpop.permute.xlu1 %636 }
  0xbf   :  { %v10219_v11 = vpop.permute.xlu0 %654 }
  0xc1   :  { %v10237_v63 = vpop.permute.xlu1 %652 }
  0xc2   :  { %16177 = vst [vmem:[#allocation33_spill] sm:$0xff] %v10237_v63 }
  0xc3   :  { %v10223_v54 = vpop.permute.xlu0 %658 }
  0xc4   :  { %16172 = vst [vmem:[#allocation28_spill] sm:$0xff] %v10223_v54 }
  0xc5   :  { %v10241_v1 = vpop.permute.xlu1 %656 }
  0xc6   :  { %16179 = vst [vmem:[#allocation35_spill] sm:$0xff] %v10241_v1 }
  0xc7   :  { %v10225_v16 = vpop.permute.xlu0 %674 }
  0xc8   :  { %16173 = vst [vmem:[#allocation29_spill] sm:$0xff] %v10225_v16 }
  0xc9   :  { %v10247_v18 = vpop.permute.xlu1 %660 }
  0xcb   :  { %v10229_v59 = vpop.permute.xlu0 %678 }
  0xcd   :  { %v10251_v21 = vpop.permute.xlu1 %676 }
  0xce   :  { %16183 = vst [vmem:[#allocation39_spill] sm:$0xff] %v10251_v21 }
  0xcf   :  { %v10233_v62 = vpop.permute.xlu0 %682 }
  0xd0   :  { %16175 = vst [vmem:[#allocation31_spill] sm:$0xff] %v10233_v62 }
  0xd1   :  { %v10257_v31 = vpop.permute.xlu1 %680 }
  0xd2   :  { %16186 = vst [vmem:[#allocation42_spill] sm:$0xff] %v10257_v31 }
  0xd3   :  { %v10235_v15 = vpop.permute.xlu0 %698 }
  0xd4   :  { %16176 = vst [vmem:[#allocation32_spill] sm:$0xff] %v10235_v15 }
  0xd5   :  { %v10261_v6 = vpop.permute.xlu1 %684 }
  0xd6   :  { %16188 = vst [vmem:[#allocation44_spill] sm:$0xff] %v10261_v6 }
  0xd7   :  { %v10239_v0 = vpop.permute.xlu0 %702 }
  0xd8   :  { %16178 = vst [vmem:[#allocation34_spill] sm:$0xff] %v10239_v0 }
  0xdb   :  { %v10243_v4 = vpop.permute.xlu0 %706 }
  0xdc   :  { %16180 = vst [vmem:[#allocation36_spill] sm:$0xff] %v10243_v4 }
  0xdf   :  { %v10245_v8 = vpop.permute.xlu0 %722 }
  0xe0   :  { %16181 = vst [vmem:[#allocation37_spill] sm:$0xff] %v10245_v8  ;;  %v10267_v8 = vpop.permute.xlu1 %700 }
  0xe1   :  { %16191 = vst [vmem:[#allocation47_spill] sm:$0xff] %v10267_v8 }
  0xe3   :  { %v10249_v19 = vpop.permute.xlu0 %726 }
  0xe4   :  { %16182 = vst [vmem:[#allocation38_spill] sm:$0xff] %v10249_v19  ;;  %v10271_v16 = vpop.permute.xlu1 %704 }
  0xe5   :  { %16193 = vst [vmem:[#allocation49_spill] sm:$0xff] %v10271_v16 }
  0xe7   :  { %v10253_v22 = vpop.permute.xlu0 %730 }
  0xe8   :  { %16184 = vst [vmem:[#allocation40_spill] sm:$0xff] %v10253_v22 }
  0xeb   :  { %v10255_v30 = vpop.permute.xlu0 %746 }
  0xec   :  { %16185 = vst [vmem:[#allocation41_spill] sm:$0xff] %v10255_v30  ;;  %v10277_v30 = vpop.permute.xlu1 %708 }
  0xed   :  { %16196 = vst [vmem:[#allocation52_spill] sm:$0xff] %v10277_v30 }
  0xef   :  { %v10259_v5 = vpop.permute.xlu0 %750 }
  0xf0   :  { %16187 = vst [vmem:[#allocation43_spill] sm:$0xff] %v10259_v5  ;;  %v10281_v54 = vpop.permute.xlu1 %724 }
  0xf1   :  { %16198 = vst [vmem:[#allocation54_spill] sm:$0xff] %v10281_v54 }
  0xf3   :  { %v10263_v15 = vpop.permute.xlu0 %754 }
  0xf4   :  { %16189 = vst [vmem:[#allocation45_spill] sm:$0xff] %v10263_v15 }
  0xf7   :  { %v10265_v4 = vpop.permute.xlu0 %770 }
  0xf8   :  { %16190 = vst [vmem:[#allocation46_spill] sm:$0xff] %v10265_v4  ;;  %v10287_v4 = vpop.permute.xlu1 %728 }
  0xf9   :  { %16201 = vst [vmem:[#allocation57_spill] sm:$0xff] %v10287_v4 }
  0xfb   :  { %v10269_v62 = vpop.permute.xlu0 %774 }
  0xfc   :  { %16192 = vst [vmem:[#allocation48_spill] sm:$0xff] %v10269_v62  ;;  %v10291_v63 = vpop.permute.xlu1 %732 }
  0xfd   :  { %16203 = vst [vmem:[#allocation59_spill] sm:$0xff] %v10291_v63 }
  0xff   :  { %v10273_v21 = vpop.permute.xlu0 %778 }
 0x100   :  { %16194 = vst [vmem:[#allocation50_spill] sm:$0xff] %v10273_v21  ;;  %v10295_v21 = vpop.permute.xlu1 %748 }
 0x101   :  { %16205 = vst [vmem:[#allocation61_spill] sm:$0xff] %v10295_v21 }
 0x103   :  { %v10275_v22 = vpop.permute.xlu0 %794 }
 0x104   :  { %16195 = vst [vmem:[#allocation51_spill] sm:$0xff] %v10275_v22  ;;  %v10304_v50 = vpop.permute.xlu1 %752 }
 0x105   :  { %16208 = vst [vmem:[#allocation63_spill] sm:$0xff] %v10304_v50 }
 0x107   :  { %v10279_v31 = vpop.permute.xlu0 %798 }
 0x108   :  { %16197 = vst [vmem:[#allocation53_spill] sm:$0xff] %v10279_v31  ;;  %v10317_v47 = vpop.permute.xlu1 %756 }
 0x109   :  { %16210 = vst [vmem:[#allocation65_spill] sm:$0xff] %v10317_v47 }
 0x10b   :  { %v10283_v7 = vpop.permute.xlu0 %802 }
 0x10c   :  { %16199 = vst [vmem:[#allocation55_spill] sm:$0xff] %v10283_v7 }
 0x10f   :  { %v10285_v15 = vpop.permute.xlu0 %818 }
 0x110   :  { %16200 = vst [vmem:[#allocation56_spill] sm:$0xff] %v10285_v15  ;;  %v16207_v15 = vmov 0.0  }
 0x113   :  { %v10289_v8 = vpop.permute.xlu0 %822 }
 0x114   :  { %16202 = vst [vmem:[#allocation58_spill] sm:$0xff] %v10289_v8 }
 0x117   :  { %v10293_v16 = vpop.permute.xlu0 %826 }
 0x118   :  { %16204 = vst [vmem:[#allocation60_spill] sm:$0xff] %v10293_v16 }
 0x11b   :  { %v940_v22 = vpop.permute.xlu0 %939 }
 0x11c   :  { %v982_v48 = vrot.slane %v940_v22, %v9842_v13 }
 0x11e   :  { %v10299_v42 = vrot.slane %v982_v48, %v9845_v14  ;;  %v990_v55 = vcombine.high %v982_v48, %v16207_v15 }
 0x11f   :  { %v944_v54 = vpop.permute.xlu0 %943 }
 0x120   :  { %16206 = vst [vmem:[#allocation62_spill] sm:$0xff] %v10299_v42  ;;  %v1064_v7 = vrot.slane %v944_v54, %v9842_v13  ;;  %v1020_v4 = vcombine.high %v10299_v42, %v16207_v15 }
 0x122   :  { %v10307_v1 = vrot.slane %v1064_v7, %v9845_v14  ;;  %1473 = vrot.lane.b32.xlu0 %v1020_v4, %s9780_s24 }
 0x123   :  { %v948_v16 = vpop.permute.xlu0 %947 }
 0x124   :  { %16209 = vst [vmem:[#allocation64_spill] sm:$0xff] %v10307_v1  ;;  %v1146_v21 = vrot.slane %v948_v16, %v9842_v13  ;;  %v1102_v41 = vcombine.high %v10307_v1, %v16207_v15 }
 0x126   :  { %v10314_v33 = vrot.slane %v1146_v21, %v9845_v14  ;;  %1475 = vrot.lane.b32.xlu1 %v1102_v41, %s9780_s24  ;;  %v10329_v41 = vpop.permute.xlu1 %772  ;;  %v1154_v44 = vcombine.high %v1146_v21, %v16207_v15 }
 0x127   :  { %v952_v42 = vpop.permute.xlu0 %951  ;;  %16212 = vst [vmem:[#allocation67_spill] sm:$0xff] %v10329_v41  ;;  %v1072_v41 = vcombine.high %v1064_v7, %v16207_v15 }
 0x128   :  { %v1228_v50 = vrot.slane %v952_v42, %v9842_v13  ;;  %v1184_v28 = vcombine.high %v10314_v33, %v16207_v15 }
 0x12a   :  { %v10323_v4 = vrot.slane %v1228_v50, %v9845_v14  ;;  %1477 = vrot.lane.b32.xlu0 %v1184_v28, %s9780_s24 }
 0x12b   :  { %v956_v9 = vpop.permute.xlu0 %955 }
 0x12c   :  { %16211 = vst [vmem:[#allocation66_spill] sm:$0xff] %v10323_v4  ;;  %v1310_v1 = vrot.slane %v956_v9, %v9842_v13  ;;  %v1266_v27 = vcombine.high %v10323_v4, %v16207_v15  ;;  %v10343_v4 = vpop.permute.xlu1 %776 }
 0x12d   :  { %16214 = vst [vmem:[#allocation69_spill] sm:$0xff] %v10343_v4  ;;  %v1086_v4 = vrot.slane %v1072_v41, %v9845_v14 }
 0x12e   :  { %v10332_v3 = vrot.slane %v1310_v1, %v9845_v14  ;;  %1479 = vrot.lane.b32.xlu1 %v1266_v27, %s9780_s24  ;;  %v1004_v27 = vrot.slane %v990_v55, %v9845_v14  ;;  %v1318_v26 = vcombine.high %v1310_v1, %v16207_v15 }
 0x12f   :  { %v960_v53 = vpop.permute.xlu0 %959 }
 0x130   :  { %16213 = vst [vmem:[#allocation68_spill] sm:$0xff] %v10332_v3  ;;  %v1392_v56 = vrot.slane %v960_v53, %v9842_v13  ;;  %v1348_v28 = vcombine.high %v10332_v3, %v16207_v15  ;;  %v1236_v3 = vcombine.high %v1228_v50, %v16207_v15  ;;  %v10356_v7 = vpop.permute.xlu1 %780  ;;  %v1332_v55 = vrot.slane %v1318_v26, %v9845_v14 }
 0x131   :  { %16215 = vst [vmem:[#allocation70_spill] sm:$0xff] %v10356_v7  ;;  %v1021_v1 = vcombine.high %v1004_v27, %v16207_v15  ;;  %v1103_v26 = vcombine.high %v1086_v4, %v16207_v15 }
 0x132   :  { %v10340_v32 = vrot.slane %v1392_v56, %v9845_v14  ;;  %1481 = vrot.lane.b32.xlu0 %v1348_v28, %s9780_s24  ;;  %v1168_v28 = vrot.slane %v1154_v44, %v9845_v14  ;;  %v1400_v21 = vcombine.high %v1392_v56, %v16207_v15  ;;  %v975_v56 = vcombine.high %v940_v22, %v16207_v15 }
 0x134   :  { %v1430_v48 = vcombine.high %v10340_v32, %v16207_v15  ;;  %v1414_v44 = vrot.slane %v1400_v21, %v9845_v14  ;;  %v10366_v50 = vpop.permute.xlu1 %796  ;;  %v989_v21 = vrot.slane %v975_v56, %v9842_v13 }
 0x135   :  { %16216 = vst [vmem:[#allocation71_spill] sm:$0xff] %v10366_v50  ;;  %v1349_v50 = vcombine.high %v1332_v55, %v16207_v15 }
 0x136   :  { %1497 = vrot.lane.b32.xlu0 %v1004_v27, %s9781_s25  ;;  %1483 = vrot.lane.b32.xlu1 %v1430_v48, %s9780_s24  ;;  %v1250_v48 = vrot.slane %v1236_v3, %v9845_v14  ;;  %v1185_v3 = vcombine.high %v1168_v28, %v16207_v15  ;;  %v1057_v27 = vcombine.high %v944_v54, %v16207_v15 }
 0x138   :  { %v10374_v41 = vpop.permute.xlu1 %800  ;;  %v1267_v22 = vcombine.high %v1250_v48, %v16207_v15  ;;  %v1071_v56 = vrot.slane %v1057_v27, %v9842_v13 }
 0x139   :  { %16217 = vst [vmem:[#allocation72_spill] sm:$0xff] %v10374_v41  ;;  %v1005_v41 = vcombine.high %v989_v21, %v16207_v15 }
 0x13a   :  { %1501 = vrot.lane.b32.xlu0 %v1168_v28, %s9781_s25  ;;  %1499 = vrot.lane.b32.xlu1 %v1086_v4, %s9781_s25  ;;  %v1431_v4 = vcombine.high %v1414_v44, %v16207_v15  ;;  %v1094_v27 = vrot.slane %v1071_v56, %v9845_v14 }
 0x13c   :  { %v10386_v28 = vpop.permute.xlu1 %804 }
 0x13d   :  { %16218 = vst [vmem:[#allocation73_spill] sm:$0xff] %v10386_v28 }
 0x13e   :  { %1505 = vrot.lane.b32.xlu0 %v1332_v55, %s9781_s25  ;;  %1503 = vrot.lane.b32.xlu1 %v1250_v48, %s9781_s25  ;;  %v1303_v55 = vcombine.high %v956_v9, %v16207_v15  ;;  %v1385_v48 = vcombine.high %v960_v53, %v16207_v15 }
 0x142   :  { %1521 = vrot.lane.b32.xlu0 %v1021_v1, %s9782_s26  ;;  %1507 = vrot.lane.b32.xlu1 %v1414_v44, %s9781_s25  ;;  %v1139_v1 = vcombine.high %v948_v16, %v16207_v15  ;;  %v1221_v16 = vcombine.high %v952_v42, %v16207_v15  ;;  %v1399_v42 = vrot.slane %v1385_v48, %v9842_v13 }
 0x143   :  { %v1104_v48 = vcombine.high %v1094_v27, %v16207_v15 }
 0x144   :  { %v1153_v54 = vrot.slane %v1139_v1, %v9842_v13  ;;  %v1235_v44 = vrot.slane %v1221_v16, %v9842_v13  ;;  %v1422_v1 = vrot.slane %v1399_v42, %v9845_v14 }
 0x146   :  { %1525 = vrot.lane.b32.xlu0 %v1185_v3, %s9782_s26  ;;  %1523 = vrot.lane.b32.xlu1 %v1103_v26, %s9782_s26  ;;  %v1012_v26 = vrot.slane %v989_v21, %v9845_v14  ;;  %v1176_v3 = vrot.slane %v1153_v54, %v9845_v14  ;;  %v1258_v9 = vrot.slane %v1235_v44, %v9845_v14 }
 0x148   :  { %v1022_v16 = vcombine.high %v1012_v26, %v16207_v15 }
 0x14a   :  { %1529 = vrot.lane.b32.xlu0 %v1349_v50, %s9782_s26  ;;  %1527 = vrot.lane.b32.xlu1 %v1267_v22, %s9782_s26  ;;  %v1317_v50 = vrot.slane %v1303_v55, %v9842_v13  ;;  %v10400_v22 = vpop.permute.xlu1 %820  ;;  %v1186_v55 = vcombine.high %v1176_v3, %v16207_v15 }
 0x14b   :  { %16219 = vst [vmem:[#allocation74_spill] sm:$0xff] %v10400_v22 }
 0x14c   :  { %v1340_v53 = vrot.slane %v1317_v50, %v9845_v14 }
 0x14e   :  { %1545 = vrot.lane.b32.xlu0 %v1012_v26, %s9783_s27  ;;  %1531 = vrot.lane.b32.xlu1 %v1431_v4, %s9782_s26  ;;  %v10410_v4 = vpop.permute.xlu1 %824  ;;  %v1268_v26 = vcombine.high %v1258_v9, %v16207_v15 }
 0x14f   :  { %16220 = vst [vmem:[#allocation75_spill] sm:$0xff] %v10410_v4  ;;  %v1350_v4 = vcombine.high %v1340_v53, %v16207_v15 }
 0x152   :  { %1549 = vrot.lane.b32.xlu0 %v1176_v3, %s9783_s27  ;;  %1547 = vrot.lane.b32.xlu1 %v1094_v27, %s9783_s27  ;;  %v10417_v22 = vpop.permute.xlu1 %828  ;;  %v1432_v3 = vcombine.high %v1422_v1, %v16207_v15  ;;  %v1087_v27 = vcombine.high %v1071_v56, %v16207_v15  ;;  %v1415_v56 = vcombine.high %v1399_v42, %v16207_v15 }
 0x153   :  { %16221 = vst [vmem:[#allocation76_spill] sm:$0xff] %v10417_v22 }
 0x156   :  { %1553 = vrot.lane.b32.xlu0 %v1340_v53, %s9783_s27  ;;  %1551 = vrot.lane.b32.xlu1 %v1258_v9, %s9783_s27  ;;  %v10424_v40 = vpop.permute.xlu1 %941  ;;  %v1251_v53 = vcombine.high %v1235_v44, %v16207_v15  ;;  %v1333_v9 = vcombine.high %v1317_v50, %v16207_v15  ;;  %v1429_v44 = vrot.slane %v1415_v56, %v9845_v14 }
 0x15a   :  { %1569 = vrot.lane.b32.xlu0 %v1022_v16, %s9784_s28  ;;  %1555 = vrot.lane.b32.xlu1 %v1422_v1, %s9783_s27  ;;  %v1169_v16 = vcombine.high %v1153_v54, %v16207_v15  ;;  %v10434_v21 = vpop.permute.xlu1 %945  ;;  %v1101_v1 = vrot.slane %v1087_v27, %v9845_v14  ;;  %v1265_v54 = vrot.slane %v1251_v53, %v9845_v14 }
 0x15b   :  { %v1030_v27 = vrot.slane %v10424_v40, %v9842_v13 }
 0x15d   :  { %v1031_v34 = vcombine.high %v1030_v27, %v16207_v15 }
 0x15e   :  { %1573 = vrot.lane.b32.xlu0 %v1186_v55, %s9784_s28  ;;  %1571 = vrot.lane.b32.xlu1 %v1104_v48, %s9784_s28  ;;  %v1019_v55 = vrot.slane %v1005_v41, %v9845_v14  ;;  %v1347_v41 = vrot.slane %v1333_v9, %v9845_v14  ;;  %v10445_v48 = vpop.permute.xlu1 %949  ;;  %v1433_v9 = vcombine.high %v1429_v44, %v16207_v15 }
 0x15f   :  { %v1194_v56 = vrot.slane %v10445_v48, %v9842_v13 }
 0x160   :  { %v1023_v50 = vcombine.high %v1019_v55, %v16207_v15 }
 0x162   :  { %1577 = vrot.lane.b32.xlu0 %v1350_v4, %s9784_s28  ;;  %1575 = vrot.lane.b32.xlu1 %v1268_v26, %s9784_s28  ;;  %v1183_v4 = vrot.slane %v1169_v16, %v9845_v14  ;;  %v10453_v42 = vpop.permute.xlu1 %953  ;;  %v1351_v16 = vcombine.high %v1347_v41, %v16207_v15 }
 0x164   :  { %v1187_v26 = vcombine.high %v1183_v4, %v16207_v15 }
 0x166   :  { %1593 = vrot.lane.b32.xlu0 %v1019_v55, %s9785_s29  ;;  %1579 = vrot.lane.b32.xlu1 %v1432_v3, %s9784_s28  ;;  %v1105_v3 = vcombine.high %v1101_v1, %v16207_v15  ;;  %v1269_v55 = vcombine.high %v1265_v54, %v16207_v15  ;;  %v10463_v53 = vpop.permute.xlu1 %957 }
 0x16a   :  { %1597 = vrot.lane.b32.xlu0 %v1183_v4, %s9785_s29  ;;  %1595 = vrot.lane.b32.xlu1 %v1101_v1, %s9785_s29  ;;  %v1038_v4 = vrot.slane %v1030_v27, %v9845_v14  ;;  %v1112_v1 = vrot.slane %v10434_v21, %v9842_v13 }
 0x16c   :  { %v1054_v24 = vcombine.high %v1038_v4, %v16207_v15 }
 0x16e   :  { %1601 = vrot.lane.b32.xlu0 %v1347_v41, %s9785_s29  ;;  %1599 = vrot.lane.b32.xlu1 %v1265_v54, %s9785_s29  ;;  %v1358_v41 = vrot.slane %v10463_v53, %v9842_v13  ;;  %v10477_v54 = vpop.permute.xlu1 %961 }
 0x170   :  { %v1359_v27 = vcombine.high %v1358_v41, %v16207_v15 }
 0x172   :  { %1617 = vrot.lane.b32.xlu0 %v1023_v50, %s9786_s30  ;;  %1603 = vrot.lane.b32.xlu1 %v1429_v44, %s9785_s29  ;;  %v1120_v50 = vrot.slane %v1112_v1, %v9845_v14  ;;  %v1202_v44 = vrot.slane %v1194_v56, %v9845_v14 }
 0x174   :  { %v1218_v36 = vcombine.high %v1202_v44, %v16207_v15  ;;  %v1136_v12 = vcombine.high %v1120_v50, %v16207_v15 }
 0x176   :  { %1621 = vrot.lane.b32.xlu0 %v1187_v26, %s9786_s30  ;;  %1619 = vrot.lane.b32.xlu1 %v1105_v3, %s9786_s30  ;;  %v1276_v26 = vrot.slane %v10453_v42, %v9842_v13  ;;  %v1366_v3 = vrot.slane %v1358_v41, %v9845_v14 }
 0x178   :  { %v1382_v2 = vcombine.high %v1366_v3, %v16207_v15 }
 0x17a   :  { %1625 = vrot.lane.b32.xlu0 %v1351_v16, %s9786_s30  ;;  %1623 = vrot.lane.b32.xlu1 %v1269_v55, %s9786_s30  ;;  %v1440_v16 = vrot.slane %v10477_v54, %v9842_v13  ;;  %v1284_v55 = vrot.slane %v1276_v26, %v9845_v14 }
 0x17c   :  { %v1300_v25 = vcombine.high %v1284_v55, %v16207_v15 }
 0x17e   :  { %1641 = vrot.lane.b32.xlu0 %v1038_v4, %s9787_s16  ;;  %1627 = vrot.lane.b32.xlu1 %v1433_v9, %s9786_s30  ;;  %v1448_v9 = vrot.slane %v1440_v16, %v9845_v14  ;;  %v1113_v4 = vcombine.high %v1112_v1, %v16207_v15 }
 0x182   :  { %1645 = vrot.lane.b32.xlu0 %v1202_v44, %s9787_s16  ;;  %1643 = vrot.lane.b32.xlu1 %v1120_v50, %s9787_s16  ;;  %v1195_v50 = vcombine.high %v1194_v56, %v16207_v15  ;;  %v1441_v44 = vcombine.high %v1440_v16, %v16207_v15 }
 0x184   :  { %v1455_v41 = vrot.slane %v1441_v44, %v9845_v14 }
 0x186   :  { %1649 = vrot.lane.b32.xlu0 %v1366_v3, %s9787_s16  ;;  %1647 = vrot.lane.b32.xlu1 %v1284_v55, %s9787_s16 }
 0x18a   :  { %1665 = vrot.lane.b32.xlu0 %v1054_v24, %s9788_s17  ;;  %1651 = vrot.lane.b32.xlu1 %v1448_v9, %s9787_s16  ;;  %v1464_v24 = vcombine.high %v1448_v9, %v16207_v15 }
 0x18e   :  { %1669 = vrot.lane.b32.xlu0 %v1218_v36, %s9788_s17  ;;  %1667 = vrot.lane.b32.xlu1 %v1136_v12, %s9788_s17  ;;  %v1045_v36 = vrot.slane %v1031_v34, %v9845_v14  ;;  %v1277_v12 = vcombine.high %v1276_v26, %v16207_v15  ;;  %v1373_v34 = vrot.slane %v1359_v27, %v9845_v14 }
 0x190   :  { %v1291_v56 = vrot.slane %v1277_v12, %v9845_v14  ;;  %v1055_v16 = vcombine.high %v1045_v36, %v16207_v15  ;;  %v1383_v27 = vcombine.high %v1373_v34, %v16207_v15 }
 0x192   :  { %1673 = vrot.lane.b32.xlu0 %v1382_v2, %s9788_s17  ;;  %1671 = vrot.lane.b32.xlu1 %v1300_v25, %s9788_s17  ;;  %v1209_v2 = vrot.slane %v1195_v50, %v9845_v14  ;;  %v1127_v25 = vrot.slane %v1113_v4, %v9845_v14  ;;  %v1046_v50 = vcombine.high %v10424_v40, %v16207_v15 }
 0x193   :  { %v1301_v44 = vcombine.high %v1291_v56, %v16207_v15  ;;  %v1210_v40 = vcombine.high %v10445_v48, %v16207_v15 }
 0x194   :  { %v10517_v1 = vpop.permute.xlu0 %1473  ;;  %v1137_v4 = vcombine.high %v1127_v25, %v16207_v15 }
 0x195   :  { %16222 = vst [vmem:[#allocation77_spill] sm:$0xff] %v10517_v1 }
 0x196   :  { %1689 = vrot.lane.b32.xlu0 %v1045_v36, %s9789_s18  ;;  %1675 = vrot.lane.b32.xlu1 %v1464_v24, %s9788_s17  ;;  %v1219_v24 = vcombine.high %v1209_v2, %v16207_v15 }
 0x198   :  { %v10524_v26 = vpop.permute.xlu1 %1475 }
 0x199   :  { %16223 = vst [vmem:[#allocation78_spill] sm:$0xff] %v10524_v26 }
 0x19a   :  { %1693 = vrot.lane.b32.xlu0 %v1209_v2, %s9789_s18  ;;  %1691 = vrot.lane.b32.xlu1 %v1127_v25, %s9789_s18  ;;  %v1465_v2 = vcombine.high %v1455_v41, %v16207_v15  ;;  %v1053_v25 = vrot.slane %v1046_v50, %v9845_v14 }
 0x19c   :  { %v10526_v3 = vpop.permute.xlu0 %1477 }
 0x19e   :  { %1697 = vrot.lane.b32.xlu0 %v1373_v34, %s9789_s18  ;;  %1695 = vrot.lane.b32.xlu1 %v1291_v56, %s9789_s18  ;;  %v1217_v56 = vrot.slane %v1210_v40, %v9845_v14 }
 0x1a0   :  { %v10531_v55 = vpop.permute.xlu1 %1479 }
 0x1a1   :  { %16224 = vst [vmem:[#allocation79_spill] sm:$0xff] %v10531_v55 }
 0x1a2   :  { %1713 = vrot.lane.b32.xlu0 %v1055_v16, %s9790_s19  ;;  %1699 = vrot.lane.b32.xlu1 %v1455_v41, %s9789_s18  ;;  %v1128_v16 = vcombine.high %v10434_v21, %v16207_v15  ;;  %v1292_v41 = vcombine.high %v10453_v42, %v16207_v15  ;;  %v1374_v21 = vcombine.high %v10463_v53, %v16207_v15 }
 0x1a4   :  { %v10533_v9 = vpop.permute.xlu0 %1481  ;;  %v1135_v34 = vrot.slane %v1128_v16, %v9845_v14 }
 0x1a5   :  { %16225 = vst [vmem:[#allocation80_spill] sm:$0xff] %v10533_v9 }
 0x1a6   :  { %1717 = vrot.lane.b32.xlu0 %v1219_v24, %s9790_s19  ;;  %1715 = vrot.lane.b32.xlu1 %v1137_v4, %s9790_s19 }
 0x1a8   :  { %v10541_v36 = vpop.permute.xlu1 %1483  ;;  %v10543_v12 = vpop.permute.xlu0 %1497 }
 0x1a9   :  { %16226 = vst [vmem:[#allocation81_spill] sm:$0xff] %v10543_v12 }
 0x1aa   :  { %1721 = vrot.lane.b32.xlu0 %v1383_v27, %s9790_s19  ;;  %1719 = vrot.lane.b32.xlu1 %v1301_v44, %s9790_s19  ;;  %v1456_v27 = vcombine.high %v10477_v54, %v16207_v15  ;;  %v1299_v44 = vrot.slane %v1292_v41, %v9845_v14  ;;  %v1056_v54 = vcombine.high %v1053_v25, %v16207_v15 }
 0x1ac   :  { %v10555_v24 = vpop.permute.xlu1 %1499  ;;  %v10557_v4 = vpop.permute.xlu0 %1501  ;;  %v1463_v53 = vrot.slane %v1456_v27, %v9845_v14  ;;  %v1138_v27 = vcombine.high %v1135_v34, %v16207_v15 }
 0x1ad   :  { %16227 = vst [vmem:[#allocation82_spill] sm:$0xff] %v10555_v24 }
 0x1ae   :  { %1737 = vrot.lane.b32.xlu0 %v1053_v25, %s9791_s20  ;;  %1723 = vrot.lane.b32.xlu1 %v1465_v2, %s9790_s19  ;;  %v1381_v2 = vrot.slane %v1374_v21, %v9845_v14  ;;  %v1220_v21 = vcombine.high %v1217_v56, %v16207_v15 }
 0x1b0   :  { %v10567_v50 = vpop.permute.xlu1 %1503  ;;  %v10569_v48 = vpop.permute.xlu0 %1505  ;;  %v1384_v25 = vcombine.high %v1381_v2, %v16207_v15 }
 0x1b1   :  { %16228 = vst [vmem:[#allocation83_spill] sm:$0xff] %v10567_v50  ;;  %16229 = vst [vmem:[#allocation84_spill] sm:$0xff] %v10569_v48 }
 0x1b2   :  { %1741 = vrot.lane.b32.xlu0 %v1217_v56, %s9791_s20  ;;  %1739 = vrot.lane.b32.xlu1 %v1135_v34, %s9791_s20  ;;  %v1466_v56 = vcombine.high %v1463_v53, %v16207_v15 }
 0x1b4   :  { %v10577_v16 = vpop.permute.xlu1 %1507  ;;  %v10579_v42 = vpop.permute.xlu0 %1521 }
 0x1b5   :  { %16230 = vst [vmem:[#allocation85_spill] sm:$0xff] %v10579_v42 }
 0x1b6   :  { %1745 = vrot.lane.b32.xlu0 %v1381_v2, %s9791_s20  ;;  %1743 = vrot.lane.b32.xlu1 %v1299_v44, %s9791_s20  ;;  %v10623_v2 = vld [vmem:[%s16025_s0 + $0x10] sm:$0xff] }
 0x1b8   :  { %v10584_v40 = vpop.permute.xlu0 %1525  ;;  %v10587_v48 = vpop.permute.xlu1 %1523 }
 0x1b9   :  { %16231 = vst [vmem:[#allocation86_spill] sm:$0xff] %v10587_v48 }
 0x1ba   :  { %1761 = vrot.lane.b32.xlu0 %v1056_v54, %s9792_s21  ;;  %1747 = vrot.lane.b32.xlu1 %v1463_v53, %s9791_s20  ;;  %v1302_v54 = vcombine.high %v1299_v44, %v16207_v15 }
 0x1bc   :  { %v10591_v41 = vpop.permute.xlu0 %1529  ;;  %v10597_v42 = vpop.permute.xlu1 %1527 }
 0x1bd   :  { %16232 = vst [vmem:[#allocation87_spill] sm:$0xff] %v10591_v41  ;;  %16233 = vst [vmem:[#allocation88_spill] sm:$0xff] %v10597_v42 }
 0x1be   :  { %1765 = vrot.lane.b32.xlu0 %v1220_v21, %s9792_s21  ;;  %1763 = vrot.lane.b32.xlu1 %v1138_v27, %s9792_s21  ;;  %v10613_v21 = vld [vmem:[%s16025_s0] sm:$0xff] }
 0x1c0   :  { %v10599_v50 = vpop.permute.xlu0 %1545  ;;  %v10608_v34 = vpop.permute.xlu1 %1531 }
 0x1c1   :  { %16234 = vst [vmem:[#allocation89_spill] sm:$0xff] %v10599_v50 }
 0x1c2   :  { %1769 = vrot.lane.b32.xlu0 %v1384_v25, %s9792_s21  ;;  %1767 = vrot.lane.b32.xlu1 %v1302_v54, %s9792_s21  ;;  %v10636_v25 = vld [vmem:[%s16025_s0 + $0x20] sm:$0xff] }
 0x1c4   :  { %v10606_v41 = vpop.permute.xlu0 %1549  ;;  %v10629_v53 = vpop.permute.xlu1 %1547 }
 0x1c5   :  { %16236 = vst [vmem:[#allocation91_spill] sm:$0xff] %v10629_v53 }
 0x1c6   :  { %1857 = vrot.lane.b32.xlu0 %v10613_v21, %s9788_s17  ;;  %1771 = vrot.lane.b32.xlu1 %v1466_v56, %s9792_s21 }
 0x1c8   :  { %v10618_v44 = vpop.permute.xlu0 %1553  ;;  %v10644_v56 = vpop.permute.xlu1 %1551 }
 0x1c9   :  { %16235 = vst [vmem:[#allocation90_spill] sm:$0xff] %v10618_v44  ;;  %16238 = vst [vmem:[#allocation93_spill] sm:$0xff] %v10644_v56 }
 0x1ca   :  { %1861 = vrot.lane.b32.xlu0 %v10623_v2, %s9788_s17  ;;  %1859 = vrot.lane.b32.xlu1 %v10009_v46, %s9788_s17  ;;  %v10649_v46 = vld [vmem:[%s16025_s0 + $0x30] sm:$0xff] }
 0x1cc   :  { %v10631_v27 = vpop.permute.xlu0 %1569  ;;  %v10666_v44 = vpop.permute.xlu1 %1555 }
 0x1cd   :  { %16237 = vst [vmem:[#allocation92_spill] sm:$0xff] %v10631_v27 }
 0x1ce   :  { %1865 = vrot.lane.b32.xlu0 %v10636_v25, %s9788_s17  ;;  %1863 = vrot.lane.b32.xlu1 %v10004_v45, %s9788_s17  ;;  %v10660_v45 = vld [vmem:[%s16025_s0 + $0x40] sm:$0xff] }
 0x1d0   :  { %v10642_v54 = vpop.permute.xlu0 %1573  ;;  %v10681_v53 = vpop.permute.xlu1 %1571 }
 0x1d1   :  { %16241 = vst [vmem:[#allocation96_spill] sm:$0xff] %v10681_v53 }
 0x1d2   :  { %1869 = vrot.lane.b32.xlu0 %v10649_v46, %s9788_s17  ;;  %1867 = vrot.lane.b32.xlu1 %v10027_v52, %s9788_s17  ;;  %v10673_v52 = vld [vmem:[%s16025_s0 + $0x50] sm:$0xff] }
 0x1d4   :  { %v10655_v27 = vpop.permute.xlu0 %1577 }
 0x1d5   :  { %16239 = vst [vmem:[#allocation94_spill] sm:$0xff] %v10655_v27 }
 0x1d6   :  { %1873 = vrot.lane.b32.xlu0 %v10660_v45, %s9788_s17  ;;  %1871 = vrot.lane.b32.xlu1 %v10022_v51, %s9788_s17 }
 0x1d8   :  { %v10668_v56 = vpop.permute.xlu0 %1593 }
 0x1d9   :  { %16240 = vst [vmem:[#allocation95_spill] sm:$0xff] %v10668_v56  ;;  %v10687_v56 = vpop.permute.xlu1 %1575 }
 0x1da   :  { %1877 = vrot.lane.b32.xlu0 %v10673_v52, %s9788_s17  ;;  %1875 = vrot.lane.b32.xlu1 %v10045_v58, %s9788_s17  ;;  %16243 = vst [vmem:[#allocation98_spill] sm:$0xff] %v10687_v56 }
 0x1dc   :  { %v10679_v27 = vpop.permute.xlu0 %1597 }
 0x1dd   :  { %v10693_v48 = vpop.permute.xlu1 %1579 }
 0x1de   :  { %1879 = vrot.lane.b32.xlu1 %v10040_v57, %s9788_s17  ;;  %16245 = vst [vmem:[#allocation100_spill] sm:$0xff] %v10693_v48 }
 0x1e0   :  { %v10685_v51 = vpop.permute.xlu0 %1601 }
 0x1e1   :  { %16242 = vst [vmem:[#allocation97_spill] sm:$0xff] %v10685_v51  ;;  %v10697_v58 = vpop.permute.xlu1 %1595 }
 0x1e2   :  { %16247 = vst [vmem:[#allocation102_spill] sm:$0xff] %v10697_v58 }
 0x1e4   :  { %v10689_v50 = vpop.permute.xlu0 %1617 }
 0x1e5   :  { %16244 = vst [vmem:[#allocation99_spill] sm:$0xff] %v10689_v50  ;;  %v10703_v9 = vpop.permute.xlu1 %1599 }
 0x1e6   :  { %16249 = vst [vmem:[#allocation104_spill] sm:$0xff] %v10703_v9 }
 0x1e8   :  { %v10691_v42 = vpop.permute.xlu0 %1621 }
 0x1e9   :  { %v10707_v51 = vpop.permute.xlu1 %1603 }
 0x1ea   :  { %16251 = vst [vmem:[#allocation106_spill] sm:$0xff] %v10707_v51 }
 0x1ec   :  { %v10695_v24 = vpop.permute.xlu0 %1625 }
 0x1ed   :  { %16246 = vst [vmem:[#allocation101_spill] sm:$0xff] %v10695_v24  ;;  %v10713_v55 = vpop.permute.xlu1 %1619 }
 0x1ee   :  { %16253 = vst [vmem:[#allocation108_spill] sm:$0xff] %v10713_v55 }
 0x1f0   :  { %v10699_v12 = vpop.permute.xlu0 %1641 }
 0x1f1   :  { %16248 = vst [vmem:[#allocation103_spill] sm:$0xff] %v10699_v12  ;;  %v10717_v24 = vpop.permute.xlu1 %1623 }
 0x1f2   :  { %16255 = vst [vmem:[#allocation110_spill] sm:$0xff] %v10717_v24 }
 0x1f4   :  { %v10701_v53 = vpop.permute.xlu0 %1645 }
 0x1f5   :  { %v10723_v1 = vpop.permute.xlu1 %1627 }
 0x1f6   :  { %16258 = vst [vmem:[#allocation113_spill] sm:$0xff] %v10723_v1 }
 0x1f8   :  { %v10705_v57 = vpop.permute.xlu0 %1649 }
 0x1f9   :  { %16250 = vst [vmem:[#allocation105_spill] sm:$0xff] %v10705_v57  ;;  %v10727_v57 = vpop.permute.xlu1 %1643 }
 0x1fa   :  { %16260 = vst [vmem:[#allocation115_spill] sm:$0xff] %v10727_v57 }
 0x1fc   :  { %v10709_v56 = vpop.permute.xlu0 %1665 }
 0x1fd   :  { %16252 = vst [vmem:[#allocation107_spill] sm:$0xff] %v10709_v56  ;;  %v10733_v22 = vpop.permute.xlu1 %1647 }
 0x1fe   :  { %16263 = vst [vmem:[#allocation118_spill] sm:$0xff] %v10733_v22 }
 0x200   :  { %v10711_v50 = vpop.permute.xlu0 %1669 }
 0x204   :  { %v10715_v26 = vpop.permute.xlu0 %1673 }
 0x205   :  { %16254 = vst [vmem:[#allocation109_spill] sm:$0xff] %v10715_v26  ;;  %v10737_v26 = vpop.permute.xlu1 %1651 }
 0x206   :  { %16265 = vst [vmem:[#allocation120_spill] sm:$0xff] %v10737_v26 }
 0x208   :  { %v10719_v58 = vpop.permute.xlu0 %1689 }
 0x209   :  { %16256 = vst [vmem:[#allocation111_spill] sm:$0xff] %v10719_v58  ;;  %v10743_v28 = vpop.permute.xlu1 %1667 }
 0x20a   :  { %16268 = vst [vmem:[#allocation123_spill] sm:$0xff] %v10743_v28 }
 0x20c   :  { %v10721_v12 = vpop.permute.xlu0 %1693 }
 0x20d   :  { %16257 = vst [vmem:[#allocation112_spill] sm:$0xff] %v10721_v12 }
 0x210   :  { %v10725_v9 = vpop.permute.xlu0 %1697 }
 0x211   :  { %16259 = vst [vmem:[#allocation114_spill] sm:$0xff] %v10725_v9  ;;  %v10747_v9 = vpop.permute.xlu1 %1671 }
 0x212   :  { %16270 = vst [vmem:[#allocation125_spill] sm:$0xff] %v10747_v9 }
 0x214   :  { %v10729_v39 = vpop.permute.xlu0 %1713 }
 0x215   :  { %16261 = vst [vmem:[#allocation116_spill] sm:$0xff] %v10729_v39  ;;  %v10753_v8 = vpop.permute.xlu1 %1675 }
 0x216   :  { %16273 = vst [vmem:[#allocation128_spill] sm:$0xff] %v10753_v8 }
 0x218   :  { %v10731_v56 = vpop.permute.xlu0 %1717 }
 0x219   :  { %16262 = vst [vmem:[#allocation117_spill] sm:$0xff] %v10731_v56 }
 0x21c   :  { %v10735_v55 = vpop.permute.xlu0 %1721 }
 0x21d   :  { %16264 = vst [vmem:[#allocation119_spill] sm:$0xff] %v10735_v55  ;;  %v10757_v55 = vpop.permute.xlu1 %1691 }
 0x21e   :  { %16275 = vst [vmem:[#allocation130_spill] sm:$0xff] %v10757_v55 }
 0x220   :  { %v10739_v24 = vpop.permute.xlu0 %1737 }
 0x221   :  { %16266 = vst [vmem:[#allocation121_spill] sm:$0xff] %v10739_v24  ;;  %v10766_v9 = vpop.permute.xlu1 %1695 }
 0x222   :  { %16277 = vst [vmem:[#allocation132_spill] sm:$0xff] %v10766_v9 }
 0x224   :  { %v10741_v58 = vpop.permute.xlu0 %1741 }
 0x225   :  { %16267 = vst [vmem:[#allocation122_spill] sm:$0xff] %v10741_v58  ;;  %v10779_v58 = vpop.permute.xlu1 %1699 }
 0x226   :  { %16279 = vst [vmem:[#allocation134_spill] sm:$0xff] %v10779_v58 }
 0x228   :  { %v10745_v7 = vpop.permute.xlu0 %1745 }
 0x229   :  { %16269 = vst [vmem:[#allocation124_spill] sm:$0xff] %v10745_v7 }
 0x22c   :  { %v10749_v57 = vpop.permute.xlu0 %1761 }
 0x22d   :  { %16271 = vst [vmem:[#allocation126_spill] sm:$0xff] %v10749_v57 }
 0x230   :  { %v10751_v39 = vpop.permute.xlu0 %1765 }
 0x231   :  { %16272 = vst [vmem:[#allocation127_spill] sm:$0xff] %v10751_v39 }
 0x234   :  { %v10755_v22 = vpop.permute.xlu0 %1769 }
 0x235   :  { %16274 = vst [vmem:[#allocation129_spill] sm:$0xff] %v10755_v22 }
 0x238   :  { %v1858_v47 = vpop.permute.xlu0 %1857 }
 0x239   :  { %v1900_v24 = vrot.slane %v1858_v47, %v9842_v13 }
 0x23b   :  { %v10761_v31 = vrot.slane %v1900_v24, %v9845_v14  ;;  %v1908_v6 = vcombine.high %v1900_v24, %v16207_v15 }
 0x23c   :  { %v1862_v28 = vpop.permute.xlu0 %1861 }
 0x23d   :  { %16276 = vst [vmem:[#allocation131_spill] sm:$0xff] %v10761_v31  ;;  %v1982_v7 = vrot.slane %v1862_v28, %v9842_v13  ;;  %v1938_v57 = vcombine.high %v10761_v31, %v16207_v15 }
 0x23f   :  { %v10769_v62 = vrot.slane %v1982_v7, %v9845_v14  ;;  %2391 = vrot.lane.b32.xlu0 %v1938_v57, %s9780_s24 }
 0x240   :  { %v1866_v22 = vpop.permute.xlu0 %1865 }
 0x241   :  { %16278 = vst [vmem:[#allocation133_spill] sm:$0xff] %v10769_v62  ;;  %v2064_v55 = vrot.slane %v1866_v22, %v9842_v13  ;;  %v2020_v5 = vcombine.high %v10769_v62, %v16207_v15 }
 0x243   :  { %v10776_v39 = vrot.slane %v2064_v55, %v9845_v14  ;;  %2393 = vrot.lane.b32.xlu1 %v2020_v5, %s9780_s24  ;;  %v10791_v5 = vpop.permute.xlu1 %1715  ;;  %v2072_v1 = vcombine.high %v2064_v55, %v16207_v15 }
 0x244   :  { %v1870_v31 = vpop.permute.xlu0 %1869  ;;  %16281 = vst [vmem:[#allocation136_spill] sm:$0xff] %v10791_v5  ;;  %v1990_v5 = vcombine.high %v1982_v7, %v16207_v15 }
 0x245   :  { %v2146_v9 = vrot.slane %v1870_v31, %v9842_v13  ;;  %v2102_v56 = vcombine.high %v10776_v39, %v16207_v15 }
 0x247   :  { %v10785_v57 = vrot.slane %v2146_v9, %v9845_v14  ;;  %2395 = vrot.lane.b32.xlu0 %v2102_v56, %s9780_s24 }
 0x248   :  { %v1874_v12 = vpop.permute.xlu0 %1873 }
 0x249   :  { %16280 = vst [vmem:[#allocation135_spill] sm:$0xff] %v10785_v57  ;;  %v2228_v62 = vrot.slane %v1874_v12, %v9842_v13  ;;  %v2184_v63 = vcombine.high %v10785_v57, %v16207_v15  ;;  %v10805_v57 = vpop.permute.xlu1 %1719 }
 0x24a   :  { %16284 = vst [vmem:[#allocation139_spill] sm:$0xff] %v10805_v57  ;;  %v2004_v57 = vrot.slane %v1990_v5, %v9845_v14 }
 0x24b   :  { %v10794_v58 = vrot.slane %v2228_v62, %v9845_v14  ;;  %2397 = vrot.lane.b32.xlu1 %v2184_v63, %s9780_s24  ;;  %v1922_v63 = vrot.slane %v1908_v6, %v9845_v14  ;;  %v2236_v19 = vcombine.high %v2228_v62, %v16207_v15 }
 0x24c   :  { %v1878_v30 = vpop.permute.xlu0 %1877 }
 0x24d   :  { %16282 = vst [vmem:[#allocation137_spill] sm:$0xff] %v10794_v58  ;;  %v2310_v8 = vrot.slane %v1878_v30, %v9842_v13  ;;  %v2266_v56 = vcombine.high %v10794_v58, %v16207_v15  ;;  %v2154_v58 = vcombine.high %v2146_v9, %v16207_v15  ;;  %v10818_v7 = vpop.permute.xlu1 %1723  ;;  %v2250_v6 = vrot.slane %v2236_v19, %v9845_v14 }
 0x24e   :  { %16285 = vst [vmem:[#allocation140_spill] sm:$0xff] %v10818_v7  ;;  %v1939_v9 = vcombine.high %v1922_v63, %v16207_v15 }
 0x24f   :  { %v10802_v26 = vrot.slane %v2310_v8, %v9845_v14  ;;  %2399 = vrot.lane.b32.xlu0 %v2266_v56, %s9780_s24  ;;  %v2086_v56 = vrot.slane %v2072_v1, %v9845_v14  ;;  %v2318_v55 = vcombine.high %v2310_v8, %v16207_v15  ;;  %v1893_v8 = vcombine.high %v1858_v47, %v16207_v15 }
 0x251   :  { %16283 = vst [vmem:[#allocation138_spill] sm:$0xff] %v10802_v26  ;;  %v2348_v24 = vcombine.high %v10802_v26, %v16207_v15  ;;  %v2332_v62 = vrot.slane %v2318_v55, %v9845_v14  ;;  %v10828_v1 = vpop.permute.xlu1 %1739  ;;  %v2103_v19 = vcombine.high %v2086_v56, %v16207_v15  ;;  %v1907_v55 = vrot.slane %v1893_v8, %v9842_v13 }
 0x252   :  { %16286 = vst [vmem:[#allocation141_spill] sm:$0xff] %v10828_v1  ;;  %v2267_v1 = vcombine.high %v2250_v6, %v16207_v15 }
 0x253   :  { %2415 = vrot.lane.b32.xlu0 %v1922_v63, %s9781_s25  ;;  %2401 = vrot.lane.b32.xlu1 %v2348_v24, %s9780_s24  ;;  %v2168_v24 = vrot.slane %v2154_v58, %v9845_v14  ;;  %v2021_v58 = vcombine.high %v2004_v57, %v16207_v15  ;;  %v1975_v63 = vcombine.high %v1862_v28, %v16207_v15 }
 0x255   :  { %v10836_v5 = vpop.permute.xlu1 %1743  ;;  %v2185_v47 = vcombine.high %v2168_v24, %v16207_v15  ;;  %v1989_v8 = vrot.slane %v1975_v63, %v9842_v13 }
 0x256   :  { %16287 = vst [vmem:[#allocation142_spill] sm:$0xff] %v10836_v5  ;;  %v1923_v5 = vcombine.high %v1907_v55, %v16207_v15 }
 0x257   :  { %2419 = vrot.lane.b32.xlu0 %v2086_v56, %s9781_s25  ;;  %2417 = vrot.lane.b32.xlu1 %v2004_v57, %s9781_s25  ;;  %v2349_v57 = vcombine.high %v2332_v62, %v16207_v15  ;;  %v2012_v63 = vrot.slane %v1989_v8, %v9845_v14 }
 0x259   :  { %v10848_v56 = vpop.permute.xlu1 %1747 }
 0x25a   :  { %16288 = vst [vmem:[#allocation143_spill] sm:$0xff] %v10848_v56 }
 0x25b   :  { %2423 = vrot.lane.b32.xlu0 %v2250_v6, %s9781_s25  ;;  %2421 = vrot.lane.b32.xlu1 %v2168_v24, %s9781_s25  ;;  %v2221_v6 = vcombine.high %v1874_v12, %v16207_v15  ;;  %v2303_v24 = vcombine.high %v1878_v30, %v16207_v15 }
 0x25f   :  { %2439 = vrot.lane.b32.xlu0 %v1939_v9, %s9782_s26  ;;  %2425 = vrot.lane.b32.xlu1 %v2332_v62, %s9781_s25  ;;  %v2057_v9 = vcombine.high %v1866_v22, %v16207_v15  ;;  %v2139_v22 = vcombine.high %v1870_v31, %v16207_v15  ;;  %v2317_v31 = vrot.slane %v2303_v24, %v9842_v13 }
 0x260   :  { %v2022_v24 = vcombine.high %v2012_v63, %v16207_v15 }
 0x261   :  { %v2071_v28 = vrot.slane %v2057_v9, %v9842_v13  ;;  %v2153_v62 = vrot.slane %v2139_v22, %v9842_v13  ;;  %v2340_v9 = vrot.slane %v2317_v31, %v9845_v14 }
 0x263   :  { %2443 = vrot.lane.b32.xlu0 %v2103_v19, %s9782_s26  ;;  %2441 = vrot.lane.b32.xlu1 %v2021_v58, %s9782_s26  ;;  %v1930_v19 = vrot.slane %v1907_v55, %v9845_v14  ;;  %v2094_v58 = vrot.slane %v2071_v28, %v9845_v14  ;;  %v2176_v12 = vrot.slane %v2153_v62, %v9845_v14 }
 0x265   :  { %v1940_v22 = vcombine.high %v1930_v19, %v16207_v15 }
 0x267   :  { %2447 = vrot.lane.b32.xlu0 %v2267_v1, %s9782_s26  ;;  %2445 = vrot.lane.b32.xlu1 %v2185_v47, %s9782_s26  ;;  %v2235_v1 = vrot.slane %v2221_v6, %v9842_v13  ;;  %v10862_v47 = vpop.permute.xlu1 %1763  ;;  %v2104_v6 = vcombine.high %v2094_v58, %v16207_v15 }
 0x268   :  { %16289 = vst [vmem:[#allocation144_spill] sm:$0xff] %v10862_v47 }
 0x269   :  { %v2258_v30 = vrot.slane %v2235_v1, %v9845_v14 }
 0x26b   :  { %2463 = vrot.lane.b32.xlu0 %v1930_v19, %s9783_s27  ;;  %2449 = vrot.lane.b32.xlu1 %v2349_v57, %s9782_s26  ;;  %v10872_v57 = vpop.permute.xlu1 %1767  ;;  %v2186_v19 = vcombine.high %v2176_v12, %v16207_v15 }
 0x26c   :  { %16290 = vst [vmem:[#allocation145_spill] sm:$0xff] %v10872_v57  ;;  %v2268_v57 = vcombine.high %v2258_v30, %v16207_v15 }
 0x26f   :  { %2467 = vrot.lane.b32.xlu0 %v2094_v58, %s9783_s27  ;;  %2465 = vrot.lane.b32.xlu1 %v2012_v63, %s9783_s27  ;;  %v10879_v47 = vpop.permute.xlu1 %1771  ;;  %v2350_v58 = vcombine.high %v2340_v9, %v16207_v15  ;;  %v2005_v63 = vcombine.high %v1989_v8, %v16207_v15  ;;  %v2333_v8 = vcombine.high %v2317_v31, %v16207_v15 }
 0x270   :  { %16291 = vst [vmem:[#allocation146_spill] sm:$0xff] %v10879_v47 }
 0x273   :  { %2471 = vrot.lane.b32.xlu0 %v2258_v30, %s9783_s27  ;;  %2469 = vrot.lane.b32.xlu1 %v2176_v12, %s9783_s27  ;;  %v10886_v56 = vpop.permute.xlu1 %1859  ;;  %v2169_v30 = vcombine.high %v2153_v62, %v16207_v15  ;;  %v2251_v12 = vcombine.high %v2235_v1, %v16207_v15  ;;  %v2347_v62 = vrot.slane %v2333_v8, %v9845_v14 }
 0x277   :  { %2487 = vrot.lane.b32.xlu0 %v1940_v22, %s9784_s28  ;;  %2473 = vrot.lane.b32.xlu1 %v2340_v9, %s9783_s27  ;;  %v2087_v22 = vcombine.high %v2071_v28, %v16207_v15  ;;  %v10896_v55 = vpop.permute.xlu1 %1863  ;;  %v2019_v9 = vrot.slane %v2005_v63, %v9845_v14  ;;  %v2183_v28 = vrot.slane %v2169_v30, %v9845_v14 }
 0x278   :  { %v1948_v63 = vrot.slane %v10886_v56, %v9842_v13 }
 0x27a   :  { %v1949_v51 = vcombine.high %v1948_v63, %v16207_v15 }
 0x27b   :  { %2491 = vrot.lane.b32.xlu0 %v2104_v6, %s9784_s28  ;;  %2489 = vrot.lane.b32.xlu1 %v2022_v24, %s9784_s28  ;;  %v1937_v6 = vrot.slane %v1923_v5, %v9845_v14  ;;  %v2265_v5 = vrot.slane %v2251_v12, %v9845_v14  ;;  %v10907_v24 = vpop.permute.xlu1 %1867  ;;  %v2351_v12 = vcombine.high %v2347_v62, %v16207_v15 }
 0x27c   :  { %v2112_v8 = vrot.slane %v10907_v24, %v9842_v13 }
 0x27d   :  { %v1941_v1 = vcombine.high %v1937_v6, %v16207_v15 }
 0x27f   :  { %2495 = vrot.lane.b32.xlu0 %v2268_v57, %s9784_s28  ;;  %2493 = vrot.lane.b32.xlu1 %v2186_v19, %s9784_s28  ;;  %v2101_v57 = vrot.slane %v2087_v22, %v9845_v14  ;;  %v10915_v31 = vpop.permute.xlu1 %1871  ;;  %v2269_v22 = vcombine.high %v2265_v5, %v16207_v15 }
 0x281   :  { %v2105_v19 = vcombine.high %v2101_v57, %v16207_v15 }
 0x283   :  { %2511 = vrot.lane.b32.xlu0 %v1937_v6, %s9785_s29  ;;  %2497 = vrot.lane.b32.xlu1 %v2350_v58, %s9784_s28  ;;  %v2023_v58 = vcombine.high %v2019_v9, %v16207_v15  ;;  %v2187_v6 = vcombine.high %v2183_v28, %v16207_v15  ;;  %v10925_v30 = vpop.permute.xlu1 %1875 }
 0x287   :  { %2515 = vrot.lane.b32.xlu0 %v2101_v57, %s9785_s29  ;;  %2513 = vrot.lane.b32.xlu1 %v2019_v9, %s9785_s29  ;;  %v1956_v57 = vrot.slane %v1948_v63, %v9845_v14  ;;  %v2030_v9 = vrot.slane %v10896_v55, %v9842_v13 }
 0x289   :  { %v1972_v47 = vcombine.high %v1956_v57, %v16207_v15 }
 0x28b   :  { %2519 = vrot.lane.b32.xlu0 %v2265_v5, %s9785_s29  ;;  %2517 = vrot.lane.b32.xlu1 %v2183_v28, %s9785_s29  ;;  %v2276_v5 = vrot.slane %v10925_v30, %v9842_v13  ;;  %v10939_v28 = vpop.permute.xlu1 %1879 }
 0x28d   :  { %v2277_v63 = vcombine.high %v2276_v5, %v16207_v15 }
 0x28f   :  { %2535 = vrot.lane.b32.xlu0 %v1941_v1, %s9786_s30  ;;  %2521 = vrot.lane.b32.xlu1 %v2347_v62, %s9785_s29  ;;  %v2038_v1 = vrot.slane %v2030_v9, %v9845_v14  ;;  %v2120_v62 = vrot.slane %v2112_v8, %v9845_v14 }
 0x291   :  { %v2136_v7 = vcombine.high %v2120_v62, %v16207_v15  ;;  %v2054_v26 = vcombine.high %v2038_v1, %v16207_v15 }
 0x293   :  { %2539 = vrot.lane.b32.xlu0 %v2105_v19, %s9786_s30  ;;  %2537 = vrot.lane.b32.xlu1 %v2023_v58, %s9786_s30  ;;  %v2194_v19 = vrot.slane %v10915_v31, %v9842_v13  ;;  %v2284_v58 = vrot.slane %v2276_v5, %v9845_v14 }
 0x295   :  { %v2300_v0 = vcombine.high %v2284_v58, %v16207_v15 }
 0x297   :  { %2543 = vrot.lane.b32.xlu0 %v2269_v22, %s9786_s30  ;;  %2541 = vrot.lane.b32.xlu1 %v2187_v6, %s9786_s30  ;;  %v2358_v22 = vrot.slane %v10939_v28, %v9842_v13  ;;  %v2202_v6 = vrot.slane %v2194_v19, %v9845_v14 }
 0x299   :  { %v2218_v48 = vcombine.high %v2202_v6, %v16207_v15 }
 0x29b   :  { %2559 = vrot.lane.b32.xlu0 %v1956_v57, %s9787_s16  ;;  %2545 = vrot.lane.b32.xlu1 %v2351_v12, %s9786_s30  ;;  %v2366_v12 = vrot.slane %v2358_v22, %v9845_v14  ;;  %v2031_v57 = vcombine.high %v2030_v9, %v16207_v15 }
 0x29f   :  { %2563 = vrot.lane.b32.xlu0 %v2120_v62, %s9787_s16  ;;  %2561 = vrot.lane.b32.xlu1 %v2038_v1, %s9787_s16  ;;  %v2113_v1 = vcombine.high %v2112_v8, %v16207_v15  ;;  %v2359_v62 = vcombine.high %v2358_v22, %v16207_v15 }
 0x2a1   :  { %v2373_v5 = vrot.slane %v2359_v62, %v9845_v14 }
 0x2a3   :  { %2567 = vrot.lane.b32.xlu0 %v2284_v58, %s9787_s16  ;;  %2565 = vrot.lane.b32.xlu1 %v2202_v6, %s9787_s16 }
 0x2a7   :  { %2583 = vrot.lane.b32.xlu0 %v1972_v47, %s9788_s17  ;;  %2569 = vrot.lane.b32.xlu1 %v2366_v12, %s9787_s16  ;;  %v2382_v47 = vcombine.high %v2366_v12, %v16207_v15 }
 0x2ab   :  { %2587 = vrot.lane.b32.xlu0 %v2136_v7, %s9788_s17  ;;  %2585 = vrot.lane.b32.xlu1 %v2054_v26, %s9788_s17  ;;  %v1963_v7 = vrot.slane %v1949_v51, %v9845_v14  ;;  %v2195_v26 = vcombine.high %v2194_v19, %v16207_v15  ;;  %v2291_v51 = vrot.slane %v2277_v63, %v9845_v14 }
 0x2ad   :  { %v2209_v8 = vrot.slane %v2195_v26, %v9845_v14  ;;  %v1973_v22 = vcombine.high %v1963_v7, %v16207_v15  ;;  %v2301_v63 = vcombine.high %v2291_v51, %v16207_v15 }
 0x2af   :  { %2591 = vrot.lane.b32.xlu0 %v2300_v0, %s9788_s17  ;;  %2589 = vrot.lane.b32.xlu1 %v2218_v48, %s9788_s17  ;;  %v2127_v0 = vrot.slane %v2113_v1, %v9845_v14  ;;  %v2045_v48 = vrot.slane %v2031_v57, %v9845_v14  ;;  %v1964_v1 = vcombine.high %v10886_v56, %v16207_v15 }
 0x2b0   :  { %v2219_v62 = vcombine.high %v2209_v8, %v16207_v15  ;;  %v2128_v56 = vcombine.high %v10907_v24, %v16207_v15 }
 0x2b1   :  { %v10979_v9 = vpop.permute.xlu0 %2391  ;;  %v2055_v57 = vcombine.high %v2045_v48, %v16207_v15 }
 0x2b2   :  { %16292 = vst [vmem:[#allocation147_spill] sm:$0xff] %v10979_v9 }
 0x2b3   :  { %2607 = vrot.lane.b32.xlu0 %v1963_v7, %s9789_s18  ;;  %2593 = vrot.lane.b32.xlu1 %v2382_v47, %s9788_s17  ;;  %v2137_v47 = vcombine.high %v2127_v0, %v16207_v15 }
 0x2b5   :  { %v10986_v19 = vpop.permute.xlu1 %2393 }
 0x2b6   :  { %16293 = vst [vmem:[#allocation148_spill] sm:$0xff] %v10986_v19 }
 0x2b7   :  { %2611 = vrot.lane.b32.xlu0 %v2127_v0, %s9789_s18  ;;  %2609 = vrot.lane.b32.xlu1 %v2045_v48, %s9789_s18  ;;  %v2383_v0 = vcombine.high %v2373_v5, %v16207_v15  ;;  %v1971_v48 = vrot.slane %v1964_v1, %v9845_v14 }
 0x2b9   :  { %v10988_v58 = vpop.permute.xlu0 %2395 }
 0x2bb   :  { %2615 = vrot.lane.b32.xlu0 %v2291_v51, %s9789_s18  ;;  %2613 = vrot.lane.b32.xlu1 %v2209_v8, %s9789_s18  ;;  %v2135_v8 = vrot.slane %v2128_v56, %v9845_v14 }
 0x2bd   :  { %v10993_v6 = vpop.permute.xlu1 %2397 }
 0x2be   :  { %16294 = vst [vmem:[#allocation149_spill] sm:$0xff] %v10993_v6 }
 0x2bf   :  { %2631 = vrot.lane.b32.xlu0 %v1973_v22, %s9790_s19  ;;  %2617 = vrot.lane.b32.xlu1 %v2373_v5, %s9789_s18  ;;  %v2046_v22 = vcombine.high %v10896_v55, %v16207_v15  ;;  %v2210_v5 = vcombine.high %v10915_v31, %v16207_v15  ;;  %v2292_v55 = vcombine.high %v10925_v30, %v16207_v15  ;;  %v2776_v31 = vrot.slane %v10613_v21, 1 }
 0x2c0   :  { %v2782_v21 = vrot.slane %v10636_v25, 1  ;;  %v9762_v25 = vld [vmem:[%s16025_s0 + $0x48] sm:$0xff] }
 0x2c1   :  { %v10995_v12 = vpop.permute.xlu0 %2399  ;;  %v2053_v51 = vrot.slane %v2046_v22, %v9845_v14  ;;  %v2217_v30 = vrot.slane %v2210_v5, %v9845_v14  ;;  %v2299_v22 = vrot.slane %v2292_v55, %v9845_v14  ;;  %v9761_v5 = vld [vmem:[%s16025_s0 + $0x18] sm:$0xff] }
 0x2c2   :  { %16295 = vst [vmem:[#allocation150_spill] sm:$0xff] %v10995_v12  ;;  %v11061_v55 = vrot.slane %v9761_v5, 1  ;;  %v11076_v12 = vrot.slane %v9762_v25, 1  ;;  %v2788_v5 = vrot.slane %v10660_v45, 1  ;;  %v2785_v25 = vrot.slane %v10649_v46, 1 }
 0x2c3   :  { %2635 = vrot.lane.b32.xlu0 %v2137_v47, %s9790_s19  ;;  %2633 = vrot.lane.b32.xlu1 %v2055_v57, %s9790_s19  ;;  %v2056_v45 = vcombine.high %v2053_v51, %v16207_v15 }
 0x2c4   :  { %16303 = vst [vmem:[#allocation158_spill] sm:$0xff] %v11061_v55  ;;  %16305 = vst [vmem:[#allocation160_spill] sm:$0xff] %v11076_v12 }
 0x2c5   :  { %v11003_v7 = vpop.permute.xlu1 %2401  ;;  %v11005_v26 = vpop.permute.xlu0 %2415 }
 0x2c6   :  { %16296 = vst [vmem:[#allocation151_spill] sm:$0xff] %v11005_v26  ;;  %v1974_v26 = vcombine.high %v1971_v48, %v16207_v15 }
 0x2c7   :  { %2639 = vrot.lane.b32.xlu0 %v2301_v63, %s9790_s19  ;;  %2637 = vrot.lane.b32.xlu1 %v2219_v62, %s9790_s19  ;;  %v2374_v63 = vcombine.high %v10939_v28, %v16207_v15  ;;  %v9759_v62 = vld [vmem:[%s16025_s0 + $0x8] sm:$0xff] }
 0x2c8   :  { %v9760_v28 = vld [vmem:[%s16025_s0 + $0x28] sm:$0xff] }
 0x2c9   :  { %v11017_v47 = vpop.permute.xlu1 %2417  ;;  %v11019_v57 = vpop.permute.xlu0 %2419 }
 0x2ca   :  { %16297 = vst [vmem:[#allocation152_spill] sm:$0xff] %v11017_v47 }
 0x2cb   :  { %2655 = vrot.lane.b32.xlu0 %v1971_v48, %s9791_s20  ;;  %2641 = vrot.lane.b32.xlu1 %v2383_v0, %s9790_s19  ;;  %v11040_v0 = vrot.slane %v9759_v62, 1  ;;  %v2381_v62 = vrot.slane %v2374_v63, %v9845_v14  ;;  %v9763_v48 = vld [vmem:[%s16025_s0 + $0x38] sm:$0xff] }
 0x2cd   :  { %v11029_v1 = vpop.permute.xlu1 %2421  ;;  %v11031_v24 = vpop.permute.xlu0 %2423  ;;  %16300 = vst [vmem:[#allocation155_spill] sm:$0xff] %v11040_v0 }
 0x2ce   :  { %16298 = vst [vmem:[#allocation153_spill] sm:$0xff] %v11029_v1  ;;  %16299 = vst [vmem:[#allocation154_spill] sm:$0xff] %v11031_v24  ;;  %v11052_v1 = vrot.slane %v9760_v28, 1  ;;  %v2779_v28 = vrot.slane %v10623_v2, 1 }
 0x2cf   :  { %2659 = vrot.lane.b32.xlu0 %v2135_v8, %s9791_s20  ;;  %2657 = vrot.lane.b32.xlu1 %v2053_v51, %s9791_s20  ;;  %v9764_v51 = vld [vmem:[%s16025_s0 + $0x58] sm:$0xff] }
 0x2d0   :  { %16302 = vst [vmem:[#allocation157_spill] sm:$0xff] %v11052_v1  ;;  %v11084_v2 = vsel %vm16096_vm0, %v2782_v21, %v11052_v1  ;;  %v2138_v21 = vcombine.high %v2135_v8, %v16207_v15  ;;  %v11119_v8 = vrot.slane %v9764_v51, 1  ;;  %v2302_v1 = vcombine.high %v2299_v22, %v16207_v15 }
 0x2d1   :  { %v11045_v56 = vpop.permute.xlu1 %2425  ;;  %v11047_v24 = vpop.permute.xlu0 %2439  ;;  %v2977_v9 = vrot.slane %v11084_v2, %v9842_v13 }
 0x2d2   :  { %16301 = vst [vmem:[#allocation156_spill] sm:$0xff] %v11047_v24  ;;  %v11065_v24 = vsel %vm16096_vm0, %v2776_v31, %v11040_v0  ;;  %16312 = vst [vmem:[#allocation167_spill] sm:$0xff] %v11119_v8 }
 0x2d3   :  { %2663 = vrot.lane.b32.xlu0 %v2299_v22, %s9791_s20  ;;  %2661 = vrot.lane.b32.xlu1 %v2217_v30, %s9791_s20  ;;  %v2813_v31 = vrot.slane %v11065_v24, %v9842_v13 }
 0x2d5   :  { %v11068_v47 = vpop.permute.xlu1 %2441  ;;  %v11070_v63 = vpop.permute.xlu0 %2443 }
 0x2d6   :  { %16304 = vst [vmem:[#allocation159_spill] sm:$0xff] %v11068_v47  ;;  %v11090_v47 = vrot.slane %v9763_v48, 1  ;;  %v11114_v48 = vsel %vm16096_vm0, %v2788_v5, %v11076_v12  ;;  %v2220_v5 = vcombine.high %v2217_v30, %v16207_v15  ;;  %v2384_v12 = vcombine.high %v2381_v62, %v16207_v15 }
 0x2d7   :  { %2679 = vrot.lane.b32.xlu0 %v1974_v26, %s9792_s21  ;;  %2665 = vrot.lane.b32.xlu1 %v2381_v62, %s9791_s20  ;;  %v11094_v26 = vsel %vm16096_vm0, %v2779_v28, %v11061_v55  ;;  %v11108_v28 = vrot.slane %v2813_v31, %v9845_v14  ;;  %16311 = vst [vmem:[#allocation166_spill] sm:$0xff] %v11114_v48 }
 0x2d8   :  { %16306 = vst [vmem:[#allocation161_spill] sm:$0xff] %v11090_v47  ;;  %16307 = vst [vmem:[#allocation162_spill] sm:$0xff] %v11094_v26  ;;  %v2895_v46 = vrot.slane %v11094_v26, %v9842_v13  ;;  %v11134_v55 = vrot.slane %v2977_v9, %v9845_v14  ;;  %v3141_v51 = vrot.slane %v11114_v48, %v9842_v13 }
 0x2d9   :  { %v11097_v6 = vpop.permute.xlu1 %2445  ;;  %v11099_v19 = vpop.permute.xlu0 %2447  ;;  %16310 = vst [vmem:[#allocation165_spill] sm:$0xff] %v11108_v28 }
 0x2da   :  { %16308 = vst [vmem:[#allocation163_spill] sm:$0xff] %v11097_v6  ;;  %16309 = vst [vmem:[#allocation164_spill] sm:$0xff] %v11099_v19 }
 0x2db   :  { %2683 = vrot.lane.b32.xlu0 %v2138_v21, %s9792_s21  ;;  %2681 = vrot.lane.b32.xlu1 %v2056_v45, %s9792_s21  ;;  %v11123_v21 = vsel %vm16096_vm0, %v2785_v25, %v11090_v47  ;;  %v2791_v45 = vrot.slane %v10673_v52, 1  ;;  %16315 = vst [vmem:[#allocation170_spill] sm:$0xff] %v11134_v55  ;;  %v2851_v52 = vcombine.high %v11108_v28, %v16207_v15 }
 0x2dc   :  { %16313 = vst [vmem:[#allocation168_spill] sm:$0xff] %v11123_v21  ;;  %v11143_v25 = vrot.slane %v2895_v46, %v9845_v14  ;;  %v3059_v30 = vrot.slane %v11123_v21, %v9842_v13 }
 0x2dd   :  { %v11126_v19 = vpop.permute.xlu1 %2449  ;;  %v11128_v6 = vpop.permute.xlu0 %2463  ;;  %v11149_v22 = vsel %vm16096_vm0, %v2791_v45, %v11119_v8  ;;  %vm16145_vm0 = vcmask 1042432  }
 0x2de   :  { %16314 = vst [vmem:[#allocation169_spill] sm:$0xff] %v11128_v6  ;;  %16316 = vst [vmem:[#allocation171_spill] sm:$0xff] %v11143_v25  ;;  %v2933_v28 = vcombine.high %v11143_v25, %v16207_v15  ;;  %v11165_v45 = vrot.slane %v3059_v30, %v9845_v14 }
 0x2df   :  { %2687 = vrot.lane.b32.xlu0 %v2302_v1, %s9792_s21  ;;  %2685 = vrot.lane.b32.xlu1 %v2220_v5, %s9792_s21  ;;  %16317 = vst [vmem:[#allocation172_spill] sm:$0xff] %v11149_v22  ;;  %v3015_v1 = vcombine.high %v11134_v55, %v16207_v15  ;;  %v11158_v5 = vrot.slane %v3141_v51, %v9845_v14 }
 0x2e0   :  { %16320 = vst [vmem:[#allocation175_spill] sm:$0xff] %v11165_v45 }
 0x2e1   :  { %v11151_v62 = vpop.permute.xlu1 %2465  ;;  %v11153_v6 = vpop.permute.xlu0 %2467  ;;  %16319 = vst [vmem:[#allocation174_spill] sm:$0xff] %v11158_v5  ;;  %v3179_v55 = vcombine.high %v11158_v5, %v16207_v15 }
 0x2e2   :  { %16318 = vst [vmem:[#allocation173_spill] sm:$0xff] %v11151_v62  ;;  %v3223_v62 = vrot.slane %v11149_v22, %v9842_v13 }
 0x2e3   :  { %3304 = vrot.lane.b32.xlu0 %v2851_v52, %s9780_s24  ;;  %2689 = vrot.lane.b32.xlu1 %v2384_v12, %s9792_s21  ;;  %v3097_v12 = vcombine.high %v11165_v45, %v16207_v15  ;;  %v2821_v52 = vcombine.high %v2813_v31, %v16207_v15  ;;  %v2903_v31 = vcombine.high %v2895_v46, %v16207_v15 }
 0x2e4   :  { %v11181_v25 = vrot.slane %v3223_v62, %v9845_v14 }
 0x2e5   :  { %v11169_v8 = vpop.permute.xlu1 %2469  ;;  %v11171_v47 = vpop.permute.xlu0 %2471 }
 0x2e6   :  { %16321 = vst [vmem:[#allocation176_spill] sm:$0xff] %v11169_v8  ;;  %16322 = vst [vmem:[#allocation177_spill] sm:$0xff] %v11171_v47  ;;  %v2985_v47 = vcombine.high %v2977_v9, %v16207_v15  ;;  %v2917_v9 = vrot.slane %v2903_v31, %v9845_v14 }
 0x2e7   :  { %3308 = vrot.lane.b32.xlu0 %v3015_v1, %s9780_s24  ;;  %3306 = vrot.lane.b32.xlu1 %v2933_v28, %s9780_s24  ;;  %16323 = vst [vmem:[#allocation178_spill] sm:$0xff] %v11181_v25  ;;  %v2835_v28 = vrot.slane %v2821_v52, %v9845_v14  ;;  %v3261_v1 = vcombine.high %v11181_v25, %v16207_v15 }
 0x2e9   :  { %v11183_v0 = vpop.permute.xlu1 %2473  ;;  %v11185_v8 = vpop.permute.xlu0 %2487 }
 0x2ea   :  { %16324 = vst [vmem:[#allocation179_spill] sm:$0xff] %v11183_v0  ;;  %16325 = vst [vmem:[#allocation180_spill] sm:$0xff] %v11185_v8  ;;  %v2999_v0 = vrot.slane %v2985_v47, %v9845_v14 }
 0x2eb   :  { %3312 = vrot.lane.b32.xlu0 %v3179_v55, %s9780_s24  ;;  %3310 = vrot.lane.b32.xlu1 %v3097_v12, %s9780_s24  ;;  %v3149_v55 = vcombine.high %v3141_v51, %v16207_v15  ;;  %v3067_v12 = vcombine.high %v3059_v30, %v16207_v15  ;;  %v2852_v51 = vcombine.high %v2835_v28, %v16207_v15 }
 0x2ed   :  { %v11194_v5 = vpop.permute.xlu1 %2489  ;;  %v11196_v45 = vpop.permute.xlu0 %2491  ;;  %v3163_v47 = vrot.slane %v3149_v55, %v9845_v14  ;;  %v3081_v46 = vrot.slane %v3067_v12, %v9845_v14  ;;  %v2934_v55 = vcombine.high %v2917_v9, %v16207_v15  ;;  %v2806_v12 = vcombine.high %v11065_v24, %v16207_v15 }
 0x2ee   :  { %16326 = vst [vmem:[#allocation181_spill] sm:$0xff] %v11194_v5 }
 0x2ef   :  { %3328 = vrot.lane.b32.xlu0 %v2835_v28, %s9781_s25  ;;  %3314 = vrot.lane.b32.xlu1 %v3261_v1, %s9780_s24  ;;  %v3231_v1 = vcombine.high %v3223_v62, %v16207_v15  ;;  %v3016_v62 = vcombine.high %v2999_v0, %v16207_v15 }
 0x2f1   :  { %v11204_v52 = vpop.permute.xlu1 %2493  ;;  %v11206_v8 = vpop.permute.xlu0 %2495  ;;  %v3245_v30 = vrot.slane %v3231_v1, %v9845_v14  ;;  %v2888_v1 = vcombine.high %v11094_v26, %v16207_v15 }
 0x2f2   :  { %16327 = vst [vmem:[#allocation182_spill] sm:$0xff] %v11204_v52  ;;  %16328 = vst [vmem:[#allocation183_spill] sm:$0xff] %v11206_v8 }
 0x2f3   :  { %3332 = vrot.lane.b32.xlu0 %v2999_v0, %s9781_s25  ;;  %3330 = vrot.lane.b32.xlu1 %v2917_v9, %s9781_s25  ;;  %v3180_v0 = vcombine.high %v3163_v47, %v16207_v15  ;;  %v3098_v9 = vcombine.high %v3081_v46, %v16207_v15  ;;  %v3262_v25 = vcombine.high %v3245_v30, %v16207_v15 }
 0x2f4   :  { %v11252_v26 = vrot.slane %v2888_v1, %v9842_v13 }
 0x2f5   :  { %v11213_v5 = vpop.permute.xlu1 %2497  ;;  %v11215_v31 = vpop.permute.xlu0 %2511 }
 0x2f6   :  { %16329 = vst [vmem:[#allocation184_spill] sm:$0xff] %v11215_v31 }
 0x2f7   :  { %3336 = vrot.lane.b32.xlu0 %v3163_v47, %s9781_s25  ;;  %3334 = vrot.lane.b32.xlu1 %v3081_v46, %s9781_s25  ;;  %v3052_v46 = vcombine.high %v11123_v21, %v16207_v15 }
 0x2f9   :  { %v11221_v8 = vpop.permute.xlu1 %2513  ;;  %v11223_v52 = vpop.permute.xlu0 %2515 }
 0x2fa   :  { %16330 = vst [vmem:[#allocation185_spill] sm:$0xff] %v11221_v8  ;;  %v2970_v8 = vcombine.high %v11084_v2, %v16207_v15 }
 0x2fb   :  { %3352 = vrot.lane.b32.xlu0 %v2852_v51, %s9782_s26  ;;  %3338 = vrot.lane.b32.xlu1 %v3245_v30, %s9781_s25  ;;  %v11244_v51 = vrot.slane %v2806_v12, %v9842_v13 }
 0x2fd   :  { %v11231_v31 = vpop.permute.xlu1 %2517  ;;  %v11233_v28 = vpop.permute.xlu0 %2519  ;;  %v2843_v47 = vrot.slane %v11244_v51, %v9845_v14 }
 0x2fe   :  { %16331 = vst [vmem:[#allocation186_spill] sm:$0xff] %v11231_v31  ;;  %16332 = vst [vmem:[#allocation187_spill] sm:$0xff] %v11233_v28 }
 0x2ff   :  { %3356 = vrot.lane.b32.xlu0 %v3016_v62, %s9782_s26  ;;  %3354 = vrot.lane.b32.xlu1 %v2934_v55, %s9782_s26  ;;  %v11255_v62 = vrot.slane %v2970_v8, %v9842_v13  ;;  %v3134_v55 = vcombine.high %v11114_v48, %v16207_v15  ;;  %v2925_v8 = vrot.slane %v11252_v26, %v9845_v14 }
 0x301   :  { %v11246_v31 = vpop.permute.xlu1 %2521  ;;  %v11248_v28 = vpop.permute.xlu0 %2535  ;;  %v3007_v1 = vrot.slane %v11255_v62, %v9845_v14 }
 0x302   :  { %16333 = vst [vmem:[#allocation188_spill] sm:$0xff] %v11248_v28  ;;  %v842_v28 = vsel %vm836_vm1, %v9886_v29, %v10105_v43  ;;  %v839_v43 = vsel %vm836_vm1, %v9870_v23, %v10089_v35  ;;  %v1781_v35 = vsel %vm836_vm1, %v10314_v33, %v10526_v3  ;;  %v2935_v3 = vcombine.high %v2925_v8, %v16207_v15 }
 0x303   :  { %3360 = vrot.lane.b32.xlu0 %v3180_v0, %s9782_s26  ;;  %3358 = vrot.lane.b32.xlu1 %v3098_v9, %s9782_s26  ;;  %v11276_v0 = vrot.slane %v3052_v46, %v9842_v13  ;;  %v11279_v9 = vrot.slane %v3134_v55, %v9842_v13  ;;  %v849_v29 = vsel %vm843_vm2, %v842_v28, %v10149_v17 }
 0x304   :  { %v2853_v17 = vcombine.high %v2843_v47, %v16207_v15  ;;  %v846_v23 = vsel %vm843_vm2, %v839_v43, %v10129_v61 }
 0x305   :  { %v11265_v30 = vpop.permute.xlu1 %2537  ;;  %v11267_v12 = vpop.permute.xlu0 %2539  ;;  %v3171_v46 = vrot.slane %v11279_v9, %v9845_v14  ;;  %v853_v28 = vsel %vm850_vm3, %v846_v23, %v10155_v20 }
 0x306   :  { %16334 = vst [vmem:[#allocation189_spill] sm:$0xff] %v11265_v30  ;;  %v3216_v30 = vcombine.high %v11149_v22, %v16207_v15  ;;  %v856_v22 = vsel %vm850_vm3, %v849_v29, %v10181_v38  ;;  %v1787_v38 = vsel %vm843_vm2, %v1781_v35, %v10557_v4  ;;  %v3017_v4 = vcombine.high %v3007_v1, %v16207_v15 }
 0x307   :  { %3362 = vrot.lane.b32.xlu1 %v3262_v25, %s9782_s26  ;;  %3376 = vrot.lane.b32.xlu0 %v2843_v47, %s9783_s27  ;;  %v3089_v25 = vrot.slane %v11276_v0, %v9845_v14  ;;  %v860_v47 = vsel %vm857_vm4, %v853_v28, %v10175_v37  ;;  %v863_v61 = vsel %vm857_vm4, %v856_v22, %v10213_v49  ;;  %v16343_v28 = vld [vmem:[#allocation34_spill] sm:$0xff] }
 0x308   :  { %v11297_v55 = vrot.slane %v3216_v30, %v9842_v13  ;;  %v1793_v33 = vsel %vm850_vm3, %v1787_v38, %v10584_v40  ;;  %v867_v37 = vsel %vm864_vm5, %v860_v47, %v10197_v10  ;;  %v870_v40 = vsel %vm864_vm5, %v863_v61, %v10231_v60  ;;  %v16344_v38 = vld [vmem:[#allocation106_spill] sm:$0xff] }
 0x309   :  { %v11286_v48 = vpop.permute.xlu1 %2541  ;;  %v11288_v21 = vpop.permute.xlu0 %2543  ;;  %v1799_v20 = vsel %vm857_vm4, %v1793_v33, %v10606_v41  ;;  %v874_v41 = vsel %vm871_vm6, %v867_v37, %v10219_v11  ;;  %v1784_v22 = vsel %vm836_vm1, %v10340_v32, %v10541_v36  ;;  %v2699_v11 = vsel %vm836_vm1, %v10776_v39, %v10988_v58  ;;  %v16346_v33 = vld [vmem:[#allocation113_spill] sm:$0xff]  ;;  %v16348_v37 = vld [vmem:[#allocation138_spill] sm:$0xff] }
 0x30a   :  { %16335 = vst [vmem:[#allocation190_spill] sm:$0xff] %v11286_v48  ;;  %16336 = vst [vmem:[#allocation191_spill] sm:$0xff] %v11288_v21  ;;  %v3253_v30 = vrot.slane %v11297_v55, %v9845_v14  ;;  %v1805_v49 = vsel %vm864_vm5, %v1799_v20, %v10642_v54  ;;  %v1790_v54 = vsel %vm843_vm2, %v1784_v22, %v10577_v16 }
 0x30b   :  { %3378 = vrot.lane.b32.xlu1 %v2925_v8, %s9783_s27  ;;  %3380 = vrot.lane.b32.xlu0 %v3007_v1, %s9783_s27  ;;  %v1811_v8 = vsel %vm871_vm6, %v1805_v49, %v10679_v27  ;;  %v3099_v43 = vcombine.high %v3089_v25, %v16207_v15  ;;  %v2705_v32 = vsel %vm843_vm2, %v2699_v11, %v11019_v57 }
 0x30c   :  { %v1817_v60 = vsel %vm878_vm7, %v1811_v8, %v10691_v42  ;;  %v3181_v36 = vcombine.high %v3171_v46, %v16207_v15  ;;  %v2836_v16 = vcombine.high %v11244_v51, %v16207_v15  ;;  %v877_v42 = vsel %vm871_vm6, %v870_v40, %v10247_v18 }
 0x30d   :  { %v11304_v21 = vpop.permute.xlu1 %2545  ;;  %v11306_v48 = vpop.permute.xlu0 %2559  ;;  %v1796_v39 = vsel %vm850_vm3, %v1790_v54, %v10608_v34  ;;  %v1823_v27 = vsel %vm885_vm8, %v1817_v60, %v10701_v53  ;;  %v2711_v58 = vsel %vm850_vm3, %v2705_v32, %v11070_v63  ;;  %v881_v57 = vsel %vm878_vm7, %v874_v41, %v10229_v59  ;;  %v16349_v54 = vld [vmem:[#allocation120_spill] sm:$0xff]  ;;  %v16351_v32 = vld [vmem:[#allocation179_spill] sm:$0xff] }
 0x30e   :  { %16337 = vst [vmem:[#allocation192_spill] sm:$0xff] %v11306_v48  ;;  %v1829_v51 = vsel %vm16141_vm9, %v1823_v27, %v10711_v50  ;;  %v2717_v18 = vsel %vm857_vm4, %v2711_v58, %v11153_v6  ;;  %v3263_v59 = vcombine.high %v3253_v30, %v16207_v15  ;;  %v2850_v6 = vrot.slane %v2836_v16, %v9845_v14  ;;  %v16354_v27 = vld [vmem:[#allocation44_spill] sm:$0xff] }
 0x30f   :  { %3382 = vrot.lane.b32.xlu1 %v3089_v25, %s9783_s27  ;;  %3384 = vrot.lane.b32.xlu0 %v3171_v46, %s9783_s27  ;;  %v1802_v25 = vsel %vm857_vm4, %v1796_v39, %v10666_v44  ;;  %v2723_v63 = vsel %vm864_vm5, %v2717_v18, %v11196_v45  ;;  %v2918_v44 = vcombine.high %v11252_v26, %v16207_v15  ;;  %v8289_v47 = vrot.slane %v1829_v51, 7 }
 0x310   :  { %v2729_v23 = vsel %vm871_vm6, %v2723_v63, %v11223_v52  ;;  %v3000_v35 = vcombine.high %v11255_v62, %v16207_v15  ;;  %v888_v45 = vsel %vm885_vm8, %v881_v57, %v16343_v28  ;;  %v16345_v52 = vld [vmem:[#allocation38_spill] sm:$0xff]  ;;  %v2702_v49 = vsel %vm836_vm1, %v16348_v37, %v11003_v7 }
 0x311   :  { %v11324_v29 = vpop.permute.xlu1 %2561  ;;  %v2564_v48 = vpop.permute.xlu0 %2563  ;;  %v2735_v26 = vsel %vm878_vm7, %v2729_v23, %v11267_v12  ;;  %v895_v61 = vsel %vm16141_vm9, %v888_v45, %v16345_v52  ;;  %v2932_v40 = vrot.slane %v2918_v44, %v9845_v14  ;;  %v3082_v41 = vcombine.high %v11276_v0, %v16207_v15  ;;  %v16357_v23 = vld [vmem:[#allocation59_spill] sm:$0xff] }
 0x312   :  { %16338 = vst [vmem:[#allocation193_spill] sm:$0xff] %v11324_v29  ;;  %v2708_v22 = vsel %vm843_vm2, %v2702_v49, %v11045_v56  ;;  %v3014_v8 = vrot.slane %v3000_v35, %v9845_v14  ;;  %v3164_v7 = vcombine.high %v11279_v9, %v16207_v15  ;;  %v8530_v11 = vsel %vm8525_vm10, %v895_v61, %v8289_v47  ;;  %v16350_v56 = vld [vmem:[#allocation128_spill] sm:$0xff] }
 0x313   :  { %3386 = vrot.lane.b32.xlu1 %v3253_v30, %s9783_s27  ;;  %3400 = vrot.lane.b32.xlu0 %v2853_v17, %s9784_s28  ;;  %v16342_v17 = vld [vmem:[#allocation100_spill] sm:$0xff]  ;;  %v2714_v0 = vsel %vm850_vm3, %v2708_v22, %v11126_v19  ;;  %v884_v58 = vsel %vm878_vm7, %v877_v42, %v16354_v27  ;;  %v3096_v57 = vrot.slane %v3082_v41, %v9845_v14 }
 0x314   :  { %v1808_v53 = vsel %vm864_vm5, %v1802_v25, %v16342_v17  ;;  %v3178_v51 = vrot.slane %v3164_v7, %v9845_v14  ;;  %v3246_v18 = vcombine.high %v11297_v55, %v16207_v15  ;;  %v2936_v47 = vcombine.high %v2932_v40, %v16207_v15 }
 0x315   :  { %v11351_v1 = vpop.permute.xlu1 %2565  ;;  %v11353_v10 = vpop.permute.xlu0 %2567  ;;  %v1814_v30 = vsel %vm871_vm6, %v1808_v53, %v16344_v38 }
 0x316   :  { %16339 = vst [vmem:[#allocation194_spill] sm:$0xff] %v11351_v1  ;;  %16340 = vst [vmem:[#allocation195_spill] sm:$0xff] %v11353_v10  ;;  %v1820_v20 = vsel %vm878_vm7, %v1814_v30, %v16346_v33  ;;  %v3100_v33 = vcombine.high %v3096_v57, %v16207_v15 }
 0x317   :  { %3402 = vrot.lane.b32.xlu1 %v2935_v3, %s9784_s28  ;;  %3404 = vrot.lane.b32.xlu0 %v3017_v4, %s9784_s28  ;;  %v2741_v3 = vsel %vm885_vm8, %v2735_v26, %v2564_v48  ;;  %v1826_v60 = vsel %vm885_vm8, %v1820_v20, %v16349_v54  ;;  %v3018_v26 = vcombine.high %v3014_v8, %v16207_v15 }
 0x318   :  { %v3182_v20 = vcombine.high %v3178_v51, %v16207_v15 }
 0x319   :  { %v2570_v46 = vpop.permute.xlu1 %2569  ;;  %v11386_v34 = vpop.permute.xlu0 %2583 }
 0x31a   :  { %16341 = vst [vmem:[#allocation196_spill] sm:$0xff] %v11386_v34 }
 0x31b   :  { %3406 = vrot.lane.b32.xlu1 %v3099_v43, %s9784_s28  ;;  %3408 = vrot.lane.b32.xlu0 %v3181_v36, %s9784_s28  ;;  %v1832_v43 = vsel %vm16141_vm9, %v1826_v60, %v16350_v56  ;;  %v2720_v36 = vsel %vm857_vm4, %v2714_v0, %v16351_v32 }
 0x31c   :  { %v2726_v19 = vsel %vm864_vm5, %v2720_v36, %v11213_v5  ;;  %v8295_v17 = vrot.slane %v1832_v43, 7  ;;  %v16366_v43 = vld [vmem:[#allocation161_spill] sm:$0xff]  ;;  %v16367_v36 = vld [vmem:[#allocation160_spill] sm:$0xff] }
 0x31d   :  { %v11413_v62 = vpop.permute.xlu1 %2585  ;;  %v11415_v4 = vpop.permute.xlu0 %2587  ;;  %v2732_v25 = vsel %vm871_vm6, %v2726_v19, %v11246_v31  ;;  %v16356_v31 = vld [vmem:[#allocation52_spill] sm:$0xff]  ;;  %v3107_v32 = vrot.slane %v16366_v43, %v9842_v13  ;;  %v11521_v27 = vrot.slane %v16367_v36, %v9842_v13 }
 0x31e   :  { %16347 = vst [vmem:[#allocation100_spill] sm:$0xff] %v11413_v62  ;;  %v2747_v12 = vsel %vm16141_vm9, %v2741_v3, %v11415_v4  ;;  %v2738_v42 = vsel %vm878_vm7, %v2732_v25, %v11304_v21  ;;  %v3260_v21 = vrot.slane %v3246_v18, %v9845_v14  ;;  %v16361_v3 = vld [vmem:[#allocation155_spill] sm:$0xff] }
 0x31f   :  { %v8325_v48 = vrot.slane %v2747_v12, 6  ;;  %3410 = vrot.lane.b32.xlu1 %v3263_v59, %s9784_s28  ;;  %3424 = vrot.lane.b32.xlu0 %v2850_v6, %s9785_s29  ;;  %v2744_v5 = vsel %vm885_vm8, %v2738_v42, %v2570_v46  ;;  %v891_v59 = vsel %vm885_vm8, %v884_v58, %v16356_v31  ;;  %v2854_v46 = vcombine.high %v2850_v6, %v16207_v15 }
 0x320   :  { %v898_v35 = vsel %vm16141_vm9, %v891_v59, %v16357_v23  ;;  %v2861_v37 = vrot.slane %v16361_v3, %v9842_v13  ;;  %v3264_v22 = vcombine.high %v3260_v21, %v16207_v15  ;;  %v3197_v25 = vrot.slane %v11521_v27, %v9845_v14 }
 0x321   :  { %v11442_v16 = vsel %vm16097_vm11, %v8530_v11, %v8325_v48  ;;  %v11444_v39 = vpop.permute.xlu1 %2589  ;;  %v11446_v9 = vpop.permute.xlu0 %2591  ;;  %v8536_v28 = vsel %vm8525_vm10, %v898_v35, %v8295_v17 }
 0x322   :  { %16352 = vst [vmem:[#allocation34_spill] sm:$0xff] %v11444_v39  ;;  %16353 = vst [vmem:[#allocation106_spill] sm:$0xff] %v11446_v9  ;;  %v2869_v48 = vrot.slane %v2861_v37, %v9845_v14 }
 0x323   :  { %3426 = vrot.lane.b32.xlu1 %v2932_v40, %s9785_s29  ;;  %3428 = vrot.lane.b32.xlu0 %v3014_v8, %s9785_s29  ;;  %v16363_v40 = vld [vmem:[#allocation158_spill] sm:$0xff]  ;;  %v16364_v8 = vld [vmem:[#allocation157_spill] sm:$0xff] }
 0x324   :  { %v2943_v41 = vrot.slane %v16363_v40, %v9842_v13  ;;  %v3025_v7 = vrot.slane %v16364_v8, %v9842_v13  ;;  %v2885_v31 = vcombine.high %v2869_v48, %v16207_v15 }
 0x325   :  { %v11463_v53 = vpop.permute.xlu1 %2593  ;;  %v11465_v63 = vpop.permute.xlu0 %2607 }
 0x326   :  { %16355 = vst [vmem:[#allocation38_spill] sm:$0xff] %v11465_v63  ;;  %v2750_v44 = vsel %vm16141_vm9, %v2744_v5, %v11463_v53  ;;  %v2951_v11 = vrot.slane %v2943_v41, %v9845_v14  ;;  %v3033_v0 = vrot.slane %v3025_v7, %v9845_v14 }
 0x327   :  { %v8331_v55 = vrot.slane %v2750_v44, 6  ;;  %3430 = vrot.lane.b32.xlu1 %v3096_v57, %s9785_s29  ;;  %3432 = vrot.lane.b32.xlu0 %v3178_v51, %s9785_s29  ;;  %v3115_v57 = vrot.slane %v3107_v32, %v9845_v14  ;;  %v16370_v51 = vld [vmem:[#allocation167_spill] sm:$0xff] }
 0x328   :  { %v11534_v18 = vrot.slane %v16370_v51, %v9842_v13  ;;  %v2967_v35 = vcombine.high %v2951_v11, %v16207_v15 }
 0x329   :  { %v11479_v45 = vsel %vm16097_vm11, %v8536_v28, %v8331_v55  ;;  %v11481_v38 = vpop.permute.xlu1 %2609  ;;  %v11483_v30 = vpop.permute.xlu0 %2611  ;;  %v3049_v55 = vcombine.high %v3033_v0, %v16207_v15  ;;  %v16375_v28 = vld [vmem:[#allocation112_spill] sm:$0xff] }
 0x32a   :  { %16358 = vst [vmem:[#allocation113_spill] sm:$0xff] %v11481_v38  ;;  %v3279_v5 = vrot.slane %v11534_v18, %v9845_v14 }
 0x32b   :  { %3434 = vrot.lane.b32.xlu1 %v3260_v21, %s9785_s29  ;;  %3448 = vrot.lane.b32.xlu0 %v2854_v46, %s9786_s30 }
 0x32d   :  { %v11489_v61 = vpop.permute.xlu1 %2613  ;;  %v11491_v6 = vpop.permute.xlu0 %2615 }
 0x32e   :  { %16359 = vst [vmem:[#allocation138_spill] sm:$0xff] %v11489_v61  ;;  %16360 = vst [vmem:[#allocation120_spill] sm:$0xff] %v11491_v6 }
 0x32f   :  { %3450 = vrot.lane.b32.xlu1 %v2936_v47, %s9786_s30  ;;  %3452 = vrot.lane.b32.xlu0 %v3018_v26, %s9786_s30  ;;  %v1835_v47 = vsel %vm899_vm12, %v10711_v50, %v16375_v28  ;;  %v16376_v26 = vld [vmem:[#allocation134_spill] sm:$0xff]  ;;  %v16379_v28 = vld [vmem:[#allocation127_spill] sm:$0xff] }
 0x330   :  { %v16378_v50 = vld [vmem:[#allocation122_spill] sm:$0xff] }
 0x331   :  { %v11499_v49 = vpop.permute.xlu1 %2617  ;;  %v11501_v12 = vpop.permute.xlu0 %2631 }
 0x332   :  { %16362 = vst [vmem:[#allocation128_spill] sm:$0xff] %v11501_v12 }
 0x333   :  { %3454 = vrot.lane.b32.xlu1 %v3100_v33, %s9786_s30  ;;  %3456 = vrot.lane.b32.xlu0 %v3182_v20, %s9786_s30  ;;  %v1838_v33 = vsel %vm899_vm12, %v16350_v56, %v16376_v26  ;;  %v2862_v20 = vcombine.high %v2861_v37, %v16207_v15 }
 0x335   :  { %v11511_v54 = vpop.permute.xlu1 %2633  ;;  %v2636_v60 = vpop.permute.xlu0 %2635 }
 0x336   :  { %16365 = vst [vmem:[#allocation179_spill] sm:$0xff] %v11511_v54 }
 0x337   :  { %3458 = vrot.lane.b32.xlu1 %v3264_v22, %s9786_s30  ;;  %3472 = vrot.lane.b32.xlu0 %v2869_v48, %s9787_s16  ;;  %v16377_v22 = vld [vmem:[#allocation117_spill] sm:$0xff] }
 0x338   :  { %v1841_v48 = vsel %vm906_vm13, %v1835_v47, %v16377_v22  ;;  %v16382_v47 = vld [vmem:[#allocation140_spill] sm:$0xff]  ;;  %v2753_v22 = vsel %vm899_vm12, %v11415_v4, %v11483_v30  ;;  %v2756_v30 = vsel %vm899_vm12, %v11463_v53, %v11499_v49 }
 0x339   :  { %v11523_v58 = vpop.permute.xlu1 %2637  ;;  %v11525_v19 = vpop.permute.xlu0 %2639 }
 0x33a   :  { %16368 = vst [vmem:[#allocation44_spill] sm:$0xff] %v11523_v58  ;;  %16369 = vst [vmem:[#allocation52_spill] sm:$0xff] %v11525_v19 }
 0x33b   :  { %3474 = vrot.lane.b32.xlu1 %v2951_v11, %s9787_s16  ;;  %3476 = vrot.lane.b32.xlu0 %v3033_v0, %s9787_s16  ;;  %v3131_v11 = vcombine.high %v3115_v57, %v16207_v15  ;;  %v3213_v0 = vcombine.high %v3197_v25, %v16207_v15 }
 0x33d   :  { %v2642_v17 = vpop.permute.xlu1 %2641  ;;  %v11536_v42 = vpop.permute.xlu0 %2655 }
 0x33e   :  { %16371 = vst [vmem:[#allocation59_spill] sm:$0xff] %v11536_v42 }
 0x33f   :  { %3478 = vrot.lane.b32.xlu1 %v3115_v57, %s9787_s16  ;;  %3480 = vrot.lane.b32.xlu0 %v3197_v25, %s9787_s16  ;;  %v3295_v57 = vcombine.high %v3279_v5, %v16207_v15  ;;  %v2876_v25 = vrot.slane %v2862_v20, %v9845_v14 }
 0x341   :  { %v11543_v59 = vpop.permute.xlu1 %2657  ;;  %v2660_v44 = vpop.permute.xlu0 %2659 }
 0x342   :  { %16372 = vst [vmem:[#allocation155_spill] sm:$0xff] %v11543_v59 }
 0x343   :  { %3482 = vrot.lane.b32.xlu1 %v3279_v5, %s9787_s16  ;;  %3496 = vrot.lane.b32.xlu0 %v2885_v31, %s9788_s17  ;;  %v1847_v31 = vsel %vm913_vm14, %v1841_v48, %v16378_v50  ;;  %v2944_v48 = vcombine.high %v2943_v41, %v16207_v15  ;;  %v3026_v50 = vcombine.high %v3025_v7, %v16207_v15 }
 0x344   :  { %v1853_v56 = vsel %vm920_vm15, %v1847_v31, %v16379_v28  ;;  %v2759_v5 = vsel %vm906_vm13, %v2753_v22, %v2636_v60  ;;  %v16384_v31 = vld [vmem:[#allocation53_spill] sm:$0xff]  ;;  %v16388_v60 = vld [vmem:[#allocation143_spill] sm:$0xff]  ;;  %v3108_v22 = vcombine.high %v3107_v32, %v16207_v15  ;;  %v16390_v32 = vld [vmem:[#allocation146_spill] sm:$0xff] }
 0x345   :  { %v11549_v21 = vpop.permute.xlu1 %2661  ;;  %v11551_v46 = vpop.permute.xlu0 %2663  ;;  %v16385_v28 = vld [vmem:[#allocation65_spill] sm:$0xff]  ;;  %v2765_v41 = vsel %vm913_vm14, %v2759_v5, %v2660_v44  ;;  %v2958_v53 = vrot.slane %v2944_v48, %v9845_v14  ;;  %v3040_v49 = vrot.slane %v3026_v50, %v9845_v14  ;;  %v3190_v44 = vcombine.high %v11521_v27, %v16207_v15 }
 0x346   :  { %16373 = vst [vmem:[#allocation158_spill] sm:$0xff] %v11549_v21  ;;  %16374 = vst [vmem:[#allocation157_spill] sm:$0xff] %v11551_v46  ;;  %v16381_v46 = vld [vmem:[#allocation43_spill] sm:$0xff]  ;;  %v905_v4 = vsel %vm899_vm12, %v16357_v23, %v16385_v28  ;;  %v3122_v50 = vrot.slane %v3108_v22, %v9845_v14  ;;  %v16394_v28 = vld [vmem:[#allocation73_spill] sm:$0xff] }
 0x347   :  { %3498 = vrot.lane.b32.xlu1 %v2967_v35, %s9788_s17  ;;  %3500 = vrot.lane.b32.xlu0 %v3049_v55, %s9788_s17  ;;  %v902_v35 = vsel %vm899_vm12, %v16345_v52, %v16381_v46  ;;  %v1844_v55 = vsel %vm906_vm13, %v1838_v33, %v16382_v47  ;;  %v16383_v52 = vld [vmem:[#allocation48_spill] sm:$0xff]  ;;  %v8290_v33 = vrot.slane %v1853_v56, 7 }
 0x348   :  { %v909_v46 = vsel %vm906_vm13, %v902_v35, %v16383_v52  ;;  %v1850_v35 = vsel %vm913_vm14, %v1844_v55, %v16388_v60  ;;  %v2762_v55 = vsel %vm906_vm13, %v2756_v30, %v2642_v17  ;;  %v3204_v17 = vrot.slane %v3190_v44, %v9845_v14 }
 0x349   :  { %v2666_v37 = vpop.permute.xlu1 %2665  ;;  %v11570_v26 = vpop.permute.xlu0 %2679  ;;  %v916_v20 = vsel %vm913_vm14, %v909_v46, %v16384_v31  ;;  %v16389_v46 = vld [vmem:[#allocation70_spill] sm:$0xff]  ;;  %v1856_v31 = vsel %vm920_vm15, %v1850_v35, %v16390_v32 }
 0x34a   :  { %16380 = vst [vmem:[#allocation161_spill] sm:$0xff] %v11570_v26  ;;  %v912_v5 = vsel %vm906_vm13, %v905_v4, %v16389_v46  ;;  %v2768_v27 = vsel %vm913_vm14, %v2762_v55, %v2666_v37  ;;  %v8296_v30 = vrot.slane %v1856_v31, 7  ;;  %v3050_v55 = vcombine.high %v3040_v49, %v16207_v15 }
 0x34b   :  { %3502 = vrot.lane.b32.xlu1 %v3131_v11, %s9788_s17  ;;  %3504 = vrot.lane.b32.xlu0 %v3213_v0, %s9788_s17  ;;  %v16387_v0 = vld [vmem:[#allocation58_spill] sm:$0xff]  ;;  %v919_v4 = vsel %vm913_vm14, %v912_v5, %v16394_v28  ;;  %v3132_v5 = vcombine.high %v3122_v50, %v16207_v15  ;;  %v3214_v32 = vcombine.high %v3204_v17, %v16207_v15 }
 0x34c   :  { %v923_v56 = vsel %vm920_vm15, %v916_v20, %v16387_v0  ;;  %v2877_v31 = vcombine.high %v16361_v3, %v16207_v15 }
 0x34d   :  { %v11598_v7 = vpop.permute.xlu1 %2681  ;;  %v2684_v11 = vpop.permute.xlu0 %2683  ;;  %v8531_v52 = vsel %vm8525_vm10, %v923_v56, %v8290_v33  ;;  %v3272_v33 = vcombine.high %v11534_v18, %v16207_v15  ;;  %v16396_v56 = vld [vmem:[#allocation76_spill] sm:$0xff]  ;;  %v2886_v18 = vcombine.high %v2876_v25, %v16207_v15 }
 0x34e   :  { %16386 = vst [vmem:[#allocation160_spill] sm:$0xff] %v11598_v7  ;;  %v2771_v47 = vsel %vm920_vm15, %v2765_v41, %v2684_v11  ;;  %v926_v37 = vsel %vm920_vm15, %v919_v4, %v16396_v56  ;;  %v3205_v56 = vcombine.high %v16367_v36, %v16207_v15 }
 0x34f   :  { %v8326_v23 = vrot.slane %v2771_v47, 6  ;;  %3506 = vrot.lane.b32.xlu1 %v3295_v57, %s9788_s17  ;;  %3520 = vrot.lane.b32.xlu0 %v2876_v25, %s9789_s18  ;;  %v3286_v35 = vrot.slane %v3272_v33, %v9845_v14  ;;  %v8537_v47 = vsel %vm8525_vm10, %v926_v37, %v8296_v30 }
 0x351   :  { %v11619_v57 = vsel %vm16097_vm11, %v8531_v52, %v8326_v23  ;;  %v11621_v20 = vpop.permute.xlu1 %2685  ;;  %v11623_v48 = vpop.permute.xlu0 %2687  ;;  %v2968_v52 = vcombine.high %v2958_v53, %v16207_v15  ;;  %v3296_v33 = vcombine.high %v3286_v35, %v16207_v15 }
 0x352   :  { %16391 = vst [vmem:[#allocation167_spill] sm:$0xff] %v11619_v57  ;;  %16392 = vst [vmem:[#allocation112_spill] sm:$0xff] %v11621_v20 }
 0x353   :  { %16393 = vst [vmem:[#allocation134_spill] sm:$0xff] %v11623_v48  ;;  %3522 = vrot.lane.b32.xlu1 %v2958_v53, %s9789_s18  ;;  %3524 = vrot.lane.b32.xlu0 %v3040_v49, %s9789_s18  ;;  %v2959_v49 = vcombine.high %v16363_v40, %v16207_v15  ;;  %v16419_v48 = vld [vmem:[#allocation172_spill] sm:$0xff] }
 0x355   :  { %v2690_v41 = vpop.permute.xlu1 %2689  ;;  %v11634_v11 = vpop.permute.xlu0 %3304  ;;  %v2966_v30 = vrot.slane %v2959_v49, %v9845_v14 }
 0x356   :  { %16395 = vst [vmem:[#allocation117_spill] sm:$0xff] %v11634_v11  ;;  %v2774_v0 = vsel %vm920_vm15, %v2768_v27, %v2690_v41 }
 0x357   :  { %v8332_v60 = vrot.slane %v2774_v0, 6  ;;  %3526 = vrot.lane.b32.xlu1 %v3122_v50, %s9789_s18  ;;  %3528 = vrot.lane.b32.xlu0 %v3204_v17, %s9789_s18  ;;  %v2884_v50 = vrot.slane %v2877_v31, %v9845_v14  ;;  %v3041_v17 = vcombine.high %v16364_v8, %v16207_v15  ;;  %v3123_v0 = vcombine.high %v16366_v43, %v16207_v15 }
 0x359   :  { %v11645_v22 = vsel %vm16097_vm11, %v8537_v47, %v8332_v60  ;;  %v11647_v23 = vpop.permute.xlu1 %3306  ;;  %v11649_v44 = vpop.permute.xlu0 %3308  ;;  %v3048_v41 = vrot.slane %v3041_v17, %v9845_v14  ;;  %v3287_v47 = vcombine.high %v16370_v51, %v16207_v15  ;;  %vm16102_vm11 = vcmask 1043456  }
 0x35a   :  { %16397 = vst [vmem:[#allocation122_spill] sm:$0xff] %v11645_v22  ;;  %16398 = vst [vmem:[#allocation127_spill] sm:$0xff] %v11647_v23 }
 0x35b   :  { %3530 = vrot.lane.b32.xlu1 %v3286_v35, %s9789_s18  ;;  %3544 = vrot.lane.b32.xlu0 %v2886_v18, %s9790_s19  ;;  %v3130_v35 = vrot.slane %v3123_v0, %v9845_v14  ;;  %v3212_v18 = vrot.slane %v3205_v56, %v9845_v14  ;;  %v3051_v17 = vcombine.high %v3048_v41, %v16207_v15 }
 0x35d   :  { %v11655_v46 = vpop.permute.xlu1 %3310  ;;  %v11657_v25 = vpop.permute.xlu0 %3312  ;;  %v3215_v56 = vcombine.high %v3212_v18, %v16207_v15 }
 0x35e   :  { %16399 = vst [vmem:[#allocation43_spill] sm:$0xff] %v11655_v46  ;;  %16400 = vst [vmem:[#allocation140_spill] sm:$0xff] %v11657_v25 }
 0x35f   :  { %3546 = vrot.lane.b32.xlu1 %v2968_v52, %s9790_s19  ;;  %3548 = vrot.lane.b32.xlu0 %v3050_v55, %s9790_s19 }
 0x361   :  { %v11665_v27 = vpop.permute.xlu1 %3314  ;;  %v11667_v53 = vpop.permute.xlu0 %3328 }
 0x362   :  { %16401 = vst [vmem:[#allocation48_spill] sm:$0xff] %v11667_v53 }
 0x363   :  { %3550 = vrot.lane.b32.xlu1 %v3132_v5, %s9790_s19  ;;  %3552 = vrot.lane.b32.xlu0 %v3214_v32, %s9790_s19  ;;  %v3294_v5 = vrot.slane %v3287_v47, %v9845_v14  ;;  %v2887_v32 = vcombine.high %v2884_v50, %v16207_v15 }
 0x365   :  { %v11677_v28 = vpop.permute.xlu1 %3330  ;;  %v11679_v4 = vpop.permute.xlu0 %3332 }
 0x366   :  { %16402 = vst [vmem:[#allocation53_spill] sm:$0xff] %v11677_v28 }
 0x367   :  { %3554 = vrot.lane.b32.xlu1 %v3296_v33, %s9790_s19  ;;  %3568 = vrot.lane.b32.xlu0 %v2884_v50, %s9791_s20  ;;  %v2969_v33 = vcombine.high %v2966_v30, %v16207_v15  ;;  %v3133_v50 = vcombine.high %v3130_v35, %v16207_v15 }
 0x369   :  { %v11689_v37 = vpop.permute.xlu1 %3334  ;;  %v11691_v60 = vpop.permute.xlu0 %3336 }
 0x36a   :  { %16403 = vst [vmem:[#allocation65_spill] sm:$0xff] %v11689_v37  ;;  %16404 = vst [vmem:[#allocation58_spill] sm:$0xff] %v11691_v60 }
 0x36b   :  { %3570 = vrot.lane.b32.xlu1 %v2966_v30, %s9791_s20  ;;  %3572 = vrot.lane.b32.xlu0 %v3048_v41, %s9791_s20  ;;  %v3297_v30 = vcombine.high %v3294_v5, %v16207_v15 }
 0x36d   :  { %v11699_v52 = vpop.permute.xlu1 %3338  ;;  %v11701_v55 = vpop.permute.xlu0 %3352 }
 0x36e   :  { %16405 = vst [vmem:[#allocation143_spill] sm:$0xff] %v11701_v55 }
 0x36f   :  { %3574 = vrot.lane.b32.xlu1 %v3130_v35, %s9791_s20  ;;  %3576 = vrot.lane.b32.xlu0 %v3212_v18, %s9791_s20  ;;  %v16411_v18 = vld [vmem:[#allocation162_spill] sm:$0xff] }
 0x371   :  { %v11707_v31 = vpop.permute.xlu0 %3356  ;;  %v11709_v49 = vpop.permute.xlu1 %3354 }
 0x372   :  { %16406 = vst [vmem:[#allocation70_spill] sm:$0xff] %v11709_v49 }
 0x373   :  { %3578 = vrot.lane.b32.xlu1 %v3294_v5, %s9791_s20  ;;  %3592 = vrot.lane.b32.xlu0 %v2887_v32, %s9792_s21 }
 0x375   :  { %v11715_v0 = vpop.permute.xlu0 %3360  ;;  %v11721_v47 = vpop.permute.xlu1 %3358 }
 0x376   :  { %16407 = vst [vmem:[#allocation146_spill] sm:$0xff] %v11715_v0  ;;  %16408 = vst [vmem:[#allocation73_spill] sm:$0xff] %v11721_v47 }
 0x377   :  { %3594 = vrot.lane.b32.xlu1 %v2969_v33, %s9792_s21  ;;  %3596 = vrot.lane.b32.xlu0 %v3051_v17, %s9792_s21 }
 0x379   :  { %v11723_v60 = vpop.permute.xlu0 %3376  ;;  %v11730_v32 = vpop.permute.xlu1 %3362 }
 0x37a   :  { %16409 = vst [vmem:[#allocation76_spill] sm:$0xff] %v11723_v60 }
 0x37b   :  { %3598 = vrot.lane.b32.xlu1 %v3133_v50, %s9792_s21  ;;  %3600 = vrot.lane.b32.xlu0 %v3215_v56, %s9792_s21  ;;  %v16415_v56 = vld [vmem:[#allocation168_spill] sm:$0xff] }
 0x37d   :  { %v11728_v41 = vpop.permute.xlu0 %3380  ;;  %v11741_v33 = vpop.permute.xlu1 %3378 }
 0x37e   :  { %16412 = vst [vmem:[#allocation162_spill] sm:$0xff] %v11741_v33 }
 0x37f   :  { %3602 = vrot.lane.b32.xlu1 %v3297_v30, %s9792_s21  ;;  %3688 = vrot.lane.b32.xlu0 %v11065_v24, %s9793_s22 }
 0x381   :  { %v11735_v35 = vpop.permute.xlu0 %3384  ;;  %v11751_v50 = vpop.permute.xlu1 %3382 }
 0x382   :  { %16410 = vst [vmem:[#allocation197_spill] sm:$0xff] %v11735_v35  ;;  %16414 = vst [vmem:[#allocation199_spill] sm:$0xff] %v11751_v50  ;;  %v16417_v35 = vld [vmem:[#allocation166_spill] sm:$0xff] }
 0x383   :  { %3692 = vrot.lane.b32.xlu0 %v16411_v18, %s9793_s22  ;;  %3690 = vrot.lane.b32.xlu1 %v16361_v3, %s9793_s22 }
 0x385   :  { %v11743_v5 = vpop.permute.xlu0 %3400  ;;  %v11763_v0 = vpop.permute.xlu1 %3386 }
 0x386   :  { %16413 = vst [vmem:[#allocation198_spill] sm:$0xff] %v11743_v5 }
 0x387   :  { %3696 = vrot.lane.b32.xlu0 %v11084_v2, %s9793_s22  ;;  %3694 = vrot.lane.b32.xlu1 %v16363_v40, %s9793_s22 }
 0x389   :  { %v11749_v17 = vpop.permute.xlu0 %3404  ;;  %v11773_v5 = vpop.permute.xlu1 %3402 }
 0x38a   :  { %16420 = vst [vmem:[#allocation172_spill] sm:$0xff] %v11773_v5 }
 0x38b   :  { %3700 = vrot.lane.b32.xlu0 %v16415_v56, %s9793_s22  ;;  %3698 = vrot.lane.b32.xlu1 %v16364_v8, %s9793_s22 }
 0x38d   :  { %v11757_v30 = vpop.permute.xlu0 %3408  ;;  %v11779_v7 = vpop.permute.xlu1 %3406 }
 0x38e   :  { %16416 = vst [vmem:[#allocation168_spill] sm:$0xff] %v11757_v30  ;;  %16422 = vst [vmem:[#allocation201_spill] sm:$0xff] %v11779_v7 }
 0x38f   :  { %3704 = vrot.lane.b32.xlu0 %v16417_v35, %s9793_s22  ;;  %3702 = vrot.lane.b32.xlu1 %v16366_v43, %s9793_s22 }
 0x391   :  { %v11765_v25 = vpop.permute.xlu0 %3424  ;;  %v11785_v60 = vpop.permute.xlu1 %3410 }
 0x392   :  { %16418 = vst [vmem:[#allocation166_spill] sm:$0xff] %v11765_v25 }
 0x393   :  { %3708 = vrot.lane.b32.xlu0 %v16419_v48, %s9793_s22  ;;  %3706 = vrot.lane.b32.xlu1 %v16367_v36, %s9793_s22 }
 0x395   :  { %v11771_v20 = vpop.permute.xlu0 %3428  ;;  %v11789_v55 = vpop.permute.xlu1 %3426 }
 0x396   :  { %16425 = vst [vmem:[#allocation204_spill] sm:$0xff] %v11789_v55 }
 0x397   :  { %3710 = vrot.lane.b32.xlu1 %v16370_v51, %s9793_s22 }
 0x399   :  { %v11777_v30 = vpop.permute.xlu0 %3432  ;;  %v11795_v53 = vpop.permute.xlu1 %3430 }
 0x39a   :  { %16421 = vst [vmem:[#allocation200_spill] sm:$0xff] %v11777_v30  ;;  %16427 = vst [vmem:[#allocation206_spill] sm:$0xff] %v11795_v53 }
 0x39d   :  { %v11781_v50 = vpop.permute.xlu0 %3448  ;;  %v11799_v30 = vpop.permute.xlu1 %3434 }
 0x39e   :  { %16423 = vst [vmem:[#allocation202_spill] sm:$0xff] %v11781_v50 }
 0x3a1   :  { %v11783_v25 = vpop.permute.xlu0 %3452  ;;  %v11805_v19 = vpop.permute.xlu1 %3450 }
 0x3a2   :  { %16430 = vst [vmem:[#allocation209_spill] sm:$0xff] %v11805_v19 }
 0x3a5   :  { %v11787_v26 = vpop.permute.xlu0 %3456 }
 0x3a6   :  { %16424 = vst [vmem:[#allocation203_spill] sm:$0xff] %v11787_v26  ;;  %v11809_v26 = vpop.permute.xlu1 %3454 }
 0x3a7   :  { %16432 = vst [vmem:[#allocation211_spill] sm:$0xff] %v11809_v26 }
 0x3a9   :  { %v11791_v21 = vpop.permute.xlu0 %3472 }
 0x3aa   :  { %16426 = vst [vmem:[#allocation205_spill] sm:$0xff] %v11791_v21  ;;  %v11815_v5 = vpop.permute.xlu1 %3458 }
 0x3ad   :  { %v11793_v59 = vpop.permute.xlu0 %3476 }
 0x3b1   :  { %v11797_v42 = vpop.permute.xlu0 %3480 }
 0x3b2   :  { %16428 = vst [vmem:[#allocation207_spill] sm:$0xff] %v11797_v42  ;;  %v11819_v42 = vpop.permute.xlu1 %3474 }
 0x3b3   :  { %16435 = vst [vmem:[#allocation214_spill] sm:$0xff] %v11819_v42 }
 0x3b5   :  { %v11801_v7 = vpop.permute.xlu0 %3496 }
 0x3b6   :  { %16429 = vst [vmem:[#allocation208_spill] sm:$0xff] %v11801_v7  ;;  %v11825_v11 = vpop.permute.xlu1 %3478 }
 0x3b7   :  { %16437 = vst [vmem:[#allocation216_spill] sm:$0xff] %v11825_v11 }
 0x3b9   :  { %v11803_v50 = vpop.permute.xlu0 %3500 }
 0x3bd   :  { %v11807_v58 = vpop.permute.xlu0 %3504 }
 0x3be   :  { %16431 = vst [vmem:[#allocation210_spill] sm:$0xff] %v11807_v58  ;;  %v11829_v58 = vpop.permute.xlu1 %3482 }
 0x3c1   :  { %v11811_v55 = vpop.permute.xlu0 %3520 }
 0x3c2   :  { %16433 = vst [vmem:[#allocation212_spill] sm:$0xff] %v11811_v55  ;;  %v11835_v54 = vpop.permute.xlu1 %3498 }
 0x3c3   :  { %16440 = vst [vmem:[#allocation219_spill] sm:$0xff] %v11835_v54 }
 0x3c5   :  { %v11813_v21 = vpop.permute.xlu0 %3524 }
 0x3c9   :  { %v11817_v53 = vpop.permute.xlu0 %3528 }
 0x3ca   :  { %16434 = vst [vmem:[#allocation213_spill] sm:$0xff] %v11817_v53  ;;  %v11839_v53 = vpop.permute.xlu1 %3502 }
 0x3cb   :  { %16442 = vst [vmem:[#allocation221_spill] sm:$0xff] %v11839_v53 }
 0x3cd   :  { %v11821_v47 = vpop.permute.xlu0 %3544 }
 0x3ce   :  { %16436 = vst [vmem:[#allocation215_spill] sm:$0xff] %v11821_v47  ;;  %v11845_v6 = vpop.permute.xlu1 %3506 }
 0x3d1   :  { %v11823_v7 = vpop.permute.xlu0 %3548 }
 0x3d5   :  { %v11827_v19 = vpop.permute.xlu0 %3552 }
 0x3d6   :  { %16438 = vst [vmem:[#allocation217_spill] sm:$0xff] %v11827_v19  ;;  %v11849_v19 = vpop.permute.xlu1 %3522 }
 0x3d7   :  { %16446 = vst [vmem:[#allocation225_spill] sm:$0xff] %v11849_v19 }
 0x3d9   :  { %v11831_v26 = vpop.permute.xlu0 %3568 }
 0x3da   :  { %16439 = vst [vmem:[#allocation218_spill] sm:$0xff] %v11831_v26  ;;  %v11858_v53 = vpop.permute.xlu1 %3526 }
 0x3db   :  { %16448 = vst [vmem:[#allocation227_spill] sm:$0xff] %v11858_v53 }
 0x3dd   :  { %v11833_v55 = vpop.permute.xlu0 %3572 }
 0x3de   :  { %v11871_v9 = vpop.permute.xlu1 %3530 }
 0x3e1   :  { %v11837_v12 = vpop.permute.xlu0 %3576 }
 0x3e2   :  { %16441 = vst [vmem:[#allocation220_spill] sm:$0xff] %v11837_v12 }
 0x3e5   :  { %v11841_v42 = vpop.permute.xlu0 %3592 }
 0x3e6   :  { %16443 = vst [vmem:[#allocation222_spill] sm:$0xff] %v11841_v42 }
 0x3e9   :  { %v11843_v47 = vpop.permute.xlu0 %3596 }
 0x3ea   :  { %16444 = vst [vmem:[#allocation223_spill] sm:$0xff] %v11843_v47 }
 0x3ed   :  { %v11847_v11 = vpop.permute.xlu0 %3600 }
 0x3ee   :  { %16445 = vst [vmem:[#allocation224_spill] sm:$0xff] %v11847_v11 }
 0x3f1   :  { %v3689_v61 = vpop.permute.xlu0 %3688 }
 0x3f2   :  { %v3731_v26 = vrot.slane %v3689_v61, %v9842_v13 }
 0x3f4   :  { %v11853_v38 = vrot.slane %v3731_v26, %v9845_v14  ;;  %v3739_v62 = vcombine.high %v3731_v26, %v16207_v15 }
 0x3f5   :  { %v3693_v54 = vpop.permute.xlu0 %3692 }
 0x3f6   :  { %16447 = vst [vmem:[#allocation226_spill] sm:$0xff] %v11853_v38  ;;  %v3813_v12 = vrot.slane %v3693_v54, %v9842_v13  ;;  %v3769_v42 = vcombine.high %v11853_v38, %v16207_v15 }
 0x3f8   :  { %v11861_v33 = vrot.slane %v3813_v12, %v9845_v14  ;;  %4222 = vrot.lane.b32.xlu0 %v3769_v42, %s9780_s24 }
 0x3f9   :  { %v3697_v11 = vpop.permute.xlu0 %3696 }
 0x3fa   :  { %16449 = vst [vmem:[#allocation228_spill] sm:$0xff] %v11861_v33  ;;  %v3895_v19 = vrot.slane %v3697_v11, %v9842_v13  ;;  %v3851_v63 = vcombine.high %v11861_v33, %v16207_v15 }
 0x3fc   :  { %v11868_v37 = vrot.slane %v3895_v19, %v9845_v14  ;;  %4224 = vrot.lane.b32.xlu1 %v3851_v63, %s9780_s24  ;;  %v11883_v63 = vpop.permute.xlu1 %3546  ;;  %v3903_v23 = vcombine.high %v3895_v19, %v16207_v15 }
 0x3fd   :  { %v3701_v38 = vpop.permute.xlu0 %3700  ;;  %16451 = vst [vmem:[#allocation230_spill] sm:$0xff] %v11883_v63  ;;  %v3821_v63 = vcombine.high %v3813_v12, %v16207_v15 }
 0x3fe   :  { %v3977_v53 = vrot.slane %v3701_v38, %v9842_v13  ;;  %v3933_v49 = vcombine.high %v11868_v37, %v16207_v15 }
 0x400   :  { %v11877_v42 = vrot.slane %v3977_v53, %v9845_v14  ;;  %4226 = vrot.lane.b32.xlu0 %v3933_v49, %s9780_s24 }
 0x401   :  { %v3705_v10 = vpop.permute.xlu0 %3704 }
 0x402   :  { %16450 = vst [vmem:[#allocation229_spill] sm:$0xff] %v11877_v42  ;;  %v4059_v33 = vrot.slane %v3705_v10, %v9842_v13  ;;  %v4015_v28 = vcombine.high %v11877_v42, %v16207_v15  ;;  %v11897_v42 = vpop.permute.xlu1 %3550 }
 0x403   :  { %16453 = vst [vmem:[#allocation232_spill] sm:$0xff] %v11897_v42  ;;  %v3835_v42 = vrot.slane %v3821_v63, %v9845_v14 }
 0x404   :  { %v11886_v46 = vrot.slane %v4059_v33, %v9845_v14  ;;  %4228 = vrot.lane.b32.xlu1 %v4015_v28, %s9780_s24  ;;  %v3753_v28 = vrot.slane %v3739_v62, %v9845_v14  ;;  %v4067_v34 = vcombine.high %v4059_v33, %v16207_v15 }
 0x405   :  { %v3709_v39 = vpop.permute.xlu0 %3708 }
 0x406   :  { %16452 = vst [vmem:[#allocation231_spill] sm:$0xff] %v11886_v46  ;;  %v4141_v1 = vrot.slane %v3709_v39, %v9842_v13  ;;  %v4097_v49 = vcombine.high %v11886_v46, %v16207_v15  ;;  %v3985_v46 = vcombine.high %v3977_v53, %v16207_v15  ;;  %v11910_v12 = vpop.permute.xlu1 %3554  ;;  %v4081_v62 = vrot.slane %v4067_v34, %v9845_v14 }
 0x407   :  { %16454 = vst [vmem:[#allocation233_spill] sm:$0xff] %v11910_v12  ;;  %v3770_v33 = vcombine.high %v3753_v28, %v16207_v15 }
 0x408   :  { %v11894_v29 = vrot.slane %v4141_v1, %v9845_v14  ;;  %4230 = vrot.lane.b32.xlu0 %v4097_v49, %s9780_s24  ;;  %v3917_v49 = vrot.slane %v3903_v23, %v9845_v14  ;;  %v4149_v19 = vcombine.high %v4141_v1, %v16207_v15  ;;  %v3724_v1 = vcombine.high %v3689_v61, %v16207_v15 }
 0x40a   :  { %v4179_v26 = vcombine.high %v11894_v29, %v16207_v15  ;;  %v4163_v23 = vrot.slane %v4149_v19, %v9845_v14  ;;  %v11920_v53 = vpop.permute.xlu1 %3570  ;;  %v3934_v34 = vcombine.high %v3917_v49, %v16207_v15  ;;  %v3738_v19 = vrot.slane %v3724_v1, %v9842_v13 }
 0x40b   :  { %16455 = vst [vmem:[#allocation234_spill] sm:$0xff] %v11920_v53  ;;  %v4098_v53 = vcombine.high %v4081_v62, %v16207_v15 }
 0x40c   :  { %4246 = vrot.lane.b32.xlu0 %v3753_v28, %s9781_s25  ;;  %4232 = vrot.lane.b32.xlu1 %v4179_v26, %s9780_s24  ;;  %v3999_v26 = vrot.slane %v3985_v46, %v9845_v14  ;;  %v3852_v46 = vcombine.high %v3835_v42, %v16207_v15  ;;  %v3806_v28 = vcombine.high %v3693_v54, %v16207_v15 }
 0x40e   :  { %v11928_v63 = vpop.permute.xlu1 %3574  ;;  %v4016_v61 = vcombine.high %v3999_v26, %v16207_v15  ;;  %v3820_v1 = vrot.slane %v3806_v28, %v9842_v13 }
 0x40f   :  { %16456 = vst [vmem:[#allocation235_spill] sm:$0xff] %v11928_v63  ;;  %v3754_v63 = vcombine.high %v3738_v19, %v16207_v15 }
 0x410   :  { %4250 = vrot.lane.b32.xlu0 %v3917_v49, %s9781_s25  ;;  %4248 = vrot.lane.b32.xlu1 %v3835_v42, %s9781_s25  ;;  %v4180_v42 = vcombine.high %v4163_v23, %v16207_v15  ;;  %v3843_v28 = vrot.slane %v3820_v1, %v9845_v14 }
 0x412   :  { %v11940_v49 = vpop.permute.xlu1 %3578 }
 0x413   :  { %16457 = vst [vmem:[#allocation236_spill] sm:$0xff] %v11940_v49 }
 0x414   :  { %4254 = vrot.lane.b32.xlu0 %v4081_v62, %s9781_s25  ;;  %4252 = vrot.lane.b32.xlu1 %v3999_v26, %s9781_s25  ;;  %v4052_v62 = vcombine.high %v3705_v10, %v16207_v15  ;;  %v4134_v26 = vcombine.high %v3709_v39, %v16207_v15 }
 0x418   :  { %4270 = vrot.lane.b32.xlu0 %v3770_v33, %s9782_s26  ;;  %4256 = vrot.lane.b32.xlu1 %v4163_v23, %s9781_s25  ;;  %v3888_v33 = vcombine.high %v3697_v11, %v16207_v15  ;;  %v3970_v11 = vcombine.high %v3701_v38, %v16207_v15  ;;  %v4148_v38 = vrot.slane %v4134_v26, %v9842_v13 }
 0x419   :  { %v3853_v26 = vcombine.high %v3843_v28, %v16207_v15 }
 0x41a   :  { %v3902_v54 = vrot.slane %v3888_v33, %v9842_v13  ;;  %v3984_v23 = vrot.slane %v3970_v11, %v9842_v13  ;;  %v4171_v33 = vrot.slane %v4148_v38, %v9845_v14 }
 0x41c   :  { %4274 = vrot.lane.b32.xlu0 %v3934_v34, %s9782_s26  ;;  %4272 = vrot.lane.b32.xlu1 %v3852_v46, %s9782_s26  ;;  %v3761_v34 = vrot.slane %v3738_v19, %v9845_v14  ;;  %v3925_v46 = vrot.slane %v3902_v54, %v9845_v14  ;;  %v4007_v39 = vrot.slane %v3984_v23, %v9845_v14 }
 0x41e   :  { %v3771_v11 = vcombine.high %v3761_v34, %v16207_v15 }
 0x420   :  { %4278 = vrot.lane.b32.xlu0 %v4098_v53, %s9782_s26  ;;  %4276 = vrot.lane.b32.xlu1 %v4016_v61, %s9782_s26  ;;  %v4066_v53 = vrot.slane %v4052_v62, %v9842_v13  ;;  %v11954_v61 = vpop.permute.xlu1 %3594  ;;  %v3935_v62 = vcombine.high %v3925_v46, %v16207_v15 }
 0x421   :  { %16458 = vst [vmem:[#allocation237_spill] sm:$0xff] %v11954_v61 }
 0x422   :  { %v4089_v10 = vrot.slane %v4066_v53, %v9845_v14 }
 0x424   :  { %4294 = vrot.lane.b32.xlu0 %v3761_v34, %s9783_s27  ;;  %4280 = vrot.lane.b32.xlu1 %v4180_v42, %s9782_s26  ;;  %v11964_v42 = vpop.permute.xlu1 %3598  ;;  %v4017_v34 = vcombine.high %v4007_v39, %v16207_v15 }
 0x425   :  { %16459 = vst [vmem:[#allocation238_spill] sm:$0xff] %v11964_v42  ;;  %v4099_v42 = vcombine.high %v4089_v10, %v16207_v15 }
 0x428   :  { %4298 = vrot.lane.b32.xlu0 %v3925_v46, %s9783_s27  ;;  %4296 = vrot.lane.b32.xlu1 %v3843_v28, %s9783_s27  ;;  %v11971_v61 = vpop.permute.xlu1 %3602  ;;  %v4181_v46 = vcombine.high %v4171_v33, %v16207_v15  ;;  %v3836_v28 = vcombine.high %v3820_v1, %v16207_v15  ;;  %v4164_v1 = vcombine.high %v4148_v38, %v16207_v15 }
 0x429   :  { %16460 = vst [vmem:[#allocation239_spill] sm:$0xff] %v11971_v61 }
 0x42c   :  { %4302 = vrot.lane.b32.xlu0 %v4089_v10, %s9783_s27  ;;  %4300 = vrot.lane.b32.xlu1 %v4007_v39, %s9783_s27  ;;  %v11978_v22 = vpop.permute.xlu1 %3690  ;;  %v4000_v10 = vcombine.high %v3984_v23, %v16207_v15  ;;  %v4082_v39 = vcombine.high %v4066_v53, %v16207_v15  ;;  %v4178_v23 = vrot.slane %v4164_v1, %v9845_v14 }
 0x430   :  { %4318 = vrot.lane.b32.xlu0 %v3771_v11, %s9784_s28  ;;  %4304 = vrot.lane.b32.xlu1 %v4171_v33, %s9783_s27  ;;  %v3918_v11 = vcombine.high %v3902_v54, %v16207_v15  ;;  %v11988_v19 = vpop.permute.xlu1 %3694  ;;  %v3850_v33 = vrot.slane %v3836_v28, %v9845_v14  ;;  %v4014_v54 = vrot.slane %v4000_v10, %v9845_v14 }
 0x431   :  { %v3779_v28 = vrot.slane %v11978_v22, %v9842_v13 }
 0x434   :  { %4322 = vrot.lane.b32.xlu0 %v3935_v62, %s9784_s28  ;;  %4320 = vrot.lane.b32.xlu1 %v3853_v26, %s9784_s28  ;;  %v3768_v62 = vrot.slane %v3754_v63, %v9845_v14  ;;  %v4096_v63 = vrot.slane %v4082_v39, %v9845_v14  ;;  %v11999_v26 = vpop.permute.xlu1 %3698  ;;  %v4182_v39 = vcombine.high %v4178_v23, %v16207_v15 }
 0x435   :  { %v3943_v1 = vrot.slane %v11999_v26, %v9842_v13 }
 0x436   :  { %v3772_v53 = vcombine.high %v3768_v62, %v16207_v15 }
 0x438   :  { %4326 = vrot.lane.b32.xlu0 %v4099_v42, %s9784_s28  ;;  %4324 = vrot.lane.b32.xlu1 %v4017_v34, %s9784_s28  ;;  %v3932_v42 = vrot.slane %v3918_v11, %v9845_v14  ;;  %v12007_v38 = vpop.permute.xlu1 %3702  ;;  %v4100_v11 = vcombine.high %v4096_v63, %v16207_v15 }
 0x43a   :  { %v3936_v34 = vcombine.high %v3932_v42, %v16207_v15 }
 0x43c   :  { %4342 = vrot.lane.b32.xlu0 %v3768_v62, %s9785_s29  ;;  %4328 = vrot.lane.b32.xlu1 %v4181_v46, %s9784_s28  ;;  %v3854_v46 = vcombine.high %v3850_v33, %v16207_v15  ;;  %v4018_v62 = vcombine.high %v4014_v54, %v16207_v15  ;;  %v12017_v10 = vpop.permute.xlu1 %3706 }
 0x440   :  { %4346 = vrot.lane.b32.xlu0 %v3932_v42, %s9785_s29  ;;  %4344 = vrot.lane.b32.xlu1 %v3850_v33, %s9785_s29  ;;  %v3787_v42 = vrot.slane %v3779_v28, %v9845_v14  ;;  %v3861_v33 = vrot.slane %v11988_v19, %v9842_v13 }
 0x442   :  { %v3803_v61 = vcombine.high %v3787_v42, %v16207_v15 }
 0x444   :  { %4350 = vrot.lane.b32.xlu0 %v4096_v63, %s9785_s29  ;;  %4348 = vrot.lane.b32.xlu1 %v4014_v54, %s9785_s29  ;;  %v4107_v63 = vrot.slane %v12017_v10, %v9842_v13  ;;  %v12031_v54 = vpop.permute.xlu1 %3710 }
 0x448   :  { %4366 = vrot.lane.b32.xlu0 %v3772_v53, %s9786_s30  ;;  %4352 = vrot.lane.b32.xlu1 %v4178_v23, %s9785_s29  ;;  %v3869_v53 = vrot.slane %v3861_v33, %v9845_v14  ;;  %v3951_v23 = vrot.slane %v3943_v1, %v9845_v14 }
 0x44a   :  { %v3967_v57 = vcombine.high %v3951_v23, %v16207_v15  ;;  %v3885_v49 = vcombine.high %v3869_v53, %v16207_v15 }
 0x44c   :  { %4370 = vrot.lane.b32.xlu0 %v3936_v34, %s9786_s30  ;;  %4368 = vrot.lane.b32.xlu1 %v3854_v46, %s9786_s30  ;;  %v4025_v34 = vrot.slane %v12007_v38, %v9842_v13  ;;  %v4115_v46 = vrot.slane %v4107_v63, %v9845_v14 }
 0x44e   :  { %v4131_v12 = vcombine.high %v4115_v46, %v16207_v15 }
 0x450   :  { %4374 = vrot.lane.b32.xlu0 %v4100_v11, %s9786_s30  ;;  %4372 = vrot.lane.b32.xlu1 %v4018_v62, %s9786_s30  ;;  %v4189_v11 = vrot.slane %v12031_v54, %v9842_v13  ;;  %v4033_v62 = vrot.slane %v4025_v34, %v9845_v14  ;;  %v3780_v13 = vcombine.high %v3779_v28, %v16207_v15 }
 0x451   :  { %v4108_v28 = vcombine.high %v4107_v63, %v16207_v15 }
 0x452   :  { %v4049_v47 = vcombine.high %v4033_v62, %v16207_v15 }
 0x454   :  { %4390 = vrot.lane.b32.xlu0 %v3787_v42, %s9787_s16  ;;  %4376 = vrot.lane.b32.xlu1 %v4182_v39, %s9786_s30  ;;  %v4197_v39 = vrot.slane %v4189_v11, %v9845_v14  ;;  %v3862_v42 = vcombine.high %v3861_v33, %v16207_v15 }
 0x458   :  { %4394 = vrot.lane.b32.xlu0 %v3951_v23, %s9787_s16  ;;  %4392 = vrot.lane.b32.xlu1 %v3869_v53, %s9787_s16  ;;  %v3944_v53 = vcombine.high %v3943_v1, %v16207_v15  ;;  %v4190_v23 = vcombine.high %v4189_v11, %v16207_v15 }
 0x45a   :  { %v4204_v63 = vrot.slane %v4190_v23, %v9845_v14 }
 0x45c   :  { %4398 = vrot.lane.b32.xlu0 %v4115_v46, %s9787_s16  ;;  %4396 = vrot.lane.b32.xlu1 %v4033_v62, %s9787_s16 }
 0x460   :  { %4414 = vrot.lane.b32.xlu0 %v3803_v61, %s9788_s17  ;;  %4400 = vrot.lane.b32.xlu1 %v4197_v39, %s9787_s16  ;;  %v4213_v61 = vcombine.high %v4197_v39, %v16207_v15 }
 0x464   :  { %4418 = vrot.lane.b32.xlu0 %v3967_v57, %s9788_s17  ;;  %4416 = vrot.lane.b32.xlu1 %v3885_v49, %s9788_s17  ;;  %v3794_v57 = vrot.slane %v3780_v13, %v9845_v14  ;;  %v4026_v49 = vcombine.high %v4025_v34, %v16207_v15  ;;  %v4122_v13 = vrot.slane %v4108_v28, %v9845_v14 }
 0x466   :  { %v4040_v1 = vrot.slane %v4026_v49, %v9845_v14  ;;  %v3804_v11 = vcombine.high %v3794_v57, %v16207_v15  ;;  %v4132_v28 = vcombine.high %v4122_v13, %v16207_v15 }
 0x468   :  { %4422 = vrot.lane.b32.xlu0 %v4131_v12, %s9788_s17  ;;  %4420 = vrot.lane.b32.xlu1 %v4049_v47, %s9788_s17  ;;  %v3958_v12 = vrot.slane %v3944_v53, %v9845_v14  ;;  %v3876_v47 = vrot.slane %v3862_v42, %v9845_v14  ;;  %v3795_v53 = vcombine.high %v11978_v22, %v16207_v15 }
 0x469   :  { %v4050_v23 = vcombine.high %v4040_v1, %v16207_v15  ;;  %v3959_v22 = vcombine.high %v11999_v26, %v16207_v15 }
 0x46a   :  { %v12071_v33 = vpop.permute.xlu0 %4222  ;;  %v3886_v42 = vcombine.high %v3876_v47, %v16207_v15 }
 0x46c   :  { %4438 = vrot.lane.b32.xlu0 %v3794_v57, %s9789_s18  ;;  %4424 = vrot.lane.b32.xlu1 %v4213_v61, %s9788_s17  ;;  %v3968_v61 = vcombine.high %v3958_v12, %v16207_v15 }
 0x46e   :  { %v12078_v34 = vpop.permute.xlu1 %4224 }
 0x470   :  { %4442 = vrot.lane.b32.xlu0 %v3958_v12, %s9789_s18  ;;  %4440 = vrot.lane.b32.xlu1 %v3876_v47, %s9789_s18  ;;  %v4214_v12 = vcombine.high %v4204_v63, %v16207_v15  ;;  %v3802_v47 = vrot.slane %v3795_v53, %v9845_v14 }
 0x472   :  { %v12080_v46 = vpop.permute.xlu0 %4226 }
 0x474   :  { %4446 = vrot.lane.b32.xlu0 %v4122_v13, %s9789_s18  ;;  %4444 = vrot.lane.b32.xlu1 %v4040_v1, %s9789_s18  ;;  %v3966_v1 = vrot.slane %v3959_v22, %v9845_v14 }
 0x476   :  { %v12085_v62 = vpop.permute.xlu1 %4228 }
 0x478   :  { %4462 = vrot.lane.b32.xlu0 %v3804_v11, %s9790_s19  ;;  %4448 = vrot.lane.b32.xlu1 %v4204_v63, %s9789_s18  ;;  %v3877_v11 = vcombine.high %v11988_v19, %v16207_v15  ;;  %v4041_v63 = vcombine.high %v12007_v38, %v16207_v15  ;;  %v4123_v19 = vcombine.high %v12017_v10, %v16207_v15 }
 0x47a   :  { %v12087_v39 = vpop.permute.xlu0 %4230  ;;  %v3884_v13 = vrot.slane %v3877_v11, %v9845_v14 }
 0x47c   :  { %4466 = vrot.lane.b32.xlu0 %v3968_v61, %s9790_s19  ;;  %4464 = vrot.lane.b32.xlu1 %v3886_v42, %s9790_s19 }
 0x47e   :  { %v12095_v57 = vpop.permute.xlu1 %4232  ;;  %v12097_v49 = vpop.permute.xlu0 %4246 }
 0x480   :  { %4470 = vrot.lane.b32.xlu0 %v4132_v28, %s9790_s19  ;;  %4468 = vrot.lane.b32.xlu1 %v4050_v23, %s9790_s19  ;;  %v4205_v28 = vcombine.high %v12031_v54, %v16207_v15  ;;  %v4048_v23 = vrot.slane %v4041_v63, %v9845_v14 }
 0x482   :  { %v12109_v61 = vpop.permute.xlu1 %4248  ;;  %v12111_v42 = vpop.permute.xlu0 %4250  ;;  %v4212_v10 = vrot.slane %v4205_v28, %v9845_v14  ;;  %v3969_v28 = vcombine.high %v3966_v1, %v16207_v15 }
 0x484   :  { %4486 = vrot.lane.b32.xlu0 %v3802_v47, %s9791_s20  ;;  %4472 = vrot.lane.b32.xlu1 %v4214_v12, %s9790_s19  ;;  %v4130_v12 = vrot.slane %v4123_v19, %v9845_v14 }
 0x486   :  { %v12121_v53 = vpop.permute.xlu1 %4252  ;;  %v12123_v26 = vpop.permute.xlu0 %4254 }
 0x487   :  { %16461 = vst [vmem:[#allocation240_spill] sm:$0xff] %v12121_v53  ;;  %16462 = vst [vmem:[#allocation241_spill] sm:$0xff] %v12123_v26  ;;  %v3805_v26 = vcombine.high %v3802_v47, %v16207_v15  ;;  %v4133_v47 = vcombine.high %v4130_v12, %v16207_v15 }
 0x488   :  { %4490 = vrot.lane.b32.xlu0 %v3966_v1, %s9791_s20  ;;  %4488 = vrot.lane.b32.xlu1 %v3884_v13, %s9791_s20  ;;  %v4215_v1 = vcombine.high %v4212_v10, %v16207_v15 }
 0x48a   :  { %v12131_v11 = vpop.permute.xlu1 %4256  ;;  %v12133_v38 = vpop.permute.xlu0 %4270 }
 0x48b   :  { %16463 = vst [vmem:[#allocation242_spill] sm:$0xff] %v12133_v38  ;;  %v3887_v38 = vcombine.high %v3884_v13, %v16207_v15 }
 0x48c   :  { %4494 = vrot.lane.b32.xlu0 %v4130_v12, %s9791_s20  ;;  %4492 = vrot.lane.b32.xlu1 %v4048_v23, %s9791_s20 }
 0x48e   :  { %v12138_v22 = vpop.permute.xlu1 %4272  ;;  %v12140_v54 = vpop.permute.xlu0 %4274 }
 0x48f   :  { %16464 = vst [vmem:[#allocation243_spill] sm:$0xff] %v12138_v22 }
 0x490   :  { %4510 = vrot.lane.b32.xlu0 %v3805_v26, %s9792_s21  ;;  %4496 = vrot.lane.b32.xlu1 %v4212_v10, %s9791_s20  ;;  %v4051_v26 = vcombine.high %v4048_v23, %v16207_v15 }
 0x492   :  { %v12145_v63 = vpop.permute.xlu1 %4276  ;;  %v12147_v19 = vpop.permute.xlu0 %4278 }
 0x493   :  { %16465 = vst [vmem:[#allocation244_spill] sm:$0xff] %v12147_v19 }
 0x494   :  { %4514 = vrot.lane.b32.xlu0 %v3969_v28, %s9792_s21  ;;  %4512 = vrot.lane.b32.xlu1 %v3887_v38, %s9792_s21 }
 0x496   :  { %v12153_v22 = vpop.permute.xlu1 %4280  ;;  %v12155_v53 = vpop.permute.xlu0 %4294 }
 0x498   :  { %4518 = vrot.lane.b32.xlu0 %v4133_v47, %s9792_s21  ;;  %4516 = vrot.lane.b32.xlu1 %v4051_v26, %s9792_s21 }
 0x49a   :  { %v12162_v19 = vpop.permute.xlu1 %4296  ;;  %v4299_v13 = vpop.permute.xlu0 %4298 }
 0x49c   :  { %4606 = vrot.lane.b32.xlu0 %v11065_v24, %s9788_s17  ;;  %4520 = vrot.lane.b32.xlu1 %v4215_v1, %s9792_s21 }
 0x49e   :  { %v12167_v38 = vpop.permute.xlu1 %4300  ;;  %v12169_v28 = vpop.permute.xlu0 %4302 }
 0x49f   :  { %16466 = vst [vmem:[#allocation245_spill] sm:$0xff] %v12167_v38  ;;  %16467 = vst [vmem:[#allocation246_spill] sm:$0xff] %v12169_v28 }
 0x4a0   :  { %4610 = vrot.lane.b32.xlu0 %v16411_v18, %s9788_s17  ;;  %4608 = vrot.lane.b32.xlu1 %v16361_v3, %s9788_s17 }
 0x4a2   :  { %v12175_v23 = vpop.permute.xlu1 %4304  ;;  %v12177_v12 = vpop.permute.xlu0 %4318 }
 0x4a3   :  { %16468 = vst [vmem:[#allocation247_spill] sm:$0xff] %v12177_v12 }
 0x4a4   :  { %4614 = vrot.lane.b32.xlu0 %v11084_v2, %s9788_s17  ;;  %4612 = vrot.lane.b32.xlu1 %v16363_v40, %s9788_s17 }
 0x4a6   :  { %v12183_v24 = vpop.permute.xlu1 %4320  ;;  %v4323_v10 = vpop.permute.xlu0 %4322 }
 0x4a7   :  { %16469 = vst [vmem:[#allocation248_spill] sm:$0xff] %v12183_v24 }
 0x4a8   :  { %4618 = vrot.lane.b32.xlu0 %v16415_v56, %s9788_s17  ;;  %4616 = vrot.lane.b32.xlu1 %v16364_v8, %s9788_s17 }
 0x4aa   :  { %v12189_v3 = vpop.permute.xlu1 %4324  ;;  %v12191_v18 = vpop.permute.xlu0 %4326 }
 0x4ab   :  { %16470 = vst [vmem:[#allocation249_spill] sm:$0xff] %v12189_v3  ;;  %16471 = vst [vmem:[#allocation250_spill] sm:$0xff] %v12191_v18 }
 0x4ac   :  { %4622 = vrot.lane.b32.xlu0 %v16417_v35, %s9788_s17  ;;  %4620 = vrot.lane.b32.xlu1 %v16366_v43, %s9788_s17 }
 0x4ae   :  { %v12197_v2 = vpop.permute.xlu1 %4328  ;;  %v12199_v40 = vpop.permute.xlu0 %4342 }
 0x4af   :  { %16472 = vst [vmem:[#allocation251_spill] sm:$0xff] %v12199_v40 }
 0x4b0   :  { %4626 = vrot.lane.b32.xlu0 %v16419_v48, %s9788_s17  ;;  %4624 = vrot.lane.b32.xlu1 %v16367_v36, %s9788_s17  ;;  %v16480_v36 = vld [vmem:[#allocation178_spill] sm:$0xff] }
 0x4b2   :  { %v12205_v8 = vpop.permute.xlu1 %4344  ;;  %v4347_v56 = vpop.permute.xlu0 %4346 }
 0x4b3   :  { %16473 = vst [vmem:[#allocation252_spill] sm:$0xff] %v12205_v8  ;;  %v3615_v8 = vsel %vm836_vm1, %v16480_v36, %v11665_v27 }
 0x4b4   :  { %4628 = vrot.lane.b32.xlu1 %v16370_v51, %s9788_s17 }
 0x4b6   :  { %v12209_v35 = vpop.permute.xlu1 %4348  ;;  %v12211_v47 = vpop.permute.xlu0 %4350 }
 0x4b7   :  { %16474 = vst [vmem:[#allocation253_spill] sm:$0xff] %v12209_v35  ;;  %16475 = vst [vmem:[#allocation254_spill] sm:$0xff] %v12211_v47  ;;  %v3621_v47 = vsel %vm843_vm2, %v3615_v8, %v11699_v52  ;;  %v16482_v35 = vld [vmem:[#allocation170_spill] sm:$0xff] }
 0x4ba   :  { %v4353_v43 = vpop.permute.xlu1 %4352  ;;  %v12213_v26 = vpop.permute.xlu0 %4366 }
 0x4bb   :  { %16476 = vst [vmem:[#allocation255_spill] sm:$0xff] %v12213_v26  ;;  %v3612_v26 = vsel %vm836_vm1, %v16482_v35, %v11649_v44 }
 0x4bc   :  { %v3618_v24 = vsel %vm843_vm2, %v3612_v26, %v11679_v4  ;;  %v4530_v4 = vsel %vm836_vm1, %v11868_v37, %v12080_v46 }
 0x4bd   :  { %v3624_v27 = vsel %vm850_vm3, %v3618_v24, %v11707_v31 }
 0x4be   :  { %v12215_v1 = vpop.permute.xlu1 %4368  ;;  %v4371_v40 = vpop.permute.xlu0 %4370  ;;  %v3630_v36 = vsel %vm857_vm4, %v3624_v27, %v11728_v41  ;;  %v4536_v41 = vsel %vm843_vm2, %v4530_v4, %v12111_v42 }
 0x4bf   :  { %16477 = vst [vmem:[#allocation256_spill] sm:$0xff] %v12215_v1  ;;  %v3627_v1 = vsel %vm850_vm3, %v3621_v47, %v11730_v32  ;;  %v3636_v44 = vsel %vm864_vm5, %v3630_v36, %v11749_v17  ;;  %v4542_v24 = vsel %vm850_vm3, %v4536_v41, %v12140_v54  ;;  %v4533_v36 = vsel %vm836_vm1, %v11894_v29, %v12095_v57 }
 0x4c0   :  { %v3633_v52 = vsel %vm857_vm4, %v3627_v1, %v11763_v0  ;;  %v3642_v35 = vsel %vm871_vm6, %v3636_v44, %v11771_v20  ;;  %v4548_v37 = vsel %vm857_vm4, %v4542_v24, %v4299_v13 }
 0x4c1   :  { %v3639_v31 = vsel %vm864_vm5, %v3633_v52, %v11785_v60  ;;  %v3648_v0 = vsel %vm878_vm7, %v3642_v35, %v11783_v25  ;;  %v4554_v60 = vsel %vm864_vm5, %v4548_v37, %v4323_v10  ;;  %v4539_v10 = vsel %vm843_vm2, %v4533_v36, %v12131_v11 }
 0x4c2   :  { %v12217_v48 = vpop.permute.xlu1 %4372  ;;  %v12219_v18 = vpop.permute.xlu0 %4374  ;;  %v3654_v17 = vsel %vm885_vm8, %v3648_v0, %v11793_v59  ;;  %v3645_v25 = vsel %vm871_vm6, %v3639_v31, %v11799_v30  ;;  %v4560_v42 = vsel %vm871_vm6, %v4554_v60, %v4347_v56 }
 0x4c3   :  { %16478 = vst [vmem:[#allocation257_spill] sm:$0xff] %v12217_v48  ;;  %16479 = vst [vmem:[#allocation258_spill] sm:$0xff] %v12219_v18  ;;  %v3660_v20 = vsel %vm16141_vm9, %v3654_v17, %v11803_v50  ;;  %v4566_v59 = vsel %vm878_vm7, %v4560_v42, %v4371_v40  ;;  %v3651_v54 = vsel %vm878_vm7, %v3645_v25, %v11815_v5 }
 0x4c4   :  { %v8361_v26 = vrot.slane %v3660_v20, 5  ;;  %v3657_v40 = vsel %vm885_vm8, %v3651_v54, %v11829_v58 }
 0x4c5   :  { %v3663_v29 = vsel %vm16141_vm9, %v3657_v40, %v11845_v6  ;;  %v3669_v40 = vsel %vm899_vm12, %v11845_v6, %v11871_v9 }
 0x4c6   :  { %v4377_v3 = vpop.permute.xlu1 %4376  ;;  %v12224_v51 = vpop.permute.xlu0 %4390  ;;  %v8556_v5 = vsel %vm16145_vm0, %v11442_v16, %v8361_v26 }
 0x4c7   :  { %16481 = vst [vmem:[#allocation178_spill] sm:$0xff] %v12224_v51 }
 0x4ca   :  { %v12233_v48 = vpop.permute.xlu1 %4392  ;;  %v4395_v18 = vpop.permute.xlu0 %4394 }
 0x4cb   :  { %16483 = vst [vmem:[#allocation170_spill] sm:$0xff] %v12233_v48  ;;  %v4572_v1 = vsel %vm885_vm8, %v4566_v59, %v4395_v18  ;;  %v4545_v18 = vsel %vm850_vm3, %v4539_v10, %v12153_v22  ;;  %v8367_v22 = vrot.slane %v3663_v29, 5  ;;  %v3666_v10 = vsel %vm899_vm12, %v11803_v50, %v11813_v21 }
 0x4cc   :  { %v4551_v57 = vsel %vm857_vm4, %v4545_v18, %v12175_v23  ;;  %v16502_v18 = vld [vmem:[#allocation223_spill] sm:$0xff] }
 0x4cd   :  { %v4557_v16 = vsel %vm864_vm5, %v4551_v57, %v12197_v2  ;;  %v8562_v17 = vsel %vm16145_vm0, %v11479_v45, %v8367_v22 }
 0x4ce   :  { %v12245_v8 = vpop.permute.xlu1 %4396  ;;  %v12247_v32 = vpop.permute.xlu0 %4398  ;;  %v4563_v58 = vsel %vm871_vm6, %v4557_v16, %v4353_v43 }
 0x4cf   :  { %16484 = vst [vmem:[#allocation259_spill] sm:$0xff] %v12245_v8  ;;  %16485 = vst [vmem:[#allocation260_spill] sm:$0xff] %v12247_v32  ;;  %v4569_v35 = vsel %vm878_vm7, %v4563_v58, %v4377_v3  ;;  %v16504_v58 = vld [vmem:[#allocation233_spill] sm:$0xff] }
 0x4d0   :  { %v3675_v22 = vsel %vm906_vm13, %v3669_v40, %v16504_v58 }
 0x4d2   :  { %v4401_v46 = vpop.permute.xlu1 %4400  ;;  %v12267_v47 = vpop.permute.xlu0 %4414 }
 0x4d3   :  { %16486 = vst [vmem:[#allocation261_spill] sm:$0xff] %v12267_v47  ;;  %v4575_v4 = vsel %vm885_vm8, %v4569_v35, %v4401_v46 }
 0x4d6   :  { %v12277_v27 = vpop.permute.xlu1 %4416  ;;  %v4419_v13 = vpop.permute.xlu0 %4418 }
 0x4d7   :  { %16487 = vst [vmem:[#allocation262_spill] sm:$0xff] %v12277_v27  ;;  %v4578_v30 = vsel %vm16141_vm9, %v4572_v1, %v4419_v13 }
 0x4d8   :  { %v8397_v56 = vrot.slane %v4578_v30, 4 }
 0x4da   :  { %v12296_v52 = vsel %vm16102_vm11, %v8556_v5, %v8397_v56  ;;  %v12298_v11 = vpop.permute.xlu1 %4420  ;;  %v12300_v44 = vpop.permute.xlu0 %4422  ;;  %v3672_v56 = vsel %vm906_vm13, %v3666_v10, %v11823_v7  ;;  %v16507_v10 = vld [vmem:[#allocation167_spill] sm:$0xff] }
 0x4db   :  { %16488 = vst [vmem:[#allocation263_spill] sm:$0xff] %v12298_v11  ;;  %16489 = vst [vmem:[#allocation264_spill] sm:$0xff] %v12300_v44  ;;  %v3678_v5 = vsel %vm913_vm14, %v3672_v56, %v11833_v55 }
 0x4dc   :  { %v3684_v29 = vsel %vm920_vm15, %v3678_v5, %v16502_v18 }
 0x4dd   :  { %v8362_v50 = vrot.slane %v3684_v29, 5 }
 0x4de   :  { %v4425_v31 = vpop.permute.xlu1 %4424  ;;  %v12307_v0 = vpop.permute.xlu0 %4438 }
 0x4df   :  { %16490 = vst [vmem:[#allocation265_spill] sm:$0xff] %v12307_v0  ;;  %v4581_v23 = vsel %vm16141_vm9, %v4575_v4, %v4425_v31  ;;  %v16506_v4 = vld [vmem:[#allocation236_spill] sm:$0xff]  ;;  %v8557_v56 = vsel %vm16145_vm0, %v16507_v10, %v8362_v50  ;;  %v16512_v50 = vld [vmem:[#allocation122_spill] sm:$0xff] }
 0x4e0   :  { %v8403_v41 = vrot.slane %v4581_v23, 4  ;;  %v3681_v23 = vsel %vm913_vm14, %v3675_v22, %v16506_v4  ;;  %v16511_v22 = vld [vmem:[#allocation3_spill] sm:$0xff] }
 0x4e2   :  { %v12313_v24 = vsel %vm16102_vm11, %v8562_v17, %v8403_v41  ;;  %v12315_v2 = vpop.permute.xlu1 %4440  ;;  %v4443_v43 = vpop.permute.xlu0 %4442 }
 0x4e3   :  { %16491 = vst [vmem:[#allocation266_spill] sm:$0xff] %v12315_v2  ;;  %v4584_v21 = vsel %vm899_vm12, %v4419_v13, %v4443_v43  ;;  %v16508_v43 = vld [vmem:[#allocation239_spill] sm:$0xff] }
 0x4e6   :  { %v12317_v20 = vpop.permute.xlu1 %4444  ;;  %v12319_v3 = vpop.permute.xlu0 %4446 }
 0x4e7   :  { %16492 = vst [vmem:[#allocation267_spill] sm:$0xff] %v12317_v20  ;;  %16493 = vst [vmem:[#allocation268_spill] sm:$0xff] %v12319_v3 }
 0x4ea   :  { %v4449_v37 = vpop.permute.xlu1 %4448  ;;  %v12321_v46 = vpop.permute.xlu0 %4462 }
 0x4eb   :  { %16494 = vst [vmem:[#allocation269_spill] sm:$0xff] %v12321_v46  ;;  %v4587_v35 = vsel %vm899_vm12, %v4425_v31, %v4449_v37 }
 0x4ee   :  { %v12323_v25 = vpop.permute.xlu1 %4464  ;;  %v4467_v60 = vpop.permute.xlu0 %4466 }
 0x4ef   :  { %16495 = vst [vmem:[#allocation270_spill] sm:$0xff] %v12323_v25  ;;  %v4590_v7 = vsel %vm906_vm13, %v4584_v21, %v4467_v60  ;;  %v3687_v60 = vsel %vm920_vm15, %v3681_v23, %v16508_v43 }
 0x4f0   :  { %v8368_v5 = vrot.slane %v3687_v60, 5 }
 0x4f2   :  { %v12325_v42 = vpop.permute.xlu1 %4468  ;;  %v12327_v26 = vpop.permute.xlu0 %4470 }
 0x4f3   :  { %16496 = vst [vmem:[#allocation271_spill] sm:$0xff] %v12325_v42  ;;  %16497 = vst [vmem:[#allocation272_spill] sm:$0xff] %v12327_v26 }
 0x4f6   :  { %v4473_v45 = vpop.permute.xlu1 %4472  ;;  %v12329_v59 = vpop.permute.xlu0 %4486 }
 0x4f7   :  { %16498 = vst [vmem:[#allocation273_spill] sm:$0xff] %v12329_v59  ;;  %v4593_v13 = vsel %vm906_vm13, %v4587_v35, %v4473_v45 }
 0x4fa   :  { %v12331_v54 = vpop.permute.xlu1 %4488  ;;  %v4491_v1 = vpop.permute.xlu0 %4490 }
 0x4fb   :  { %16499 = vst [vmem:[#allocation274_spill] sm:$0xff] %v12331_v54  ;;  %v4596_v9 = vsel %vm913_vm14, %v4590_v7, %v4491_v1  ;;  %v8563_v7 = vsel %vm16145_vm0, %v16512_v50, %v8368_v5 }
 0x4fe   :  { %v12333_v36 = vpop.permute.xlu1 %4492  ;;  %v12335_v30 = vpop.permute.xlu0 %4494 }
 0x4ff   :  { %16500 = vst [vmem:[#allocation275_spill] sm:$0xff] %v12333_v36  ;;  %16501 = vst [vmem:[#allocation276_spill] sm:$0xff] %v12335_v30 }
 0x502   :  { %v4497_v57 = vpop.permute.xlu1 %4496  ;;  %v12349_v16 = vpop.permute.xlu0 %4510 }
 0x503   :  { %16503 = vst [vmem:[#allocation223_spill] sm:$0xff] %v12349_v16  ;;  %v4599_v40 = vsel %vm913_vm14, %v4593_v13, %v4497_v57 }
 0x506   :  { %v12357_v6 = vpop.permute.xlu1 %4512  ;;  %v4515_v55 = vpop.permute.xlu0 %4514 }
 0x507   :  { %16505 = vst [vmem:[#allocation233_spill] sm:$0xff] %v12357_v6  ;;  %v4602_v41 = vsel %vm920_vm15, %v4596_v9, %v4515_v55 }
 0x508   :  { %v8398_v17 = vrot.slane %v4602_v41, 4 }
 0x50a   :  { %v12368_v31 = vsel %vm16102_vm11, %v8557_v56, %v8398_v17  ;;  %v12370_v37 = vpop.permute.xlu1 %4516  ;;  %v12372_v1 = vpop.permute.xlu0 %4518 }
 0x50b   :  { %16509 = vst [vmem:[#allocation236_spill] sm:$0xff] %v12370_v37  ;;  %16510 = vst [vmem:[#allocation167_spill] sm:$0xff] %v12372_v1 }
 0x50e   :  { %v4521_v18 = vpop.permute.xlu1 %4520  ;;  %v4607_v29 = vpop.permute.xlu0 %4606 }
 0x50f   :  { %v4605_v58 = vsel %vm920_vm15, %v4599_v40, %v4521_v18  ;;  %v4649_v21 = vrot.slane %v4607_v29, %v16511_v22 }
 0x510   :  { %v8404_v45 = vrot.slane %v4605_v58, 4 }
 0x511   :  { %v12380_v35 = vrot.slane %v4649_v21, %v9845_v14 }
 0x512   :  { %v12383_v9 = vsel %vm16102_vm11, %v8563_v7, %v8404_v45  ;;  %v4611_v55 = vpop.permute.xlu0 %4610  ;;  %v4657_v7 = vcombine.high %v4649_v21, %v16207_v15  ;;  %vm16113_vm11 = vcmask 1045504  }
 0x513   :  { %16513 = vst [vmem:[#allocation239_spill] sm:$0xff] %v12380_v35  ;;  %v4731_v57 = vrot.slane %v4611_v55, %v16511_v22  ;;  %v4687_v4 = vcombine.high %v12380_v35, %v16207_v15 }
 0x514   :  { %v4671_v35 = vrot.slane %v4657_v7, %v9845_v14 }
 0x515   :  { %v12389_v23 = vrot.slane %v4731_v57, %v9845_v14  ;;  %5140 = vrot.lane.b32.xlu0 %v4687_v4, %s9780_s24 }
 0x516   :  { %v4615_v41 = vpop.permute.xlu0 %4614 }
 0x517   :  { %16514 = vst [vmem:[#allocation3_spill] sm:$0xff] %v12389_v23  ;;  %v4813_v17 = vrot.slane %v4615_v41, %v16511_v22  ;;  %v4769_v10 = vcombine.high %v12389_v23, %v16207_v15 }
 0x519   :  { %v12396_v56 = vrot.slane %v4813_v17, %v9845_v14  ;;  %5142 = vrot.lane.b32.xlu1 %v4769_v10, %s9780_s24  ;;  %v4821_v23 = vcombine.high %v4813_v17, %v16207_v15 }
 0x51a   :  { %v4619_v13 = vpop.permute.xlu0 %4618 }
 0x51b   :  { %v4895_v43 = vrot.slane %v4619_v13, %v16511_v22  ;;  %v4851_v60 = vcombine.high %v12396_v56, %v16207_v15  ;;  %v4835_v1 = vrot.slane %v4821_v23, %v9845_v14 }
 0x51d   :  { %v12403_v40 = vrot.slane %v4895_v43, %v9845_v14  ;;  %5144 = vrot.lane.b32.xlu0 %v4851_v60, %s9780_s24  ;;  %v4903_v21 = vcombine.high %v4895_v43, %v16207_v15  ;;  %v4688_v43 = vcombine.high %v4671_v35, %v16207_v15 }
 0x51e   :  { %v4623_v5 = vpop.permute.xlu0 %4622 }
 0x51f   :  { %16515 = vst [vmem:[#allocation122_spill] sm:$0xff] %v12403_v40  ;;  %v4977_v18 = vrot.slane %v4623_v5, %v16511_v22  ;;  %v4933_v58 = vcombine.high %v12403_v40, %v16207_v15  ;;  %v4739_v40 = vcombine.high %v4731_v57, %v16207_v15  ;;  %v4917_v7 = vrot.slane %v4903_v21, %v9845_v14 }
 0x521   :  { %v12410_v45 = vrot.slane %v4977_v18, %v9845_v14  ;;  %5146 = vrot.lane.b32.xlu1 %v4933_v58, %s9780_s24 }
 0x522   :  { %v4627_v50 = vpop.permute.xlu0 %4626 }
 0x523   :  { %16516 = vst [vmem:[#allocation277_spill] sm:$0xff] %v12410_v45  ;;  %v5059_v4 = vrot.slane %v4627_v50, %v16511_v22  ;;  %v5015_v10 = vcombine.high %v12410_v45, %v16207_v15  ;;  %v4985_v45 = vcombine.high %v4977_v18, %v16207_v15  ;;  %v4852_v18 = vcombine.high %v4835_v1, %v16207_v15 }
 0x525   :  { %v12418_v60 = vrot.slane %v5059_v4, %v9845_v14  ;;  %5148 = vrot.lane.b32.xlu0 %v5015_v10, %s9780_s24  ;;  %v4753_v10 = vrot.slane %v4739_v40, %v9845_v14  ;;  %v5067_v57 = vcombine.high %v5059_v4, %v16207_v15  ;;  %v4999_v17 = vrot.slane %v4985_v45, %v9845_v14 }
 0x526   :  { %v4642_v40 = vcombine.high %v4607_v29, %v16207_v15 }
 0x527   :  { %v5097_v58 = vcombine.high %v12418_v60, %v16207_v15  ;;  %v5081_v23 = vrot.slane %v5067_v57, %v9845_v14  ;;  %v4770_v45 = vcombine.high %v4753_v10, %v16207_v15  ;;  %v5016_v21 = vcombine.high %v4999_v17, %v16207_v15 }
 0x528   :  { %v4656_v4 = vrot.slane %v4642_v40, %v16511_v22  ;;  %v4934_v57 = vcombine.high %v4917_v7, %v16207_v15 }
 0x529   :  { %5164 = vrot.lane.b32.xlu0 %v4671_v35, %s9781_s25  ;;  %5150 = vrot.lane.b32.xlu1 %v5097_v58, %s9780_s24  ;;  %v4724_v35 = vcombine.high %v4611_v55, %v16207_v15  ;;  %v4806_v58 = vcombine.high %v4615_v41, %v16207_v15  ;;  %v4970_v55 = vcombine.high %v4623_v5, %v16207_v15 }
 0x52a   :  { %v4679_v29 = vrot.slane %v4656_v4, %v9845_v14  ;;  %v5098_v41 = vcombine.high %v5081_v23, %v16207_v15 }
 0x52b   :  { %v4984_v40 = vrot.slane %v4970_v55, %v16511_v22  ;;  %v12486_v55 = vpop.permute.xlu1 %4608 }
 0x52d   :  { %5168 = vrot.lane.b32.xlu0 %v4835_v1, %s9781_s25  ;;  %5166 = vrot.lane.b32.xlu1 %v4753_v10, %s9781_s25  ;;  %v4738_v1 = vrot.slane %v4724_v35, %v16511_v22  ;;  %v4820_v10 = vrot.slane %v4806_v58, %v16511_v22  ;;  %v5007_v5 = vrot.slane %v4984_v40, %v9845_v14 }
 0x52e   :  { %v4689_v35 = vcombine.high %v4679_v29, %v16207_v15 }
 0x531   :  { %5172 = vrot.lane.b32.xlu0 %v4999_v17, %s9781_s25  ;;  %5170 = vrot.lane.b32.xlu1 %v4917_v7, %s9781_s25  ;;  %v4761_v17 = vrot.slane %v4738_v1, %v9845_v14 }
 0x535   :  { %5188 = vrot.lane.b32.xlu0 %v4688_v43, %s9782_s26  ;;  %5174 = vrot.lane.b32.xlu1 %v5081_v23, %s9781_s25  ;;  %v4888_v43 = vcombine.high %v4619_v13, %v16207_v15 }
 0x537   :  { %v4902_v7 = vrot.slane %v4888_v43, %v16511_v22  ;;  %v5017_v43 = vcombine.high %v5007_v5, %v16207_v15 }
 0x539   :  { %5192 = vrot.lane.b32.xlu0 %v4852_v18, %s9782_s26  ;;  %5190 = vrot.lane.b32.xlu1 %v4770_v45, %s9782_s26  ;;  %v5052_v18 = vcombine.high %v4627_v50, %v16207_v15  ;;  %v4843_v45 = vrot.slane %v4820_v10, %v9845_v14  ;;  %v4925_v23 = vrot.slane %v4902_v7, %v9845_v14 }
 0x53b   :  { %v5066_v13 = vrot.slane %v5052_v18, %v16511_v22  ;;  %v4853_v58 = vcombine.high %v4843_v45, %v16207_v15 }
 0x53d   :  { %5196 = vrot.lane.b32.xlu0 %v5016_v21, %s9782_s26  ;;  %5194 = vrot.lane.b32.xlu1 %v4934_v57, %s9782_s26  ;;  %v5089_v50 = vrot.slane %v5066_v13, %v9845_v14  ;;  %v4771_v21 = vcombine.high %v4761_v17, %v16207_v15  ;;  %v4672_v57 = vcombine.high %v4656_v4, %v16207_v15  ;;  %v12496_v4 = vpop.permute.xlu1 %4612 }
 0x53f   :  { %v4686_v18 = vrot.slane %v4672_v57, %v9845_v14 }
 0x541   :  { %5212 = vrot.lane.b32.xlu0 %v4679_v29, %s9783_s27  ;;  %5198 = vrot.lane.b32.xlu1 %v5098_v41, %s9782_s26  ;;  %v4935_v29 = vcombine.high %v4925_v23, %v16207_v15  ;;  %v4754_v41 = vcombine.high %v4738_v1, %v16207_v15 }
 0x543   :  { %v4768_v1 = vrot.slane %v4754_v41, %v9845_v14 }
 0x545   :  { %5216 = vrot.lane.b32.xlu0 %v4843_v45, %s9783_s27  ;;  %5214 = vrot.lane.b32.xlu1 %v4761_v17, %s9783_s27  ;;  %v4836_v17 = vcombine.high %v4820_v10, %v16207_v15  ;;  %v5099_v45 = vcombine.high %v5089_v50, %v16207_v15  ;;  %v5082_v10 = vcombine.high %v5066_v13, %v16207_v15 }
 0x549   :  { %5220 = vrot.lane.b32.xlu0 %v5007_v5, %s9783_s27  ;;  %5218 = vrot.lane.b32.xlu1 %v4925_v23, %s9783_s27  ;;  %v4918_v5 = vcombine.high %v4902_v7, %v16207_v15  ;;  %v5000_v23 = vcombine.high %v4984_v40, %v16207_v15  ;;  %v4690_v7 = vcombine.high %v4686_v18, %v16207_v15 }
 0x54a   :  { %v5096_v40 = vrot.slane %v5082_v10, %v9845_v14 }
 0x54d   :  { %5236 = vrot.lane.b32.xlu0 %v4689_v35, %s9784_s28  ;;  %5222 = vrot.lane.b32.xlu1 %v5089_v50, %s9783_s27  ;;  %v4850_v35 = vrot.slane %v4836_v17, %v9845_v14  ;;  %v5014_v50 = vrot.slane %v5000_v23, %v9845_v14 }
 0x54f   :  { %v4854_v13 = vcombine.high %v4850_v35, %v16207_v15  ;;  %v5018_v41 = vcombine.high %v5014_v50, %v16207_v15 }
 0x551   :  { %5240 = vrot.lane.b32.xlu0 %v4853_v58, %s9784_s28  ;;  %5238 = vrot.lane.b32.xlu1 %v4771_v21, %s9784_s28  ;;  %v4932_v58 = vrot.slane %v4918_v5, %v9845_v14  ;;  %v12507_v21 = vpop.permute.xlu1 %4616  ;;  %v4779_v5 = vrot.slane %v12496_v4, %v16511_v22 }
 0x552   :  { %v4861_v23 = vrot.slane %v12507_v21, %v16511_v22 }
 0x553   :  { %v4936_v17 = vcombine.high %v4932_v58, %v16207_v15 }
 0x555   :  { %5244 = vrot.lane.b32.xlu0 %v5017_v43, %s9784_s28  ;;  %5242 = vrot.lane.b32.xlu1 %v4935_v29, %s9784_s28  ;;  %v12515_v57 = vpop.permute.xlu1 %4620  ;;  %v4772_v43 = vcombine.high %v4768_v1, %v16207_v15  ;;  %v4697_v29 = vrot.slane %v12486_v55, %v16511_v22 }
 0x557   :  { %v4698_v6 = vcombine.high %v4697_v29, %v16207_v15 }
 0x559   :  { %5260 = vrot.lane.b32.xlu0 %v4686_v18, %s9785_s29  ;;  %5246 = vrot.lane.b32.xlu1 %v5099_v45, %s9784_s28  ;;  %v12525_v18 = vpop.permute.xlu1 %4624  ;;  %v4705_v45 = vrot.slane %v4697_v29, %v9845_v14 }
 0x55d   :  { %5264 = vrot.lane.b32.xlu0 %v4850_v35, %s9785_s29  ;;  %5262 = vrot.lane.b32.xlu1 %v4768_v1, %s9785_s29  ;;  %v5100_v35 = vcombine.high %v5096_v40, %v16207_v15  ;;  %v5025_v1 = vrot.slane %v12525_v18, %v16511_v22  ;;  %v12539_v10 = vpop.permute.xlu1 %4628 }
 0x55f   :  { %v5026_v29 = vcombine.high %v5025_v1, %v16207_v15 }
 0x561   :  { %5268 = vrot.lane.b32.xlu0 %v5014_v50, %s9785_s29  ;;  %5266 = vrot.lane.b32.xlu1 %v4932_v58, %s9785_s29  ;;  %v4787_v50 = vrot.slane %v4779_v5, %v9845_v14  ;;  %v4869_v58 = vrot.slane %v4861_v23, %v9845_v14 }
 0x563   :  { %v4803_v37 = vcombine.high %v4787_v50, %v16207_v15 }
 0x565   :  { %5284 = vrot.lane.b32.xlu0 %v4690_v7, %s9786_s30  ;;  %5270 = vrot.lane.b32.xlu1 %v5096_v40, %s9785_s29  ;;  %v4943_v7 = vrot.slane %v12515_v57, %v16511_v22  ;;  %v5107_v40 = vrot.slane %v12539_v10, %v16511_v22 }
 0x569   :  { %5288 = vrot.lane.b32.xlu0 %v4854_v13, %s9786_s30  ;;  %5286 = vrot.lane.b32.xlu1 %v4772_v43, %s9786_s30  ;;  %v5033_v13 = vrot.slane %v5025_v1, %v9845_v14  ;;  %v4951_v43 = vrot.slane %v4943_v7, %v9845_v14 }
 0x56b   :  { %v5049_v30 = vcombine.high %v5033_v13, %v16207_v15  ;;  %v4967_v36 = vcombine.high %v4951_v43, %v16207_v15 }
 0x56d   :  { %5292 = vrot.lane.b32.xlu0 %v5018_v41, %s9786_s30  ;;  %5290 = vrot.lane.b32.xlu1 %v4936_v17, %s9786_s30  ;;  %v5115_v41 = vrot.slane %v5107_v40, %v9845_v14  ;;  %v4721_v17 = vcombine.high %v4705_v45, %v16207_v15 }
 0x571   :  { %5308 = vrot.lane.b32.xlu0 %v4705_v45, %s9787_s16  ;;  %5294 = vrot.lane.b32.xlu1 %v5100_v35, %s9786_s30  ;;  %v4885_v35 = vcombine.high %v4869_v58, %v16207_v15  ;;  %v4780_v45 = vcombine.high %v4779_v5, %v16207_v15 }
 0x575   :  { %5312 = vrot.lane.b32.xlu0 %v4869_v58, %s9787_s16  ;;  %5310 = vrot.lane.b32.xlu1 %v4787_v50, %s9787_s16  ;;  %v4862_v58 = vcombine.high %v4861_v23, %v16207_v15  ;;  %v4712_v50 = vrot.slane %v4698_v6, %v9845_v14  ;;  %v5108_v6 = vcombine.high %v5107_v40, %v16207_v15 }
 0x576   :  { %v5040_v23 = vrot.slane %v5026_v29, %v9845_v14 }
 0x578   :  { %v5050_v29 = vcombine.high %v5040_v23, %v16207_v15 }
 0x579   :  { %5316 = vrot.lane.b32.xlu0 %v5033_v13, %s9787_s16  ;;  %5314 = vrot.lane.b32.xlu1 %v4951_v43, %s9787_s16  ;;  %v4722_v43 = vcombine.high %v4712_v50, %v16207_v15 }
 0x57d   :  { %5332 = vrot.lane.b32.xlu0 %v4721_v17, %s9788_s17  ;;  %5318 = vrot.lane.b32.xlu1 %v5115_v41, %s9787_s16  ;;  %v5131_v17 = vcombine.high %v5115_v41, %v16207_v15  ;;  %v5122_v41 = vrot.slane %v5108_v6, %v9845_v14 }
 0x581   :  { %5336 = vrot.lane.b32.xlu0 %v4885_v35, %s9788_s17  ;;  %5334 = vrot.lane.b32.xlu1 %v4803_v37, %s9788_s17  ;;  %v4944_v37 = vcombine.high %v4943_v7, %v16207_v15 }
 0x583   :  { %v4958_v13 = vrot.slane %v4944_v37, %v9845_v14 }
 0x585   :  { %5340 = vrot.lane.b32.xlu0 %v5049_v30, %s9788_s17  ;;  %5338 = vrot.lane.b32.xlu1 %v4967_v36, %s9788_s17  ;;  %v4876_v30 = vrot.slane %v4862_v58, %v9845_v14  ;;  %v4794_v36 = vrot.slane %v4780_v45, %v9845_v14  ;;  %v4968_v6 = vcombine.high %v4958_v13, %v16207_v15 }
 0x587   :  { %v12579_v5 = vpop.permute.xlu0 %5140  ;;  %v4886_v45 = vcombine.high %v4876_v30, %v16207_v15  ;;  %v4804_v58 = vcombine.high %v4794_v36, %v16207_v15 }
 0x588   :  { %16517 = vst [vmem:[#allocation278_spill] sm:$0xff] %v12579_v5 }
 0x589   :  { %5356 = vrot.lane.b32.xlu0 %v4712_v50, %s9789_s18  ;;  %5342 = vrot.lane.b32.xlu1 %v5131_v17, %s9788_s17  ;;  %v4713_v50 = vcombine.high %v12486_v55, %v16207_v15  ;;  %v4877_v55 = vcombine.high %v12507_v21, %v16207_v15  ;;  %v5041_v21 = vcombine.high %v12525_v18, %v16207_v15 }
 0x58b   :  { %v12585_v1 = vpop.permute.xlu1 %5142 }
 0x58c   :  { %16518 = vst [vmem:[#allocation279_spill] sm:$0xff] %v12585_v1 }
 0x58d   :  { %5360 = vrot.lane.b32.xlu0 %v4876_v30, %s9789_s18  ;;  %5358 = vrot.lane.b32.xlu1 %v4794_v36, %s9789_s18  ;;  %v4720_v30 = vrot.slane %v4713_v50, %v9845_v14  ;;  %v4795_v36 = vcombine.high %v12496_v4, %v16207_v15  ;;  %v4959_v4 = vcombine.high %v12515_v57, %v16207_v15  ;;  %v9766_v57 = vld [vmem:[%s16025_s0] sm:$0xff] }
 0x58f   :  { %v12587_v7 = vpop.permute.xlu0 %5144  ;;  %v4966_v18 = vrot.slane %v4959_v4, %v9845_v14  ;;  %v9768_v4 = vld [vmem:[%s16025_s0 + $0x20] sm:$0xff]  ;;  %v4723_v1 = vcombine.high %v4720_v30, %v16207_v15 }
 0x590   :  { %v5448_v38 = vsel %vm836_vm1, %v12396_v56, %v12587_v7 }
 0x591   :  { %5364 = vrot.lane.b32.xlu0 %v5040_v23, %s9789_s18  ;;  %5362 = vrot.lane.b32.xlu1 %v4958_v13, %s9789_s18  ;;  %v5132_v23 = vcombine.high %v5122_v41, %v16207_v15  ;;  %v4802_v13 = vrot.slane %v4795_v36, %v9845_v14  ;;  %v5525_v36 = vrot.slane %v9766_v57, 2  ;;  %v4969_v2 = vcombine.high %v4966_v18, %v16207_v15 }
 0x593   :  { %v12593_v40 = vpop.permute.xlu1 %5146  ;;  %v4805_v25 = vcombine.high %v4802_v13, %v16207_v15 }
 0x594   :  { %16519 = vst [vmem:[#allocation280_spill] sm:$0xff] %v12593_v40 }
 0x595   :  { %5380 = vrot.lane.b32.xlu0 %v4722_v43, %s9790_s19  ;;  %5366 = vrot.lane.b32.xlu1 %v5122_v41, %s9789_s18  ;;  %v9765_v41 = vld [vmem:[%s16025_s0 + $0x8] sm:$0xff] }
 0x597   :  { %v12595_v35 = vpop.permute.xlu0 %5148 }
 0x598   :  { %16520 = vst [vmem:[#allocation281_spill] sm:$0xff] %v12595_v35 }
 0x599   :  { %5384 = vrot.lane.b32.xlu0 %v4886_v45, %s9790_s19  ;;  %5382 = vrot.lane.b32.xlu1 %v4804_v58, %s9790_s19  ;;  %v4884_v58 = vrot.slane %v4877_v55, %v9845_v14  ;;  %v5048_v55 = vrot.slane %v5041_v21, %v9845_v14  ;;  %v9769_v21 = vld [vmem:[%s16025_s0 + $0x18] sm:$0xff] }
 0x59a   :  { %v12664_v57 = vrot.slane %v9769_v21, 2  ;;  %v9771_v21 = vld [vmem:[%s16025_s0 + $0x48] sm:$0xff] }
 0x59b   :  { %v12603_v17 = vpop.permute.xlu1 %5150  ;;  %v12605_v37 = vpop.permute.xlu0 %5164  ;;  %v12682_v5 = vrot.slane %v9771_v21, 2  ;;  %v9773_v21 = vld [vmem:[%s16025_s0 + $0x38] sm:$0xff] }
 0x59c   :  { %16521 = vst [vmem:[#allocation282_spill] sm:$0xff] %v12605_v37 }
 0x59d   :  { %5388 = vrot.lane.b32.xlu0 %v5050_v29, %s9790_s19  ;;  %5386 = vrot.lane.b32.xlu1 %v4968_v6, %s9790_s19  ;;  %v12638_v6 = vrot.slane %v9765_v41, 2  ;;  %v9767_v41 = vld [vmem:[%s16025_s0 + $0x28] sm:$0xff] }
 0x59f   :  { %v12616_v43 = vpop.permute.xlu1 %5166  ;;  %v12618_v45 = vpop.permute.xlu0 %5168 }
 0x5a0   :  { %16522 = vst [vmem:[#allocation283_spill] sm:$0xff] %v12616_v43  ;;  %v12654_v43 = vrot.slane %v9767_v41, 2  ;;  %v9770_v41 = vld [vmem:[%s16025_s0 + $0x10] sm:$0xff] }
 0x5a1   :  { %5404 = vrot.lane.b32.xlu0 %v4720_v30, %s9791_s20  ;;  %5390 = vrot.lane.b32.xlu1 %v5132_v23, %s9790_s19  ;;  %v5123_v23 = vcombine.high %v12539_v10, %v16207_v15  ;;  %v5531_v10 = vrot.slane %v9768_v4, 2  ;;  %v5528_v37 = vrot.slane %v9770_v41, 2  ;;  %v9772_v30 = vld [vmem:[%s16025_s0 + $0x40] sm:$0xff] }
 0x5a2   :  { %v5537_v41 = vrot.slane %v9772_v30, 2  ;;  %v4887_v30 = vcombine.high %v4884_v58, %v16207_v15 }
 0x5a3   :  { %v12629_v50 = vpop.permute.xlu1 %5170  ;;  %v12631_v29 = vpop.permute.xlu0 %5172  ;;  %v5130_v35 = vrot.slane %v5123_v23, %v9845_v14  ;;  %v12690_v23 = vsel %vm16113_vm11, %v5531_v10, %v12654_v43  ;;  %v9774_v10 = vld [vmem:[%s16025_s0 + $0x30] sm:$0xff] }
 0x5a4   :  { %16523 = vst [vmem:[#allocation284_spill] sm:$0xff] %v12629_v50  ;;  %16524 = vst [vmem:[#allocation285_spill] sm:$0xff] %v12631_v29  ;;  %v5534_v54 = vrot.slane %v9774_v10, 2 }
 0x5a5   :  { %5408 = vrot.lane.b32.xlu0 %v4884_v58, %s9791_s20  ;;  %5406 = vrot.lane.b32.xlu1 %v4802_v13, %s9791_s20  ;;  %v9775_v13 = vld [vmem:[%s16025_s0 + $0x58] sm:$0xff] }
 0x5a6   :  { %v12729_v58 = vrot.slane %v9775_v13, 2 }
 0x5a7   :  { %v12647_v29 = vpop.permute.xlu1 %5174  ;;  %v12649_v50 = vpop.permute.xlu0 %5188 }
 0x5a8   :  { %16525 = vst [vmem:[#allocation286_spill] sm:$0xff] %v12649_v50  ;;  %v12668_v50 = vsel %vm16113_vm11, %v5525_v36, %v12638_v6 }
 0x5a9   :  { %5412 = vrot.lane.b32.xlu0 %v5048_v55, %s9791_s20  ;;  %5410 = vrot.lane.b32.xlu1 %v4966_v18, %s9791_s20  ;;  %v5562_v36 = vrot.slane %v12668_v50, %v16511_v22 }
 0x5ab   :  { %v12674_v40 = vpop.permute.xlu1 %5190  ;;  %v12676_v4 = vpop.permute.xlu0 %5192 }
 0x5ac   :  { %16526 = vst [vmem:[#allocation287_spill] sm:$0xff] %v12674_v40  ;;  %v12698_v40 = vrot.slane %v9773_v21, 2  ;;  %v5726_v21 = vrot.slane %v12690_v23, %v16511_v22 }
 0x5ad   :  { %5428 = vrot.lane.b32.xlu0 %v4723_v1, %s9792_s21  ;;  %5414 = vrot.lane.b32.xlu1 %v5130_v35, %s9791_s20  ;;  %v12702_v1 = vsel %vm16113_vm11, %v5528_v37, %v12664_v57  ;;  %v12718_v37 = vrot.slane %v5562_v36, %v9845_v14 }
 0x5ae   :  { %v5644_v10 = vrot.slane %v12702_v1, %v16511_v22  ;;  %v12745_v13 = vrot.slane %v5726_v21, %v9845_v14 }
 0x5af   :  { %v12707_v26 = vpop.permute.xlu1 %5194  ;;  %v12709_v42 = vpop.permute.xlu0 %5196  ;;  %16529 = vst [vmem:[#allocation290_spill] sm:$0xff] %v12718_v37 }
 0x5b0   :  { %16527 = vst [vmem:[#allocation288_spill] sm:$0xff] %v12707_v26  ;;  %16528 = vst [vmem:[#allocation289_spill] sm:$0xff] %v12709_v42  ;;  %v12724_v42 = vsel %vm16113_vm11, %v5537_v41, %v12682_v5  ;;  %v5051_v41 = vcombine.high %v5048_v55, %v16207_v15  ;;  %v12754_v16 = vrot.slane %v5644_v10, %v9845_v14 }
 0x5b1   :  { %5432 = vrot.lane.b32.xlu0 %v4887_v30, %s9792_s21  ;;  %5430 = vrot.lane.b32.xlu1 %v4805_v25, %s9792_s21  ;;  %v12733_v30 = vsel %vm16113_vm11, %v5534_v54, %v12698_v40  ;;  %v9776_v25 = vld [vmem:[%s16025_s0 + $0x50] sm:$0xff]  ;;  %16531 = vst [vmem:[#allocation292_spill] sm:$0xff] %v12745_v13  ;;  %v5890_v54 = vrot.slane %v12724_v42, %v16511_v22 }
 0x5b2   :  { %v5540_v26 = vrot.slane %v9776_v25, 2  ;;  %v5600_v25 = vcombine.high %v12718_v37, %v16207_v15  ;;  %16532 = vst [vmem:[#allocation293_spill] sm:$0xff] %v12754_v16  ;;  %v5808_v55 = vrot.slane %v12733_v30, %v16511_v22 }
 0x5b3   :  { %v12738_v3 = vpop.permute.xlu1 %5198  ;;  %v12740_v20 = vpop.permute.xlu0 %5212  ;;  %v12770_v37 = vrot.slane %v5890_v54, %v9845_v14 }
 0x5b4   :  { %16530 = vst [vmem:[#allocation291_spill] sm:$0xff] %v12740_v20  ;;  %v12760_v18 = vsel %vm16113_vm11, %v5540_v26, %v12729_v58  ;;  %v5682_v26 = vcombine.high %v12754_v16, %v16207_v15  ;;  %v12777_v44 = vrot.slane %v5808_v55, %v9845_v14  ;;  %vm16139_vm11 = vcmask 1044480  }
 0x5b5   :  { %5436 = vrot.lane.b32.xlu0 %v5051_v41, %s9792_s21  ;;  %5434 = vrot.lane.b32.xlu1 %v4969_v2, %s9792_s21  ;;  %v5133_v41 = vcombine.high %v5130_v35, %v16207_v15  ;;  %v5764_v2 = vcombine.high %v12745_v13, %v16207_v15  ;;  %16534 = vst [vmem:[#allocation295_spill] sm:$0xff] %v12770_v37 }
 0x5b6   :  { %16535 = vst [vmem:[#allocation296_spill] sm:$0xff] %v12777_v44  ;;  %v5928_v13 = vcombine.high %v12770_v37, %v16207_v15 }
 0x5b7   :  { %v12762_v20 = vpop.permute.xlu1 %5214  ;;  %v12764_v59 = vpop.permute.xlu0 %5216 }
 0x5b8   :  { %16533 = vst [vmem:[#allocation294_spill] sm:$0xff] %v12762_v20  ;;  %v5972_v20 = vrot.slane %v12760_v18, %v16511_v22 }
 0x5b9   :  { %6053 = vrot.lane.b32.xlu0 %v5600_v25, %s9780_s24  ;;  %5438 = vrot.lane.b32.xlu1 %v5133_v41, %s9792_s21  ;;  %v5846_v25 = vcombine.high %v12777_v44, %v16207_v15  ;;  %v5570_v41 = vcombine.high %v5562_v36, %v16207_v15  ;;  %v5652_v36 = vcombine.high %v5644_v10, %v16207_v15 }
 0x5ba   :  { %v12793_v16 = vrot.slane %v5972_v20, %v9845_v14 }
 0x5bb   :  { %v12781_v35 = vpop.permute.xlu1 %5218  ;;  %v12783_v46 = vpop.permute.xlu0 %5220 }
 0x5bc   :  { %16536 = vst [vmem:[#allocation297_spill] sm:$0xff] %v12781_v35  ;;  %16537 = vst [vmem:[#allocation298_spill] sm:$0xff] %v12783_v46  ;;  %v5734_v46 = vcombine.high %v5726_v21, %v16207_v15  ;;  %v5666_v21 = vrot.slane %v5652_v36, %v9845_v14 }
 0x5bd   :  { %6057 = vrot.lane.b32.xlu0 %v5764_v2, %s9780_s24  ;;  %6055 = vrot.lane.b32.xlu1 %v5682_v26, %s9780_s24  ;;  %16538 = vst [vmem:[#allocation299_spill] sm:$0xff] %v12793_v16  ;;  %v5584_v2 = vrot.slane %v5570_v41, %v9845_v14  ;;  %v6010_v26 = vcombine.high %v12793_v16, %v16207_v15 }
 0x5be   :  { %v5748_v0 = vrot.slane %v5734_v46, %v9845_v14 }
 0x5bf   :  { %v12795_v32 = vpop.permute.xlu1 %5222  ;;  %v12797_v35 = vpop.permute.xlu0 %5236 }
 0x5c0   :  { %16539 = vst [vmem:[#allocation300_spill] sm:$0xff] %v12797_v35 }
 0x5c1   :  { %6061 = vrot.lane.b32.xlu0 %v5928_v13, %s9780_s24  ;;  %6059 = vrot.lane.b32.xlu1 %v5846_v25, %s9780_s24  ;;  %v5898_v13 = vcombine.high %v5890_v54, %v16207_v15  ;;  %v5816_v25 = vcombine.high %v5808_v55, %v16207_v15  ;;  %v5601_v54 = vcombine.high %v5584_v2, %v16207_v15 }
 0x5c3   :  { %v12806_v37 = vpop.permute.xlu1 %5238  ;;  %v12808_v44 = vpop.permute.xlu0 %5240  ;;  %v5912_v46 = vrot.slane %v5898_v13, %v9845_v14  ;;  %v5830_v10 = vrot.slane %v5816_v25, %v9845_v14  ;;  %v5683_v13 = vcombine.high %v5666_v21, %v16207_v15  ;;  %v5555_v25 = vcombine.high %v12668_v50, %v16207_v15 }
 0x5c4   :  { %16540 = vst [vmem:[#allocation301_spill] sm:$0xff] %v12806_v37 }
 0x5c5   :  { %6077 = vrot.lane.b32.xlu0 %v5584_v2, %s9781_s25  ;;  %6063 = vrot.lane.b32.xlu1 %v6010_v26, %s9780_s24  ;;  %v5980_v26 = vcombine.high %v5972_v20, %v16207_v15  ;;  %v5765_v20 = vcombine.high %v5748_v0, %v16207_v15 }
 0x5c7   :  { %v12816_v41 = vpop.permute.xlu1 %5242  ;;  %v12818_v16 = vpop.permute.xlu0 %5244  ;;  %v5994_v55 = vrot.slane %v5980_v26, %v9845_v14  ;;  %v5637_v26 = vcombine.high %v12702_v1, %v16207_v15 }
 0x5c8   :  { %16541 = vst [vmem:[#allocation302_spill] sm:$0xff] %v12816_v41  ;;  %16542 = vst [vmem:[#allocation303_spill] sm:$0xff] %v12818_v16 }
 0x5c9   :  { %6081 = vrot.lane.b32.xlu0 %v5748_v0, %s9781_s25  ;;  %6079 = vrot.lane.b32.xlu1 %v5666_v21, %s9781_s25  ;;  %v5929_v0 = vcombine.high %v5912_v46, %v16207_v15  ;;  %v5847_v21 = vcombine.high %v5830_v10, %v16207_v15  ;;  %v5651_v11 = vrot.slane %v5637_v26, %v16511_v22 }
 0x5cb   :  { %v12825_v37 = vpop.permute.xlu1 %5246  ;;  %v12827_v36 = vpop.permute.xlu0 %5260 }
 0x5cc   :  { %16543 = vst [vmem:[#allocation304_spill] sm:$0xff] %v12827_v36 }
 0x5cd   :  { %6085 = vrot.lane.b32.xlu0 %v5912_v46, %s9781_s25  ;;  %6083 = vrot.lane.b32.xlu1 %v5830_v10, %s9781_s25  ;;  %v5801_v10 = vcombine.high %v12733_v30, %v16207_v15 }
 0x5cf   :  { %v12833_v16 = vpop.permute.xlu1 %5262  ;;  %v12835_v41 = vpop.permute.xlu0 %5264 }
 0x5d0   :  { %16544 = vst [vmem:[#allocation305_spill] sm:$0xff] %v12833_v16  ;;  %v5719_v16 = vcombine.high %v12690_v23, %v16207_v15 }
 0x5d1   :  { %6101 = vrot.lane.b32.xlu0 %v5601_v54, %s9782_s26  ;;  %6087 = vrot.lane.b32.xlu1 %v5994_v55, %s9781_s25  ;;  %v5569_v54 = vrot.slane %v5555_v25, %v16511_v22 }
 0x5d2   :  { %v5733_v27 = vrot.slane %v5719_v16, %v16511_v22  ;;  %v5815_v16 = vrot.slane %v5801_v10, %v16511_v22 }
 0x5d3   :  { %v12843_v36 = vpop.permute.xlu1 %5266  ;;  %v12845_v2 = vpop.permute.xlu0 %5268  ;;  %v5592_v46 = vrot.slane %v5569_v54, %v9845_v14 }
 0x5d4   :  { %16545 = vst [vmem:[#allocation306_spill] sm:$0xff] %v12843_v36  ;;  %16546 = vst [vmem:[#allocation307_spill] sm:$0xff] %v12845_v2  ;;  %v6011_v2 = vcombine.high %v5994_v55, %v16207_v15  ;;  %v5674_v55 = vrot.slane %v5651_v11, %v9845_v14  ;;  %v5756_v26 = vrot.slane %v5733_v27, %v9845_v14 }
 0x5d5   :  { %6105 = vrot.lane.b32.xlu0 %v5765_v20, %s9782_s26  ;;  %6103 = vrot.lane.b32.xlu1 %v5683_v13, %s9782_s26  ;;  %v5883_v20 = vcombine.high %v12724_v42, %v16207_v15 }
 0x5d6   :  { %v5766_v12 = vcombine.high %v5756_v26, %v16207_v15 }
 0x5d7   :  { %v12856_v35 = vpop.permute.xlu1 %5270  ;;  %v12858_v36 = vpop.permute.xlu0 %5284 }
 0x5d8   :  { %16547 = vst [vmem:[#allocation308_spill] sm:$0xff] %v12858_v36 }
 0x5d9   :  { %6109 = vrot.lane.b32.xlu0 %v5929_v0, %s9782_s26  ;;  %6107 = vrot.lane.b32.xlu1 %v5847_v21, %s9782_s26  ;;  %v5897_v0 = vrot.slane %v5883_v20, %v16511_v22  ;;  %v5965_v21 = vcombine.high %v12760_v18, %v16207_v15 }
 0x5db   :  { %v12870_v13 = vpop.permute.xlu1 %5286  ;;  %v5289_v25 = vpop.permute.xlu0 %5288  ;;  %v5979_v8 = vrot.slane %v5965_v21, %v16511_v22  ;;  %v5684_v21 = vcombine.high %v5674_v55, %v16207_v15 }
 0x5dc   :  { %16548 = vst [vmem:[#allocation309_spill] sm:$0xff] %v12870_v13  ;;  %v5838_v13 = vrot.slane %v5815_v16, %v9845_v14 }
 0x5dd   :  { %6111 = vrot.lane.b32.xlu1 %v6011_v2, %s9782_s26  ;;  %6125 = vrot.lane.b32.xlu0 %v5592_v46, %s9783_s27  ;;  %v5920_v2 = vrot.slane %v5897_v0, %v9845_v14  ;;  %v6002_v20 = vrot.slane %v5979_v8, %v9845_v14 }
 0x5df   :  { %v12880_v36 = vpop.permute.xlu1 %5290  ;;  %v12882_v47 = vpop.permute.xlu0 %5292 }
 0x5e0   :  { %16549 = vst [vmem:[#allocation310_spill] sm:$0xff] %v12880_v36  ;;  %16550 = vst [vmem:[#allocation311_spill] sm:$0xff] %v12882_v47  ;;  %v5602_v47 = vcombine.high %v5592_v46, %v16207_v15  ;;  %v5848_v46 = vcombine.high %v5838_v13, %v16207_v15 }
 0x5e1   :  { %6127 = vrot.lane.b32.xlu1 %v5674_v55, %s9783_s27  ;;  %6129 = vrot.lane.b32.xlu0 %v5756_v26, %s9783_s27  ;;  %v5585_v55 = vcombine.high %v5569_v54, %v16207_v15 }
 0x5e3   :  { %v5295_v10 = vpop.permute.xlu1 %5294  ;;  %v12889_v48 = vpop.permute.xlu0 %5308 }
 0x5e4   :  { %16551 = vst [vmem:[#allocation312_spill] sm:$0xff] %v12889_v48 }
 0x5e5   :  { %6131 = vrot.lane.b32.xlu1 %v5838_v13, %s9783_s27  ;;  %6133 = vrot.lane.b32.xlu0 %v5920_v2, %s9783_s27 }
 0x5e7   :  { %v12895_v36 = vpop.permute.xlu1 %5310  ;;  %v5313_v51 = vpop.permute.xlu0 %5312 }
 0x5e8   :  { %16552 = vst [vmem:[#allocation313_spill] sm:$0xff] %v12895_v36  ;;  %v5454_v36 = vsel %vm843_vm2, %v5448_v38, %v12618_v45  ;;  %v6012_v45 = vcombine.high %v6002_v20, %v16207_v15 }
 0x5e9   :  { %6135 = vrot.lane.b32.xlu1 %v6002_v20, %s9783_s27  ;;  %6149 = vrot.lane.b32.xlu0 %v5602_v47, %s9784_s28  ;;  %v5930_v47 = vcombine.high %v5920_v2, %v16207_v15  ;;  %v5460_v26 = vsel %vm850_vm3, %v5454_v36, %v12676_v4  ;;  %v5599_v4 = vrot.slane %v5585_v55, %v9845_v14 }
 0x5ea   :  { %v5831_v20 = vcombine.high %v5815_v16, %v16207_v15 }
 0x5eb   :  { %v12901_v48 = vpop.permute.xlu1 %5314  ;;  %v12903_v28 = vpop.permute.xlu0 %5316 }
 0x5ec   :  { %16553 = vst [vmem:[#allocation314_spill] sm:$0xff] %v12901_v48  ;;  %16554 = vst [vmem:[#allocation315_spill] sm:$0xff] %v12903_v28  ;;  %v5466_v28 = vsel %vm857_vm4, %v5460_v26, %v12764_v59  ;;  %v5749_v59 = vcombine.high %v5733_v27, %v16207_v15  ;;  %v16779_v48 = vld [vmem:[#allocation121_spill] sm:$0xff] }
 0x5ed   :  { %6151 = vrot.lane.b32.xlu1 %v5684_v21, %s9784_s28  ;;  %6153 = vrot.lane.b32.xlu0 %v5766_v12, %s9784_s28  ;;  %v5472_v38 = vsel %vm864_vm5, %v5466_v28, %v12808_v44  ;;  %v5667_v12 = vcombine.high %v5651_v11, %v16207_v15  ;;  %v5451_v11 = vsel %vm836_vm1, %v12418_v60, %v12603_v17 }
 0x5ee   :  { %v5478_v13 = vsel %vm871_vm6, %v5472_v38, %v12835_v41  ;;  %v5457_v27 = vsel %vm843_vm2, %v5451_v11, %v12647_v29  ;;  %v5913_v21 = vcombine.high %v5897_v0, %v16207_v15  ;;  %v5845_v0 = vrot.slane %v5831_v20, %v9845_v14 }
 0x5ef   :  { %v5319_v56 = vpop.permute.xlu1 %5318  ;;  %v12919_v7 = vpop.permute.xlu0 %5332  ;;  %v5484_v36 = vsel %vm878_vm7, %v5478_v13, %v5289_v25  ;;  %v5681_v2 = vrot.slane %v5667_v12, %v9845_v14  ;;  %v5463_v60 = vsel %vm850_vm3, %v5457_v27, %v12738_v3  ;;  %v5692_v27 = vrot.slane %v12664_v57, %v16511_v22 }
 0x5f0   :  { %16555 = vst [vmem:[#allocation316_spill] sm:$0xff] %v12919_v7  ;;  %v5490_v54 = vsel %vm885_vm8, %v5484_v36, %v5313_v51  ;;  %v5763_v51 = vrot.slane %v5749_v59, %v9845_v14  ;;  %v5469_v17 = vsel %vm857_vm4, %v5463_v60, %v12795_v32  ;;  %v5927_v32 = vrot.slane %v5913_v21, %v9845_v14 }
 0x5f1   :  { %6155 = vrot.lane.b32.xlu1 %v5848_v46, %s9784_s28  ;;  %6157 = vrot.lane.b32.xlu0 %v5930_v47, %s9784_s28  ;;  %v5475_v47 = vsel %vm864_vm5, %v5469_v17, %v12825_v37  ;;  %v5685_v59 = vcombine.high %v5681_v2, %v16207_v15  ;;  %v5774_v21 = vrot.slane %v12654_v43, %v16511_v22 }
 0x5f2   :  { %v5481_v3 = vsel %vm871_vm6, %v5475_v47, %v12856_v35  ;;  %v5767_v36 = vcombine.high %v5763_v51, %v16207_v15  ;;  %v5700_v47 = vrot.slane %v5692_v27, %v9845_v14 }
 0x5f3   :  { %v12933_v28 = vpop.permute.xlu1 %5334  ;;  %v12935_v44 = vpop.permute.xlu0 %5336  ;;  %v5487_v55 = vsel %vm878_vm7, %v5481_v3, %v5295_v10  ;;  %v5856_v3 = vrot.slane %v12698_v40, %v16511_v22 }
 0x5f4   :  { %16556 = vst [vmem:[#allocation317_spill] sm:$0xff] %v12933_v28  ;;  %v5496_v41 = vsel %vm16141_vm9, %v5490_v54, %v12935_v44  ;;  %v5493_v26 = vsel %vm885_vm8, %v5487_v55, %v5319_v56 }
 0x5f5   :  { %v8433_v25 = vrot.slane %v5496_v41, 3  ;;  %6159 = vrot.lane.b32.xlu1 %v6012_v45, %s9784_s28  ;;  %6173 = vrot.lane.b32.xlu0 %v5599_v4, %s9785_s29  ;;  %v5610_v41 = vrot.slane %v12638_v6, %v16511_v22 }
 0x5f7   :  { %v12956_v16 = vsel %vm16139_vm11, %v12296_v52, %v8433_v25  ;;  %v12958_v29 = vpop.permute.xlu1 %5338  ;;  %v12960_v46 = vpop.permute.xlu0 %5340  ;;  %v5995_v52 = vcombine.high %v5979_v8, %v16207_v15  ;;  %v5603_v8 = vcombine.high %v5599_v4, %v16207_v15  ;;  %v5931_v4 = vcombine.high %v5927_v32, %v16207_v15 }
 0x5f8   :  { %16557 = vst [vmem:[#allocation318_spill] sm:$0xff] %v12956_v16  ;;  %16558 = vst [vmem:[#allocation319_spill] sm:$0xff] %v12958_v29 }
 0x5f9   :  { %16559 = vst [vmem:[#allocation320_spill] sm:$0xff] %v12960_v46  ;;  %6175 = vrot.lane.b32.xlu1 %v5681_v2, %s9785_s29  ;;  %6177 = vrot.lane.b32.xlu0 %v5763_v51, %s9785_s29  ;;  %v6009_v12 = vrot.slane %v5995_v52, %v9845_v14  ;;  %v5618_v51 = vrot.slane %v5610_v41, %v9845_v14 }
 0x5fb   :  { %v12973_v38 = vpop.permute.xlu1 %5342  ;;  %v12975_v37 = vpop.permute.xlu0 %5356  ;;  %v6013_v25 = vcombine.high %v6009_v12, %v16207_v15 }
 0x5fc   :  { %16560 = vst [vmem:[#allocation321_spill] sm:$0xff] %v12975_v37  ;;  %v5499_v45 = vsel %vm16141_vm9, %v5493_v26, %v12973_v38  ;;  %v5864_v26 = vrot.slane %v5856_v3, %v9845_v14  ;;  %v16770_v37 = vld [vmem:[#allocation111_spill] sm:$0xff] }
 0x5fd   :  { %v8439_v35 = vrot.slane %v5499_v45, 3  ;;  %6179 = vrot.lane.b32.xlu1 %v5845_v0, %s9785_s29  ;;  %6181 = vrot.lane.b32.xlu0 %v5927_v32, %s9785_s29  ;;  %v5938_v32 = vrot.slane %v12682_v5, %v16511_v22 }
 0x5ff   :  { %v12985_v10 = vsel %vm16139_vm11, %v12313_v24, %v8439_v35  ;;  %v12987_v56 = vpop.permute.xlu1 %5358  ;;  %v5361_v13 = vpop.permute.xlu0 %5360  ;;  %v5849_v24 = vcombine.high %v5845_v0, %v16207_v15  ;;  %v5782_v0 = vrot.slane %v5774_v21, %v9845_v14  ;;  %v5946_v45 = vrot.slane %v5938_v32, %v9845_v14 }
 0x600   :  { %16561 = vst [vmem:[#allocation322_spill] sm:$0xff] %v12985_v10  ;;  %16562 = vst [vmem:[#allocation323_spill] sm:$0xff] %v12987_v56  ;;  %v6020_v35 = vrot.slane %v12729_v58, %v16511_v22 }
 0x601   :  { %6183 = vrot.lane.b32.xlu1 %v6009_v12, %s9785_s29  ;;  %6197 = vrot.lane.b32.xlu0 %v5603_v8, %s9786_s30  ;;  %v5798_v10 = vcombine.high %v5782_v0, %v16207_v15 }
 0x603   :  { %v12993_v54 = vpop.permute.xlu1 %5362  ;;  %v12995_v11 = vpop.permute.xlu0 %5364 }
 0x604   :  { %16563 = vst [vmem:[#allocation324_spill] sm:$0xff] %v12993_v54  ;;  %16564 = vst [vmem:[#allocation325_spill] sm:$0xff] %v12995_v11  ;;  %v5611_v11 = vcombine.high %v5610_v41, %v16207_v15  ;;  %v5775_v41 = vcombine.high %v5774_v21, %v16207_v15  ;;  %v5939_v21 = vcombine.high %v5938_v32, %v16207_v15 }
 0x605   :  { %6199 = vrot.lane.b32.xlu1 %v5685_v59, %s9786_s30  ;;  %6201 = vrot.lane.b32.xlu0 %v5767_v36, %s9786_s30  ;;  %v6028_v59 = vrot.slane %v6020_v35, %v9845_v14  ;;  %v5634_v36 = vcombine.high %v5618_v51, %v16207_v15 }
 0x606   :  { %v5953_v32 = vrot.slane %v5939_v21, %v9845_v14  ;;  %v5626_v21 = vcombine.high %v12638_v6, %v16207_v15 }
 0x607   :  { %v13003_v20 = vpop.permute.xlu1 %5366  ;;  %v13005_v2 = vpop.permute.xlu0 %5380 }
 0x608   :  { %16565 = vst [vmem:[#allocation326_spill] sm:$0xff] %v13005_v2 }
 0x609   :  { %6203 = vrot.lane.b32.xlu1 %v5849_v24, %s9786_s30  ;;  %6205 = vrot.lane.b32.xlu0 %v5931_v4, %s9786_s30 }
 0x60b   :  { %v13015_v60 = vpop.permute.xlu1 %5382  ;;  %v5385_v17 = vpop.permute.xlu0 %5384 }
 0x60c   :  { %16566 = vst [vmem:[#allocation327_spill] sm:$0xff] %v13015_v60 }
 0x60d   :  { %6207 = vrot.lane.b32.xlu1 %v6013_v25, %s9786_s30  ;;  %6221 = vrot.lane.b32.xlu0 %v5618_v51, %s9787_s16  ;;  %v5716_v25 = vcombine.high %v5700_v47, %v16207_v15  ;;  %v5880_v51 = vcombine.high %v5864_v26, %v16207_v15 }
 0x60f   :  { %v13025_v52 = vpop.permute.xlu1 %5386  ;;  %v13027_v55 = vpop.permute.xlu0 %5388 }
 0x610   :  { %16567 = vst [vmem:[#allocation328_spill] sm:$0xff] %v13025_v52  ;;  %16568 = vst [vmem:[#allocation329_spill] sm:$0xff] %v13027_v55  ;;  %v5962_v52 = vcombine.high %v5946_v45, %v16207_v15 }
 0x611   :  { %6223 = vrot.lane.b32.xlu1 %v5700_v47, %s9787_s16  ;;  %6225 = vrot.lane.b32.xlu0 %v5782_v0, %s9787_s16  ;;  %v6044_v47 = vcombine.high %v6028_v59, %v16207_v15  ;;  %v5625_v0 = vrot.slane %v5611_v11, %v9845_v14 }
 0x613   :  { %v5391_v12 = vpop.permute.xlu1 %5390  ;;  %v13035_v8 = vpop.permute.xlu0 %5404 }
 0x614   :  { %16569 = vst [vmem:[#allocation330_spill] sm:$0xff] %v13035_v8  ;;  %v16746_v8 = vld [vmem:[#allocation93_spill] sm:$0xff] }
 0x615   :  { %6227 = vrot.lane.b32.xlu1 %v5864_v26, %s9787_s16  ;;  %6229 = vrot.lane.b32.xlu0 %v5946_v45, %s9787_s16 }
 0x617   :  { %v13041_v24 = vpop.permute.xlu1 %5406  ;;  %v5409_v4 = vpop.permute.xlu0 %5408 }
 0x618   :  { %16570 = vst [vmem:[#allocation331_spill] sm:$0xff] %v13041_v24 }
 0x619   :  { %6231 = vrot.lane.b32.xlu1 %v6028_v59, %s9787_s16  ;;  %6245 = vrot.lane.b32.xlu0 %v5634_v36, %s9788_s17 }
 0x61b   :  { %v13047_v16 = vpop.permute.xlu1 %5410  ;;  %v13049_v55 = vpop.permute.xlu0 %5412 }
 0x61c   :  { %16571 = vst [vmem:[#allocation332_spill] sm:$0xff] %v13047_v16  ;;  %16572 = vst [vmem:[#allocation333_spill] sm:$0xff] %v13049_v55  ;;  %v5502_v55 = vsel %vm899_vm12, %v12935_v44, %v5361_v13  ;;  %v5857_v16 = vcombine.high %v5856_v3, %v16207_v15 }
 0x61d   :  { %6247 = vrot.lane.b32.xlu1 %v5716_v25, %s9788_s17  ;;  %6249 = vrot.lane.b32.xlu0 %v5798_v10, %s9788_s17  ;;  %v5693_v10 = vcombine.high %v5692_v27, %v16207_v15  ;;  %v5508_v26 = vsel %vm906_vm13, %v5502_v55, %v5385_v17  ;;  %v5789_v27 = vrot.slane %v5775_v41, %v9845_v14 }
 0x61e   :  { %v5514_v45 = vsel %vm913_vm14, %v5508_v26, %v5409_v4  ;;  %v5871_v3 = vrot.slane %v5857_v16, %v9845_v14  ;;  %v5505_v4 = vsel %vm899_vm12, %v12973_v38, %v13003_v20  ;;  %v5635_v20 = vcombine.high %v5625_v0, %v16207_v15 }
 0x61f   :  { %v5415_v54 = vpop.permute.xlu1 %5414  ;;  %v13056_v36 = vpop.permute.xlu0 %5428  ;;  %v5707_v13 = vrot.slane %v5693_v10, %v9845_v14 }
 0x620   :  { %16573 = vst [vmem:[#allocation334_spill] sm:$0xff] %v13056_v36  ;;  %v16733_v36 = vld [vmem:[#allocation68_spill] sm:$0xff] }
 0x621   :  { %6251 = vrot.lane.b32.xlu1 %v5880_v51, %s9788_s17  ;;  %6253 = vrot.lane.b32.xlu0 %v5962_v52, %s9788_s17  ;;  %v6021_v51 = vcombine.high %v6020_v35, %v16207_v15 }
 0x623   :  { %v13068_v25 = vpop.permute.xlu1 %5430  ;;  %v5433_v59 = vpop.permute.xlu0 %5432  ;;  %v6035_v38 = vrot.slane %v6021_v51, %v9845_v14 }
 0x624   :  { %16574 = vst [vmem:[#allocation335_spill] sm:$0xff] %v13068_v25  ;;  %v5520_v11 = vsel %vm920_vm15, %v5514_v45, %v5433_v59  ;;  %v5717_v45 = vcombine.high %v5707_v13, %v16207_v15  ;;  %v5799_v59 = vcombine.high %v5789_v27, %v16207_v15  ;;  %v16732_v25 = vld [vmem:[#allocation80_spill] sm:$0xff] }
 0x625   :  { %v8434_v44 = vrot.slane %v5520_v11, 3  ;;  %6255 = vrot.lane.b32.xlu1 %v6044_v47, %s9788_s17  ;;  %6269 = vrot.lane.b32.xlu0 %v5625_v0, %s9789_s18  ;;  %v5963_v0 = vcombine.high %v5953_v32, %v16207_v15  ;;  %v6045_v51 = vcombine.high %v6035_v38, %v16207_v15 }
 0x627   :  { %v13079_v17 = vsel %vm16139_vm11, %v12368_v31, %v8434_v44  ;;  %v13081_v52 = vpop.permute.xlu1 %5434  ;;  %v13083_v55 = vpop.permute.xlu0 %5436  ;;  %v5511_v31 = vsel %vm906_vm13, %v5505_v4, %v5391_v12 }
 0x628   :  { %16575 = vst [vmem:[#allocation336_spill] sm:$0xff] %v13079_v17  ;;  %16576 = vst [vmem:[#allocation337_spill] sm:$0xff] %v13081_v52  ;;  %v5517_v47 = vsel %vm913_vm14, %v5511_v31, %v5415_v54  ;;  %v16730_v52 = vld [vmem:[#allocation79_spill] sm:$0xff] }
 0x629   :  { %16577 = vst [vmem:[#allocation338_spill] sm:$0xff] %v13083_v55  ;;  %6271 = vrot.lane.b32.xlu1 %v5707_v13, %s9789_s18  ;;  %6273 = vrot.lane.b32.xlu0 %v5789_v27, %s9789_s18  ;;  %v5708_v27 = vcombine.high %v12664_v57, %v16207_v15  ;;  %v16686_v55 = vld [vmem:[#allocation15_spill] sm:$0xff] }
 0x62b   :  { %v5439_v10 = vpop.permute.xlu1 %5438  ;;  %v13095_v41 = vpop.permute.xlu0 %6053 }
 0x62c   :  { %16578 = vst [vmem:[#allocation339_spill] sm:$0xff] %v13095_v41  ;;  %v5523_v16 = vsel %vm920_vm15, %v5517_v47, %v5439_v10  ;;  %v13143_v10 = vrot.slane %v5708_v27, %v9845_v14 }
 0x62d   :  { %v8440_v26 = vrot.slane %v5523_v16, 3  ;;  %6275 = vrot.lane.b32.xlu1 %v5871_v3, %s9789_s18  ;;  %6277 = vrot.lane.b32.xlu0 %v5953_v32, %s9789_s18  ;;  %v5790_v32 = vcombine.high %v12654_v43, %v16207_v15 }
 0x62f   :  { %v13104_v35 = vsel %vm16139_vm11, %v12383_v9, %v8440_v26  ;;  %v13106_v12 = vpop.permute.xlu1 %6055  ;;  %v13108_v54 = vpop.permute.xlu0 %6057  ;;  %v5881_v9 = vcombine.high %v5871_v3, %v16207_v15  ;;  %v13134_v3 = vrot.slane %v5626_v21, %v9845_v14  ;;  %v13149_v16 = vrot.slane %v5790_v32, %v9845_v14 }
 0x630   :  { %16579 = vst [vmem:[#allocation340_spill] sm:$0xff] %v13104_v35  ;;  %16580 = vst [vmem:[#allocation341_spill] sm:$0xff] %v13106_v12  ;;  %v5872_v26 = vcombine.high %v12698_v40, %v16207_v15  ;;  %vm16855_vm11 = vcmask 1041408  }
 0x631   :  { %16581 = vst [vmem:[#allocation342_spill] sm:$0xff] %v13108_v54  ;;  %6279 = vrot.lane.b32.xlu1 %v6035_v38, %s9789_s18  ;;  %6293 = vrot.lane.b32.xlu0 %v5635_v20, %s9790_s19  ;;  %v5954_v38 = vcombine.high %v12682_v5, %v16207_v15 }
 0x633   :  { %v13114_v11 = vpop.permute.xlu1 %6059  ;;  %v13116_v44 = vpop.permute.xlu0 %6061 }
 0x634   :  { %16582 = vst [vmem:[#allocation343_spill] sm:$0xff] %v13114_v11  ;;  %16583 = vst [vmem:[#allocation344_spill] sm:$0xff] %v13116_v44 }
 0x635   :  { %6295 = vrot.lane.b32.xlu1 %v5717_v45, %s9790_s19  ;;  %6297 = vrot.lane.b32.xlu0 %v5799_v59, %s9790_s19  ;;  %v13164_v59 = vrot.slane %v5872_v26, %v9845_v14 }
 0x637   :  { %v13124_v4 = vpop.permute.xlu1 %6063  ;;  %v13126_v13 = vpop.permute.xlu0 %6077 }
 0x638   :  { %16584 = vst [vmem:[#allocation345_spill] sm:$0xff] %v13124_v4  ;;  %16585 = vst [vmem:[#allocation346_spill] sm:$0xff] %v13126_v13 }
 0x639   :  { %6299 = vrot.lane.b32.xlu1 %v5881_v9, %s9790_s19  ;;  %6301 = vrot.lane.b32.xlu0 %v5963_v0, %s9790_s19  ;;  %v13167_v9 = vrot.slane %v5954_v38, %v9845_v14 }
 0x63b   :  { %v13138_v31 = vpop.permute.xlu1 %6079  ;;  %v13140_v47 = vpop.permute.xlu0 %6081 }
 0x63c   :  { %16586 = vst [vmem:[#allocation347_spill] sm:$0xff] %v13138_v31  ;;  %16587 = vst [vmem:[#allocation348_spill] sm:$0xff] %v13140_v47 }
 0x63d   :  { %6303 = vrot.lane.b32.xlu1 %v6045_v51, %s9790_s19  ;;  %6317 = vrot.lane.b32.xlu0 %v13134_v3, %s9791_s20 }
 0x63f   :  { %v13155_v20 = vpop.permute.xlu1 %6083  ;;  %v13157_v45 = vpop.permute.xlu0 %6085 }
 0x640   :  { %16588 = vst [vmem:[#allocation349_spill] sm:$0xff] %v13155_v20  ;;  %16589 = vst [vmem:[#allocation350_spill] sm:$0xff] %v13157_v45 }
 0x641   :  { %6319 = vrot.lane.b32.xlu1 %v13143_v10, %s9791_s20  ;;  %6321 = vrot.lane.b32.xlu0 %v13149_v16, %s9791_s20 }
 0x643   :  { %v13169_v0 = vpop.permute.xlu1 %6087  ;;  %v13171_v21 = vpop.permute.xlu0 %6101 }
 0x644   :  { %16590 = vst [vmem:[#allocation351_spill] sm:$0xff] %v13169_v0  ;;  %16591 = vst [vmem:[#allocation352_spill] sm:$0xff] %v13171_v21 }
 0x645   :  { %6323 = vrot.lane.b32.xlu1 %v13164_v59, %s9791_s20  ;;  %6325 = vrot.lane.b32.xlu0 %v13167_v9, %s9791_s20 }
 0x647   :  { %v13177_v27 = vpop.permute.xlu1 %6103  ;;  %v13179_v51 = vpop.permute.xlu0 %6105 }
 0x648   :  { %16592 = vst [vmem:[#allocation353_spill] sm:$0xff] %v13177_v27  ;;  %16593 = vst [vmem:[#allocation354_spill] sm:$0xff] %v13179_v51 }
 0x649   :  { %6441 = vrot.lane.b32.xlu1 %v12702_v1, %s9793_s22  ;;  %6453 = vrot.lane.b32.xlu0 %v12724_v42, %s9793_s22 }
 0x64b   :  { %v13185_v32 = vpop.permute.xlu1 %6107  ;;  %v13187_v26 = vpop.permute.xlu0 %6109 }
 0x64c   :  { %16594 = vst [vmem:[#allocation355_spill] sm:$0xff] %v13185_v32  ;;  %16595 = vst [vmem:[#allocation356_spill] sm:$0xff] %v13187_v26 }
 0x64d   :  { %6437 = vrot.lane.b32.xlu1 %v12668_v50, %s9793_s22  ;;  %6449 = vrot.lane.b32.xlu0 %v12733_v30, %s9793_s22 }
 0x64f   :  { %v13193_v38 = vpop.permute.xlu1 %6111  ;;  %v13195_v35 = vpop.permute.xlu0 %6125 }
 0x650   :  { %16596 = vst [vmem:[#allocation357_spill] sm:$0xff] %v13193_v38  ;;  %16597 = vst [vmem:[#allocation358_spill] sm:$0xff] %v13195_v35 }
 0x651   :  { %6443 = vrot.lane.b32.xlu1 %v12664_v57, %s9793_s22  ;;  %6455 = vrot.lane.b32.xlu0 %v12682_v5, %s9793_s22 }
 0x653   :  { %v13201_v17 = vpop.permute.xlu1 %6127  ;;  %v13203_v32 = vpop.permute.xlu0 %6129 }
 0x654   :  { %16598 = vst [vmem:[#allocation359_spill] sm:$0xff] %v13201_v17  ;;  %16599 = vst [vmem:[#allocation360_spill] sm:$0xff] %v13203_v32 }
 0x655   :  { %6439 = vrot.lane.b32.xlu1 %v12638_v6, %s9793_s22  ;;  %6445 = vrot.lane.b32.xlu0 %v12690_v23, %s9793_s22 }
 0x657   :  { %v13209_v26 = vpop.permute.xlu1 %6131  ;;  %v13211_v38 = vpop.permute.xlu0 %6133 }
 0x658   :  { %16600 = vst [vmem:[#allocation361_spill] sm:$0xff] %v13209_v26  ;;  %16601 = vst [vmem:[#allocation362_spill] sm:$0xff] %v13211_v38 }
 0x659   :  { %6451 = vrot.lane.b32.xlu1 %v12698_v40, %s9793_s22  ;;  %6457 = vrot.lane.b32.xlu0 %v12760_v18, %s9793_s22 }
 0x65b   :  { %v13217_v35 = vpop.permute.xlu1 %6135  ;;  %v13219_v17 = vpop.permute.xlu0 %6149 }
 0x65c   :  { %16602 = vst [vmem:[#allocation363_spill] sm:$0xff] %v13217_v35  ;;  %16603 = vst [vmem:[#allocation364_spill] sm:$0xff] %v13219_v17 }
 0x65d   :  { %7355 = vrot.lane.b32.xlu1 %v12668_v50, %s9788_s17  ;;  %7367 = vrot.lane.b32.xlu0 %v12733_v30, %s9788_s17 }
 0x65f   :  { %v13225_v32 = vpop.permute.xlu1 %6151  ;;  %v13227_v26 = vpop.permute.xlu0 %6153 }
 0x660   :  { %16604 = vst [vmem:[#allocation365_spill] sm:$0xff] %v13225_v32  ;;  %16605 = vst [vmem:[#allocation366_spill] sm:$0xff] %v13227_v26 }
 0x661   :  { %6447 = vrot.lane.b32.xlu1 %v12654_v43, %s9793_s22  ;;  %6459 = vrot.lane.b32.xlu0 %v12729_v58, %s9793_s22 }
 0x663   :  { %v13233_v38 = vpop.permute.xlu1 %6155  ;;  %v13235_v35 = vpop.permute.xlu0 %6157 }
 0x664   :  { %16606 = vst [vmem:[#allocation367_spill] sm:$0xff] %v13233_v38  ;;  %16607 = vst [vmem:[#allocation368_spill] sm:$0xff] %v13235_v35 }
 0x665   :  { %7357 = vrot.lane.b32.xlu1 %v12638_v6, %s9788_s17  ;;  %7359 = vrot.lane.b32.xlu0 %v12702_v1, %s9788_s17 }
 0x667   :  { %v13241_v50 = vpop.permute.xlu1 %6159  ;;  %v13243_v30 = vpop.permute.xlu0 %6173 }
 0x668   :  { %16608 = vst [vmem:[#allocation369_spill] sm:$0xff] %v13241_v50  ;;  %16609 = vst [vmem:[#allocation370_spill] sm:$0xff] %v13243_v30 }
 0x669   :  { %7369 = vrot.lane.b32.xlu1 %v12698_v40, %s9788_s17  ;;  %7371 = vrot.lane.b32.xlu0 %v12724_v42, %s9788_s17  ;;  %v6036_v42 = vcombine.high %v12729_v58, %v16207_v15 }
 0x66b   :  { %v13249_v26 = vpop.permute.xlu1 %6175  ;;  %v13251_v38 = vpop.permute.xlu0 %6177 }
 0x66c   :  { %16610 = vst [vmem:[#allocation371_spill] sm:$0xff] %v13249_v26  ;;  %16611 = vst [vmem:[#allocation372_spill] sm:$0xff] %v13251_v38 }
 0x66d   :  { %7361 = vrot.lane.b32.xlu1 %v12664_v57, %s9788_s17  ;;  %7363 = vrot.lane.b32.xlu0 %v12690_v23, %s9788_s17  ;;  %v6043_v57 = vrot.slane %v6036_v42, %v9845_v14 }
 0x66f   :  { %v13257_v6 = vpop.permute.xlu1 %6179  ;;  %v13259_v1 = vpop.permute.xlu0 %6181 }
 0x670   :  { %16612 = vst [vmem:[#allocation373_spill] sm:$0xff] %v13257_v6  ;;  %16613 = vst [vmem:[#allocation374_spill] sm:$0xff] %v13259_v1 }
 0x671   :  { %7373 = vrot.lane.b32.xlu1 %v12682_v5, %s9788_s17  ;;  %7375 = vrot.lane.b32.xlu0 %v12760_v18, %s9788_s17  ;;  %v5636_v5 = vcombine.high %v13134_v3, %v16207_v15  ;;  %v5882_v3 = vcombine.high %v13164_v59, %v16207_v15 }
 0x673   :  { %v13267_v40 = vpop.permute.xlu1 %6183  ;;  %v13269_v38 = vpop.permute.xlu0 %6197 }
 0x674   :  { %16614 = vst [vmem:[#allocation375_spill] sm:$0xff] %v13267_v40  ;;  %16615 = vst [vmem:[#allocation376_spill] sm:$0xff] %v13269_v38  ;;  %v5718_v40 = vcombine.high %v13143_v10, %v16207_v15 }
 0x675   :  { %7365 = vrot.lane.b32.xlu1 %v12654_v43, %s9788_s17  ;;  %7377 = vrot.lane.b32.xlu0 %v12729_v58, %s9788_s17  ;;  %v5800_v43 = vcombine.high %v13149_v16, %v16207_v15  ;;  %v6046_v16 = vcombine.high %v6043_v57, %v16207_v15 }
 0x677   :  { %v13278_v23 = vpop.permute.xlu1 %6199  ;;  %v13280_v18 = vpop.permute.xlu0 %6201 }
 0x678   :  { %16616 = vst [vmem:[#allocation377_spill] sm:$0xff] %v13278_v23  ;;  %16617 = vst [vmem:[#allocation378_spill] sm:$0xff] %v13280_v18 }
 0x679   :  { %6327 = vrot.lane.b32.xlu1 %v6043_v57, %s9791_s20  ;;  %6341 = vrot.lane.b32.xlu0 %v5636_v5, %s9792_s21  ;;  %v5964_v5 = vcombine.high %v13167_v9, %v16207_v15 }
 0x67b   :  { %v13288_v58 = vpop.permute.xlu1 %6203  ;;  %v13290_v42 = vpop.permute.xlu0 %6205 }
 0x67c   :  { %16618 = vst [vmem:[#allocation379_spill] sm:$0xff] %v13288_v58  ;;  %16619 = vst [vmem:[#allocation380_spill] sm:$0xff] %v13290_v42 }
 0x67d   :  { %6343 = vrot.lane.b32.xlu1 %v5718_v40, %s9792_s21  ;;  %6345 = vrot.lane.b32.xlu0 %v5800_v43, %s9792_s21 }
 0x67f   :  { %v13298_v6 = vpop.permute.xlu1 %6207  ;;  %v13300_v10 = vpop.permute.xlu0 %6221 }
 0x680   :  { %16620 = vst [vmem:[#allocation381_spill] sm:$0xff] %v13298_v6  ;;  %16621 = vst [vmem:[#allocation382_spill] sm:$0xff] %v13300_v10 }
 0x681   :  { %6347 = vrot.lane.b32.xlu1 %v5882_v3, %s9792_s21  ;;  %6349 = vrot.lane.b32.xlu0 %v5964_v5, %s9792_s21 }
 0x683   :  { %v13305_v58 = vpop.permute.xlu1 %6223  ;;  %v13307_v40 = vpop.permute.xlu0 %6225 }
 0x684   :  { %16622 = vst [vmem:[#allocation383_spill] sm:$0xff] %v13305_v58  ;;  %16623 = vst [vmem:[#allocation384_spill] sm:$0xff] %v13307_v40 }
 0x685   :  { %6351 = vrot.lane.b32.xlu1 %v6046_v16, %s9792_s21 }
 0x687   :  { %v13310_v59 = vpop.permute.xlu1 %6227  ;;  %v13312_v43 = vpop.permute.xlu0 %6229 }
 0x688   :  { %16624 = vst [vmem:[#allocation385_spill] sm:$0xff] %v13310_v59  ;;  %16625 = vst [vmem:[#allocation386_spill] sm:$0xff] %v13312_v43 }
 0x68b   :  { %v13314_v9 = vpop.permute.xlu1 %6231  ;;  %v13316_v6 = vpop.permute.xlu0 %6245 }
 0x68c   :  { %16626 = vst [vmem:[#allocation387_spill] sm:$0xff] %v13314_v9  ;;  %16627 = vst [vmem:[#allocation388_spill] sm:$0xff] %v13316_v6 }
 0x68f   :  { %v13318_v42 = vpop.permute.xlu1 %6247  ;;  %v13320_v3 = vpop.permute.xlu0 %6249 }
 0x690   :  { %16628 = vst [vmem:[#allocation389_spill] sm:$0xff] %v13318_v42  ;;  %16629 = vst [vmem:[#allocation390_spill] sm:$0xff] %v13320_v3 }
 0x693   :  { %v13322_v5 = vpop.permute.xlu1 %6251  ;;  %v13324_v57 = vpop.permute.xlu0 %6253 }
 0x694   :  { %16630 = vst [vmem:[#allocation391_spill] sm:$0xff] %v13322_v5  ;;  %16631 = vst [vmem:[#allocation392_spill] sm:$0xff] %v13324_v57 }
 0x697   :  { %v13326_v58 = vpop.permute.xlu1 %6255  ;;  %v13328_v40 = vpop.permute.xlu0 %6269 }
 0x698   :  { %16632 = vst [vmem:[#allocation393_spill] sm:$0xff] %v13326_v58  ;;  %16633 = vst [vmem:[#allocation394_spill] sm:$0xff] %v13328_v40 }
 0x69b   :  { %v13330_v16 = vpop.permute.xlu1 %6271  ;;  %v13332_v59 = vpop.permute.xlu0 %6273 }
 0x69c   :  { %16634 = vst [vmem:[#allocation395_spill] sm:$0xff] %v13330_v16  ;;  %16635 = vst [vmem:[#allocation396_spill] sm:$0xff] %v13332_v59 }
 0x69f   :  { %v13334_v43 = vpop.permute.xlu1 %6275  ;;  %v13336_v9 = vpop.permute.xlu0 %6277 }
 0x6a0   :  { %16636 = vst [vmem:[#allocation397_spill] sm:$0xff] %v13334_v43  ;;  %16637 = vst [vmem:[#allocation398_spill] sm:$0xff] %v13336_v9 }
 0x6a3   :  { %v13338_v6 = vpop.permute.xlu1 %6279  ;;  %v13340_v42 = vpop.permute.xlu0 %6293 }
 0x6a4   :  { %16638 = vst [vmem:[#allocation399_spill] sm:$0xff] %v13338_v6  ;;  %16639 = vst [vmem:[#allocation400_spill] sm:$0xff] %v13340_v42 }
 0x6a7   :  { %v13342_v3 = vpop.permute.xlu1 %6295  ;;  %v13344_v5 = vpop.permute.xlu0 %6297 }
 0x6a8   :  { %16640 = vst [vmem:[#allocation401_spill] sm:$0xff] %v13342_v3  ;;  %16641 = vst [vmem:[#allocation402_spill] sm:$0xff] %v13344_v5 }
 0x6ab   :  { %v13346_v57 = vpop.permute.xlu1 %6299  ;;  %v13348_v58 = vpop.permute.xlu0 %6301 }
 0x6ac   :  { %16642 = vst [vmem:[#allocation403_spill] sm:$0xff] %v13346_v57  ;;  %16643 = vst [vmem:[#allocation404_spill] sm:$0xff] %v13348_v58 }
 0x6af   :  { %v13350_v40 = vpop.permute.xlu1 %6303  ;;  %v13352_v16 = vpop.permute.xlu0 %6317 }
 0x6b0   :  { %16644 = vst [vmem:[#allocation405_spill] sm:$0xff] %v13350_v40  ;;  %16645 = vst [vmem:[#allocation406_spill] sm:$0xff] %v13352_v16 }
 0x6b3   :  { %v13354_v59 = vpop.permute.xlu1 %6319  ;;  %v13356_v43 = vpop.permute.xlu0 %6321 }
 0x6b4   :  { %16646 = vst [vmem:[#allocation407_spill] sm:$0xff] %v13354_v59  ;;  %16647 = vst [vmem:[#allocation408_spill] sm:$0xff] %v13356_v43 }
 0x6b7   :  { %v13358_v9 = vpop.permute.xlu1 %6323  ;;  %v13360_v6 = vpop.permute.xlu0 %6325 }
 0x6b8   :  { %16648 = vst [vmem:[#allocation409_spill] sm:$0xff] %v13358_v9  ;;  %16649 = vst [vmem:[#allocation410_spill] sm:$0xff] %v13360_v6 }
 0x6bb   :  { %v6442_v42 = vpop.permute.xlu1 %6441  ;;  %v6454_v3 = vpop.permute.xlu0 %6453 }
 0x6bc   :  { %v6562_v5 = vrot.slane %v6442_v42, %v16511_v22  ;;  %v6808_v58 = vrot.slane %v6454_v3, %v16511_v22 }
 0x6be   :  { %v13364_v57 = vrot.slane %v6562_v5, %v9845_v14  ;;  %v6570_v59 = vcombine.high %v6562_v5, %v16207_v15  ;;  %v13376_v18 = vrot.slane %v6808_v58, %v9845_v14  ;;  %v6816_v38 = vcombine.high %v6808_v58, %v16207_v15 }
 0x6bf   :  { %v6438_v40 = vpop.permute.xlu1 %6437  ;;  %v6450_v10 = vpop.permute.xlu0 %6449  ;;  %v6801_v58 = vcombine.high %v6454_v3, %v16207_v15 }
 0x6c0   :  { %16650 = vst [vmem:[#allocation411_spill] sm:$0xff] %v13364_v57  ;;  %v6480_v16 = vrot.slane %v6438_v40, %v16511_v22  ;;  %v6726_v43 = vrot.slane %v6450_v10, %v16511_v22  ;;  %v6600_v9 = vcombine.high %v13364_v57, %v16207_v15  ;;  %16652 = vst [vmem:[#allocation413_spill] sm:$0xff] %v13376_v18 }
 0x6c1   :  { %v6584_v5 = vrot.slane %v6570_v59, %v9845_v14  ;;  %v6846_v57 = vcombine.high %v13376_v18, %v16207_v15  ;;  %v6830_v30 = vrot.slane %v6816_v38, %v9845_v14 }
 0x6c2   :  { %v13373_v6 = vrot.slane %v6480_v16, %v9845_v14  ;;  %v13379_v23 = vrot.slane %v6726_v43, %v9845_v14  ;;  %6973 = vrot.lane.b32.xlu1 %v6600_v9, %s9780_s24  ;;  %v6734_v59 = vcombine.high %v6726_v43, %v16207_v15  ;;  %v6488_v38 = vcombine.high %v6480_v16, %v16207_v15 }
 0x6c3   :  { %v6847_v9 = vcombine.high %v6830_v30, %v16207_v15 }
 0x6c4   :  { %16651 = vst [vmem:[#allocation412_spill] sm:$0xff] %v13373_v6  ;;  %16653 = vst [vmem:[#allocation414_spill] sm:$0xff] %v13379_v23  ;;  %v6518_v1 = vcombine.high %v13373_v6, %v16207_v15  ;;  %v6764_v26 = vcombine.high %v13379_v23, %v16207_v15  ;;  %v6815_v6 = vrot.slane %v6801_v58, %v16511_v22  ;;  %v13415_v58 = vpop.permute.xlu0 %6455 }
 0x6c6   :  { %6997 = vrot.lane.b32.xlu1 %v6584_v5, %s9781_s25  ;;  %6971 = vrot.lane.b32.xlu0 %v6518_v1, %s9780_s24  ;;  %v6555_v1 = vcombine.high %v6442_v42, %v16207_v15  ;;  %v6838_v3 = vrot.slane %v6815_v6, %v9845_v14  ;;  %v6719_v42 = vcombine.high %v6450_v10, %v16207_v15 }
 0x6c7   :  { %v6856_v10 = vrot.slane %v13415_v58, %v16511_v22 }
 0x6c8   :  { %v6569_v43 = vrot.slane %v6555_v1, %v16511_v22 }
 0x6c9   :  { %v13438_v23 = vrot.slane %v6856_v10, %v9845_v14  ;;  %v6857_v18 = vcombine.high %v6856_v10, %v16207_v15 }
 0x6ca   :  { %6979 = vrot.lane.b32.xlu0 %v6846_v57, %s9780_s24  ;;  %6977 = vrot.lane.b32.xlu1 %v6764_v26, %s9780_s24  ;;  %v6601_v57 = vcombine.high %v6584_v5, %v16207_v15  ;;  %v6748_v26 = vrot.slane %v6734_v59, %v9845_v14  ;;  %v6592_v16 = vrot.slane %v6569_v43, %v9845_v14 }
 0x6cb   :  { %v6473_v59 = vcombine.high %v6438_v40, %v16207_v15  ;;  %v13431_v40 = vpop.permute.xlu1 %6443  ;;  %v6871_v32 = vrot.slane %v6857_v18, %v9845_v14 }
 0x6cc   :  { %v6765_v5 = vcombine.high %v6748_v26, %v16207_v15 }
 0x6ce   :  { %7003 = vrot.lane.b32.xlu0 %v6830_v30, %s9781_s25  ;;  %7027 = vrot.lane.b32.xlu1 %v6847_v9, %s9782_s26  ;;  %v6502_v30 = vrot.slane %v6488_v38, %v9845_v14  ;;  %v6733_v9 = vrot.slane %v6719_v42, %v16511_v22  ;;  %v6848_v38 = vcombine.high %v6838_v3, %v16207_v15 }
 0x6cf   :  { %v6602_v42 = vcombine.high %v6592_v16, %v16207_v15 }
 0x6d0   :  { %v6519_v1 = vcombine.high %v6502_v30, %v16207_v15 }
 0x6d2   :  { %7021 = vrot.lane.b32.xlu0 %v6601_v57, %s9782_s26  ;;  %7001 = vrot.lane.b32.xlu1 %v6748_v26, %s9781_s25  ;;  %v13427_v57 = vpop.permute.xlu0 %6445  ;;  %v6831_v26 = vcombine.high %v6815_v6, %v16207_v15  ;;  %v6585_v6 = vcombine.high %v6569_v43, %v16207_v15  ;;  %v6880_v43 = vcombine.high %v13438_v23, %v16207_v15 }
 0x6d3   :  { %v6644_v51 = vrot.slane %v13427_v57, %v16511_v22 }
 0x6d6   :  { %6995 = vrot.lane.b32.xlu0 %v6502_v30, %s9781_s25  ;;  %7051 = vrot.lane.b32.xlu1 %v6838_v3, %s9783_s27  ;;  %v6756_v30 = vrot.slane %v6733_v9, %v9845_v14  ;;  %v6610_v3 = vrot.slane %v13431_v40, %v16511_v22 }
 0x6d8   :  { %v6611_v17 = vcombine.high %v6610_v3, %v16207_v15 }
 0x6da   :  { %7045 = vrot.lane.b32.xlu0 %v6592_v16, %s9783_s27  ;;  %7025 = vrot.lane.b32.xlu1 %v6765_v5, %s9782_s26  ;;  %v6487_v5 = vrot.slane %v6473_v59, %v16511_v22  ;;  %v13446_v16 = vrot.slane %v6610_v3, %v9845_v14  ;;  %v6625_v21 = vrot.slane %v6611_v17, %v9845_v14 }
 0x6dc   :  { %v6510_v59 = vrot.slane %v6487_v5, %v9845_v14  ;;  %v6634_v10 = vcombine.high %v13446_v16, %v16207_v15 }
 0x6de   :  { %7019 = vrot.lane.b32.xlu0 %v6519_v1, %s9782_s26  ;;  %7075 = vrot.lane.b32.xlu1 %v6848_v38, %s9784_s28  ;;  %v6845_v1 = vrot.slane %v6831_v26, %v9845_v14  ;;  %v13448_v38 = vpop.permute.xlu0 %6457  ;;  %v6599_v26 = vrot.slane %v6585_v6, %v9845_v14  ;;  %v6520_v0 = vcombine.high %v6510_v59, %v16207_v15 }
 0x6df   :  { %v6890_v50 = vrot.slane %v13448_v38, %v16511_v22 }
 0x6e0   :  { %v6849_v45 = vcombine.high %v6845_v1, %v16207_v15  ;;  %v6603_v20 = vcombine.high %v6599_v26, %v16207_v15 }
 0x6e1   :  { %v13461_v35 = vrot.slane %v6890_v50, %v9845_v14 }
 0x6e2   :  { %7069 = vrot.lane.b32.xlu0 %v6602_v42, %s9784_s28  ;;  %7049 = vrot.lane.b32.xlu1 %v6756_v30, %s9783_s27  ;;  %v13457_v42 = vpop.permute.xlu1 %6439  ;;  %v13499_v47 = vpop.permute.xlu0 %7367 }
 0x6e3   :  { %16654 = vst [vmem:[#allocation415_spill] sm:$0xff] %v13461_v35  ;;  %v6928_v6 = vcombine.high %v13461_v35, %v16207_v15  ;;  %v7644_v31 = vrot.slane %v13499_v47, %v16511_v22 }
 0x6e6   :  { %7043 = vrot.lane.b32.xlu0 %v6510_v59, %s9783_s27  ;;  %7099 = vrot.lane.b32.xlu1 %v6845_v1, %s9785_s29  ;;  %v13471_v27 = vpop.permute.xlu1 %6451  ;;  %v6749_v59 = vcombine.high %v6733_v9, %v16207_v15  ;;  %v6652_v1 = vcombine.high %v6644_v51, %v16207_v15 }
 0x6e8   :  { %v6666_v9 = vrot.slane %v6652_v1, %v9845_v14 }
 0x6ea   :  { %7093 = vrot.lane.b32.xlu0 %v6599_v26, %s9785_s29  ;;  %7171 = vrot.lane.b32.xlu1 %v6880_v43, %s9788_s17  ;;  %v13478_v43 = vrot.slane %v6644_v51, %v9845_v14  ;;  %v13483_v18 = vpop.permute.xlu1 %7355  ;;  %v6763_v51 = vrot.slane %v6749_v59, %v9845_v14 }
 0x6ec   :  { %16655 = vst [vmem:[#allocation416_spill] sm:$0xff] %v13478_v43  ;;  %v6682_v3 = vcombine.high %v13478_v43, %v16207_v15  ;;  %v6767_v12 = vcombine.high %v6763_v51, %v16207_v15 }
 0x6ee   :  { %7165 = vrot.lane.b32.xlu0 %v6634_v10, %s9788_s17  ;;  %7195 = vrot.lane.b32.xlu1 %v6871_v32, %s9789_s18  ;;  %v6766_v10 = vcombine.high %v6756_v30, %v16207_v15  ;;  %v13492_v17 = vpop.permute.xlu1 %6447  ;;  %v6881_v30 = vcombine.high %v6871_v32, %v16207_v15  ;;  %v13514_v32 = vpop.permute.xlu0 %6459 }
 0x6f2   :  { %7189 = vrot.lane.b32.xlu0 %v6625_v21, %s9789_s18  ;;  %6981 = vrot.lane.b32.xlu1 %v6928_v6, %s9780_s24  ;;  %v6898_v6 = vcombine.high %v6890_v50, %v16207_v15  ;;  %v6774_v50 = vrot.slane %v13471_v27, %v16511_v22 }
 0x6f4   :  { %v13519_v26 = vrot.slane %v6774_v50, %v9845_v14  ;;  %v6775_v1 = vcombine.high %v6774_v50, %v16207_v15 }
 0x6f6   :  { %6975 = vrot.lane.b32.xlu0 %v6682_v3, %s9780_s24  ;;  %7073 = vrot.lane.b32.xlu1 %v6766_v10, %s9784_s28  ;;  %v13505_v3 = vpop.permute.xlu1 %7357  ;;  %v6528_v10 = vrot.slane %v13457_v42, %v16511_v22  ;;  %v6789_v4 = vrot.slane %v6775_v1, %v9845_v14 }
 0x6f8   :  { %v13536_v59 = vrot.slane %v6528_v10, %v9845_v14 }
 0x6fa   :  { %7067 = vrot.lane.b32.xlu0 %v6520_v0, %s9784_s28  ;;  %7123 = vrot.lane.b32.xlu1 %v6849_v45, %s9786_s30  ;;  %v6635_v45 = vcombine.high %v6625_v21, %v16207_v15  ;;  %v6912_v0 = vrot.slane %v6898_v6, %v9845_v14  ;;  %v13521_v21 = vpop.permute.xlu1 %7369  ;;  %v13528_v6 = vpop.permute.xlu0 %7359  ;;  %v6552_v50 = vcombine.high %v13536_v59, %v16207_v15 }
 0x6fc   :  { %v6929_v54 = vcombine.high %v6912_v0, %v16207_v15 }
 0x6fe   :  { %7117 = vrot.lane.b32.xlu0 %v6603_v20, %s9786_s30  ;;  %7219 = vrot.lane.b32.xlu1 %v6881_v30, %s9790_s19  ;;  %v6503_v20 = vcombine.high %v6487_v5, %v16207_v15  ;;  %v6798_v30 = vcombine.high %v13519_v26, %v16207_v15  ;;  %v13549_v13 = vpop.permute.xlu0 %7371 }
 0x700   :  { %v6517_v5 = vrot.slane %v6503_v20, %v9845_v14  ;;  %v6872_v20 = vcombine.high %v13415_v58, %v16207_v15  ;;  %v6626_v58 = vcombine.high %v13431_v40, %v16207_v15 }
 0x702   :  { %7213 = vrot.lane.b32.xlu0 %v6635_v45, %s9790_s19  ;;  %7005 = vrot.lane.b32.xlu1 %v6912_v0, %s9781_s25  ;;  %v13539_v45 = vpop.permute.xlu1 %7361  ;;  %v13567_v1 = vpop.permute.xlu0 %7363  ;;  %v6521_v0 = vcombine.high %v6517_v5, %v16207_v15 }
 0x703   :  { %16656 = vst [vmem:[#allocation417_spill] sm:$0xff] %v13539_v45  ;;  %v16780_v45 = vld [vmem:[#allocation72_spill] sm:$0xff] }
 0x706   :  { %6999 = vrot.lane.b32.xlu0 %v6666_v9, %s9781_s25  ;;  %7097 = vrot.lane.b32.xlu1 %v6763_v51, %s9785_s29  ;;  %v13554_v43 = vpop.permute.xlu1 %7373 }
 0x707   :  { %16657 = vst [vmem:[#allocation418_spill] sm:$0xff] %v13554_v43 }
 0x70a   :  { %7091 = vrot.lane.b32.xlu0 %v6517_v5, %s9785_s29  ;;  %7147 = vrot.lane.b32.xlu1 %v13438_v23, %s9787_s16  ;;  %v6529_v23 = vcombine.high %v6528_v10, %v16207_v15  ;;  %v7398_v10 = vrot.slane %v13483_v18, %v16511_v22  ;;  %v16667_v5 = vld [vmem:[#allocation5_spill] sm:$0xff] }
 0x70c   :  { %v6543_v44 = vrot.slane %v6529_v23, %v9845_v14  ;;  %v13573_v40 = vrot.slane %v7398_v10, %v9845_v14  ;;  %v13581_v23 = vpop.permute.xlu0 %7375 }
 0x70e   :  { %7141 = vrot.lane.b32.xlu0 %v13446_v16, %s9787_s16  ;;  %7169 = vrot.lane.b32.xlu1 %v6798_v30, %s9788_s17  ;;  %v6879_v16 = vrot.slane %v6872_v20, %v9845_v14  ;;  %v13564_v30 = vrot.slane %v7644_v31, %v9845_v14  ;;  %16659 = vst [vmem:[#allocation420_spill] sm:$0xff] %v13573_v40  ;;  %v13575_v20 = vpop.permute.xlu1 %7365 }
 0x70f   :  { %16660 = vst [vmem:[#allocation421_spill] sm:$0xff] %v13575_v20  ;;  %v7436_v35 = vcombine.high %v13573_v40, %v16207_v15  ;;  %v6683_v20 = vcombine.high %v6666_v9, %v16207_v15  ;;  %v6553_v51 = vcombine.high %v6543_v44, %v16207_v15 }
 0x710   :  { %16658 = vst [vmem:[#allocation419_spill] sm:$0xff] %v13564_v30  ;;  %v7682_v11 = vcombine.high %v13564_v30, %v16207_v15  ;;  %v13592_v30 = vpop.permute.xlu0 %7377 }
 0x711   :  { %16662 = vst [vmem:[#allocation423_spill] sm:$0xff] %v13592_v30  ;;  %v16681_v30 = vld [vmem:[#allocation30_spill] sm:$0xff] }
 0x712   :  { %7163 = vrot.lane.b32.xlu0 %v6552_v50, %s9788_s17  ;;  %7193 = vrot.lane.b32.xlu1 %v6789_v4, %s9789_s18  ;;  %v6633_v50 = vrot.slane %v6626_v58, %v9845_v14  ;;  %v13586_v58 = vpop.permute.xlu1 %6327 }
 0x713   :  { %16661 = vst [vmem:[#allocation422_spill] sm:$0xff] %v13586_v58  ;;  %v6799_v58 = vcombine.high %v6789_v4, %v16207_v15  ;;  %v16666_v4 = vld [vmem:[#allocation9_spill] sm:$0xff] }
 0x714   :  { %v13605_v9 = vpop.permute.xlu0 %6341 }
 0x715   :  { %16664 = vst [vmem:[#allocation425_spill] sm:$0xff] %v13605_v9 }
 0x716   :  { %7187 = vrot.lane.b32.xlu0 %v6543_v44, %s9789_s18  ;;  %7243 = vrot.lane.b32.xlu1 %v6879_v16, %s9791_s20  ;;  %v7406_v44 = vcombine.high %v7398_v10, %v16207_v15 }
 0x718   :  { %v7420_v10 = vrot.slane %v7406_v44, %v9845_v14 }
 0x71a   :  { %7237 = vrot.lane.b32.xlu0 %v6633_v50, %s9791_s20  ;;  %7895 = vrot.lane.b32.xlu1 %v7682_v11, %s9780_s24  ;;  %v13596_v11 = vpop.permute.xlu1 %6343 }
 0x71b   :  { %16663 = vst [vmem:[#allocation424_spill] sm:$0xff] %v13596_v11  ;;  %v16679_v11 = vld [vmem:[#allocation11_spill] sm:$0xff] }
 0x71e   :  { %7889 = vrot.lane.b32.xlu0 %v7436_v35, %s9780_s24  ;;  %7029 = vrot.lane.b32.xlu1 %v6929_v54, %s9782_s26  ;;  %v6883_v35 = vcombine.high %v13448_v38, %v16207_v15  ;;  %v7652_v54 = vcombine.high %v7644_v31, %v16207_v15  ;;  %v6637_v38 = vcombine.high %v13427_v57, %v16207_v15 }
 0x720   :  { %v13619_v31 = vrot.slane %v6883_v35, %v16511_v22  ;;  %v13631_v57 = vrot.slane %v6637_v38, %v16511_v22 }
 0x722   :  { %7023 = vrot.lane.b32.xlu0 %v6683_v20, %s9782_s26  ;;  %7121 = vrot.lane.b32.xlu1 %v6767_v12, %s9786_s30  ;;  %v6882_v12 = vcombine.high %v6879_v16, %v16207_v15  ;;  %v13609_v20 = vpop.permute.xlu1 %6347  ;;  %v6636_v16 = vcombine.high %v6633_v50, %v16207_v15  ;;  %v6920_v50 = vrot.slane %v13619_v31, %v9845_v14 }
 0x723   :  { %16665 = vst [vmem:[#allocation426_spill] sm:$0xff] %v13609_v20  ;;  %v13624_v20 = vpop.permute.xlu0 %6345  ;;  %v13650_v44 = vrot.slane %v13631_v57, %v9845_v14 }
 0x724   :  { %16668 = vst [vmem:[#allocation9_spill] sm:$0xff] %v13624_v20  ;;  %v16678_v20 = vld [vmem:[#allocation6_spill] sm:$0xff] }
 0x726   :  { %7115 = vrot.lane.b32.xlu0 %v6521_v0, %s9786_s30  ;;  %7217 = vrot.lane.b32.xlu1 %v6799_v58, %s9790_s19  ;;  %v840_v58 = vsel %vm836_vm1, %v16667_v5, %v16666_v4  ;;  %v7666_v0 = vrot.slane %v7652_v54, %v9845_v14  ;;  %v13633_v35 = vpop.permute.xlu1 %6351  ;;  %v16671_v54 = vld [vmem:[#allocation20_spill] sm:$0xff]  ;;  %v6790_v5 = vcombine.high %v13471_v27, %v16207_v15 }
 0x727   :  { %16670 = vst [vmem:[#allocation5_spill] sm:$0xff] %v13633_v35  ;;  %v16677_v35 = vld [vmem:[#allocation10_spill] sm:$0xff] }
 0x728   :  { %v838_v9 = vsel %vm836_vm1, %v16678_v20, %v16677_v35  ;;  %v16685_v20 = vld [vmem:[#allocation12_spill] sm:$0xff] }
 0x72a   :  { %7211 = vrot.lane.b32.xlu0 %v6553_v51, %s9790_s19  ;;  %7267 = vrot.lane.b32.xlu1 %v6882_v12, %s9792_s21  ;;  %v16669_v51 = vld [vmem:[#allocation14_spill] sm:$0xff] }
 0x72b   :  { %v847_v12 = vsel %vm843_vm2, %v840_v58, %v16669_v51  ;;  %v13644_v58 = vpop.permute.xlu0 %6349 }
 0x72c   :  { %v854_v4 = vsel %vm850_vm3, %v847_v12, %v16671_v54  ;;  %16672 = vst [vmem:[#allocation14_spill] sm:$0xff] %v13644_v58  ;;  %v16675_v12 = vld [vmem:[#allocation8_spill] sm:$0xff] }
 0x72d   :  { %v16676_v54 = vld [vmem:[#allocation4_spill] sm:$0xff] }
 0x72e   :  { %7261 = vrot.lane.b32.xlu0 %v6636_v16, %s9792_s21  ;;  %7919 = vrot.lane.b32.xlu1 %v7666_v0, %s9781_s25  ;;  %v16674_v16 = vld [vmem:[#allocation24_spill] sm:$0xff]  ;;  %v837_v27 = vsel %vm836_vm1, %v16676_v54, %v16675_v12  ;;  %v16684_v12 = vld [vmem:[#allocation13_spill] sm:$0xff] }
 0x72f   :  { %v861_v51 = vsel %vm857_vm4, %v854_v4, %v16674_v16  ;;  %v6544_v16 = vcombine.high %v13457_v42, %v16207_v15  ;;  %v845_v54 = vsel %vm843_vm2, %v838_v9, %v16684_v12  ;;  %v844_v35 = vsel %vm843_vm2, %v837_v27, %v16685_v20  ;;  %v16690_v9 = vld [vmem:[#allocation23_spill] sm:$0xff] }
 0x730   :  { %v868_v4 = vsel %vm864_vm5, %v861_v51, %v16681_v30  ;;  %v16688_v51 = vld [vmem:[#allocation16_spill] sm:$0xff]  ;;  %v16691_v12 = vld [vmem:[#allocation19_spill] sm:$0xff] }
 0x731   :  { %v851_v42 = vsel %vm850_vm3, %v844_v35, %v16688_v51  ;;  %v16693_v20 = vld [vmem:[#allocation35_spill] sm:$0xff]  ;;  %v16695_v51 = vld [vmem:[#allocation22_spill] sm:$0xff] }
 0x732   :  { %7913 = vrot.lane.b32.xlu0 %v7420_v10, %s9781_s25  ;;  %7053 = vrot.lane.b32.xlu1 %v6920_v50, %s9783_s27  ;;  %v875_v35 = vsel %vm871_vm6, %v868_v4, %v16693_v20  ;;  %v16701_v20 = vld [vmem:[#allocation28_spill] sm:$0xff] }
 0x734   :  { %v13646_v38 = vpop.permute.xlu1 %6973 }
 0x735   :  { %16673 = vst [vmem:[#allocation20_spill] sm:$0xff] %v13646_v38  ;;  %v16680_v38 = vld [vmem:[#allocation7_spill] sm:$0xff] }
 0x736   :  { %7047 = vrot.lane.b32.xlu0 %v13650_v44, %s9783_s27  ;;  %7145 = vrot.lane.b32.xlu1 %v13519_v26, %s9787_s16  ;;  %v841_v58 = vsel %vm836_vm1, %v16680_v38, %v16679_v11  ;;  %v6797_v26 = vrot.slane %v6790_v5, %v9845_v14  ;;  %v16687_v38 = vld [vmem:[#allocation17_spill] sm:$0xff]  ;;  %v16689_v5 = vld [vmem:[#allocation18_spill] sm:$0xff] }
 0x737   :  { %v848_v11 = vsel %vm843_vm2, %v841_v58, %v16686_v55  ;;  %v852_v30 = vsel %vm850_vm3, %v845_v54, %v16687_v38  ;;  %v858_v55 = vsel %vm857_vm4, %v851_v42, %v16691_v12  ;;  %v16692_v58 = vld [vmem:[#allocation21_spill] sm:$0xff]  ;;  %v16694_v38 = vld [vmem:[#allocation27_spill] sm:$0xff]  ;;  %v7683_v42 = vcombine.high %v7666_v0, %v16207_v15 }
 0x738   :  { %v13672_v40 = vpop.permute.xlu1 %6997  ;;  %v13674_v41 = vpop.permute.xlu0 %6971  ;;  %v859_v27 = vsel %vm857_vm4, %v852_v30, %v16690_v9  ;;  %v16698_v9 = vld [vmem:[#allocation25_spill] sm:$0xff] }
 0x739   :  { %16682 = vst [vmem:[#allocation24_spill] sm:$0xff] %v13672_v40  ;;  %16683 = vst [vmem:[#allocation8_spill] sm:$0xff] %v13674_v41  ;;  %v855_v40 = vsel %vm850_vm3, %v848_v11, %v16689_v5  ;;  %v866_v11 = vsel %vm864_vm5, %v859_v27, %v16694_v38  ;;  %v6551_v5 = vrot.slane %v6544_v16, %v9845_v14  ;;  %v16699_v12 = vld [vmem:[#allocation33_spill] sm:$0xff]  ;;  %v16702_v38 = vld [vmem:[#allocation39_spill] sm:$0xff] }
 0x73a   :  { %7139 = vrot.lane.b32.xlu0 %v13536_v59, %s9787_s16  ;;  %7241 = vrot.lane.b32.xlu1 %v6797_v26, %s9791_s20  ;;  %v862_v54 = vsel %vm857_vm4, %v855_v40, %v16692_v58  ;;  %v865_v59 = vsel %vm864_vm5, %v858_v55, %v16695_v51  ;;  %v873_v4 = vsel %vm871_vm6, %v866_v11, %v16699_v12  ;;  %v16700_v58 = vld [vmem:[#allocation26_spill] sm:$0xff]  ;;  %v16704_v0 = vld [vmem:[#allocation29_spill] sm:$0xff]  ;;  %v16705_v11 = vld [vmem:[#allocation31_spill] sm:$0xff] }
 0x73b   :  { %v869_v40 = vsel %vm864_vm5, %v862_v54, %v16698_v9  ;;  %v872_v27 = vsel %vm871_vm6, %v865_v59, %v16700_v58  ;;  %v880_v16 = vsel %vm878_vm7, %v873_v4, %v16702_v38  ;;  %v16703_v51 = vld [vmem:[#allocation42_spill] sm:$0xff]  ;;  %v16706_v59 = vld [vmem:[#allocation47_spill] sm:$0xff] }
 0x73c   :  { %v13704_v41 = vpop.permute.xlu1 %6977  ;;  %v13706_v30 = vpop.permute.xlu0 %6979  ;;  %v876_v55 = vsel %vm871_vm6, %v869_v40, %v16701_v20  ;;  %v879_v54 = vsel %vm878_vm7, %v872_v27, %v16704_v0  ;;  %v887_v12 = vsel %vm885_vm8, %v880_v16, %v16706_v59  ;;  %v16707_v40 = vld [vmem:[#allocation61_spill] sm:$0xff]  ;;  %v16708_v58 = vld [vmem:[#allocation54_spill] sm:$0xff]  ;;  %v6930_v27 = vcombine.high %v6920_v50, %v16207_v15 }
 0x73d   :  { %16696 = vst [vmem:[#allocation4_spill] sm:$0xff] %v13704_v41  ;;  %16697 = vst [vmem:[#allocation10_spill] sm:$0xff] %v13706_v30  ;;  %v882_v41 = vsel %vm878_vm7, %v875_v35, %v16703_v51  ;;  %v883_v9 = vsel %vm878_vm7, %v876_v55, %v16705_v11  ;;  %v901_v4 = vsel %vm899_vm12, %v16708_v58, %v16707_v40  ;;  %v16711_v51 = vld [vmem:[#allocation32_spill] sm:$0xff]  ;;  %v16712_v0 = vld [vmem:[#allocation49_spill] sm:$0xff] }
 0x73e   :  { %7235 = vrot.lane.b32.xlu0 %v6551_v5, %s9791_s20  ;;  %7943 = vrot.lane.b32.xlu1 %v7683_v42, %s9782_s26  ;;  %v7637_v35 = vcombine.high %v13499_v47, %v16207_v15  ;;  %v7437_v42 = vcombine.high %v7420_v10, %v16207_v15  ;;  %v886_v55 = vsel %vm885_vm8, %v879_v54, %v16711_v51  ;;  %v16713_v11 = vld [vmem:[#allocation36_spill] sm:$0xff]  ;;  %v16714_v40 = vld [vmem:[#allocation37_spill] sm:$0xff]  ;;  %v16716_v54 = vld [vmem:[#allocation63_spill] sm:$0xff] }
 0x73f   :  { %v889_v16 = vsel %vm885_vm8, %v882_v41, %v16712_v0  ;;  %v13746_v59 = vsel %vm885_vm8, %v883_v9, %v16713_v11  ;;  %v13750_v47 = vsel %vm16141_vm9, %v887_v12, %v16708_v58  ;;  %v16715_v10 = vld [vmem:[#allocation41_spill] sm:$0xff]  ;;  %v16719_v58 = vld [vmem:[#allocation40_spill] sm:$0xff]  ;;  %v16720_v0 = vld [vmem:[#allocation46_spill] sm:$0xff] }
 0x740   :  { %v13734_v20 = vpop.permute.xlu1 %7027  ;;  %v13736_v38 = vpop.permute.xlu0 %7003  ;;  %v900_v50 = vsel %vm899_vm12, %v16714_v40, %v16715_v10  ;;  %v16717_v51 = vld [vmem:[#allocation57_spill] sm:$0xff]  ;;  %v16729_v30 = vld [vmem:[#allocation64_spill] sm:$0xff] }
 0x741   :  { %16709 = vst [vmem:[#allocation6_spill] sm:$0xff] %v13734_v20  ;;  %16710 = vst [vmem:[#allocation11_spill] sm:$0xff] %v13736_v38  ;;  %v13754_v20 = vsel %vm16141_vm9, %v886_v55, %v16714_v40  ;;  %v903_v41 = vsel %vm899_vm12, %v16717_v51, %v16716_v54  ;;  %v13766_v9 = vsel %vm16141_vm9, %v889_v16, %v16717_v51  ;;  %v16718_v12 = vld [vmem:[#allocation45_spill] sm:$0xff]  ;;  %v16721_v40 = vld [vmem:[#allocation67_spill] sm:$0xff] }
 0x742   :  { %7937 = vrot.lane.b32.xlu0 %v7437_v42, %s9782_s26  ;;  %7077 = vrot.lane.b32.xlu1 %v6930_v27, %s9784_s28  ;;  %v904_v55 = vsel %vm899_vm12, %v16719_v58, %v16718_v12  ;;  %v13773_v11 = vsel %vm906_vm13, %v900_v50, %v16720_v0  ;;  %v13777_v10 = vsel %vm906_vm13, %v901_v4, %v16721_v40  ;;  %v16724_v12 = vld [vmem:[#allocation50_spill] sm:$0xff]  ;;  %v16725_v4 = vld [vmem:[#allocation69_spill] sm:$0xff] }
 0x743   :  { %v7391_v42 = vcombine.high %v13483_v18, %v16207_v15  ;;  %v13782_v27 = vrot.slane %v7637_v35, %v16511_v22  ;;  %v6684_v51 = vcombine.high %v13650_v44, %v16207_v15  ;;  %v6800_v50 = vcombine.high %v6797_v26, %v16207_v15  ;;  %v16726_v18 = vld [vmem:[#allocation77_spill] sm:$0xff]  ;;  %v16727_v35 = vld [vmem:[#allocation62_spill] sm:$0xff] }
 0x744   :  { %v13784_v16 = vpop.permute.xlu1 %7001  ;;  %v13786_v54 = vpop.permute.xlu0 %7021  ;;  %v13793_v0 = vsel %vm906_vm13, %v904_v55, %v16724_v12  ;;  %v13797_v40 = vsel %vm906_vm13, %v903_v41, %v16725_v4  ;;  %v1779_v38 = vsel %vm836_vm1, %v16727_v35, %v16726_v18  ;;  %v16731_v44 = vld [vmem:[#allocation66_spill] sm:$0xff]  ;;  %v1783_v55 = vsel %vm836_vm1, %v16733_v36, %v16732_v25  ;;  %v16734_v12 = vld [vmem:[#allocation81_spill] sm:$0xff]  ;;  %v16736_v35 = vld [vmem:[#allocation83_spill] sm:$0xff] }
 0x745   :  { %16722 = vst [vmem:[#allocation7_spill] sm:$0xff] %v13784_v16  ;;  %16723 = vst [vmem:[#allocation30_spill] sm:$0xff] %v13786_v54  ;;  %v16728_v16 = vld [vmem:[#allocation78_spill] sm:$0xff]  ;;  %v1782_v26 = vsel %vm836_vm1, %v16731_v44, %v16730_v52  ;;  %v1785_v41 = vsel %vm843_vm2, %v1779_v38, %v16734_v12  ;;  %v6913_v44 = vcombine.high %v13619_v31, %v16207_v15  ;;  %v16742_v12 = vld [vmem:[#allocation88_spill] sm:$0xff] }
 0x746   :  { %v1780_v54 = vsel %vm836_vm1, %v16729_v30, %v16728_v16  ;;  %7071 = vrot.lane.b32.xlu0 %v6684_v51, %s9784_s28  ;;  %7265 = vrot.lane.b32.xlu1 %v6800_v50, %s9792_s21  ;;  %v16735_v4 = vld [vmem:[#allocation82_spill] sm:$0xff]  ;;  %v1788_v30 = vsel %vm843_vm2, %v1782_v26, %v16736_v35  ;;  %v16737_v16 = vld [vmem:[#allocation84_spill] sm:$0xff]  ;;  %v13824_v36 = vrot.slane %v7391_v42, %v16511_v22  ;;  %v16740_v26 = vld [vmem:[#allocation85_spill] sm:$0xff] }
 0x747   :  { %v1786_v18 = vsel %vm843_vm2, %v1780_v54, %v16735_v4  ;;  %v1789_v52 = vsel %vm843_vm2, %v1783_v55, %v16737_v16  ;;  %v6938_v25 = vrot.slane %v13514_v32, %v16511_v22  ;;  %v6554_v54 = vcombine.high %v6551_v5, %v16207_v15  ;;  %v16741_v31 = vld [vmem:[#allocation86_spill] sm:$0xff]  ;;  %v16743_v35 = vld [vmem:[#allocation87_spill] sm:$0xff] }
 0x748   :  { %v13828_v38 = vpop.permute.xlu1 %7051  ;;  %v13830_v51 = vpop.permute.xlu0 %6995  ;;  %v13835_v50 = vrot.slane %v13782_v27, %v9845_v14  ;;  %v1791_v55 = vsel %vm850_vm3, %v1785_v41, %v16740_v26  ;;  %v1792_v42 = vsel %vm850_vm3, %v1786_v18, %v16741_v31  ;;  %v1794_v4 = vsel %vm850_vm3, %v1788_v30, %v16742_v12  ;;  %v16745_v5 = vld [vmem:[#allocation91_spill] sm:$0xff]  ;;  %v16747_v41 = vld [vmem:[#allocation90_spill] sm:$0xff]  ;;  %v16748_v30 = vld [vmem:[#allocation92_spill] sm:$0xff] }
 0x749   :  { %16738 = vst [vmem:[#allocation13_spill] sm:$0xff] %v13828_v38  ;;  %16739 = vst [vmem:[#allocation12_spill] sm:$0xff] %v13830_v51  ;;  %v1795_v16 = vsel %vm850_vm3, %v1789_v52, %v16743_v35  ;;  %v16744_v38 = vld [vmem:[#allocation89_spill] sm:$0xff]  ;;  %v1798_v24 = vsel %vm857_vm4, %v1792_v42, %v16745_v5  ;;  %v1800_v60 = vsel %vm857_vm4, %v1794_v4, %v16746_v8  ;;  %v16749_v26 = vld [vmem:[#allocation96_spill] sm:$0xff] }
 0x74a   :  { %v1797_v51 = vsel %vm857_vm4, %v1791_v55, %v16744_v38  ;;  %7259 = vrot.lane.b32.xlu0 %v6554_v54, %s9792_s21  ;;  %7967 = vrot.lane.b32.xlu1 %v13835_v50, %s9783_s27  ;;  %v1801_v18 = vsel %vm857_vm4, %v1795_v16, %v16747_v41  ;;  %v1804_v38 = vsel %vm864_vm5, %v1798_v24, %v16749_v26  ;;  %v16752_v24 = vld [vmem:[#allocation98_spill] sm:$0xff]  ;;  %v16754_v16 = vld [vmem:[#allocation95_spill] sm:$0xff]  ;;  %v16756_v26 = vld [vmem:[#allocation104_spill] sm:$0xff] }
 0x74b   :  { %v1803_v52 = vsel %vm864_vm5, %v1797_v51, %v16748_v30  ;;  %v6692_v55 = vrot.slane %v13492_v17, %v16511_v22  ;;  %v6667_v8 = vcombine.high %v13631_v57, %v16207_v15  ;;  %v13865_v54 = vrot.slane %v6938_v25, %v9845_v14  ;;  %v16753_v35 = vld [vmem:[#allocation94_spill] sm:$0xff] }
 0x74c   :  { %v13867_v31 = vpop.permute.xlu1 %7025  ;;  %v13869_v42 = vpop.permute.xlu0 %7045  ;;  %v13873_v12 = vrot.slane %v13824_v36, %v9845_v14  ;;  %v13876_v51 = vrot.slane %v6913_v44, %v9845_v14  ;;  %v1806_v4 = vsel %vm864_vm5, %v1800_v60, %v16752_v24  ;;  %v1807_v57 = vsel %vm864_vm5, %v1801_v18, %v16753_v35  ;;  %v16755_v41 = vld [vmem:[#allocation102_spill] sm:$0xff]  ;;  %v16758_v44 = vld [vmem:[#allocation99_spill] sm:$0xff]  ;;  %v16759_v60 = vld [vmem:[#allocation108_spill] sm:$0xff] }
 0x74d   :  { %16750 = vst [vmem:[#allocation15_spill] sm:$0xff] %v13867_v31  ;;  %16751 = vst [vmem:[#allocation17_spill] sm:$0xff] %v13869_v42  ;;  %v1809_v5 = vsel %vm871_vm6, %v1803_v52, %v16754_v16  ;;  %v1810_v30 = vsel %vm871_vm6, %v1804_v38, %v16755_v41  ;;  %v1812_v31 = vsel %vm871_vm6, %v1806_v4, %v16756_v26  ;;  %v16757_v42 = vld [vmem:[#allocation97_spill] sm:$0xff]  ;;  %v16760_v52 = vld [vmem:[#allocation110_spill] sm:$0xff] }
 0x74e   :  { %v1813_v2 = vsel %vm871_vm6, %v1807_v57, %v16757_v42  ;;  %v1815_v46 = vsel %vm878_vm7, %v1809_v5, %v16758_v44  ;;  %7961 = vrot.lane.b32.xlu0 %v13873_v12, %s9783_s27  ;;  %7101 = vrot.lane.b32.xlu1 %v13876_v51, %s9785_s29  ;;  %v1816_v18 = vsel %vm878_vm7, %v1810_v30, %v16759_v60  ;;  %v16761_v24 = vld [vmem:[#allocation101_spill] sm:$0xff]  ;;  %v16765_v26 = vld [vmem:[#allocation115_spill] sm:$0xff]  ;;  %v16766_v44 = vld [vmem:[#allocation118_spill] sm:$0xff] }
 0x74f   :  { %v1818_v38 = vsel %vm878_vm7, %v1812_v31, %v16760_v52  ;;  %v1819_v4 = vsel %vm878_vm7, %v1813_v2, %v16761_v24  ;;  %v13903_v42 = vrot.slane %v6692_v55, %v9845_v14  ;;  %v6939_v35 = vcombine.high %v6938_v25, %v16207_v15  ;;  %v16764_v2 = vld [vmem:[#allocation103_spill] sm:$0xff]  ;;  %v16767_v52 = vld [vmem:[#allocation105_spill] sm:$0xff] }
 0x750   :  { %v13908_v57 = vrot.slane %v13549_v13, %v16511_v22  ;;  %v13910_v16 = vpop.permute.xlu1 %7075  ;;  %v13912_v5 = vpop.permute.xlu0 %7019  ;;  %v13915_v41 = vrot.slane %v6667_v8, %v9845_v14  ;;  %v6962_v31 = vcombine.high %v13865_v54, %v16207_v15  ;;  %v1821_v30 = vsel %vm885_vm8, %v1815_v46, %v16764_v2  ;;  %v16769_v8 = vld [vmem:[#allocation123_spill] sm:$0xff]  ;;  %v16771_v46 = vld [vmem:[#allocation125_spill] sm:$0xff]  ;;  %v16773_v2 = vld [vmem:[#allocation116_spill] sm:$0xff] }
 0x751   :  { %16762 = vst [vmem:[#allocation16_spill] sm:$0xff] %v13910_v16  ;;  %16763 = vst [vmem:[#allocation18_spill] sm:$0xff] %v13912_v5  ;;  %v1822_v25 = vsel %vm885_vm8, %v1816_v18, %v16765_v26  ;;  %v1824_v60 = vsel %vm885_vm8, %v1818_v38, %v16766_v44  ;;  %v1825_v24 = vsel %vm885_vm8, %v1819_v4, %v16767_v52  ;;  %v16768_v16 = vld [vmem:[#allocation107_spill] sm:$0xff]  ;;  %v16772_v38 = vld [vmem:[#allocation109_spill] sm:$0xff] }
 0x752   :  { %v1827_v5 = vsel %vm16141_vm9, %v1821_v30, %v16768_v16  ;;  %v1828_v56 = vsel %vm16141_vm9, %v1822_v25, %v16769_v8  ;;  %v1833_v29 = vsel %vm899_vm12, %v16768_v16, %v16770_v37  ;;  %7095 = vrot.lane.b32.xlu0 %v13915_v41, %s9785_s29  ;;  %7173 = vrot.lane.b32.xlu1 %v6962_v31, %s9788_s17  ;;  %v16778_v52 = vld [vmem:[#allocation71_spill] sm:$0xff] }
 0x753   :  { %v1830_v18 = vsel %vm16141_vm9, %v1824_v60, %v16771_v46  ;;  %v1831_v4 = vsel %vm16141_vm9, %v1825_v24, %v16772_v38  ;;  %v1839_v30 = vsel %vm906_vm13, %v1833_v29, %v16773_v2  ;;  %v6693_v26 = vcombine.high %v6692_v55, %v16207_v15  ;;  %v16777_v29 = vld [vmem:[#allocation51_spill] sm:$0xff] }
 0x754   :  { %v13946_v25 = vrot.slane %v13528_v6, %v16511_v22  ;;  %v13950_v37 = vrot.slane %v13908_v57, %v9845_v14  ;;  %v13952_v16 = vpop.permute.xlu1 %7049  ;;  %v13954_v31 = vpop.permute.xlu0 %7069  ;;  %v6716_v44 = vcombine.high %v13903_v42, %v16207_v15  ;;  %v13959_v60 = vrot.slane %v6939_v35, %v9845_v14  ;;  %v16781_v35 = vld [vmem:[#allocation126_spill] sm:$0xff] }
 0x755   :  { %16775 = vst [vmem:[#allocation19_spill] sm:$0xff] %v13952_v16  ;;  %16776 = vst [vmem:[#allocation21_spill] sm:$0xff] %v13954_v31  ;;  %v914_v55 = vsel %vm913_vm14, %v13773_v11, %v16777_v29  ;;  %v915_v24 = vsel %vm913_vm14, %v13777_v10, %v16778_v52  ;;  %v8285_v2 = vrot.slane %v1827_v5, 7  ;;  %v1845_v16 = vsel %vm913_vm14, %v1839_v30, %v16779_v48  ;;  %v16782_v10 = vld [vmem:[#allocation55_spill] sm:$0xff]  ;;  %v16783_v5 = vld [vmem:[#allocation56_spill] sm:$0xff] }
 0x756   :  { %16774 = vst [vmem:[#allocation23_spill] sm:$0xff] %v13950_v37  ;;  %v917_v31 = vsel %vm913_vm14, %v13797_v40, %v16780_v45  ;;  %v8287_v28 = vrot.slane %v1828_v56, 7  ;;  %v8291_v7 = vrot.slane %v1830_v18, 7  ;;  %v1851_v43 = vsel %vm920_vm15, %v1845_v16, %v16781_v35  ;;  %7167 = vrot.lane.b32.xlu0 %v6716_v44, %s9788_s17  ;;  %7197 = vrot.lane.b32.xlu1 %v13959_v60, %s9789_s18  ;;  %v16784_v40 = vld [vmem:[#allocation74_spill] sm:$0xff]  ;;  %v16789_v29 = vld [vmem:[#allocation75_spill] sm:$0xff] }
 0x757   :  { %v897_v11 = vsel %vm16141_vm9, %v13746_v59, %v16719_v58  ;;  %v918_v48 = vsel %vm913_vm14, %v13793_v0, %v16782_v10  ;;  %v921_v56 = vsel %vm920_vm15, %v914_v55, %v16783_v5  ;;  %v8293_v45 = vrot.slane %v1831_v4, 7  ;;  %v16788_v0 = vld [vmem:[#allocation60_spill] sm:$0xff]  ;;  %v16790_v10 = vld [vmem:[#allocation130_spill] sm:$0xff]  ;;  %v16795_v5 = vld [vmem:[#allocation119_spill] sm:$0xff] }
 0x758   :  { %v13987_v18 = vsel %vm920_vm15, %v915_v24, %v16784_v40  ;;  %v13991_v30 = vrot.slane %v13946_v25, %v9845_v14  ;;  %v13993_v16 = vpop.permute.xlu1 %7099  ;;  %v13995_v44 = vpop.permute.xlu0 %7043  ;;  %v13998_v59 = vrot.slane %v6693_v26, %v9845_v14  ;;  %v7764_v58 = vcombine.high %v13950_v37, %v16207_v15 }
 0x759   :  { %16786 = vst [vmem:[#allocation27_spill] sm:$0xff] %v13993_v16  ;;  %16787 = vst [vmem:[#allocation22_spill] sm:$0xff] %v13995_v44  ;;  %v14004_v4 = vsel %vm920_vm15, %v918_v48, %v16788_v0  ;;  %v14008_v55 = vsel %vm920_vm15, %v917_v31, %v16789_v29  ;;  %v14012_v52 = vsel %vm8525_vm10, %v13754_v20, %v8285_v2  ;;  %v8286_v24 = vrot.slane %v1851_v43, 7  ;;  %v16791_v43 = vld [vmem:[#allocation132_spill] sm:$0xff]  ;;  %v16799_v29 = vld [vmem:[#allocation142_spill] sm:$0xff] }
 0x75a   :  { %16785 = vst [vmem:[#allocation35_spill] sm:$0xff] %v13991_v30  ;;  %v14016_v26 = vsel %vm8525_vm10, %v13750_v47, %v8287_v28  ;;  %v14020_v35 = vsel %vm8525_vm10, %v13766_v9, %v8291_v7  ;;  %v1834_v48 = vsel %vm899_vm12, %v16769_v8, %v16790_v10  ;;  %7191 = vrot.lane.b32.xlu0 %v13998_v59, %s9789_s18  ;;  %v16792_v47 = vld [vmem:[#allocation114_spill] sm:$0xff]  ;;  %v16793_v9 = vld [vmem:[#allocation136_spill] sm:$0xff]  ;;  %v16794_v8 = vld [vmem:[#allocation139_spill] sm:$0xff] }
 0x75b   :  { %7897 = vrot.lane.b32.xlu1 %v7764_v58, %s9780_s24  ;;  %v14029_v20 = vsel %vm8525_vm10, %v897_v11, %v8293_v45  ;;  %v1836_v28 = vsel %vm899_vm12, %v16771_v46, %v16791_v43  ;;  %v1837_v7 = vsel %vm899_vm12, %v16772_v38, %v16792_v47  ;;  %v1840_v31 = vsel %vm906_vm13, %v1834_v48, %v16793_v9  ;;  %v16798_v38 = vld [vmem:[#allocation141_spill] sm:$0xff]  ;;  %v16800_v48 = vld [vmem:[#allocation124_spill] sm:$0xff]  ;;  %v16880_v16 = vld [vmem:[#allocation143_spill] sm:$0xff] }
 0x75c   :  { %v1842_v2 = vsel %vm906_vm13, %v1836_v28, %v16794_v8  ;;  %v1843_v40 = vsel %vm906_vm13, %v1837_v7, %v16795_v5  ;;  %v14043_v58 = vpop.permute.xlu1 %7171  ;;  %v14045_v11 = vpop.permute.xlu0 %7093  ;;  %v7518_v46 = vcombine.high %v13991_v30, %v16207_v15  ;;  %v7684_v45 = vcombine.high %v13835_v50, %v16207_v15  ;;  %v16801_v47 = vld [vmem:[#allocation144_spill] sm:$0xff]  ;;  %v16802_v9 = vld [vmem:[#allocation145_spill] sm:$0xff]  ;;  %v16805_v5 = vld [vmem:[#allocation131_spill] sm:$0xff] }
 0x75d   :  { %16796 = vst [vmem:[#allocation25_spill] sm:$0xff] %v14043_v58  ;;  %16797 = vst [vmem:[#allocation33_spill] sm:$0xff] %v14045_v11  ;;  %v1846_v0 = vsel %vm913_vm14, %v1840_v31, %v16798_v38  ;;  %v1848_v10 = vsel %vm913_vm14, %v1842_v2, %v16799_v29  ;;  %v1849_v43 = vsel %vm913_vm14, %v1843_v40, %v16800_v48  ;;  %v16803_v50 = vld [vmem:[#allocation129_spill] sm:$0xff]  ;;  %v16804_v2 = vld [vmem:[#allocation147_spill] sm:$0xff] }
 0x75e   :  { %v14058_v28 = vsel %vm8525_vm10, %v921_v56, %v8286_v24  ;;  %v14062_v7 = vsel %vm920_vm15, %v1846_v0, %v16801_v47  ;;  %v14066_v8 = vsel %vm920_vm15, %v1848_v10, %v16802_v9  ;;  %v14070_v31 = vsel %vm920_vm15, %v1849_v43, %v16803_v50  ;;  %7891 = vrot.lane.b32.xlu0 %v7518_v46, %s9780_s24  ;;  %v16806_v24 = vld [vmem:[#allocation148_spill] sm:$0xff]  ;;  %v16807_v40 = vld [vmem:[#allocation133_spill] sm:$0xff]  ;;  %v16809_v29 = vld [vmem:[#allocation135_spill] sm:$0xff] }
 0x75f   :  { %7991 = vrot.lane.b32.xlu1 %v7684_v45, %s9784_s28  ;;  %v2697_v56 = vsel %vm836_vm1, %v16805_v5, %v16804_v2  ;;  %v2698_v38 = vsel %vm836_vm1, %v16807_v40, %v16806_v24  ;;  %v16808_v0 = vld [vmem:[#allocation149_spill] sm:$0xff]  ;;  %v16810_v48 = vld [vmem:[#allocation150_spill] sm:$0xff]  ;;  %v16812_v9 = vld [vmem:[#allocation151_spill] sm:$0xff]  ;;  %v7438_v5 = vcombine.high %v13873_v12, %v16207_v15  ;;  %v6931_v24 = vcombine.high %v13876_v51, %v16207_v15 }
 0x760   :  { %v2700_v10 = vsel %vm836_vm1, %v16809_v29, %v16808_v0  ;;  %v16811_v47 = vld [vmem:[#allocation137_spill] sm:$0xff]  ;;  %v2703_v46 = vsel %vm843_vm2, %v2697_v56, %v16812_v9  ;;  %v16813_v45 = vld [vmem:[#allocation152_spill] sm:$0xff]  ;;  %v14090_v44 = vpop.permute.xlu1 %7195  ;;  %v14092_v2 = vpop.permute.xlu0 %7165  ;;  %v16817_v29 = vld [vmem:[#allocation154_spill] sm:$0xff] }
 0x761   :  { %v2701_v43 = vsel %vm836_vm1, %v16811_v47, %v16810_v48  ;;  %v2704_v50 = vsel %vm843_vm2, %v2698_v38, %v16813_v45  ;;  %16814 = vst [vmem:[#allocation26_spill] sm:$0xff] %v14090_v44  ;;  %16815 = vst [vmem:[#allocation28_spill] sm:$0xff] %v14092_v2  ;;  %v16816_v40 = vld [vmem:[#allocation153_spill] sm:$0xff]  ;;  %v16818_v56 = vld [vmem:[#allocation156_spill] sm:$0xff] }
 0x762   :  { %v2706_v0 = vsel %vm843_vm2, %v2700_v10, %v16816_v40  ;;  %v2707_v48 = vsel %vm843_vm2, %v2701_v43, %v16817_v29  ;;  %v2709_v47 = vsel %vm850_vm3, %v2703_v46, %v16818_v56  ;;  %v16819_v38 = vld [vmem:[#allocation159_spill] sm:$0xff]  ;;  %v16821_v11 = vld [vmem:[#allocation169_spill] sm:$0xff]  ;;  %7985 = vrot.lane.b32.xlu0 %v7438_v5, %s9784_s28  ;;  %v16823_v10 = vld [vmem:[#allocation164_spill] sm:$0xff] }
 0x763   :  { %v2710_v9 = vsel %vm850_vm3, %v2704_v50, %v16819_v38  ;;  %v16820_v45 = vld [vmem:[#allocation163_spill] sm:$0xff]  ;;  %v2715_v12 = vsel %vm857_vm4, %v2709_v47, %v16821_v11  ;;  %v16822_v30 = vld [vmem:[#allocation173_spill] sm:$0xff]  ;;  %7125 = vrot.lane.b32.xlu1 %v6931_v24, %s9786_s30  ;;  %v2713_v43 = vsel %vm850_vm3, %v2707_v48, %v16823_v10  ;;  %v16824_v46 = vld [vmem:[#allocation176_spill] sm:$0xff]  ;;  %v6685_v48 = vcombine.high %v13915_v41, %v16207_v15 }
 0x764   :  { %v2712_v2 = vsel %vm850_vm3, %v2706_v0, %v16820_v45  ;;  %v2716_v51 = vsel %vm857_vm4, %v2710_v9, %v16822_v30  ;;  %v16825_v50 = vld [vmem:[#allocation180_spill] sm:$0xff]  ;;  %v16826_v0 = vld [vmem:[#allocation181_spill] sm:$0xff]  ;;  %v7734_v30 = vcombine.high %v13908_v57, %v16207_v15  ;;  %v14126_v5 = vpop.permute.xlu1 %6981  ;;  %v14128_v24 = vpop.permute.xlu0 %7189  ;;  %v16830_v45 = vld [vmem:[#allocation182_spill] sm:$0xff] }
 0x765   :  { %v2718_v40 = vsel %vm857_vm4, %v2712_v2, %v16824_v46  ;;  %v2721_v29 = vsel %vm864_vm5, %v2715_v12, %v16825_v50  ;;  %v2722_v56 = vsel %vm864_vm5, %v2716_v51, %v16826_v0  ;;  %v16827_v11 = vld [vmem:[#allocation184_spill] sm:$0xff]  ;;  %16828 = vst [vmem:[#allocation39_spill] sm:$0xff] %v14128_v24  ;;  %v6963_v2 = vcombine.high %v13959_v60, %v16207_v15  ;;  %v16829_v38 = vld [vmem:[#allocation177_spill] sm:$0xff]  ;;  %v16846_v24 = vld [vmem:[#allocation34_spill] sm:$0xff] }
 0x766   :  { %v2727_v47 = vsel %vm871_vm6, %v2721_v29, %v16827_v11  ;;  %v2719_v9 = vsel %vm857_vm4, %v2713_v43, %v16829_v38  ;;  %v2724_v12 = vsel %vm864_vm5, %v2718_v40, %v16830_v45  ;;  %v16831_v51 = vld [vmem:[#allocation185_spill] sm:$0xff]  ;;  %v16832_v57 = vld [vmem:[#allocation188_spill] sm:$0xff]  ;;  %v8288_v50 = vrot.slane %v14062_v7, 7  ;;  %v16833_v29 = vld [vmem:[#allocation186_spill] sm:$0xff]  ;;  %7119 = vrot.lane.b32.xlu0 %v6685_v48, %s9786_s30 }
 0x767   :  { %v2728_v10 = vsel %vm871_vm6, %v2722_v56, %v16831_v51  ;;  %v2733_v46 = vsel %vm878_vm7, %v2727_v47, %v16832_v57  ;;  %v2730_v41 = vsel %vm871_vm6, %v2724_v12, %v16833_v29  ;;  %v16834_v0 = vld [vmem:[#allocation189_spill] sm:$0xff]  ;;  %v16835_v11 = vld [vmem:[#allocation192_spill] sm:$0xff]  ;;  %7221 = vrot.lane.b32.xlu1 %v6963_v2, %s9790_s19  ;;  %v16836_v40 = vld [vmem:[#allocation190_spill] sm:$0xff]  ;;  %v7667_v51 = vcombine.high %v13782_v27, %v16207_v15 }
 0x768   :  { %v2734_v60 = vsel %vm878_vm7, %v2728_v10, %v16834_v0  ;;  %v2739_v43 = vsel %vm885_vm8, %v2733_v46, %v16835_v11  ;;  %v2736_v56 = vsel %vm878_vm7, %v2730_v41, %v16836_v40  ;;  %v16837_v38 = vld [vmem:[#allocation196_spill] sm:$0xff]  ;;  %v16838_v7 = vld [vmem:[#allocation127_spill] sm:$0xff]  ;;  %v7488_v10 = vcombine.high %v13946_v25, %v16207_v15  ;;  %v14164_v2 = vpop.permute.xlu1 %7073  ;;  %v14166_v57 = vpop.permute.xlu0 %6975  ;;  %v16842_v11 = vld [vmem:[#allocation193_spill] sm:$0xff] }
 0x769   :  { %v2745_v47 = vsel %vm16141_vm9, %v2739_v43, %v16837_v38  ;;  %v16839_v45 = vld [vmem:[#allocation171_spill] sm:$0xff]  ;;  %v7692_v48 = vrot.slane %v13521_v21, %v16511_v22  ;;  %16840 = vst [vmem:[#allocation42_spill] sm:$0xff] %v14164_v2  ;;  %v6717_v46 = vcombine.high %v13998_v59, %v16207_v15  ;;  %v14171_v29 = vrot.slane %v7734_v30, %v9845_v14  ;;  %v16843_v43 = vld [vmem:[#allocation194_spill] sm:$0xff]  ;;  %v16845_v59 = vld [vmem:[#allocation100_spill] sm:$0xff] }
 0x76a   :  { %v3611_v12 = vsel %vm836_vm1, %v16839_v45, %v16838_v7  ;;  %v8292_v41 = vrot.slane %v14066_v8, 7  ;;  %v16841_v0 = vld [vmem:[#allocation183_spill] sm:$0xff]  ;;  %v2740_v25 = vsel %vm885_vm8, %v2734_v60, %v16842_v11  ;;  %v2742_v40 = vsel %vm885_vm8, %v2736_v56, %v16843_v43  ;;  %v16854_v58 = vld [vmem:[#allocation70_spill] sm:$0xff] }
 0x76b   :  { %v2725_v27 = vsel %vm864_vm5, %v2719_v9, %v16841_v0  ;;  %v8294_v7 = vrot.slane %v14070_v31, 7  ;;  %v16844_v45 = vld [vmem:[#allocation187_spill] sm:$0xff]  ;;  %v2746_v30 = vsel %vm16141_vm9, %v2740_v25, %v16845_v59  ;;  %v2748_v8 = vsel %vm16141_vm9, %v2742_v40, %v16846_v24  ;;  %7215 = vrot.lane.b32.xlu0 %v6717_v46, %s9790_s19  ;;  %7921 = vrot.lane.b32.xlu1 %v14171_v29, %s9781_s25  ;;  %v16849_v31 = vld [vmem:[#allocation53_spill] sm:$0xff] }
 0x76c   :  { %v2731_v2 = vsel %vm871_vm6, %v2725_v27, %v16844_v45  ;;  %v8321_v9 = vrot.slane %v2745_v47, 6  ;;  %v16847_v60 = vld [vmem:[#allocation43_spill] sm:$0xff]  ;;  %v3617_v11 = vsel %vm843_vm2, %v3611_v12, %v16849_v31  ;;  %v7421_v27 = vcombine.high %v13824_v36, %v16207_v15  ;;  %v14202_v46 = vpop.permute.xlu1 %7123  ;;  %v14204_v40 = vpop.permute.xlu0 %7067 }
 0x76d   :  { %v16848_v0 = vld [vmem:[#allocation175_spill] sm:$0xff]  ;;  %v7446_v25 = vrot.slane %v13505_v3, %v16511_v22  ;;  %v14200_v43 = vrot.slane %v7692_v48, %v9845_v14  ;;  %16850 = vst [vmem:[#allocation29_spill] sm:$0xff] %v14202_v46  ;;  %16851 = vst [vmem:[#allocation31_spill] sm:$0xff] %v14204_v40  ;;  %v14207_v47 = vrot.slane %v7667_v51, %v9845_v14  ;;  %v8327_v31 = vrot.slane %v2748_v8, 6 }
 0x76e   :  { %v3613_v56 = vsel %vm836_vm1, %v16848_v0, %v16847_v60  ;;  %v14210_v45 = vrot.slane %v7488_v10, %v9845_v14  ;;  %v14214_v12 = vsel %vm8525_vm10, %v13987_v18, %v8288_v50  ;;  %v16852_v36 = vld [vmem:[#allocation191_spill] sm:$0xff]  ;;  %v8323_v0 = vrot.slane %v2746_v30, 6  ;;  %v16856_v50 = vld [vmem:[#allocation106_spill] sm:$0xff] }
 0x76f   :  { %v2737_v60 = vsel %vm878_vm7, %v2731_v2, %v16852_v36  ;;  %v14220_v46 = vsel %vm8525_vm10, %v14008_v55, %v8292_v41  ;;  %v16853_v40 = vld [vmem:[#allocation195_spill] sm:$0xff]  ;;  %v3623_v10 = vsel %vm850_vm3, %v3617_v11, %v16854_v58  ;;  %8015 = vrot.lane.b32.xlu1 %v14207_v47, %s9785_s29  ;;  %v14232_v18 = vsel %vm8525_vm10, %v14004_v4, %v8294_v7  ;;  %v16857_v41 = vld [vmem:[#allocation65_spill] sm:$0xff]  ;;  %vm16860_vm10 = vmmov %vm16855_vm11 }
 0x770   :  { %v2743_v51 = vsel %vm885_vm8, %v2737_v60, %v16853_v40  ;;  %7915 = vrot.lane.b32.xlu0 %v14210_v45, %s9781_s25  ;;  %v14236_v55 = vsel %vm16855_vm11, %v14012_v52, %v8321_v9  ;;  %v3619_v58 = vsel %vm843_vm2, %v3613_v56, %v16857_v41  ;;  %v14243_v30 = vrot.slane %v7446_v25, %v9845_v14  ;;  %v14246_v11 = vpop.permute.xlu1 %7219  ;;  %v14248_v40 = vpop.permute.xlu0 %7117  ;;  %vm16861_vm11 = vmmov %vm16860_vm10  ;;  %v16862_v56 = vld [vmem:[#allocation38_spill] sm:$0xff]  ;;  %v16864_v41 = vld [vmem:[#allocation113_spill] sm:$0xff] }
 0x771   :  { %v2749_v2 = vsel %vm16141_vm9, %v2743_v51, %v16856_v50  ;;  %v7693_v8 = vcombine.high %v7692_v48, %v16207_v15  ;;  %16858 = vst [vmem:[#allocation47_spill] sm:$0xff] %v14246_v11  ;;  %16859 = vst [vmem:[#allocation61_spill] sm:$0xff] %v14248_v40  ;;  %v7716_v4 = vcombine.high %v14200_v43, %v16207_v15  ;;  %v16863_v36 = vld [vmem:[#allocation162_spill] sm:$0xff] }
 0x772   :  { %v14253_v52 = vrot.slane %v7421_v27, %v9845_v14  ;;  %v14257_v7 = vsel %vm16860_vm10, %v14016_v26, %v8323_v0  ;;  %v14261_v9 = vsel %vm16861_vm11, %v14020_v35, %v8327_v31  ;;  %v2751_v48 = vsel %vm899_vm12, %v16837_v38, %v16862_v56  ;;  %v16865_v40 = vld [vmem:[#allocation138_spill] sm:$0xff]  ;;  %v16866_v0 = vld [vmem:[#allocation120_spill] sm:$0xff]  ;;  %v16870_v56 = vld [vmem:[#allocation165_spill] sm:$0xff] }
 0x773   :  { %v3629_v60 = vsel %vm857_vm4, %v3623_v10, %v16863_v36  ;;  %v8329_v51 = vrot.slane %v2749_v2, 6  ;;  %v2752_v27 = vsel %vm899_vm12, %v16845_v59, %v16864_v41  ;;  %v2754_v26 = vsel %vm899_vm12, %v16846_v24, %v16865_v40  ;;  %8087 = vrot.lane.b32.xlu1 %v7716_v4, %s9788_s17  ;;  %v16867_v38 = vld [vmem:[#allocation128_spill] sm:$0xff]  ;;  %v16868_v10 = vld [vmem:[#allocation179_spill] sm:$0xff]  ;;  %v16869_v59 = vld [vmem:[#allocation117_spill] sm:$0xff] }
 0x774   :  { %v2755_v35 = vsel %vm899_vm12, %v16856_v50, %v16866_v0  ;;  %8009 = vrot.lane.b32.xlu0 %v14253_v52, %s9785_s29  ;;  %v2757_v31 = vsel %vm906_vm13, %v2751_v48, %v16867_v38  ;;  %v2758_v2 = vsel %vm906_vm13, %v2752_v27, %v16868_v10  ;;  %v3610_v36 = vsel %vm836_vm1, %v16870_v56, %v16869_v59  ;;  %v16871_v24 = vld [vmem:[#allocation73_spill] sm:$0xff]  ;;  %v16872_v41 = vld [vmem:[#allocation172_spill] sm:$0xff]  ;;  %v14292_v0 = vpop.permute.xlu1 %7005  ;;  %v14294_v11 = vpop.permute.xlu0 %7213  ;;  %v16876_v56 = vld [vmem:[#allocation59_spill] sm:$0xff] }
 0x775   :  { %v3625_v40 = vsel %vm850_vm3, %v3619_v58, %v16871_v24  ;;  %v3635_v50 = vsel %vm864_vm5, %v3629_v60, %v16872_v41  ;;  %v7447_v4 = vcombine.high %v7446_v25, %v16207_v15  ;;  %16873 = vst [vmem:[#allocation54_spill] sm:$0xff] %v14294_v11  ;;  %v14297_v48 = vrot.slane %v7693_v8, %v9845_v14  ;;  %v16874_v38 = vld [vmem:[#allocation44_spill] sm:$0xff]  ;;  %v16878_v41 = vld [vmem:[#allocation155_spill] sm:$0xff]  ;;  %v16879_v8 = vld [vmem:[#allocation158_spill] sm:$0xff] }
 0x776   :  { %v7470_v27 = vcombine.high %v14243_v30, %v16207_v15  ;;  %v2760_v10 = vsel %vm906_vm13, %v2754_v26, %v16874_v38  ;;  %v16875_v59 = vld [vmem:[#allocation52_spill] sm:$0xff]  ;;  %v2763_v60 = vsel %vm913_vm14, %v2757_v31, %v16876_v56  ;;  %v2764_v11 = vsel %vm913_vm14, %v2758_v2, %v16878_v41  ;;  %v16881_v26 = vld [vmem:[#allocation161_spill] sm:$0xff]  ;;  %v16883_v38 = vld [vmem:[#allocation199_spill] sm:$0xff] }
 0x777   :  { %v2761_v58 = vsel %vm906_vm13, %v2755_v35, %v16875_v59  ;;  %v16877_v25 = vld [vmem:[#allocation48_spill] sm:$0xff]  ;;  %v2766_v44 = vsel %vm913_vm14, %v2760_v10, %v16879_v8  ;;  %8111 = vrot.lane.b32.xlu1 %v14297_v48, %s9789_s18  ;;  %v2769_v35 = vsel %vm920_vm15, %v2763_v60, %v16881_v26  ;;  %v3631_v2 = vsel %vm857_vm4, %v3625_v40, %v16883_v38  ;;  %v16891_v38 = vld [vmem:[#allocation201_spill] sm:$0xff]  ;;  %vm16909_vm11 = vmmov %vm16860_vm10 }
 0x778   :  { %v3616_v24 = vsel %vm843_vm2, %v3610_v36, %v16877_v25  ;;  %8081 = vrot.lane.b32.xlu0 %v7470_v27, %s9788_s17  ;;  %v16882_v31 = vld [vmem:[#allocation76_spill] sm:$0xff]  ;;  %v16886_v25 = vld [vmem:[#allocation198_spill] sm:$0xff]  ;;  %v6954_v27 = vcombine.high %v13514_v32, %v16207_v15  ;;  %v14332_v41 = vpop.permute.xlu1 %7097  ;;  %v14334_v60 = vpop.permute.xlu0 %6999  ;;  %v14341_v40 = vsel %vm16860_vm10, %v14029_v20, %v8329_v51 }
 0x779   :  { %v3622_v37 = vsel %vm850_vm3, %v3616_v24, %v16880_v16  ;;  %v16884_v59 = vld [vmem:[#allocation204_spill] sm:$0xff]  ;;  %16887 = vst [vmem:[#allocation32_spill] sm:$0xff] %v14332_v41  ;;  %v16894_v51 = vld [vmem:[#allocation134_spill] sm:$0xff] }
 0x77a   :  { %v3628_v36 = vsel %vm857_vm4, %v3622_v37, %v16882_v31  ;;  %v3641_v10 = vsel %vm871_vm6, %v3635_v50, %v16884_v59  ;;  %v16885_v56 = vld [vmem:[#allocation160_spill] sm:$0xff]  ;;  %v14337_v37 = vrot.slane %v7447_v4, %v9845_v14  ;;  %v16888_v50 = vld [vmem:[#allocation157_spill] sm:$0xff]  ;;  %v16890_v31 = vld [vmem:[#allocation166_spill] sm:$0xff]  ;;  %v3637_v59 = vsel %vm864_vm5, %v3631_v2, %v16891_v38 }
 0x77b   :  { %v2770_v16 = vsel %vm920_vm15, %v2764_v11, %v16885_v56  ;;  %v3634_v24 = vsel %vm864_vm5, %v3628_v36, %v16886_v25  ;;  %v2767_v11 = vsel %vm913_vm14, %v2761_v58, %v16888_v50  ;;  %v16889_v8 = vld [vmem:[#allocation112_spill] sm:$0xff]  ;;  %v8322_v36 = vrot.slane %v2769_v35, 6  ;;  %v16892_v56 = vld [vmem:[#allocation202_spill] sm:$0xff]  ;;  %v16893_v25 = vld [vmem:[#allocation209_spill] sm:$0xff]  ;;  %7149 = vrot.lane.b32.xlu1 %v13865_v54, %s9787_s16 }
 0x77c   :  { %v2772_v26 = vsel %vm920_vm15, %v2766_v44, %v16889_v8  ;;  %v3640_v32 = vsel %vm871_vm6, %v3634_v24, %v16890_v31  ;;  %v3647_v20 = vsel %vm878_vm7, %v3641_v10, %v16893_v25  ;;  %8105 = vrot.lane.b32.xlu0 %v14337_v37, %s9789_s18  ;;  %v8324_v44 = vrot.slane %v2770_v16, 6  ;;  %v16895_v35 = vld [vmem:[#allocation140_spill] sm:$0xff]  ;;  %v16896_v24 = vld [vmem:[#allocation174_spill] sm:$0xff]  ;;  %v16897_v50 = vld [vmem:[#allocation205_spill] sm:$0xff] }
 0x77d   :  { %v3646_v4 = vsel %vm878_vm7, %v3640_v32, %v16892_v56  ;;  %v2773_v58 = vsel %vm920_vm15, %v2767_v11, %v16894_v51  ;;  %v3614_v2 = vsel %vm836_vm1, %v16896_v24, %v16895_v35  ;;  %v16898_v31 = vld [vmem:[#allocation58_spill] sm:$0xff]  ;;  %v16899_v32 = vld [vmem:[#allocation208_spill] sm:$0xff]  ;;  %v6708_v38 = vcombine.high %v13492_v17, %v16207_v15  ;;  %v14375_v11 = vpop.permute.xlu1 %7147  ;;  %v14377_v56 = vpop.permute.xlu0 %7091 }
 0x77e   :  { %v3652_v8 = vsel %vm885_vm8, %v3646_v4, %v16897_v50  ;;  %v3620_v10 = vsel %vm843_vm2, %v3614_v2, %v16898_v31  ;;  %v14373_v16 = vrot.slane %v6954_v27, %v9845_v14  ;;  %16900 = vst [vmem:[#allocation49_spill] sm:$0xff] %v14375_v11  ;;  %16901 = vst [vmem:[#allocation36_spill] sm:$0xff] %v14377_v56  ;;  %v8328_v25 = vrot.slane %v2772_v26, 6  ;;  %v16902_v51 = vld [vmem:[#allocation146_spill] sm:$0xff]  ;;  %v16905_v31 = vld [vmem:[#allocation219_spill] sm:$0xff] }
 0x77f   :  { %v3658_v54 = vsel %vm16141_vm9, %v3652_v8, %v16899_v32  ;;  %v3626_v4 = vsel %vm850_vm3, %v3620_v10, %v16902_v51  ;;  %v16903_v35 = vld [vmem:[#allocation206_spill] sm:$0xff]  ;;  %v8330_v8 = vrot.slane %v2773_v58, 6  ;;  %v16906_v27 = vld [vmem:[#allocation225_spill] sm:$0xff]  ;;  %v16907_v11 = vld [vmem:[#allocation227_spill] sm:$0xff] }
 0x780   :  { %v3643_v24 = vsel %vm871_vm6, %v3637_v59, %v16903_v35  ;;  %v16904_v2 = vld [vmem:[#allocation214_spill] sm:$0xff]  ;;  %v3665_v41 = vsel %vm899_vm12, %v16905_v31, %v16906_v27  ;;  %v16908_v56 = vld [vmem:[#allocation221_spill] sm:$0xff]  ;;  %7245 = vrot.lane.b32.xlu1 %v14373_v16, %s9791_s20  ;;  %7143 = vrot.lane.b32.xlu0 %v13903_v42, %s9787_s16  ;;  %v14399_v59 = vsel %vm16909_vm11, %v14058_v28, %v8322_v36  ;;  %v8357_v51 = vrot.slane %v3658_v54, 5  ;;  %v16911_v35 = vld [vmem:[#allocation168_spill] sm:$0xff] }
 0x781   :  { %v3653_v50 = vsel %vm885_vm8, %v3647_v20, %v16904_v2  ;;  %v3667_v26 = vsel %vm899_vm12, %v16908_v56, %v16907_v11  ;;  %v14403_v20 = vsel %vm16860_vm10, %v14214_v12, %v8324_v44  ;;  %v16910_v58 = vld [vmem:[#allocation197_spill] sm:$0xff]  ;;  %v16912_v2 = vld [vmem:[#allocation211_spill] sm:$0xff]  ;;  %v14412_v42 = vrot.slane %v6708_v38, %v9845_v14  ;;  %v14416_v28 = vpop.permute.xlu0 %7141  ;;  %v16914_v36 = vld [vmem:[#allocation200_spill] sm:$0xff] }
 0x782   :  { %v3659_v17 = vsel %vm16141_vm9, %v3653_v50, %v16905_v31  ;;  %v3632_v10 = vsel %vm857_vm4, %v3626_v4, %v16910_v58  ;;  %v3649_v50 = vsel %vm878_vm7, %v3643_v24, %v16912_v2  ;;  %v14414_v31 = vpop.permute.xlu1 %7169  ;;  %16913 = vst [vmem:[#allocation37_spill] sm:$0xff] %v14416_v28  ;;  %v7765_v12 = vcombine.high %v14171_v29, %v16207_v15  ;;  %v16915_v4 = vld [vmem:[#allocation230_spill] sm:$0xff]  ;;  %v16916_v58 = vld [vmem:[#allocation232_spill] sm:$0xff]  ;;  %vm16917_vm11 = vmmov %vm16860_vm10 }
 0x783   :  { %v3638_v11 = vsel %vm864_vm5, %v3632_v10, %v16911_v35  ;;  %v8359_v54 = vrot.slane %v3659_v17, 5  ;;  %v3671_v27 = vsel %vm906_vm13, %v3665_v41, %v16915_v4  ;;  %v3673_v24 = vsel %vm906_vm13, %v3667_v26, %v16916_v58  ;;  %v16918_v35 = vld [vmem:[#allocation203_spill] sm:$0xff]  ;;  %v16919_v41 = vld [vmem:[#allocation216_spill] sm:$0xff]  ;;  %v16925_v58 = vld [vmem:[#allocation210_spill] sm:$0xff] }
 0x784   :  { %v3644_v44 = vsel %vm871_vm6, %v3638_v11, %v16914_v36  ;;  %v14428_v38 = vsel %vm16917_vm11, %v14220_v46, %v8328_v25  ;;  %v14432_v10 = vsel %vm16860_vm10, %v14232_v18, %v8330_v8  ;;  %7945 = vrot.lane.b32.xlu1 %v7765_v12, %s9782_s26  ;;  %7239 = vrot.lane.b32.xlu0 %v14412_v42, %s9791_s20  ;;  %v16920_v26 = vld [vmem:[#allocation207_spill] sm:$0xff]  ;;  %v16921_v18 = vld [vmem:[#allocation212_spill] sm:$0xff]  ;;  %v16922_v8 = vld [vmem:[#allocation234_spill] sm:$0xff]  ;;  %vm16974_vm11 = vcmask 1043456  }
 0x785   :  { %v3650_v29 = vsel %vm878_vm7, %v3644_v44, %v16918_v35  ;;  %v3655_v17 = vsel %vm885_vm8, %v3649_v50, %v16919_v41  ;;  %v14445_v46 = vsel %vm16145_vm0, %v14236_v55, %v8357_v51  ;;  %v3664_v25 = vsel %vm899_vm12, %v16899_v32, %v16921_v18  ;;  %v16923_v12 = vld [vmem:[#allocation235_spill] sm:$0xff]  ;;  %v14456_v50 = vpop.permute.xlu0 %7163  ;;  %vm16975_vm10 = vmmov %vm16974_vm11  ;;  %v17040_v28 = vld [vmem:[#allocation321_spill] sm:$0xff] }
 0x786   :  { %v3656_v11 = vsel %vm885_vm8, %v3650_v29, %v16920_v26  ;;  %v3677_v2 = vsel %vm913_vm14, %v3671_v27, %v16922_v8  ;;  %v3679_v36 = vsel %vm913_vm14, %v3673_v24, %v16923_v12  ;;  %v14454_v44 = vpop.permute.xlu1 %7193  ;;  %v7685_v4 = vcombine.high %v14207_v47, %v16207_v15  ;;  %v16924_v27 = vld [vmem:[#allocation213_spill] sm:$0xff]  ;;  %v16926_v35 = vld [vmem:[#allocation215_spill] sm:$0xff]  ;;  %v16930_v26 = vld [vmem:[#allocation222_spill] sm:$0xff] }
 0x787   :  { %v7519_v55 = vcombine.high %v14210_v45, %v16207_v15  ;;  %v14464_v51 = vsel %vm16145_vm0, %v14257_v7, %v8359_v54  ;;  %v14468_v32 = vsel %vm16141_vm9, %v3655_v17, %v16908_v56  ;;  %v3668_v24 = vsel %vm899_vm12, %v16925_v58, %v16924_v27  ;;  %v16927_v45 = vld [vmem:[#allocation217_spill] sm:$0xff]  ;;  %v16928_v7 = vld [vmem:[#allocation218_spill] sm:$0xff]  ;;  %v16929_v56 = vld [vmem:[#allocation220_spill] sm:$0xff] }
 0x788   :  { %v3670_v29 = vsel %vm906_vm13, %v3664_v25, %v16926_v35  ;;  %v14477_v47 = vsel %vm16141_vm9, %v3656_v11, %v16925_v58  ;;  %v3674_v41 = vsel %vm906_vm13, %v3668_v24, %v16927_v45  ;;  %8039 = vrot.lane.b32.xlu1 %v7685_v4, %s9786_s30  ;;  %v16931_v25 = vld [vmem:[#allocation237_spill] sm:$0xff]  ;;  %v16932_v8 = vld [vmem:[#allocation238_spill] sm:$0xff]  ;;  %v16933_v27 = vld [vmem:[#allocation224_spill] sm:$0xff]  ;;  %v7717_v35 = vcombine.high %v14297_v48, %v16207_v15 }
 0x789   :  { %v3676_v54 = vsel %vm913_vm14, %v3670_v29, %v16928_v7  ;;  %7939 = vrot.lane.b32.xlu0 %v7519_v55, %s9782_s26  ;;  %v3680_v17 = vsel %vm913_vm14, %v3674_v41, %v16929_v56  ;;  %v14493_v11 = vsel %vm920_vm15, %v3677_v2, %v16931_v25  ;;  %v14497_v12 = vsel %vm920_vm15, %v3679_v36, %v16932_v8  ;;  %v14507_v24 = vpop.permute.xlu0 %7187  ;;  %v16935_v36 = vld [vmem:[#allocation226_spill] sm:$0xff]  ;;  %v16936_v45 = vld [vmem:[#allocation228_spill] sm:$0xff] }
 0x78a   :  { %v14489_v18 = vsel %vm920_vm15, %v3676_v54, %v16930_v26  ;;  %v14501_v4 = vsel %vm920_vm15, %v3680_v17, %v16933_v27  ;;  %v7719_v55 = vcombine.high %v13549_v13, %v16207_v15  ;;  %v14505_v58 = vpop.permute.xlu1 %7243  ;;  %v7439_v2 = vcombine.high %v14253_v52, %v16207_v15  ;;  %v16937_v13 = vld [vmem:[#allocation229_spill] sm:$0xff]  ;;  %v16938_v54 = vld [vmem:[#allocation231_spill] sm:$0xff]  ;;  %v16939_v17 = vld [vmem:[#allocation240_spill] sm:$0xff] }
 0x78b   :  { %16934 = vst [vmem:[#allocation41_spill] sm:$0xff] %v14505_v58  ;;  %v4528_v29 = vsel %vm836_vm1, %v16935_v36, %v12071_v33  ;;  %v4529_v41 = vsel %vm836_vm1, %v16936_v45, %v12078_v34  ;;  %v4531_v7 = vsel %vm836_vm1, %v16937_v13, %v12085_v62  ;;  %v4532_v56 = vsel %vm836_vm1, %v16938_v54, %v12087_v39  ;;  %v16940_v34 = vld [vmem:[#allocation241_spill] sm:$0xff]  ;;  %v16941_v26 = vld [vmem:[#allocation242_spill] sm:$0xff]  ;;  %v16942_v39 = vld [vmem:[#allocation243_spill] sm:$0xff] }
 0x78c   :  { %v4534_v48 = vsel %vm843_vm2, %v4528_v29, %v12097_v49  ;;  %v4535_v52 = vsel %vm843_vm2, %v4529_v41, %v12109_v61  ;;  %v4537_v33 = vsel %vm843_vm2, %v4531_v7, %v16939_v17  ;;  %8135 = vrot.lane.b32.xlu1 %v7717_v35, %s9790_s19  ;;  %v4538_v62 = vsel %vm843_vm2, %v4532_v56, %v16940_v34  ;;  %v16944_v45 = vld [vmem:[#allocation244_spill] sm:$0xff]  ;;  %v16946_v54 = vld [vmem:[#allocation246_spill] sm:$0xff]  ;;  %v16947_v56 = vld [vmem:[#allocation247_spill] sm:$0xff] }
 0x78d   :  { %8033 = vrot.lane.b32.xlu0 %v7439_v2, %s9786_s30  ;;  %v4540_v25 = vsel %vm850_vm3, %v4534_v48, %v16941_v26  ;;  %v4541_v8 = vsel %vm850_vm3, %v4535_v52, %v16942_v39  ;;  %v4543_v49 = vsel %vm850_vm3, %v4537_v33, %v12145_v63  ;;  %v7473_v61 = vcombine.high %v13528_v6, %v16207_v15  ;;  %v14548_v2 = vpop.permute.xlu0 %7237  ;;  %v16948_v48 = vld [vmem:[#allocation248_spill] sm:$0xff]  ;;  %v16950_v17 = vld [vmem:[#allocation250_spill] sm:$0xff] }
 0x78e   :  { %v14544_v27 = vrot.slane %v7719_v55, %v16511_v22  ;;  %v14546_v35 = vpop.permute.xlu1 %7895  ;;  %16943 = vst [vmem:[#allocation63_spill] sm:$0xff] %v14548_v2  ;;  %v6964_v36 = vcombine.high %v14373_v16, %v16207_v15  ;;  %v7471_v29 = vcombine.high %v14337_v37, %v16207_v15  ;;  %v4544_v41 = vsel %vm850_vm3, %v4538_v62, %v16944_v45  ;;  %v16945_v55 = vld [vmem:[#allocation245_spill] sm:$0xff]  ;;  %v16952_v62 = vld [vmem:[#allocation252_spill] sm:$0xff]  ;;  %v17038_v2 = vld [vmem:[#allocation319_spill] sm:$0xff] }
 0x78f   :  { %v4546_v63 = vsel %vm857_vm4, %v4540_v25, %v12155_v53  ;;  %v4547_v6 = vsel %vm857_vm4, %v4541_v8, %v12162_v19  ;;  %v4549_v13 = vsel %vm857_vm4, %v4543_v49, %v16945_v55  ;;  %v8363_v7 = vrot.slane %v14468_v32, 5  ;;  %v16949_v53 = vld [vmem:[#allocation249_spill] sm:$0xff]  ;;  %v16951_v32 = vld [vmem:[#allocation251_spill] sm:$0xff] }
 0x790   :  { %v4550_v16 = vsel %vm857_vm4, %v4544_v41, %v16946_v54  ;;  %v4552_v37 = vsel %vm864_vm5, %v4546_v63, %v16947_v56  ;;  %v4553_v52 = vsel %vm864_vm5, %v4547_v6, %v16948_v48  ;;  %7269 = vrot.lane.b32.xlu1 %v6964_v36, %s9792_s21  ;;  %v4555_v19 = vsel %vm864_vm5, %v4549_v13, %v16949_v53  ;;  %v16953_v25 = vld [vmem:[#allocation253_spill] sm:$0xff]  ;;  %v16954_v41 = vld [vmem:[#allocation254_spill] sm:$0xff]  ;;  %v16955_v6 = vld [vmem:[#allocation255_spill] sm:$0xff] }
 0x791   :  { %8129 = vrot.lane.b32.xlu0 %v7471_v29, %s9790_s19  ;;  %v4556_v33 = vsel %vm864_vm5, %v4550_v16, %v16950_v17  ;;  %v4558_v34 = vsel %vm871_vm6, %v4552_v37, %v16951_v32  ;;  %v4559_v26 = vsel %vm871_vm6, %v4553_v52, %v16952_v62  ;;  %v4561_v39 = vsel %vm871_vm6, %v4555_v19, %v16953_v25  ;;  %v14586_v36 = vpop.permute.xlu0 %7889  ;;  %v16956_v13 = vld [vmem:[#allocation256_spill] sm:$0xff]  ;;  %v16957_v54 = vld [vmem:[#allocation257_spill] sm:$0xff]  ;;  %v16958_v37 = vld [vmem:[#allocation178_spill] sm:$0xff] }
 0x792   :  { %v14582_v8 = vrot.slane %v7473_v61, %v16511_v22  ;;  %v14584_v49 = vpop.permute.xlu1 %7029  ;;  %v14590_v29 = vrot.slane %v14544_v27, %v9845_v14  ;;  %v6718_v45 = vcombine.high %v14412_v42, %v16207_v15  ;;  %v4562_v63 = vsel %vm871_vm6, %v4556_v33, %v16954_v41  ;;  %v16959_v52 = vld [vmem:[#allocation170_spill] sm:$0xff]  ;;  %v16960_v53 = vld [vmem:[#allocation259_spill] sm:$0xff]  ;;  %v16962_v32 = vld [vmem:[#allocation261_spill] sm:$0xff] }
 0x793   :  { %v4564_v55 = vsel %vm878_vm7, %v4558_v34, %v16955_v6  ;;  %v4565_v61 = vsel %vm878_vm7, %v4559_v26, %v16956_v13  ;;  %v4567_v16 = vsel %vm878_vm7, %v4561_v39, %v16957_v54  ;;  %v8365_v56 = vrot.slane %v14477_v47, 5  ;;  %v16961_v17 = vld [vmem:[#allocation258_spill] sm:$0xff]  ;;  %v16964_v26 = vld [vmem:[#allocation263_spill] sm:$0xff]  ;;  %v16965_v39 = vld [vmem:[#allocation265_spill] sm:$0xff] }
 0x794   :  { %v4570_v48 = vsel %vm885_vm8, %v4564_v55, %v16958_v37  ;;  %v4571_v42 = vsel %vm885_vm8, %v4565_v61, %v16959_v52  ;;  %v4573_v19 = vsel %vm885_vm8, %v4567_v16, %v16960_v53  ;;  %7969 = vrot.lane.b32.xlu1 %v14590_v29, %s9783_s27  ;;  %v4568_v33 = vsel %vm878_vm7, %v4562_v63, %v16961_v17  ;;  %v16963_v34 = vld [vmem:[#allocation262_spill] sm:$0xff]  ;;  %v16967_v16 = vld [vmem:[#allocation260_spill] sm:$0xff]  ;;  %v16970_v17 = vld [vmem:[#allocation273_spill] sm:$0xff] }
 0x795   :  { %7263 = vrot.lane.b32.xlu0 %v6718_v45, %s9792_s21  ;;  %v4576_v47 = vsel %vm16141_vm9, %v4570_v48, %v16962_v32  ;;  %v4577_v62 = vsel %vm16141_vm9, %v4571_v42, %v16963_v34  ;;  %v4579_v25 = vsel %vm16141_vm9, %v4573_v19, %v16964_v26  ;;  %v4582_v41 = vsel %vm899_vm12, %v16962_v32, %v16965_v39  ;;  %v14631_v55 = vpop.permute.xlu0 %7023  ;;  %v16969_v53 = vld [vmem:[#allocation264_spill] sm:$0xff]  ;;  %v16971_v39 = vld [vmem:[#allocation223_spill] sm:$0xff] }
 0x796   :  { %v7708_v6 = vcombine.high %v13521_v21, %v16207_v15  ;;  %v14627_v45 = vrot.slane %v13581_v23, %v16511_v22  ;;  %v14629_v63 = vpop.permute.xlu1 %7121  ;;  %v14635_v13 = vrot.slane %v14582_v8, %v9845_v14  ;;  %v8358_v61 = vrot.slane %v14489_v18, 5  ;;  %v16968_v21 = vld [vmem:[#allocation269_spill] sm:$0xff] }
 0x797   :  { %16966 = vst [vmem:[#allocation57_spill] sm:$0xff] %v14629_v63  ;;  %v8360_v54 = vrot.slane %v14493_v11, 5  ;;  %v4574_v37 = vsel %vm885_vm8, %v4568_v33, %v16967_v16  ;;  %v4588_v48 = vsel %vm906_vm13, %v4582_v41, %v16968_v21  ;;  %v8364_v52 = vrot.slane %v14497_v12, 5  ;;  %v17027_v63 = vld [vmem:[#allocation313_spill] sm:$0xff] }
 0x798   :  { %v8366_v42 = vrot.slane %v14501_v4, 5  ;;  %v4580_v19 = vsel %vm16141_vm9, %v4574_v37, %v16969_v53  ;;  %v4594_v32 = vsel %vm913_vm14, %v4588_v48, %v16970_v17  ;;  %8063 = vrot.lane.b32.xlu1 %v14200_v43, %s9787_s16  ;;  %v8393_v18 = vrot.slane %v4576_v47, 4  ;;  %vm16976_vm9 = vmmov %vm16975_vm10 }
 0x799   :  { %7963 = vrot.lane.b32.xlu0 %v14635_v13, %s9783_s27  ;;  %v8395_v11 = vrot.slane %v4577_v62, 4  ;;  %v8399_v33 = vrot.slane %v4579_v25, 4  ;;  %v4600_v12 = vsel %vm920_vm15, %v4594_v32, %v16971_v39  ;;  %v7462_v4 = vcombine.high %v13505_v3, %v16207_v15  ;;  %v14668_v47 = vpop.permute.xlu0 %7115 }
 0x79a   :  { %v7715_v41 = vrot.slane %v7708_v6, %v9845_v14  ;;  %v14660_v16 = vrot.slane %v13567_v1, %v16511_v22  ;;  %v14664_v43 = vrot.slane %v14627_v45, %v9845_v14  ;;  %v14666_v37 = vpop.permute.xlu1 %7217  ;;  %16973 = vst [vmem:[#allocation40_spill] sm:$0xff] %v14668_v47  ;;  %v8558_v62 = vsel %vm16145_vm0, %v14261_v9, %v8363_v7  ;;  %v17015_v47 = vld [vmem:[#allocation302_spill] sm:$0xff] }
 0x79b   :  { %v8560_v3 = vsel %vm16145_vm0, %v14341_v40, %v8365_v56  ;;  %v8553_v25 = vsel %vm16145_vm0, %v14399_v59, %v8358_v61  ;;  %v8401_v6 = vrot.slane %v4580_v19, 4  ;;  %v14678_v21 = vsel %vm16145_vm0, %v14403_v20, %v8360_v54  ;;  %v16980_v54 = vld [vmem:[#allocation267_spill] sm:$0xff]  ;;  %v16982_v19 = vld [vmem:[#allocation270_spill] sm:$0xff] }
 0x79c   :  { %16972 = vst [vmem:[#allocation45_spill] sm:$0xff] %v14664_v43  ;;  %v14682_v48 = vsel %vm16145_vm0, %v14428_v38, %v8364_v52  ;;  %v14686_v17 = vsel %vm16145_vm0, %v14432_v10, %v8366_v42  ;;  %8159 = vrot.lane.b32.xlu1 %v7715_v41, %s9791_s20  ;;  %v14693_v9 = vsel %vm16974_vm11, %v14445_v46, %v8393_v18  ;;  %v8394_v20 = vrot.slane %v4600_v12, 4  ;;  %v16977_v38 = vld [vmem:[#allocation266_spill] sm:$0xff]  ;;  %v16981_v52 = vld [vmem:[#allocation268_spill] sm:$0xff]  ;;  %v16983_v18 = vld [vmem:[#allocation271_spill] sm:$0xff] }
 0x79d   :  { %8057 = vrot.lane.b32.xlu0 %v14243_v30, %s9787_s16  ;;  %v14697_v40 = vsel %vm16975_vm10, %v14464_v51, %v8395_v11  ;;  %v14700_v59 = vsel %vm16976_vm9, %v8558_v62, %v8399_v33  ;;  %v4583_v10 = vsel %vm899_vm12, %v16963_v34, %v16977_v38  ;;  %v7469_v7 = vrot.slane %v7462_v4, %v9845_v14  ;;  %v14712_v56 = vpop.permute.xlu0 %7211  ;;  %v16984_v33 = vld [vmem:[#allocation272_spill] sm:$0xff]  ;;  %v16985_v12 = vld [vmem:[#allocation274_spill] sm:$0xff]  ;;  %vm16988_vm11 = vmmov %vm16976_vm9 }
 0x79e   :  { %v14708_v30 = vrot.slane %v14660_v16, %v9845_v14  ;;  %v14710_v46 = vpop.permute.xlu1 %7267  ;;  %v7846_v51 = vcombine.high %v14664_v43, %v16207_v15  ;;  %v14717_v61 = vsel %vm16976_vm9, %v8560_v3, %v8401_v6  ;;  %v4585_v34 = vsel %vm899_vm12, %v16964_v26, %v16980_v54  ;;  %v16986_v26 = vld [vmem:[#allocation275_spill] sm:$0xff]  ;;  %v16989_v38 = vld [vmem:[#allocation233_spill] sm:$0xff]  ;;  %v16990_v54 = vld [vmem:[#allocation236_spill] sm:$0xff] }
 0x79f   :  { %16979 = vst [vmem:[#allocation67_spill] sm:$0xff] %v14710_v46  ;;  %v4586_v42 = vsel %vm899_vm12, %v16969_v53, %v16981_v52  ;;  %v4589_v32 = vsel %vm906_vm13, %v4583_v10, %v16982_v19  ;;  %v4591_v11 = vsel %vm906_vm13, %v4585_v34, %v16983_v18  ;;  %v16987_v53 = vld [vmem:[#allocation276_spill] sm:$0xff]  ;;  %v14740_v6 = vsel %vm16988_vm11, %v8553_v25, %v8394_v20  ;;  %v16994_v18 = vld [vmem:[#allocation239_spill] sm:$0xff] }
 0x7a0   :  { %16978 = vst [vmem:[#allocation46_spill] sm:$0xff] %v14708_v30  ;;  %v4592_v39 = vsel %vm906_vm13, %v4586_v42, %v16984_v33  ;;  %v4595_v4 = vsel %vm913_vm14, %v4589_v32, %v16985_v12  ;;  %7899 = vrot.lane.b32.xlu1 %v7846_v51, %s9780_s24  ;;  %v4597_v62 = vsel %vm913_vm14, %v4591_v11, %v16986_v26  ;;  %v16991_v51 = vld [vmem:[#allocation167_spill] sm:$0xff]  ;;  %v16993_v32 = vld [vmem:[#allocation278_spill] sm:$0xff]  ;;  %v17003_v43 = vld [vmem:[#allocation284_spill] sm:$0xff]  ;;  %vm17030_vm10 = vcmask 1031168  }
 0x7a1   :  { %8153 = vrot.lane.b32.xlu0 %v7469_v7, %s9791_s20  ;;  %v4598_v3 = vsel %vm913_vm14, %v4592_v39, %v16987_v53  ;;  %v14744_v10 = vsel %vm920_vm15, %v4595_v4, %v16989_v38  ;;  %v14748_v34 = vsel %vm920_vm15, %v4597_v62, %v16990_v54  ;;  %v14756_v19 = vpop.permute.xlu0 %7261  ;;  %v7766_v25 = vcombine.high %v14590_v29, %v16207_v15  ;;  %v16995_v33 = vld [vmem:[#allocation279_spill] sm:$0xff]  ;;  %v16997_v4 = vld [vmem:[#allocation280_spill] sm:$0xff]  ;;  %v16998_v26 = vld [vmem:[#allocation122_spill] sm:$0xff] }
 0x7a2   :  { %v14752_v52 = vsel %vm920_vm15, %v4598_v3, %v16991_v51  ;;  %v14754_v42 = vpop.permute.xlu1 %7919  ;;  %16992 = vst [vmem:[#allocation50_spill] sm:$0xff] %v14756_v19  ;;  %v7600_v20 = vcombine.high %v14708_v30, %v16207_v15  ;;  %v5446_v11 = vsel %vm836_vm1, %v16994_v18, %v16993_v32  ;;  %v16996_v39 = vld [vmem:[#allocation3_spill] sm:$0xff]  ;;  %v5449_v62 = vsel %vm836_vm1, %v16998_v26, %v16997_v4  ;;  %v16999_v53 = vld [vmem:[#allocation281_spill] sm:$0xff]  ;;  %v17001_v29 = vld [vmem:[#allocation282_spill] sm:$0xff] }
 0x7a3   :  { %v5447_v12 = vsel %vm836_vm1, %v16996_v39, %v16995_v33  ;;  %v17000_v3 = vld [vmem:[#allocation277_spill] sm:$0xff]  ;;  %v5452_v54 = vsel %vm843_vm2, %v5446_v11, %v17001_v29  ;;  %v17002_v51 = vld [vmem:[#allocation283_spill] sm:$0xff]  ;;  %v5455_v32 = vsel %vm843_vm2, %v5449_v62, %v17003_v43  ;;  %v17005_v39 = vld [vmem:[#allocation286_spill] sm:$0xff]  ;;  %v7816_v43 = vcombine.high %v14627_v45, %v16207_v15 }
 0x7a4   :  { %v5450_v38 = vsel %vm836_vm1, %v17000_v3, %v16999_v53  ;;  %v5453_v30 = vsel %vm843_vm2, %v5447_v12, %v17002_v51  ;;  %7993 = vrot.lane.b32.xlu1 %v7766_v25, %s9784_s28  ;;  %v17004_v18 = vld [vmem:[#allocation285_spill] sm:$0xff]  ;;  %v5458_v4 = vsel %vm850_vm3, %v5452_v54, %v17005_v39  ;;  %v17006_v26 = vld [vmem:[#allocation287_spill] sm:$0xff]  ;;  %v17007_v11 = vld [vmem:[#allocation288_spill] sm:$0xff]  ;;  %v7718_v62 = vcombine.high %v7715_v41, %v16207_v15 }
 0x7a5   :  { %7893 = vrot.lane.b32.xlu0 %v7600_v20, %s9780_s24  ;;  %v5456_v33 = vsel %vm843_vm2, %v5450_v38, %v17004_v18  ;;  %v5459_v53 = vsel %vm850_vm3, %v5453_v30, %v17006_v26  ;;  %v5461_v3 = vsel %vm850_vm3, %v5455_v32, %v17007_v11  ;;  %v17008_v12 = vld [vmem:[#allocation289_spill] sm:$0xff]  ;;  %v14796_v20 = vpop.permute.xlu0 %7913  ;;  %v7520_v38 = vcombine.high %v14635_v13, %v16207_v15  ;;  %v17009_v54 = vld [vmem:[#allocation291_spill] sm:$0xff]  ;;  %v17010_v51 = vld [vmem:[#allocation294_spill] sm:$0xff] }
 0x7a6   :  { %v5462_v29 = vsel %vm850_vm3, %v5456_v33, %v17008_v12  ;;  %v14794_v25 = vpop.permute.xlu1 %7053  ;;  %v5464_v30 = vsel %vm857_vm4, %v5458_v4, %v17009_v54  ;;  %v5465_v32 = vsel %vm857_vm4, %v5459_v53, %v17010_v51  ;;  %v17011_v18 = vld [vmem:[#allocation297_spill] sm:$0xff]  ;;  %v17012_v39 = vld [vmem:[#allocation298_spill] sm:$0xff]  ;;  %v17013_v26 = vld [vmem:[#allocation300_spill] sm:$0xff] }
 0x7a7   :  { %v5467_v33 = vsel %vm857_vm4, %v5461_v3, %v17011_v18  ;;  %v5468_v45 = vsel %vm857_vm4, %v5462_v29, %v17012_v39  ;;  %v5470_v11 = vsel %vm864_vm5, %v5464_v30, %v17013_v26  ;;  %v17014_v12 = vld [vmem:[#allocation301_spill] sm:$0xff]  ;;  %v17016_v4 = vld [vmem:[#allocation303_spill] sm:$0xff]  ;;  %v17017_v3 = vld [vmem:[#allocation304_spill] sm:$0xff]  ;;  %v7749_v30 = vcombine.high %v14544_v27, %v16207_v15 }
 0x7a8   :  { %v5471_v41 = vsel %vm864_vm5, %v5465_v32, %v17014_v12  ;;  %v5473_v13 = vsel %vm864_vm5, %v5467_v33, %v17015_v47  ;;  %8183 = vrot.lane.b32.xlu1 %v7718_v62, %s9792_s21  ;;  %v5474_v53 = vsel %vm864_vm5, %v5468_v45, %v17016_v4  ;;  %v5476_v54 = vsel %vm871_vm6, %v5470_v11, %v17017_v3  ;;  %v17018_v29 = vld [vmem:[#allocation305_spill] sm:$0xff]  ;;  %v17019_v47 = vld [vmem:[#allocation418_spill] sm:$0xff]  ;;  %v17022_v11 = vld [vmem:[#allocation307_spill] sm:$0xff] }
 0x7a9   :  { %7987 = vrot.lane.b32.xlu0 %v7520_v38, %s9784_s28  ;;  %v5477_v51 = vsel %vm871_vm6, %v5471_v41, %v17018_v29  ;;  %v7570_v32 = vcombine.high %v14660_v16, %v16207_v15  ;;  %v7774_v62 = vrot.slane %v17019_v47, %v16511_v22  ;;  %v14831_v38 = vpop.permute.xlu0 %7047  ;;  %v14834_v33 = vrot.slane %v7816_v43, %v9845_v14  ;;  %v17021_v45 = vld [vmem:[#allocation306_spill] sm:$0xff]  ;;  %v17023_v12 = vld [vmem:[#allocation308_spill] sm:$0xff]  ;;  %v17024_v41 = vld [vmem:[#allocation309_spill] sm:$0xff] }
 0x7aa   :  { %v14829_v18 = vpop.permute.xlu1 %7145  ;;  %v7472_v39 = vcombine.high %v7469_v7, %v16207_v15  ;;  %v5479_v26 = vsel %vm871_vm6, %v5473_v13, %v17021_v45  ;;  %v5480_v27 = vsel %vm871_vm6, %v5474_v53, %v17022_v11  ;;  %v5482_v16 = vsel %vm878_vm7, %v5476_v54, %v17023_v12  ;;  %v17025_v29 = vld [vmem:[#allocation310_spill] sm:$0xff]  ;;  %v17028_v53 = vld [vmem:[#allocation311_spill] sm:$0xff]  ;;  %v17031_v45 = vld [vmem:[#allocation317_spill] sm:$0xff] }
 0x7ab   :  { %17020 = vst [vmem:[#allocation69_spill] sm:$0xff] %v14829_v18  ;;  %v5483_v4 = vsel %vm878_vm7, %v5477_v51, %v17024_v41  ;;  %v8396_v3 = vrot.slane %v14744_v10, 4  ;;  %v5485_v43 = vsel %vm878_vm7, %v5479_v26, %v17025_v29  ;;  %v17026_v18 = vld [vmem:[#allocation312_spill] sm:$0xff]  ;;  %v5486_v54 = vsel %vm878_vm7, %v5480_v27, %v17028_v53  ;;  %vm17032_vm9 = vmmov %vm17030_vm10  ;;  %v17033_v11 = vld [vmem:[#allocation417_spill] sm:$0xff] }
 0x7ac   :  { %v5488_v7 = vsel %vm885_vm8, %v5482_v16, %v17026_v18  ;;  %v5489_v13 = vsel %vm885_vm8, %v5483_v4, %v17027_v63  ;;  %7923 = vrot.lane.b32.xlu1 %v14834_v33, %s9781_s25  ;;  %v17029_v51 = vld [vmem:[#allocation316_spill] sm:$0xff]  ;;  %v7503_v18 = vcombine.high %v14582_v8, %v16207_v15  ;;  %v7528_v63 = vrot.slane %v17033_v11, %v16511_v22  ;;  %v17036_v8 = vld [vmem:[#allocation314_spill] sm:$0xff]  ;;  %vm17039_vm11 = vmmov %vm17032_vm9 }
 0x7ad   :  { %8177 = vrot.lane.b32.xlu0 %v7472_v39, %s9792_s21  ;;  %v5494_v10 = vsel %vm17030_vm10, %v5488_v7, %v17029_v51  ;;  %v5495_v26 = vsel %vm17032_vm9, %v5489_v13, %v17031_v45  ;;  %v14866_v12 = vrot.slane %v7774_v62, %v9845_v14  ;;  %v14868_v39 = vpop.permute.xlu0 %7139  ;;  %v14871_v27 = vrot.slane %v7749_v30, %v9845_v14  ;;  %v17037_v13 = vld [vmem:[#allocation315_spill] sm:$0xff]  ;;  %vm17043_vm10 = vmmov %vm17032_vm9  ;;  %v17050_v11 = vld [vmem:[#allocation334_spill] sm:$0xff] }
 0x7ae   :  { %v7242_v16 = vpop.permute.xlu1 %7241  ;;  %17035 = vst [vmem:[#allocation62_spill] sm:$0xff] %v14868_v39  ;;  %v14874_v41 = vrot.slane %v7570_v32, %v9845_v14  ;;  %v8400_v4 = vrot.slane %v14748_v34, 4  ;;  %v8402_v29 = vrot.slane %v14752_v52, 4  ;;  %v5491_v7 = vsel %vm885_vm8, %v5485_v43, %v17036_v8  ;;  %v17041_v32 = vld [vmem:[#allocation323_spill] sm:$0xff]  ;;  %v17042_v43 = vld [vmem:[#allocation320_spill] sm:$0xff] }
 0x7af   :  { %17034 = vst [vmem:[#allocation77_spill] sm:$0xff] %v14866_v12  ;;  %v5492_v53 = vsel %vm885_vm8, %v5486_v54, %v17037_v13  ;;  %v8429_v19 = vrot.slane %v5494_v10, 3  ;;  %v5497_v39 = vsel %vm17039_vm11, %v5491_v7, %v17038_v2  ;;  %v5500_v30 = vsel %vm899_vm12, %v17029_v51, %v17040_v28  ;;  %v17044_v10 = vld [vmem:[#allocation326_spill] sm:$0xff]  ;;  %v17045_v7 = vld [vmem:[#allocation327_spill] sm:$0xff] }
 0x7b0   :  { %v5501_v34 = vsel %vm899_vm12, %v17031_v45, %v17041_v32  ;;  %8017 = vrot.lane.b32.xlu1 %v14871_v27, %s9785_s29  ;;  %v8431_v52 = vrot.slane %v5495_v26, 3  ;;  %v5498_v54 = vsel %vm17043_vm10, %v5492_v53, %v17042_v43  ;;  %v5506_v8 = vsel %vm906_vm13, %v5500_v30, %v17044_v10  ;;  %v17047_v10 = vld [vmem:[#allocation330_spill] sm:$0xff]  ;;  %v17051_v47 = vld [vmem:[#allocation335_spill] sm:$0xff] }
 0x7b1   :  { %7917 = vrot.lane.b32.xlu0 %v14874_v41, %s9781_s25  ;;  %v5507_v28 = vsel %vm906_vm13, %v5501_v34, %v17045_v7  ;;  %v14901_v51 = vrot.slane %v7528_v63, %v9845_v14  ;;  %v7775_v45 = vcombine.high %v7774_v62, %v16207_v15  ;;  %v7236_v32 = vpop.permute.xlu0 %7235  ;;  %v7798_v46 = vcombine.high %v14866_v12, %v16207_v15  ;;  %v17048_v7 = vld [vmem:[#allocation331_spill] sm:$0xff] }
 0x7b2   :  { %v7944_v13 = vpop.permute.xlu1 %7943  ;;  %v14907_v26 = vrot.slane %v7503_v18, %v9845_v14  ;;  %vm17046_vm9 = vcmask 1043456   ;;  %v8435_v30 = vrot.slane %v5497_v39, 3  ;;  %v5512_v34 = vsel %vm913_vm14, %v5506_v8, %v17047_v10  ;;  %v17055_v39 = vld [vmem:[#allocation324_spill] sm:$0xff]  ;;  %v17061_v10 = vld [vmem:[#allocation337_spill] sm:$0xff] }
 0x7b3   :  { %v8568_v53 = vsel %vm17046_vm9, %v14678_v21, %v8396_v3  ;;  %v5513_v58 = vsel %vm913_vm14, %v5507_v28, %v17048_v7  ;;  %vm17049_vm11 = vmmov %vm17046_vm9  ;;  %v5518_v12 = vsel %vm920_vm15, %v5512_v34, %v17050_v11  ;;  %v8437_v11 = vrot.slane %v5498_v54, 3  ;;  %v17058_v54 = vld [vmem:[#allocation325_spill] sm:$0xff]  ;;  %v17059_v8 = vld [vmem:[#allocation332_spill] sm:$0xff] }
 0x7b4   :  { %v14917_v62 = vsel %vm17049_vm11, %v14682_v48, %v8400_v4  ;;  %v5519_v18 = vsel %vm920_vm15, %v5513_v58, %v17051_v47  ;;  %8089 = vrot.lane.b32.xlu1 %v7798_v46, %s9788_s17  ;;  %vm17052_vm10 = vmmov %vm17046_vm9  ;;  %vm17053_vm9 = vcmask 1044480   ;;  %v5503_v58 = vsel %vm899_vm12, %v17038_v2, %v17055_v39  ;;  %v17062_v7 = vld [vmem:[#allocation333_spill] sm:$0xff] }
 0x7b5   :  { %8011 = vrot.lane.b32.xlu0 %v14907_v26, %s9785_s29  ;;  %v14928_v21 = vsel %vm17052_vm10, %v14686_v17, %v8402_v29  ;;  %v14932_v3 = vsel %vm17053_vm9, %v14693_v9, %v8429_v19  ;;  %vm17054_vm11 = vmmov %vm17053_vm9  ;;  %v7529_v46 = vcombine.high %v7528_v63, %v16207_v15  ;;  %v14944_v4 = vpop.permute.xlu0 %7937  ;;  %v7789_v17 = vrot.slane %v7775_v45, %v9845_v14  ;;  %v17057_v19 = vld [vmem:[#allocation328_spill] sm:$0xff] }
 0x7b6   :  { %v14936_v48 = vsel %vm17054_vm11, %v14697_v40, %v8431_v52  ;;  %v14942_v47 = vpop.permute.xlu1 %7077  ;;  %v7552_v9 = vcombine.high %v14901_v51, %v16207_v15  ;;  %vm17056_vm10 = vmmov %vm17053_vm9  ;;  %v5509_v29 = vsel %vm906_vm13, %v5503_v58, %v17057_v19  ;;  %v8430_v52 = vrot.slane %v5518_v12, 3  ;;  %v17060_v12 = vld [vmem:[#allocation329_spill] sm:$0xff] }
 0x7b7   :  { %v14951_v40 = vsel %vm17056_vm10, %v14700_v59, %v8435_v30  ;;  %v8432_v2 = vrot.slane %v5519_v18, 3  ;;  %v5504_v63 = vsel %vm899_vm12, %v17042_v43, %v17058_v54  ;;  %v5515_v28 = vsel %vm913_vm14, %v5509_v29, %v17059_v8  ;;  %vm17063_vm11 = vmmov %vm17053_vm9  ;;  %v17070_v8 = vld [vmem:[#allocation293_spill] sm:$0xff] }
 0x7b8   :  { %v7334_v45 = vsel %vm899_vm12, %v14414_v31, %v14454_v44  ;;  %8113 = vrot.lane.b32.xlu1 %v7789_v17, %s9789_s18  ;;  %v14967_v59 = vsel %vm17053_vm9, %v14717_v61, %v8437_v11  ;;  %v5510_v30 = vsel %vm906_vm13, %v5504_v63, %v17060_v12  ;;  %v14973_v43 = vsel %vm920_vm15, %v5515_v28, %v17061_v10  ;;  %vm17064_vm10 = vmmov %vm17053_vm9  ;;  %v17067_v63 = vld [vmem:[#allocation290_spill] sm:$0xff] }
 0x7b9   :  { %8083 = vrot.lane.b32.xlu0 %v7552_v9, %s9788_s17  ;;  %v7340_v34 = vsel %vm906_vm13, %v7334_v45, %v14666_v37  ;;  %v5516_v44 = vsel %vm913_vm14, %v5510_v30, %v17062_v7  ;;  %v7072_v58 = vpop.permute.xlu0 %7071  ;;  %v7847_v61 = vcombine.high %v14834_v33, %v16207_v15  ;;  %v14983_v11 = vrot.slane %v7529_v46, %v9845_v14  ;;  %v17065_v37 = vld [vmem:[#allocation338_spill] sm:$0xff]  ;;  %v17066_v33 = vld [vmem:[#allocation339_spill] sm:$0xff] }
 0x7ba   :  { %v7346_v18 = vsel %vm913_vm14, %v7340_v34, %v7242_v16  ;;  %v7266_v39 = vpop.permute.xlu1 %7265  ;;  %v14987_v9 = vsel %vm17063_vm11, %v14740_v6, %v8430_v52  ;;  %v14990_v19 = vsel %vm17064_vm10, %v8568_v53, %v8432_v2  ;;  %v14994_v29 = vsel %vm920_vm15, %v5516_v44, %v17065_v37  ;;  %v17068_v53 = vld [vmem:[#allocation419_spill] sm:$0xff]  ;;  %v17069_v2 = vld [vmem:[#allocation341_spill] sm:$0xff]  ;;  %v17075_v37 = vld [vmem:[#allocation296_spill] sm:$0xff] }
 0x7bb   :  { %v14997_v16 = vsel %vm920_vm15, %v7346_v18, %v7266_v39  ;;  %v8436_v54 = vrot.slane %v14973_v43, 3  ;;  %v6359_v46 = vsel %vm836_vm1, %v17067_v63, %v17066_v33  ;;  %v7331_v6 = vsel %vm899_vm12, %v14456_v50, %v14507_v24  ;;  %v17071_v18 = vld [vmem:[#allocation342_spill] sm:$0xff]  ;;  %v17076_v33 = vld [vmem:[#allocation344_spill] sm:$0xff]  ;;  %v17077_v63 = vld [vmem:[#allocation295_spill] sm:$0xff] }
 0x7bc   :  { %v8198_v52 = vsel %vm836_vm1, %v17068_v53, %v14546_v35  ;;  %7947 = vrot.lane.b32.xlu1 %v7847_v61, %s9782_s26  ;;  %v6360_v28 = vsel %vm836_vm1, %v17070_v8, %v17069_v2  ;;  %v7801_v45 = vcombine.high %v13581_v23, %v16207_v15  ;;  %v7337_v12 = vsel %vm906_vm13, %v7331_v6, %v14712_v56  ;;  %v17072_v23 = vld [vmem:[#allocation292_spill] sm:$0xff]  ;;  %v17073_v56 = vld [vmem:[#allocation415_spill] sm:$0xff] }
 0x7bd   :  { %8107 = vrot.lane.b32.xlu0 %v14983_v11, %s9789_s18  ;;  %v8204_v24 = vsel %vm843_vm2, %v8198_v52, %v14754_v42  ;;  %v7343_v30 = vsel %vm913_vm14, %v7337_v12, %v7236_v32  ;;  %v7260_v34 = vpop.permute.xlu0 %7259  ;;  %v7767_v7 = vcombine.high %v14871_v27, %v16207_v15  ;;  %v7601_v44 = vcombine.high %v14874_v41, %v16207_v15  ;;  %v17074_v27 = vld [vmem:[#allocation343_spill] sm:$0xff]  ;;  %v17078_v8 = vld [vmem:[#allocation420_spill] sm:$0xff] }
 0x7be   :  { %v8210_v35 = vsel %vm850_vm3, %v8204_v24, %v7944_v13  ;;  %v7968_v10 = vpop.permute.xlu1 %7967  ;;  %v6361_v39 = vsel %vm836_vm1, %v17072_v23, %v17071_v18  ;;  %v7282_v42 = vsel %vm836_vm1, %v17073_v56, %v14126_v5  ;;  %v15037_v32 = vsel %vm920_vm15, %v7343_v30, %v7260_v34  ;;  %v17079_v24 = vld [vmem:[#allocation416_spill] sm:$0xff]  ;;  %v17083_v18 = vld [vmem:[#allocation347_spill] sm:$0xff] }
 0x7bf   :  { %v15034_v13 = vsel %vm857_vm4, %v8210_v35, %v7968_v10  ;;  %v8438_v61 = vrot.slane %v14994_v29, 3  ;;  %v6362_v41 = vsel %vm836_vm1, %v17075_v37, %v17074_v27  ;;  %v6363_v6 = vsel %vm836_vm1, %v17077_v63, %v17076_v33  ;;  %v17084_v23 = vld [vmem:[#allocation348_spill] sm:$0xff]  ;;  %v17086_v37 = vld [vmem:[#allocation350_spill] sm:$0xff]  ;;  %v17139_v43 = vld [vmem:[#allocation423_spill] sm:$0xff] }
 0x7c0   :  { %v7288_v53 = vsel %vm843_vm2, %v7282_v42, %v14292_v0  ;;  %8041 = vrot.lane.b32.xlu1 %v7767_v7, %s9786_s30  ;;  %v7555_v5 = vcombine.high %v13567_v1, %v16207_v15  ;;  %v15053_v52 = vrot.slane %v7801_v45, %v16511_v22  ;;  %v8195_v12 = vsel %vm836_vm1, %v17078_v8, %v14586_v36  ;;  %v17081_v7 = vld [vmem:[#allocation299_spill] sm:$0xff]  ;;  %v17085_v42 = vld [vmem:[#allocation349_spill] sm:$0xff] }
 0x7c1   :  { %7941 = vrot.lane.b32.xlu0 %v7601_v44, %s9782_s26  ;;  %v7294_v2 = vsel %vm850_vm3, %v7288_v53, %v14584_v49  ;;  %v7279_v0 = vsel %vm836_vm1, %v17079_v24, %v14166_v57  ;;  %v8201_v1 = vsel %vm843_vm2, %v8195_v12, %v14796_v20  ;;  %v7962_v45 = vpop.permute.xlu0 %7961  ;;  %v7799_v10 = vcombine.high %v7789_v17, %v16207_v15  ;;  %v17089_v12 = vld [vmem:[#allocation353_spill] sm:$0xff] }
 0x7c2   :  { %v7300_v35 = vsel %vm857_vm4, %v7294_v2, %v14794_v25  ;;  %v7102_v30 = vpop.permute.xlu1 %7101  ;;  %v7285_v49 = vsel %vm843_vm2, %v7279_v0, %v14334_v60  ;;  %v8207_v34 = vsel %vm850_vm3, %v8201_v1, %v14944_v4  ;;  %v7521_v57 = vcombine.high %v14907_v26, %v16207_v15  ;;  %v17080_v25 = vld [vmem:[#allocation345_spill] sm:$0xff]  ;;  %v17090_v0 = vld [vmem:[#allocation354_spill] sm:$0xff]  ;;  %v17091_v1 = vld [vmem:[#allocation355_spill] sm:$0xff] }
 0x7c3   :  { %v7306_v36 = vsel %vm864_vm5, %v7300_v35, %v14942_v47  ;;  %v6364_v20 = vsel %vm836_vm1, %v17081_v7, %v17080_v25  ;;  %v7291_v44 = vsel %vm850_vm3, %v7285_v49, %v14631_v55  ;;  %v15085_v60 = vsel %vm857_vm4, %v8207_v34, %v7962_v45  ;;  %v17082_v47 = vld [vmem:[#allocation346_spill] sm:$0xff]  ;;  %v17095_v34 = vld [vmem:[#allocation359_spill] sm:$0xff]  ;;  %v17096_v25 = vld [vmem:[#allocation360_spill] sm:$0xff] }
 0x7c4   :  { %v15082_v17 = vsel %vm871_vm6, %v7306_v36, %v7102_v30  ;;  %8137 = vrot.lane.b32.xlu1 %v7799_v10, %s9790_s19  ;;  %v6365_v4 = vsel %vm843_vm2, %v6359_v46, %v17082_v47  ;;  %v6366_v26 = vsel %vm843_vm2, %v6360_v28, %v17083_v18  ;;  %v6367_v56 = vsel %vm843_vm2, %v6361_v39, %v17084_v23  ;;  %v17087_v39 = vld [vmem:[#allocation351_spill] sm:$0xff]  ;;  %v17093_v10 = vld [vmem:[#allocation357_spill] sm:$0xff]  ;;  %v17094_v49 = vld [vmem:[#allocation358_spill] sm:$0xff] }
 0x7c5   :  { %v7297_v55 = vsel %vm857_vm4, %v7291_v44, %v14831_v38  ;;  %8035 = vrot.lane.b32.xlu0 %v7521_v57, %s9786_s30  ;;  %v6368_v27 = vsel %vm843_vm2, %v6362_v41, %v17085_v42  ;;  %v6369_v33 = vsel %vm843_vm2, %v6363_v6, %v17086_v37  ;;  %v7096_v53 = vpop.permute.xlu0 %7095  ;;  %v7838_v28 = vrot.slane %v15053_v52, %v9845_v14  ;;  %v17088_v6 = vld [vmem:[#allocation352_spill] sm:$0xff]  ;;  %v17098_v47 = vld [vmem:[#allocation362_spill] sm:$0xff] }
 0x7c6   :  { %v7303_v63 = vsel %vm864_vm5, %v7297_v55, %v7072_v58  ;;  %v15102_v46 = vpop.permute.xlu1 %7173  ;;  %v6370_v2 = vsel %vm843_vm2, %v6364_v20, %v17087_v39  ;;  %v15109_v38 = vrot.slane %v7555_v5, %v16511_v22  ;;  %v7553_v41 = vcombine.high %v14983_v11, %v16207_v15  ;;  %v17092_v5 = vld [vmem:[#allocation356_spill] sm:$0xff]  ;;  %v17097_v20 = vld [vmem:[#allocation361_spill] sm:$0xff]  ;;  %v17099_v18 = vld [vmem:[#allocation418_spill] sm:$0xff] }
 0x7c7   :  { %v15112_v8 = vsel %vm871_vm6, %v7303_v63, %v7096_v53  ;;  %v6371_v58 = vsel %vm850_vm3, %v6365_v4, %v17088_v6  ;;  %v6372_v24 = vsel %vm850_vm3, %v6366_v26, %v17089_v12  ;;  %v6373_v35 = vsel %vm850_vm3, %v6367_v56, %v17090_v0  ;;  %v17100_v55 = vld [vmem:[#allocation363_spill] sm:$0xff]  ;;  %v17102_v53 = vld [vmem:[#allocation365_spill] sm:$0xff]  ;;  %v17105_v12 = vld [vmem:[#allocation368_spill] sm:$0xff] }
 0x7c8   :  { %v6374_v30 = vsel %vm850_vm3, %v6368_v27, %v17091_v1  ;;  %7971 = vrot.lane.b32.xlu1 %v7838_v28, %s9783_s27  ;;  %v6375_v45 = vsel %vm850_vm3, %v6369_v33, %v17092_v5  ;;  %v6376_v11 = vsel %vm850_vm3, %v6370_v2, %v17093_v10  ;;  %v6377_v36 = vsel %vm857_vm4, %v6371_v58, %v17094_v49  ;;  %v17101_v27 = vld [vmem:[#allocation364_spill] sm:$0xff]  ;;  %v17103_v2 = vld [vmem:[#allocation366_spill] sm:$0xff]  ;;  %v17104_v6 = vld [vmem:[#allocation367_spill] sm:$0xff] }
 0x7c9   :  { %v6378_v57 = vsel %vm857_vm4, %v6372_v24, %v17095_v34  ;;  %8131 = vrot.lane.b32.xlu0 %v7553_v41, %s9790_s19  ;;  %v6379_v7 = vsel %vm857_vm4, %v6373_v35, %v17096_v25  ;;  %v6380_v44 = vsel %vm857_vm4, %v6374_v30, %v17097_v20  ;;  %v6381_v4 = vsel %vm857_vm4, %v6375_v45, %v17098_v47  ;;  %v15142_v56 = vpop.permute.xlu0 %7167  ;;  %v17106_v0 = vld [vmem:[#allocation77_spill] sm:$0xff]  ;;  %v17108_v30 = vld [vmem:[#allocation370_spill] sm:$0xff]  ;;  %v17109_v45 = vld [vmem:[#allocation371_spill] sm:$0xff] }
 0x7ca   :  { %v7790_v26 = vcombine.high %v17099_v18, %v16207_v15  ;;  %v7198_v23 = vpop.permute.xlu1 %7197  ;;  %v6382_v42 = vsel %vm857_vm4, %v6376_v11, %v17100_v55  ;;  %v6383_v37 = vsel %vm864_vm5, %v6377_v36, %v17101_v27  ;;  %v7592_v63 = vrot.slane %v15109_v38, %v9845_v14  ;;  %v17107_v35 = vld [vmem:[#allocation369_spill] sm:$0xff]  ;;  %v17110_v11 = vld [vmem:[#allocation372_spill] sm:$0xff]  ;;  %v17111_v36 = vld [vmem:[#allocation374_spill] sm:$0xff] }
 0x7cb   :  { %v15150_v33 = vsel %vm899_vm12, %v15102_v46, %v7198_v23  ;;  %v6384_v39 = vsel %vm864_vm5, %v6378_v57, %v17102_v53  ;;  %v6385_v41 = vsel %vm864_vm5, %v6379_v7, %v17103_v2  ;;  %v6386_v58 = vsel %vm864_vm5, %v6380_v44, %v17104_v6  ;;  %v17112_v57 = vld [vmem:[#allocation376_spill] sm:$0xff]  ;;  %v17113_v7 = vld [vmem:[#allocation377_spill] sm:$0xff]  ;;  %v17114_v18 = vld [vmem:[#allocation378_spill] sm:$0xff] }
 0x7cc   :  { %v6387_v24 = vsel %vm864_vm5, %v6381_v4, %v17105_v12  ;;  %8065 = vrot.lane.b32.xlu1 %v17106_v0, %s9787_s16  ;;  %v6388_v1 = vsel %vm864_vm5, %v6382_v42, %v17107_v35  ;;  %v6389_v5 = vsel %vm871_vm6, %v6383_v37, %v17108_v30  ;;  %v6390_v10 = vsel %vm871_vm6, %v6384_v39, %v17109_v45  ;;  %v17115_v55 = vld [vmem:[#allocation382_spill] sm:$0xff]  ;;  %v17116_v27 = vld [vmem:[#allocation417_spill] sm:$0xff]  ;;  %v17117_v39 = vld [vmem:[#allocation380_spill] sm:$0xff] }
 0x7cd   :  { %v6391_v49 = vsel %vm871_vm6, %v6385_v41, %v17110_v11  ;;  %7965 = vrot.lane.b32.xlu0 %v7592_v63, %s9783_s27  ;;  %v6393_v34 = vsel %vm871_vm6, %v6387_v24, %v17111_v36  ;;  %v6395_v25 = vsel %vm878_vm7, %v6389_v5, %v17112_v57  ;;  %v6396_v20 = vsel %vm878_vm7, %v6390_v10, %v17113_v7  ;;  %v7192_v4 = vpop.permute.xlu0 %7191  ;;  %v17119_v6 = vld [vmem:[#allocation384_spill] sm:$0xff]  ;;  %v17122_v35 = vld [vmem:[#allocation373_spill] sm:$0xff]  ;;  %v17123_v5 = vld [vmem:[#allocation386_spill] sm:$0xff] }
 0x7ce   :  { %v7797_v44 = vrot.slane %v7790_v26, %v9845_v14  ;;  %v15180_v47 = vpop.permute.xlu1 %7897  ;;  %v6397_v23 = vsel %vm878_vm7, %v6391_v49, %v17114_v18  ;;  %v6401_v42 = vsel %vm885_vm8, %v6395_v25, %v17115_v55  ;;  %v7544_v37 = vcombine.high %v17116_v27, %v16207_v15  ;;  %v17118_v26 = vld [vmem:[#allocation383_spill] sm:$0xff]  ;;  %v17120_v24 = vld [vmem:[#allocation388_spill] sm:$0xff]  ;;  %v17124_v10 = vld [vmem:[#allocation389_spill] sm:$0xff] }
 0x7cf   :  { %v15190_v53 = vsel %vm899_vm12, %v15142_v56, %v7192_v4  ;;  %v6399_v2 = vsel %vm878_vm7, %v6393_v34, %v17117_v39  ;;  %v6402_v41 = vsel %vm885_vm8, %v6396_v20, %v17118_v26  ;;  %v6403_v12 = vsel %vm885_vm8, %v6397_v23, %v17119_v6  ;;  %v17126_v49 = vld [vmem:[#allocation390_spill] sm:$0xff]  ;;  %v17128_v34 = vld [vmem:[#allocation375_spill] sm:$0xff]  ;;  %v17130_v20 = vld [vmem:[#allocation392_spill] sm:$0xff] }
 0x7d0   :  { %vm17121_vm9 = vcmask 1031168   ;;  %8161 = vrot.lane.b32.xlu1 %v7797_v44, %s9791_s20  ;;  %v6392_v30 = vsel %vm871_vm6, %v6386_v58, %v17122_v35  ;;  %v6405_v45 = vsel %vm885_vm8, %v6399_v2, %v17123_v5  ;;  %v6394_v57 = vsel %vm871_vm6, %v6388_v1, %v17128_v34  ;;  %v17129_v25 = vld [vmem:[#allocation379_spill] sm:$0xff]  ;;  %v17131_v55 = vld [vmem:[#allocation381_spill] sm:$0xff] }
 0x7d1   :  { %v6407_v0 = vsel %vm17121_vm9, %v6401_v42, %v17120_v24  ;;  %vm17125_vm11 = vmmov %vm17121_vm9  ;;  %8059 = vrot.lane.b32.xlu0 %v14901_v51, %s9787_s16  ;;  %v6398_v7 = vsel %vm878_vm7, %v6392_v30, %v17129_v25  ;;  %v6411_v58 = vsel %vm17121_vm9, %v6405_v45, %v17130_v20  ;;  %v15217_v18 = vpop.permute.xlu0 %7891  ;;  %v7848_v23 = vcombine.high %v7838_v28, %v16207_v15  ;;  %v17132_v39 = vld [vmem:[#allocation385_spill] sm:$0xff]  ;;  %v17133_v26 = vld [vmem:[#allocation387_spill] sm:$0xff] }
 0x7d2   :  { %v6408_v11 = vsel %vm17125_vm11, %v6402_v41, %v17124_v10  ;;  %vm17127_vm10 = vmmov %vm17121_vm9  ;;  %v7992_v4 = vpop.permute.xlu1 %7991  ;;  %v6400_v42 = vsel %vm878_vm7, %v6394_v57, %v17131_v55  ;;  %v8465_v27 = vrot.slane %v6407_v0, 2  ;;  %v7551_v51 = vrot.slane %v7544_v37, %v9845_v14  ;;  %v17135_v37 = vld [vmem:[#allocation391_spill] sm:$0xff]  ;;  %v17137_v35 = vld [vmem:[#allocation393_spill] sm:$0xff] }
 0x7d3   :  { %v6409_v36 = vsel %vm17127_vm10, %v6403_v12, %v17126_v49  ;;  %v15225_v1 = vsel %vm864_vm5, %v15034_v13, %v7992_v4  ;;  %v6404_v2 = vsel %vm885_vm8, %v6398_v7, %v17132_v39  ;;  %v6406_v41 = vsel %vm885_vm8, %v6400_v42, %v17133_v26  ;;  %vm17136_vm10 = vmmov %vm17121_vm9  ;;  %v17142_v57 = vld [vmem:[#allocation318_spill] sm:$0xff]  ;;  %v17148_v4 = vld [vmem:[#allocation413_spill] sm:$0xff] }
 0x7d4   :  { %v8467_v6 = vrot.slane %v6408_v11, 2  ;;  %v8469_v12 = vrot.slane %v6409_v36, 2  ;;  %7995 = vrot.lane.b32.xlu1 %v7848_v23, %s9784_s28  ;;  %vm17134_vm11 = vcmask 1044480   ;;  %v15240_v13 = vsel %vm17136_vm10, %v6404_v2, %v17135_v37  ;;  %v17146_v7 = vld [vmem:[#allocation398_spill] sm:$0xff]  ;;  %v17149_v55 = vld [vmem:[#allocation421_spill] sm:$0xff] }
 0x7d5   :  { %v15236_v28 = vsel %vm17134_vm11, %v14917_v62, %v8436_v54  ;;  %v8473_v0 = vrot.slane %v6411_v58, 2  ;;  %v6412_v30 = vsel %vm17121_vm9, %v6406_v41, %v17137_v35  ;;  %8155 = vrot.lane.b32.xlu0 %v7551_v51, %s9791_s20  ;;  %vm17138_vm0 = vmmov %vm17134_vm11  ;;  %v7831_v62 = vcombine.high %v15053_v52, %v16207_v15  ;;  %v7986_v11 = vpop.permute.xlu0 %7985  ;;  %v17147_v58 = vld [vmem:[#allocation10_spill] sm:$0xff] }
 0x7d6   :  { %v15249_v5 = vsel %vm17138_vm0, %v14928_v21, %v8438_v61  ;;  %v7856_v54 = vrot.slane %v17139_v43, %v16511_v22  ;;  %v7126_v45 = vpop.permute.xlu1 %7125  ;;  %v7800_v36 = vcombine.high %v7797_v44, %v16207_v15  ;;  %vm17140_vm11 = vcmask 1045504  }
 0x7d7   :  { %v15258_v34 = vsel %vm17140_vm11, %v14932_v3, %v8465_v27  ;;  %v15262_v29 = vsel %vm878_vm7, %v15082_v17, %v7126_v45  ;;  %v15266_v21 = vsel %vm864_vm5, %v15085_v60, %v7986_v11  ;;  %v7602_v61 = vcombine.high %v7592_v63, %v16207_v15  ;;  %vm17141_vm0 = vmmov %vm17140_vm11  ;;  %v17145_v60 = vld [vmem:[#allocation394_spill] sm:$0xff]  ;;  %v17150_v27 = vld [vmem:[#allocation11_spill] sm:$0xff] }
 0x7d8   :  { %v15271_v52 = vsel %vm17141_vm0, %v14936_v48, %v8467_v6  ;;  %vm17143_vm10 = vmmov %vm17141_vm0  ;;  %v8471_v3 = vrot.slane %v15240_v13, 2  ;;  %v8475_v25 = vrot.slane %v6412_v30, 2  ;;  %8185 = vrot.lane.b32.xlu1 %v7800_v36, %s9792_s21  ;;  %v6413_v63 = vsel %vm899_vm12, %v17120_v24, %v17145_v60  ;;  %v17153_v30 = vld [vmem:[#allocation395_spill] sm:$0xff]  ;;  %v17154_v45 = vld [vmem:[#allocation396_spill] sm:$0xff] }
 0x7d9   :  { %v15275_v44 = vsel %vm17143_vm10, %v17142_v57, %v8469_v12  ;;  %vm17144_vm9 = vmmov %vm17141_vm0  ;;  %v6417_v48 = vsel %vm899_vm12, %v17130_v20, %v17146_v7  ;;  %v7281_v23 = vsel %vm836_vm1, %v17148_v4, %v17147_v58  ;;  %7989 = vrot.lane.b32.xlu0 %v7602_v61, %s9784_s28  ;;  %v7610_v42 = vrot.slane %v17149_v55, %v16511_v22  ;;  %v7120_v2 = vpop.permute.xlu0 %7119  ;;  %v17151_v12 = vld [vmem:[#allocation322_spill] sm:$0xff]  ;;  %v17159_v60 = vld [vmem:[#allocation13_spill] sm:$0xff] }
 0x7da   :  { %v15281_v17 = vsel %vm17144_vm9, %v14967_v59, %v8473_v0  ;;  %v15296_v59 = vrot.slane %v7856_v54, %v9845_v14  ;;  %v7287_v39 = vsel %vm843_vm2, %v7281_v23, %v17150_v27  ;;  %v7222_v24 = vpop.permute.xlu1 %7221  ;;  %v7845_v26 = vrot.slane %v7831_v62, %v9845_v14  ;;  %vm17152_vm11 = vmmov %vm17141_vm0  ;;  %v17157_v36 = vld [vmem:[#allocation410_spill] sm:$0xff]  ;;  %v17161_v23 = vld [vmem:[#allocation16_spill] sm:$0xff] }
 0x7db   :  { %v7585_v20 = vcombine.high %v15109_v38, %v16207_v15  ;;  %v15305_v41 = vsel %vm906_vm13, %v15150_v33, %v7222_v24  ;;  %v15309_v22 = vsel %vm878_vm7, %v15112_v8, %v7120_v2  ;;  %v7554_v6 = vcombine.high %v7551_v51, %v16207_v15  ;;  %v17155_v33 = vld [vmem:[#allocation404_spill] sm:$0xff]  ;;  %v17156_v8 = vld [vmem:[#allocation397_spill] sm:$0xff]  ;;  %v17158_v57 = vld [vmem:[#allocation6_spill] sm:$0xff] }
 0x7dc   :  { %v15314_v0 = vsel %vm17152_vm11, %v17151_v12, %v8475_v25  ;;  %v6414_v62 = vsel %vm899_vm12, %v17124_v10, %v17153_v30  ;;  %v15322_v38 = vsel %vm899_vm12, %v17126_v49, %v17154_v45  ;;  %v6423_v11 = vsel %vm906_vm13, %v6417_v48, %v17155_v33  ;;  %8019 = vrot.lane.b32.xlu1 %v7845_v26, %s9785_s29  ;;  %v17160_v48 = vld [vmem:[#allocation23_spill] sm:$0xff]  ;;  %v17164_v33 = vld [vmem:[#allocation26_spill] sm:$0xff]  ;;  %vm17189_vm10 = vmmov %vm17144_vm9 }
 0x7dd   :  { %v15330_v51 = vsel %vm899_vm12, %v17135_v37, %v17156_v8  ;;  %v6429_v61 = vsel %vm913_vm14, %v6423_v11, %v17157_v36  ;;  %v7857_v10 = vcombine.high %v7856_v54, %v16207_v15  ;;  %v7293_v25 = vsel %vm850_vm3, %v7287_v39, %v17158_v57  ;;  %8179 = vrot.lane.b32.xlu0 %v7554_v6, %s9792_s21  ;;  %v7216_v4 = vpop.permute.xlu0 %7215  ;;  %v17163_v30 = vld [vmem:[#allocation27_spill] sm:$0xff]  ;;  %v17165_v11 = vld [vmem:[#allocation25_spill] sm:$0xff] }
 0x7de   :  { %v15339_v49 = vrot.slane %v7610_v42, %v9845_v14  ;;  %v7299_v7 = vsel %vm857_vm4, %v7293_v25, %v17159_v60  ;;  %v8199_v37 = vsel %vm836_vm1, %v17160_v48, %v15180_v47  ;;  %v7922_v58 = vpop.permute.xlu1 %7921  ;;  %v7880_v54 = vcombine.high %v15296_v59, %v16207_v15  ;;  %v17162_v47 = vld [vmem:[#allocation14_spill] sm:$0xff]  ;;  %v17166_v36 = vld [vmem:[#allocation29_spill] sm:$0xff]  ;;  %v17167_v57 = vld [vmem:[#allocation47_spill] sm:$0xff] }
 0x7df   :  { %v7305_v27 = vsel %vm864_vm5, %v7299_v7, %v17161_v23  ;;  %v15351_v39 = vsel %vm843_vm2, %v8199_v37, %v7922_v58  ;;  %v15355_v24 = vsel %vm906_vm13, %v15190_v53, %v7216_v4  ;;  %v7599_v2 = vrot.slane %v7585_v20, %v9845_v14  ;;  %v17169_v25 = vld [vmem:[#allocation411_spill] sm:$0xff]  ;;  %v17170_v7 = vld [vmem:[#allocation49_spill] sm:$0xff] }
 0x7e0   :  { %v7611_v6 = vcombine.high %v7610_v42, %v16207_v15  ;;  %v6435_v12 = vsel %vm920_vm15, %v6429_v61, %v17162_v47  ;;  %v7311_v45 = vsel %vm871_vm6, %v7305_v27, %v17163_v30  ;;  %v7335_v8 = vsel %vm899_vm12, %v17165_v11, %v17164_v33  ;;  %8091 = vrot.lane.b32.xlu1 %v7880_v54, %s9788_s17  ;;  %v17168_v61 = vld [vmem:[#allocation20_spill] sm:$0xff]  ;;  %v17171_v37 = vld [vmem:[#allocation41_spill] sm:$0xff]  ;;  %v17172_v4 = vld [vmem:[#allocation35_spill] sm:$0xff] }
 0x7e1   :  { %v7317_v53 = vsel %vm878_vm7, %v7311_v45, %v17166_v36  ;;  %v7341_v20 = vsel %vm906_vm13, %v7335_v8, %v17167_v57  ;;  %8013 = vrot.lane.b32.xlu0 %v7599_v2, %s9785_s29  ;;  %v7871_v42 = vrot.slane %v7857_v10, %v9845_v14  ;;  %v7278_v60 = vsel %vm836_vm1, %v17169_v25, %v17168_v61  ;;  %v17173_v47 = vld [vmem:[#allocation24_spill] sm:$0xff]  ;;  %v17174_v30 = vld [vmem:[#allocation67_spill] sm:$0xff]  ;;  %v17178_v25 = vld [vmem:[#allocation30_spill] sm:$0xff] }
 0x7e2   :  { %v7323_v48 = vsel %vm885_vm8, %v7317_v53, %v17170_v7  ;;  %v7347_v58 = vsel %vm913_vm14, %v7341_v20, %v17171_v37  ;;  %v8196_v54 = vsel %vm836_vm1, %v17172_v4, %v15217_v18  ;;  %v15383_v23 = vpop.permute.xlu1 %8015  ;;  %v7916_v27 = vpop.permute.xlu0 %7915  ;;  %v7284_v10 = vsel %vm843_vm2, %v7278_v60, %v17173_v47  ;;  %v17175_v36 = vld [vmem:[#allocation399_spill] sm:$0xff]  ;;  %v17176_v18 = vld [vmem:[#allocation400_spill] sm:$0xff]  ;;  %v17177_v20 = vld [vmem:[#allocation401_spill] sm:$0xff] }
 0x7e3   :  { %v7353_v45 = vsel %vm920_vm15, %v7347_v58, %v17174_v30  ;;  %v15390_v33 = vsel %vm843_vm2, %v8196_v54, %v7916_v27  ;;  %v7634_v8 = vcombine.high %v15339_v49, %v16207_v15  ;;  %v6418_v53 = vsel %vm899_vm12, %v17137_v35, %v17175_v36  ;;  %v17179_v37 = vld [vmem:[#allocation17_spill] sm:$0xff] }
 0x7e4   :  { %v6419_v57 = vsel %vm906_vm13, %v6413_v63, %v17176_v18  ;;  %v6420_v61 = vsel %vm906_vm13, %v6414_v62, %v17177_v20  ;;  %v7290_v60 = vsel %vm850_vm3, %v7284_v10, %v17178_v25  ;;  %8115 = vrot.lane.b32.xlu1 %v7871_v42, %s9789_s18  ;;  %v8474_v7 = vrot.slane %v6435_v12, 2  ;;  %v17181_v63 = vld [vmem:[#allocation407_spill] sm:$0xff]  ;;  %v17182_v62 = vld [vmem:[#allocation21_spill] sm:$0xff]  ;;  %v17185_v20 = vld [vmem:[#allocation28_spill] sm:$0xff] }
 0x7e5   :  { %v7296_v58 = vsel %vm857_vm4, %v7290_v60, %v17179_v37  ;;  %vm17180_vm0 = vcmask 1031168   ;;  %v9794_v54 = vmov 1966171168   ;;  %8085 = vrot.lane.b32.xlu0 %v7634_v8, %s9788_s17  ;;  %v6426_v27 = vsel %vm913_vm14, %v6420_v61, %v17181_v63  ;;  %v17184_v8 = vld [vmem:[#allocation39_spill] sm:$0xff]  ;;  %v17186_v60 = vld [vmem:[#allocation424_spill] sm:$0xff]  ;;  %v17187_v37 = vld [vmem:[#allocation61_spill] sm:$0xff] }
 0x7e6   :  { %v7329_v4 = vsel %vm17180_vm0, %v7323_v48, %v17165_v11  ;;  %v8641_v35 = vunpack.c.l.s4 %v9794_v54  ;;  %v7302_v47 = vsel %vm864_vm5, %v7296_v58, %v17182_v62  ;;  %v8510_v10 = vrot.slane %v7353_v45, 1  ;;  %v15413_v30 = vpop.permute.xlu1 %8087  ;;  %v15415_v12 = vpop.permute.xlu0 %8009  ;;  %v17183_v48 = vld [vmem:[#allocation33_spill] sm:$0xff]  ;;  %v17188_v54 = vld [vmem:[#allocation54_spill] sm:$0xff]  ;;  %vm17198_vm11 = vmmov %vm17180_vm0 }
 0x7e7   :  { %v7849_v36 = vcombine.high %v7845_v26, %v16207_v15  ;;  %v7626_v11 = vcombine.high %v17149_v55, %v16207_v15  ;;  %v7308_v18 = vsel %vm871_vm6, %v7302_v47, %v17183_v48  ;;  %v7332_v61 = vsel %vm899_vm12, %v17185_v20, %v17184_v8  ;;  %v17190_v62 = vld [vmem:[#allocation37_spill] sm:$0xff]  ;;  %v17191_v48 = vld [vmem:[#allocation63_spill] sm:$0xff] }
 0x7e8   :  { %v7625_v25 = vrot.slane %v7611_v6, %v9845_v14  ;;  %v6432_v45 = vsel %vm920_vm15, %v6426_v27, %v17186_v60  ;;  %v7314_v58 = vsel %vm878_vm7, %v7308_v18, %v17187_v37  ;;  %v7338_v26 = vsel %vm906_vm13, %v7332_v61, %v17188_v54  ;;  %v17194_v60 = vld [vmem:[#allocation402_spill] sm:$0xff]  ;;  %v17195_v37 = vld [vmem:[#allocation403_spill] sm:$0xff] }
 0x7e9   :  { %v8509_v63 = vrot.slane %v7329_v4, 1  ;;  %8043 = vrot.lane.b32.xlu1 %v7849_v36, %s9786_s30  ;;  %v8599_v55 = vsel %vm17189_vm10, %v15249_v5, %v8474_v7  ;;  %v7320_v47 = vsel %vm885_vm8, %v7314_v58, %v17190_v62  ;;  %v7344_v6 = vsel %vm913_vm14, %v7338_v26, %v17191_v48  ;;  %v17193_v4 = vld [vmem:[#allocation50_spill] sm:$0xff] }
 0x7ea   :  { %v8642_v8 = vunpack.c.0.s8 %v8641_v35  ;;  %8109 = vrot.lane.b32.xlu0 %v7625_v25, %s9789_s18  ;;  %v7872_v27 = vcombine.high %v17139_v43, %v16207_v15  ;;  %vm17192_vm9 = vcmask 1046528   ;;  %v7350_v36 = vsel %vm920_vm15, %v7344_v6, %v17193_v4  ;;  %v15445_v61 = vpop.permute.xlu1 %8111  ;;  %v15447_v5 = vpop.permute.xlu0 %8081  ;;  %v17196_v43 = vld [vmem:[#allocation405_spill] sm:$0xff]  ;;  %v17197_v26 = vld [vmem:[#allocation406_spill] sm:$0xff] }
 0x7eb   :  { %v8611_v18 = vsel %vm17192_vm9, %v8599_v55, %v8510_v10  ;;  %v7881_v7 = vcombine.high %v7871_v42, %v16207_v15  ;;  %v6421_v35 = vsel %vm906_vm13, %v15322_v38, %v17194_v60  ;;  %v6422_v58 = vsel %vm906_vm13, %v15330_v51, %v17195_v37  ;;  %vm17199_vm0 = vmmov %vm17192_vm9  ;;  %v17200_v38 = vld [vmem:[#allocation408_spill] sm:$0xff]  ;;  %v17201_v6 = vld [vmem:[#allocation2_spill] sm:$0xff] }
 0x7ec   :  { %v6424_v10 = vsel %vm906_vm13, %v6418_v53, %v17196_v43  ;;  %v7603_v54 = vcombine.high %v7599_v2, %v16207_v15  ;;  %v6425_v55 = vsel %vm913_vm14, %v6419_v57, %v17197_v26  ;;  %v8468_v62 = vrot.slane %v6432_v45, 2  ;;  %v17202_v57 = vld [vmem:[#allocation409_spill] sm:$0xff]  ;;  %vm17207_vm9 = vmmov %vm17198_vm11  ;;  %v17208_v26 = vld [vmem:[#allocation15_spill] sm:$0xff] }
 0x7ed   :  { %v7326_v42 = vsel %vm17198_vm11, %v7320_v47, %v17185_v20  ;;  %v8610_v48 = vsel %vm17199_vm0, %v15281_v17, %v8509_v63  ;;  %8139 = vrot.lane.b32.xlu1 %v7881_v7, %s9790_s19  ;;  %v6427_v51 = vsel %vm913_vm14, %v6421_v35, %v17200_v38  ;;  %v15469_v4 = vsub.s32 %v8642_v8, %v17201_v6  ;;  %v17203_v63 = vld [vmem:[#allocation422_spill] sm:$0xff]  ;;  %v17204_v8 = vld [vmem:[#allocation4_spill] sm:$0xff]  ;;  %vm17209_vm11 = vmmov %vm17199_vm0 }
 0x7ee   :  { %v8898_v53 = vcombine.low %v8610_v48, %v8611_v18  ;;  %v8504_v2 = vrot.slane %v7350_v36, 1  ;;  %8037 = vrot.lane.b32.xlu0 %v7603_v54, %s9786_s30  ;;  %v6428_v45 = vsel %vm913_vm14, %v6422_v58, %v17202_v57  ;;  %v15475_v20 = vrot.slane %v7626_v11, %v9845_v14  ;;  %v7150_v7 = vpop.permute.xlu1 %7149  ;;  %v15480_v60 = vpop.permute.xlu0 %8105  ;;  %v17205_v35 = vld [vmem:[#allocation414_spill] sm:$0xff]  ;;  %v17213_v6 = vld [vmem:[#allocation19_spill] sm:$0xff] }
 0x7ef   :  { %v7879_v17 = vrot.slane %v7872_v27, %v9845_v14  ;;  %v6430_v47 = vsel %vm913_vm14, %v6424_v10, %v17203_v63  ;;  %v7280_v36 = vsel %vm836_vm1, %v17205_v35, %v17204_v8  ;;  %v8503_v37 = vrot.slane %v7326_v42, 1  ;;  %v17206_v14 = vld [vmem:[#allocation7_spill] sm:$0xff] }
 0x7f0   :  { %v7324_v43 = vsel %vm885_vm8, %v15262_v29, %v7150_v7  ;;  %v7635_v58 = vcombine.high %v7625_v25, %v16207_v15  ;;  %v8593_v11 = vsel %vm17189_vm10, %v14990_v19, %v8468_v62  ;;  %v7286_v27 = vsel %vm843_vm2, %v7280_v36, %v17206_v14  ;;  %v17210_v19 = vld [vmem:[#allocation425_spill] sm:$0xff]  ;;  %vm17214_vm10 = vmmov %vm17199_vm0  ;;  %v17219_v14 = vld [vmem:[#allocation12_spill] sm:$0xff] }
 0x7f1   :  { %v8899_v10 = vcombine.high %v8610_v48, %v8611_v18  ;;  %v7330_v54 = vsel %vm17207_vm9, %v7324_v43, %v15102_v46  ;;  %8067 = vrot.lane.b32.xlu1 %v15296_v59, %s9787_s16  ;;  %v7292_v42 = vsel %vm850_vm3, %v7286_v27, %v17208_v26  ;;  %v8906_v29 = vrot.slane %v8898_v53, %v15469_v4  ;;  %v17211_v18 = vld [vmem:[#allocation9_spill] sm:$0xff]  ;;  %v17212_v48 = vld [vmem:[#allocation426_spill] sm:$0xff] }
 0x7f2   :  { %v8605_v25 = vsel %vm17209_vm11, %v8593_v11, %v8504_v2  ;;  %v8511_v38 = vrot.slane %v7330_v54, 1  ;;  %8133 = vrot.lane.b32.xlu0 %v7635_v58, %s9790_s19  ;;  %v15503_v62 = vsel %vm920_vm15, %v6425_v55, %v17210_v19  ;;  %v15507_v46 = vsel %vm920_vm15, %v6427_v51, %v17211_v18  ;;  %v7246_v53 = vpop.permute.xlu1 %7245  ;;  %v7144_v63 = vpop.permute.xlu0 %7143  ;;  %v17221_v19 = vld [vmem:[#allocation69_spill] sm:$0xff]  ;;  %vm17222_vm11 = vmmov %vm17199_vm0 }
 0x7f3   :  { %v6434_v59 = vsel %vm920_vm15, %v6428_v45, %v17212_v48  ;;  %v7298_v57 = vsel %vm857_vm4, %v7292_v42, %v17213_v6  ;;  %v8604_v2 = vsel %vm17199_vm0, %v15271_v52, %v8503_v37  ;;  %v15517_v7 = vsel %vm913_vm14, %v15305_v41, %v7246_v53  ;;  %v17215_v45 = vld [vmem:[#allocation42_spill] sm:$0xff]  ;;  %v17216_v41 = vld [vmem:[#allocation8_spill] sm:$0xff]  ;;  %vm17227_vm0 = vmmov %vm17207_vm9 }
 0x7f4   :  { %v7321_v55 = vsel %vm885_vm8, %v15309_v22, %v7144_v63  ;;  %v15523_v51 = vsel %vm17214_vm10, %v15314_v0, %v8511_v38  ;;  %v7304_v8 = vsel %vm864_vm5, %v7298_v57, %v17215_v45  ;;  %v8913_v35 = vrot.slane %v8899_v10, %v15469_v4  ;;  %v17217_v37 = vld [vmem:[#allocation412_spill] sm:$0xff]  ;;  %v17220_v10 = vld [vmem:[#allocation57_spill] sm:$0xff] }
 0x7f5   :  { %v8703_v36 = vcombine.low %v8604_v2, %v8605_v25  ;;  %v7327_v52 = vsel %vm17207_vm9, %v7321_v55, %v15142_v56  ;;  %8163 = vrot.lane.b32.xlu1 %v7879_v17, %s9791_s20  ;;  %v7277_v43 = vsel %vm836_vm1, %v17217_v37, %v17216_v41  ;;  %v17218_v22 = vld [vmem:[#allocation32_spill] sm:$0xff]  ;;  %v8914_v0 = vcombine.high %v8906_v29, %v8906_v29  ;;  %v17225_v45 = vld [vmem:[#allocation5_spill] sm:$0xff]  ;;  %vm17232_vm9 = vmmov %vm17222_vm11 }
 0x7f6   :  { %v7310_v58 = vsel %vm871_vm6, %v7304_v8, %v17218_v22  ;;  %v8505_v11 = vrot.slane %v7327_v52, 1  ;;  %8061 = vrot.lane.b32.xlu0 %v15339_v49, %s9787_s16  ;;  %v7283_v27 = vsel %vm843_vm2, %v7277_v43, %v17219_v14  ;;  %v8704_v54 = vcombine.high %v8604_v2, %v8605_v25  ;;  %v7946_v26 = vpop.permute.xlu1 %7945  ;;  %v7240_v42 = vpop.permute.xlu0 %7239  ;;  %v17223_v25 = vld [vmem:[#allocation18_spill] sm:$0xff]  ;;  %v17228_v43 = vld [vmem:[#allocation36_spill] sm:$0xff] }
 0x7f7   :  { %v7316_v56 = vsel %vm878_vm7, %v7310_v58, %v17220_v10  ;;  %v7882_v38 = vcombine.high %v7879_v17, %v16207_v15  ;;  %v15547_v48 = vsel %vm850_vm3, %v15351_v39, %v7946_v26  ;;  %v15551_v49 = vsel %vm913_vm14, %v15355_v24, %v7240_v42  ;;  %v17224_v2 = vld [vmem:[#allocation22_spill] sm:$0xff] }
 0x7f8   :  { %v7322_v18 = vsel %vm885_vm8, %v7316_v56, %v17221_v19  ;;  %v15555_v6 = vsel %vm17222_vm11, %v15275_v44, %v8505_v11  ;;  %v7289_v57 = vsel %vm850_vm3, %v7283_v27, %v17223_v25  ;;  %v8915_v53 = vcombine.high %v8913_v35, %v8913_v35  ;;  %v17229_v27 = vld [vmem:[#allocation40_spill] sm:$0xff]  ;;  %v17231_v42 = vld [vmem:[#allocation62_spill] sm:$0xff] }
 0x7f9   :  { %v8929_v17 = vrot.slane %v8913_v35, %v15469_v4  ;;  %v8711_v63 = vrot.slane %v8703_v36, %v15469_v4  ;;  %8187 = vrot.lane.b32.xlu1 %v7882_v38, %s9792_s21  ;;  %v8472_v39 = vrot.slane %v6434_v59, 2  ;;  %v7295_v55 = vsel %vm857_vm4, %v7289_v57, %v17224_v2  ;;  %v17226_v35 = vld [vmem:[#allocation31_spill] sm:$0xff] }
 0x7fa   :  { %8157 = vrot.lane.b32.xlu0 %v15475_v20, %s9791_s20  ;;  %v15567_v44 = vrot.slane %v8906_v29, %v15469_v4  ;;  %v8936_v24 = vrot.slane %v8914_v0, %v15469_v4  ;;  %v6436_v8 = vsel %vm920_vm15, %v6430_v47, %v17225_v45  ;;  %v7301_v36 = vsel %vm864_vm5, %v7295_v55, %v17226_v35  ;;  %v15577_v41 = vpop.permute.xlu1 %8039 }
 0x7fb   :  { %v8718_v52 = vrot.slane %v8704_v54, %v15469_v4  ;;  %v7328_v59 = vsel %vm17227_vm0, %v7322_v18, %v14414_v31  ;;  %v7940_v37 = vpop.permute.xlu0 %7939  ;;  %v7307_v29 = vsel %vm871_vm6, %v7301_v36, %v17228_v43  ;;  %v8508_v22 = vrot.slane %v14997_v16, 1 }
 0x7fc   :  { %v15584_v58 = vsel %vm850_vm3, %v15390_v33, %v7940_v37  ;;  %v7636_v47 = vcombine.high %v15475_v20, %v16207_v15  ;;  %v8719_v0 = vcombine.high %v8711_v63, %v8711_v63  ;;  %v15589_v11 = vrot.slane %v8711_v63, %v15469_v4  ;;  %v17236_v37 = vld [vmem:[#allocation336_spill] sm:$0xff] }
 0x7fd   :  { %v15592_v31 = vrot.slane %v8915_v53, %v15469_v4  ;;  %v8945_v14 = vcombine.high %v8929_v17, %v8929_v17  ;;  %v7313_v10 = vsel %vm878_vm7, %v7307_v29, %v17229_v27  ;;  %v8507_v56 = vrot.slane %v7328_v59, 1 }
 0x7fe   :  { %8181 = vrot.lane.b32.xlu0 %v7636_v47, %s9792_s21  ;;  %v8944_v16 = vcombine.high %v15567_v44, %v15567_v44  ;;  %v8946_v33 = vcombine.high %v8936_v24, %v8936_v24  ;;  %vm17230_vm10 = vcmask 1045504   ;;  %v8720_v54 = vcombine.high %v8718_v52, %v8718_v52  ;;  %v15604_v19 = vpop.permute.xlu1 %8135 }
 0x7ff   :  { %v8597_v20 = vsel %vm17230_vm10, %v15236_v28, %v8472_v39  ;;  %v8734_v26 = vrot.slane %v8718_v52, %v15469_v4  ;;  %v7319_v38 = vsel %vm885_vm8, %v7313_v10, %v17231_v42  ;;  %v15606_v18 = vpop.permute.xlu0 %8033  ;;  %v8466_v25 = vrot.slane %v15503_v62, 2  ;;  %vm17233_vm11 = vmmov %vm17230_vm10 }
 0x800   :  { %v8470_v57 = vrot.slane %v15507_v46, 2  ;;  %v8476_v53 = vrot.slane %v6436_v8, 2  ;;  %v8609_v63 = vsel %vm17232_vm9, %v8597_v20, %v8508_v22  ;;  %v8596_v28 = vsel %vm17233_vm11, %v14951_v40, %v8471_v3  ;;  %vm17234_vm10 = vmmov %vm17232_vm9 }
 0x801   :  { %v9435_v39 = vcombine.low %v15592_v31, %v8945_v14  ;;  %v8741_v2 = vrot.slane %v8719_v0, %v15469_v4  ;;  %v8749_v55 = vcombine.high %v15589_v11, %v15589_v11  ;;  %v7325_v62 = vsel %vm17227_vm0, %v7319_v38, %v14456_v50  ;;  %vm17235_vm9 = vmmov %vm17233_vm11  ;;  %v17238_v50 = vld [vmem:[#allocation340_spill] sm:$0xff] }
 0x802   :  { %v8608_v46 = vsel %vm17234_vm10, %v8596_v28, %v8507_v56  ;;  %v9433_v45 = vcombine.low %v8936_v24, %v8944_v16  ;;  %v9434_v8 = vcombine.low %v8946_v33, %v8929_v17  ;;  %v7270_v13 = vpop.permute.xlu1 %7269  ;;  %v15625_v40 = vrot.slane %v8720_v54, %v15469_v4  ;;  %vm17237_vm11 = vmmov %vm17235_vm9  ;;  %v18_v28 = vld [vmem:[%s16026_s2] sm:$0xff] }
 0x803   :  { %v8833_v35 = vcombine.low %v8608_v46, %v8609_v63  ;;  %v8834_v36 = vcombine.high %v8608_v46, %v8609_v63  ;;  %v15622_v52 = vpop.permute.xlu0 %8129  ;;  %v8750_v3 = vcombine.high %v8734_v26, %v8734_v26  ;;  %v8591_v59 = vsel %vm17235_vm9, %v14987_v9, %v8466_v25  ;;  %vm17239_vm0 = vmmov %vm17235_vm9 }
 0x804   :  { %v8595_v43 = vsel %vm17237_vm11, %v17236_v37, %v8470_v57  ;;  %v8601_v29 = vsel %vm17239_vm0, %v17238_v50, %v8476_v53  ;;  %v7354_v17 = vsel %vm920_vm15, %v15517_v7, %v7270_v13  ;;  %v8501_v24 = vrot.slane %v7325_v62, 1  ;;  %vm17240_vm9 = vmmov %vm17234_vm10 }
 0x805   :  { %v8502_v22 = vrot.slane %v15037_v32, 1  ;;  %v8512_v47 = vrot.slane %v7354_v17, 1  ;;  %v15637_v0 = vrot.slane %v9435_v39, %v15469_v4  ;;  %v15640_v14 = vrot.slane %v9433_v45, %v15469_v4  ;;  %vm17241_vm11 = vmmov %vm17240_vm9 }
 0x806   :  { %v15643_v9 = vrot.slane %v9434_v8, %v15469_v4  ;;  %v8751_v27 = vcombine.high %v8741_v2, %v8741_v2  ;;  %v9105_v10 = vcombine.low %v8741_v2, %v8749_v55  ;;  %v8841_v56 = vrot.slane %v8833_v35, %v15469_v4  ;;  %v7970_v33 = vpop.permute.xlu1 %7969  ;;  %vm17242_vm0 = vmmov %vm17240_vm9 }
 0x807   :  { %v8848_v16 = vrot.slane %v8834_v36, %v15469_v4  ;;  %v8613_v7 = vsel %vm17234_vm10, %v8601_v29, %v8512_v47  ;;  %v7264_v32 = vpop.permute.xlu0 %7263  ;;  %v9107_v20 = vcombine.low %v15625_v40, %v8750_v3  ;;  %v15653_v38 = vsel %vm857_vm4, %v15547_v48, %v7970_v33 }
 0x808   :  { %v8963_v54 = vcombine.low %v15523_v51, %v8613_v7  ;;  %v8964_v42 = vcombine.high %v15523_v51, %v8613_v7  ;;  %v7351_v25 = vsel %vm920_vm15, %v15551_v49, %v7264_v32  ;;  %v8602_v57 = vsel %vm17240_vm9, %v15258_v34, %v8501_v24  ;;  %v19_v51 = vld [vmem:[%s16026_s2 + $0x8] sm:$0xff] }
 0x809   :  { %v8603_v53 = vsel %vm17241_vm11, %v8591_v59, %v8502_v22  ;;  %v8506_v63 = vrot.slane %v7351_v25, 1  ;;  %v9106_v2 = vcombine.low %v8751_v27, %v8734_v26  ;;  %v9795_v49 = vmov 0  }
 0x80a   :  { %v8971_v48 = vrot.slane %v8963_v54, %v15469_v4  ;;  %v8978_v39 = vrot.slane %v8964_v42, %v15469_v4  ;;  %9751 = vset.pattern.permute.xlu0 %v9795_v49  ;;  %9752 = vset.pattern.permute.xlu1 %v9795_v49  ;;  %v8849_v34 = vcombine.high %v8841_v56, %v8841_v56  ;;  %v15669_v62 = vpop.permute.xlu1 %8063  ;;  %vm17243_vm10 = vcmask 1031168  }
 0x80b   :  { %v8607_v55 = vsel %vm17242_vm0, %v8595_v43, %v8506_v63  ;;  %v7964_v46 = vpop.permute.xlu0 %7963  ;;  %v9467_v45 = vcombine.high %v15643_v9, %v15637_v0  ;;  %9030 = vperm.xlu0 %9751, %v18_v28   ;;  %9035 = vperm.xlu1 %9752, %v19_v51   ;;  %v8850_v8 = vcombine.high %v8848_v16, %v8848_v16  ;;  %vm17245_vm9 = vmmov %vm17243_vm10 }
 0x80c   :  { %v8638_v35 = vcombine.low %v8602_v57, %v8603_v53  ;;  %v8979_v36 = vcombine.high %v8971_v48, %v8971_v48  ;;  %v8980_v13 = vcombine.high %v8978_v39, %v8978_v39  ;;  %v8639_v3 = vcombine.high %v8602_v57, %v8603_v53 }
 0x80d   :  { %v8768_v26 = vcombine.low %v15555_v6, %v8607_v55  ;;  %v8769_v59 = vcombine.high %v15555_v6, %v8607_v55  ;;  %v15677_v37 = vsel %vm857_vm4, %v15584_v58, %v7964_v46  ;;  %v15680_v43 = vrot.slane %v8971_v48, %v15469_v4 }
 0x80e   :  { %v15683_v50 = vrot.slane %v8978_v39, %v15469_v4  ;;  %v15686_v29 = vrot.slane %v8979_v36, %v15469_v4  ;;  %v15689_v17 = vrot.slane %v8980_v13, %v15469_v4  ;;  %v8160_v22 = vpop.permute.xlu1 %8159  ;;  %v9466_v58 = vcombine.low %v15643_v9, %v15637_v0 }
 0x80f   :  { %v8776_v24 = vrot.slane %v8768_v26, %v15469_v4  ;;  %v8783_v6 = vrot.slane %v8769_v59, %v15469_v4  ;;  %v15693_v47 = vpop.permute.xlu0 %8057  ;;  %v15698_v27 = vrot.slane %v9105_v10, %v15469_v4  ;;  %v8646_v7 = vrot.slane %v8638_v35, %v15469_v4 }
 0x810   :  { %v9701_v33 = vcombine.high %v15680_v43, %v15686_v29  ;;  %v9501_v32 = vcombine.low %v15683_v50, %v15689_v17  ;;  %v8871_v54 = vrot.slane %v8849_v34, %v15469_v4  ;;  %v8878_v57 = vrot.slane %v8850_v8, %v15469_v4 }
 0x811   :  { %v8784_v42 = vcombine.high %v8776_v24, %v8776_v24  ;;  %v8785_v25 = vcombine.high %v8783_v6, %v8783_v6  ;;  %v15708_v53 = vrot.slane %v9106_v2, %v15469_v4  ;;  %v8857_v10 = vrot.slane %v8841_v56, %v15469_v4 }
 0x812   :  { %v8864_v63 = vrot.slane %v8848_v16, %v15469_v4  ;;  %v8653_v28 = vrot.slane %v8639_v3, %v15469_v4  ;;  %v15714_v51 = vrot.slane %v8776_v24, %v15469_v4  ;;  %v15717_v48 = vrot.slane %v8783_v6, %v15469_v4  ;;  %v7900_v2 = vpop.permute.xlu1 %7899 }
 0x813   :  { %v15720_v39 = vrot.slane %v8784_v42, %v15469_v4  ;;  %v15723_v49 = vrot.slane %v8785_v25, %v15469_v4  ;;  %v8154_v34 = vpop.permute.xlu0 %8153  ;;  %v15726_v56 = vrot.slane %v9701_v33, %v15469_v4  ;;  %v8654_v16 = vcombine.high %v8646_v7, %v8646_v7 }
 0x814   :  { %v9366_v55 = vcombine.low %v8857_v10, %v8871_v54  ;;  %v15729_v46 = vrot.slane %v9107_v20, %v15469_v4  ;;  %v15732_v8 = vrot.slane %v9501_v32, %v15469_v4  ;;  %v9699_v13 = vcombine.high %v8857_v10, %v8871_v54 }
 0x815   :  { %v9693_v35 = vcombine.high %v15714_v51, %v15720_v39  ;;  %v9173_v36 = vcombine.low %v15717_v48, %v15723_v49  ;;  %v9368_v3 = vcombine.low %v8864_v63, %v8878_v57  ;;  %v8655_v26 = vcombine.high %v8653_v28, %v8653_v28 }
 0x816   :  { %v8662_v59 = vrot.slane %v8646_v7, %v15469_v4  ;;  %v8228_v6 = vsel %vm871_vm6, %v15225_v1, %v15383_v23  ;;  %v7994_v33 = vpop.permute.xlu1 %7993  ;;  %v9700_v42 = vcombine.high %v8864_v63, %v8878_v57  ;;  %v8669_v7 = vrot.slane %v8653_v28, %v15469_v4 }
 0x817   :  { %v7894_v32 = vpop.permute.xlu0 %7893  ;;  %v15747_v25 = vrot.slane %v9693_v35, %v15469_v4  ;;  %v15750_v54 = vrot.slane %v9173_v36, %v15469_v4  ;;  %v8234_v10 = vsel %vm878_vm7, %v8228_v6, %v15577_v41  ;;  %v8223_v20 = vsel %vm864_vm5, %v15653_v38, %v7994_v33 }
 0x818   :  { %v8676_v24 = vrot.slane %v8654_v16, %v15469_v4  ;;  %v8252_v1 = vsel %vm899_vm12, %v15413_v30, %v15445_v61  ;;  %v8240_v23 = vsel %vm885_vm8, %v8234_v10, %v15669_v62  ;;  %v9376_v38 = vrot.slane %v9366_v55, %v15469_v4 }
 0x819   :  { %v9205_v57 = vcombine.high %v15747_v25, %v15750_v54  ;;  %v9204_v63 = vcombine.low %v15747_v25, %v15750_v54  ;;  %v8258_v41 = vsel %vm906_vm13, %v8252_v1, %v15604_v19  ;;  %v9383_v28 = vrot.slane %v9699_v13, %v15469_v4  ;;  %v17244_v1 = vld [vmem:[#allocation45_spill] sm:$0xff] }
 0x81a   :  { %v8683_v16 = vrot.slane %v8655_v26, %v15469_v4  ;;  %v8225_v61 = vsel %vm871_vm6, %v15266_v21, %v15415_v12  ;;  %v8264_v62 = vsel %vm913_vm14, %v8258_v41, %v8160_v22  ;;  %v8184_v35 = vpop.permute.xlu1 %8183  ;;  %v9390_v6 = vrot.slane %v9368_v3, %v15469_v4 }
 0x81b   :  { %v7988_v36 = vpop.permute.xlu0 %7987  ;;  %v9397_v33 = vrot.slane %v9700_v42, %v15469_v4  ;;  %v8231_v19 = vsel %vm878_vm7, %v8225_v61, %v15606_v18  ;;  %v8246_v55 = vsel %vm17243_vm10, %v8240_v23, %v15413_v30  ;;  %v8270_v13 = vsel %vm920_vm15, %v8264_v62, %v8184_v35 }
 0x81c   :  { %v8220_v26 = vsel %vm864_vm5, %v15677_v37, %v7988_v36  ;;  %v8249_v21 = vsel %vm899_vm12, %v15447_v5, %v15480_v60  ;;  %v8237_v12 = vsel %vm885_vm8, %v8231_v19, %v15693_v47  ;;  %v8883_v22 = vcombine.low %v8246_v55, %v8270_v13  ;;  %v17246_v13 = vld [vmem:[#allocation46_spill] sm:$0xff] }
 0x81d   :  { %v9038_v3 = vcombine.low %v8662_v59, %v8676_v24  ;;  %v8255_v18 = vsel %vm906_vm13, %v8249_v21, %v15622_v52  ;;  %v9691_v42 = vcombine.high %v8662_v59, %v8676_v24  ;;  %v9040_v10 = vcombine.low %v8669_v7, %v8683_v16 }
 0x81e   :  { %v9692_v30 = vcombine.high %v8669_v7, %v8683_v16  ;;  %v8200_v23 = vsel %vm836_vm1, %v17244_v1, %v7900_v2  ;;  %v8261_v37 = vsel %vm913_vm14, %v8255_v18, %v8154_v34  ;;  %v8890_v41 = vrot.slane %v8883_v22, %v15469_v4  ;;  %v7924_v61 = vpop.permute.xlu1 %7923 }
 0x81f   :  { %v8178_v60 = vpop.permute.xlu0 %8177  ;;  %v9399_v62 = vcombine.high %v9376_v38, %v9383_v28  ;;  %v15797_v47 = vsel %vm843_vm2, %v8200_v23, %v7924_v61  ;;  %v8243_v35 = vsel %vm17245_vm9, %v8237_v12, %v15447_v5  ;;  %v9401_v59 = vcombine.high %v9390_v6, %v9397_v33 }
 0x820   :  { %v8267_v52 = vsel %vm920_vm15, %v8261_v37, %v8178_v60  ;;  %v8897_v24 = vrot.slane %v8890_v41, %v15469_v4  ;;  %v9398_v2 = vcombine.low %v9376_v38, %v9383_v28  ;;  %v9400_v16 = vcombine.low %v9390_v6, %v9397_v33 }
 0x821   :  { %v8688_v7 = vcombine.low %v8243_v35, %v8267_v52  ;;  %v9048_v34 = vrot.slane %v9038_v3, %v15469_v4  ;;  %v9055_v36 = vrot.slane %v9691_v42, %v15469_v4  ;;  %v9062_v19 = vrot.slane %v9040_v10, %v15469_v4 }
 0x822   :  { %v9069_v55 = vrot.slane %v9692_v30, %v15469_v4  ;;  %v8197_v21 = vsel %vm836_vm1, %v17246_v13, %v7894_v32  ;;  %v9432_v5 = vcombine.low %v8897_v24, %v15567_v44  ;;  %v8018_v22 = vpop.permute.xlu1 %8017  ;;  %v9495_v38 = vrot.slane %v9467_v45, %v15469_v4  ;;  %vm17247_vm1 = vmmov %vm17245_vm9 }
 0x823   :  { %v8695_v12 = vrot.slane %v8688_v7, %v15469_v4  ;;  %v7918_v18 = vpop.permute.xlu0 %7917  ;;  %v8229_v28 = vsel %vm871_vm6, %v8223_v20, %v8018_v22  ;;  %v9415_v33 = vrot.slane %v9399_v62, %v15469_v4  ;;  %v9429_v32 = vrot.slane %v9401_v59, %v15469_v4  ;;  %vm17251_vm11 = vmmov %vm17247_vm1 }
 0x824   :  { %v15817_v6 = vsel %vm843_vm2, %v8197_v21, %v7918_v18  ;;  %v9442_v3 = vrot.slane %v9432_v5, %v15469_v4  ;;  %v9408_v42 = vrot.slane %v9398_v2, %v15469_v4  ;;  %v9422_v10 = vrot.slane %v9400_v16, %v15469_v4  ;;  %vm17248_vm2 = vmmov %vm17247_vm1 }
 0x825   :  { %v8702_v44 = vrot.slane %v8695_v12, %v15469_v4  ;;  %v9071_v30 = vcombine.high %v9048_v34, %v9055_v36  ;;  %v9073_v1 = vcombine.high %v9062_v19, %v9069_v55  ;;  %v9070_v45 = vcombine.low %v9048_v34, %v9055_v36 }
 0x826   :  { %v9072_v23 = vcombine.low %v9062_v19, %v9069_v55  ;;  %v8090_v37 = vpop.permute.xlu1 %8089  ;;  %v9465_v61 = vcombine.high %v9442_v3, %v15640_v14  ;;  %v9464_v60 = vcombine.low %v9442_v3, %v15640_v14  ;;  %v9488_v62 = vrot.slane %v9466_v58, %v15469_v4 }
 0x827   :  { %v9104_v20 = vcombine.low %v8702_v44, %v15589_v11  ;;  %v8012_v41 = vpop.permute.xlu0 %8011  ;;  %v9431_v52 = vcombine.low %v9415_v33, %v9429_v32  ;;  %v9139_v59 = vcombine.high %v15708_v53, %v15729_v46  ;;  %v9138_v11 = vcombine.low %v15708_v53, %v15729_v46 }
 0x828   :  { %v8226_v35 = vsel %vm871_vm6, %v8220_v26, %v8012_v41  ;;  %v9481_v24 = vrot.slane %v9465_v61, %v15469_v4  ;;  %v9430_v7 = vcombine.low %v9408_v42, %v9422_v10  ;;  %v9474_v2 = vrot.slane %v9464_v60, %v15469_v4 }
 0x829   :  { %v9114_v14 = vrot.slane %v9104_v20, %v15469_v4  ;;  %v9087_v16 = vrot.slane %v9071_v30, %v15469_v4  ;;  %v9101_v0 = vrot.slane %v9073_v1, %v15469_v4  ;;  %v9080_v9 = vrot.slane %v9070_v45, %v15469_v4 }
 0x82a   :  { %v9094_v58 = vrot.slane %v9072_v23, %v15469_v4  ;;  %v8114_v26 = vpop.permute.xlu1 %8113  ;;  %v9497_v36 = vcombine.low %v9481_v24, %v9495_v38  ;;  %v9496_v19 = vcombine.low %v9474_v2, %v9488_v62  ;;  %v9167_v55 = vrot.slane %v9139_v59, %v15469_v4 }
 0x82b   :  { %v8084_v34 = vpop.permute.xlu0 %8083  ;;  %v9137_v53 = vcombine.high %v9114_v14, %v15698_v27  ;;  %v9136_v46 = vcombine.low %v9114_v14, %v15698_v27  ;;  %v9160_v13 = vrot.slane %v9138_v11, %v15469_v4  ;;  %v9103_v38 = vcombine.low %v9087_v16, %v9101_v0 }
 0x82c   :  { %v9721_v21 = vpack.c.bf16 %v9497_v36, %v9431_v52  ;;  %v9723_v5 = vpack.c.bf16 %v9496_v19, %v9430_v7  ;;  %v9102_v44 = vcombine.low %v9080_v9, %v9094_v58  ;;  %v8253_v0 = vsel %vm899_vm12, %v8090_v37, %v8114_v26 }
 0x82d   :  { %v9153_v12 = vrot.slane %v9137_v53, %v15469_v4  ;;  %v9146_v22 = vrot.slane %v9136_v46, %v15469_v4  ;;  %v8947_v26 = vcombine.high %v15592_v31, %v15592_v31  ;;  %v8752_v31 = vcombine.high %v15625_v40, %v15625_v40 }
 0x82e   :  { %v15850_v18 = vpop.permute.xlu1 %7947  ;;  %9722 = vmatprep.subr.bf16.mxu1 %v9721_v21  ;;  %v17250_v40 = vcombine.low %v15726_v56, %v15732_v8 }
 0x82f   :  { %v8108_v33 = vpop.permute.xlu0 %8107  ;;  %v9169_v32 = vcombine.low %v9153_v12, %v9167_v55  ;;  %v9168_v3 = vcombine.low %v9146_v22, %v9160_v13  ;;  %9724 = vmatpush1.bf16.msra.mxu1 %v9723_v5 }
 0x831   :  { %v9711_v27 = vpack.c.bf16 %v9169_v32, %v9103_v38  ;;  %v9713_v42 = vpack.c.bf16 %v9168_v3, %v9102_v44 }
 0x832   :  { %v8042_v10 = vpop.permute.xlu1 %8041 }
 0x833   :  { %9712 = vmatprep.subr.bf16.mxu0 %v9711_v27  ;;  %v15852_v30 = vpop.permute.xlu0 %7941  ;;  %v8235_v41 = vsel %vm878_vm7, %v8229_v28, %v8042_v10 }
 0x834   :  { %9714 = vmatpush1.bf16.msra.mxu0 %v9713_v42 }
 0x836   :  { %v8138_v1 = vpop.permute.xlu1 %8137 }
 0x837   :  { %v8036_v45 = vpop.permute.xlu0 %8035  ;;  %v8259_v28 = vsel %vm906_vm13, %v8253_v0, %v8138_v1 }
 0x838   :  { %v8232_v11 = vsel %vm878_vm7, %v8226_v35, %v8036_v45  ;;  %v8250_v35 = vsel %vm899_vm12, %v8084_v34, %v8108_v33 }
 0x83a   :  { %v15854_v23 = vpop.permute.xlu1 %7971 }
 0x83b   :  { %v8132_v20 = vpop.permute.xlu0 %8131 }
 0x83c   :  { %v8256_v46 = vsel %vm906_vm13, %v8250_v35, %v8132_v20 }
 0x83e   :  { %v8066_v61 = vpop.permute.xlu1 %8065 }
 0x83f   :  { %v8241_v60 = vsel %vm885_vm8, %v8235_v41, %v8066_v61  ;;  %v15858_v62 = vpop.permute.xlu0 %7965  ;;  %v17249_v61 = vcombine.high %v15726_v56, %v15732_v8  ;;  %v15917_v56 = vrot.slane %v9205_v57, %v15469_v4  ;;  %v8212_v57 = vsel %vm850_vm3, %v15797_v47, %v15850_v18 }
 0x840   :  { %v8247_v52 = vsel %vm17247_vm1, %v8241_v60, %v8090_v37  ;;  %v9499_v37 = vcombine.low %v15680_v43, %v15686_v29  ;;  %v9171_v43 = vcombine.low %v15714_v51, %v15720_v39  ;;  %v15902_v39 = vrot.slane %v17250_v40, %v15469_v4 }
 0x841   :  { %v15893_v60 = vrot.slane %v17249_v61, %v15469_v4 }
 0x842   :  { %v8162_v59 = vpop.permute.xlu1 %8161  ;;  %v9515_v3 = vrot.slane %v9499_v37, %v15469_v4 }
 0x843   :  { %v8060_v24 = vpop.permute.xlu0 %8059  ;;  %v8265_v9 = vsel %vm913_vm14, %v8259_v28, %v8162_v59 }
 0x844   :  { %v8238_v7 = vsel %vm885_vm8, %v8232_v11, %v8060_v24 }
 0x845   :  { %v8244_v2 = vsel %vm17248_vm2, %v8238_v7, %v8084_v34 }
 0x846   :  { %v7996_v14 = vpop.permute.xlu1 %7995 }
 0x847   :  { %v8156_v16 = vpop.permute.xlu0 %8155 }
 0x848   :  { %v8262_v21 = vsel %vm913_vm14, %v8256_v46, %v8156_v16 }
 0x84a   :  { %v8186_v58 = vpop.permute.xlu1 %8185 }
 0x84b   :  { %v8271_v36 = vsel %vm920_vm15, %v8265_v9, %v8186_v58  ;;  %v7990_v19 = vpop.permute.xlu0 %7989  ;;  %v15926_v9 = vrot.slane %v9204_v63, %v15469_v4 }
 0x84c   :  { %v8948_v53 = vcombine.low %v8247_v52, %v8271_v36  ;;  %v9187_v52 = vrot.slane %v9171_v43, %v15469_v4 }
 0x84e   :  { %v8955_v55 = vrot.slane %v8948_v53, %v15469_v4  ;;  %v8020_v13 = vpop.permute.xlu1 %8019 }
 0x84f   :  { %v8180_v5 = vpop.permute.xlu0 %8179 }
 0x850   :  { %v8962_v12 = vrot.slane %v8955_v55, %v15469_v4  ;;  %v8268_v22 = vsel %vm920_vm15, %v8262_v21, %v8180_v5  ;;  %v8218_v21 = vsel %vm857_vm4, %v8212_v57, %v15854_v23 }
 0x851   :  { %v8753_v38 = vcombine.low %v8244_v2, %v8268_v22  ;;  %v8224_v25 = vsel %vm864_vm5, %v8218_v21, %v7996_v14 }
 0x852   :  { %v9498_v34 = vcombine.low %v8947_v26, %v8962_v12  ;;  %v8092_v33 = vpop.permute.xlu1 %8091  ;;  %v8230_v54 = vsel %vm871_vm6, %v8224_v25, %v8020_v13  ;;  %v8209_v26 = vsel %vm850_vm3, %v15817_v6, %v15852_v30  ;;  %vm17252_vm3 = vmmov %vm17247_vm1 }
 0x853   :  { %v8760_v32 = vrot.slane %v8753_v38, %v15469_v4  ;;  %v8014_v44 = vpop.permute.xlu0 %8013  ;;  %v8215_v18 = vsel %vm857_vm4, %v8209_v26, %v15858_v62  ;;  %vm9796_vm4 = vmmov 1  }
 0x854   :  { %v9508_v27 = vrot.slane %v9498_v34, %v15469_v4  ;;  %v8221_v14 = vsel %vm864_vm5, %v8215_v18, %v7990_v19  ;;  %v9702_v19 = vcombine.high %v15683_v50, %v15689_v17  ;;  %v9694_v50 = vcombine.high %v15717_v48, %v15723_v49  ;;  %v14_v48 = vld [vmem:[%s16027_s1] sm:$0xff] }
 0x855   :  { %v8767_v29 = vrot.slane %v8760_v32, %v15469_v4  ;;  %v8227_v38 = vsel %vm871_vm6, %v8221_v14, %v8014_v44  ;;  %vm17253_vm5 = vcmask 1042432  }
 0x856   :  { %v9530_v42 = vcombine.low %v9508_v27, %v9515_v3  ;;  %v9531_v10 = vcombine.high %v9508_v27, %v9515_v3  ;;  %v8116_v1 = vpop.permute.xlu1 %8115  ;;  %vm15975_vm6 = vmpackc.low %vm17253_vm5, %vm9796_vm4 }
 0x857   :  { %v9170_v45 = vcombine.low %v8752_v31, %v8767_v29  ;;  %v8086_v20 = vpop.permute.xlu0 %8085  ;;  %v8254_v12 = vsel %vm899_vm12, %v8092_v33, %v8116_v1 }
 0x858   :  { %v15887_v41 = vrot.slane %v9531_v10, %v15469_v4  ;;  %v15896_v51 = vrot.slane %v9530_v42, %v15469_v4 }
 0x859   :  { %v9180_v59 = vrot.slane %v9170_v45, %v15469_v4  ;;  %v9571_v45 = vrot.slane %v9702_v19, %v15469_v4 }
 0x85a   :  { %v9563_v24 = vcombine.low %v15887_v41, %v15893_v60  ;;  %v9562_v7 = vcombine.low %v15896_v51, %v15902_v39  ;;  %v9243_v39 = vrot.slane %v9694_v50, %v15469_v4 }
 0x85b   :  { %v8044_v11 = vpop.permute.xlu1 %8043  ;;  %v9202_v2 = vcombine.low %v9180_v59, %v9187_v52  ;;  %v9203_v16 = vcombine.high %v9180_v59, %v9187_v52 }
 0x85c   :  { %v8110_v0 = vpop.permute.xlu0 %8109  ;;  %v8236_v5 = vsel %vm878_vm7, %v8230_v54, %v8044_v11 }
 0x85d   :  { %v15911_v28 = vrot.slane %v9203_v16, %v15469_v4  ;;  %v15920_v8 = vrot.slane %v9202_v2, %v15469_v4  ;;  %v8251_v27 = vsel %vm899_vm12, %v8086_v20, %v8110_v0  ;;  %v16_v0 = vadd.f32 1.0, %v14_v48 }
 0x85f   :  { %v8140_v58 = vpop.permute.xlu1 %8139  ;;  %v9235_v53 = vcombine.low %v15911_v28, %v15917_v56  ;;  %v9234_v35 = vcombine.low %v15920_v8, %v15926_v9  ;;  %v15_v8 = vld [vmem:[%s16027_s1 + $0x8] sm:$0xff] }
 0x860   :  { %v8038_v36 = vpop.permute.xlu0 %8037  ;;  %v8260_v23 = vsel %vm906_vm13, %v8254_v12, %v8140_v58  ;;  %v17_v9 = vadd.f32 1.0, %v15_v8 }
 0x861   :  { %v8233_v32 = vsel %vm878_vm7, %v8227_v38, %v8038_v36  ;;  %vm9273_vm7 = vcmask 220160  }
 0x863   :  { %v8068_v46 = vpop.permute.xlu1 %8067 }
 0x864   :  { %v8134_v55 = vpop.permute.xlu0 %8133  ;;  %v8242_v47 = vsel %vm885_vm8, %v8236_v5, %v8068_v46 }
 0x865   :  { %v8248_v34 = vsel %vm17251_vm11, %v8242_v47, %v8092_v33  ;;  %v8257_v43 = vsel %vm906_vm13, %v8251_v27, %v8134_v55 }
 0x867   :  { %v8164_v63 = vpop.permute.xlu1 %8163 }
 0x868   :  { %v8062_v37 = vpop.permute.xlu0 %8061  ;;  %v8266_v13 = vsel %vm913_vm14, %v8260_v23, %v8164_v63 }
 0x869   :  { %v8239_v62 = vsel %vm885_vm8, %v8233_v32, %v8062_v37  ;;  %vm9362_vm8 = vcmask 556032  }
 0x86a   :  { %v8245_v42 = vsel %vm17252_vm3, %v8239_v62, %v8086_v20 }
 0x86b   :  { %v8188_v22 = vpop.permute.xlu1 %8187 }
 0x86c   :  { %v8272_v6 = vsel %vm920_vm15, %v8266_v13, %v8188_v22  ;;  %v8158_v30 = vpop.permute.xlu0 %8157 }
 0x86d   :  { %v9013_v3 = vcombine.low %v8248_v34, %v8272_v6  ;;  %v8263_v44 = vsel %vm913_vm14, %v8257_v43, %v8158_v30 }
 0x86f   :  { %v9020_v31 = vrot.slane %v9013_v3, %v15469_v4 }
 0x870   :  { %v8182_v33 = vpop.permute.xlu0 %8181 }
 0x871   :  { %v9027_v29 = vrot.slane %v9020_v31, %v15469_v4  ;;  %v8269_v10 = vsel %vm920_vm15, %v8263_v44, %v8182_v33 }
 0x872   :  { %v8818_v1 = vcombine.low %v8245_v42, %v8269_v10 }
 0x873   :  { %v9578_v41 = vrot.slane %v9027_v29, %v15469_v4 }
 0x874   :  { %v8825_v17 = vrot.slane %v8818_v1, %v15469_v4 }
 0x875   :  { %v9579_v61 = vcombine.low %v9571_v45, %v9578_v41  ;;  %v9580_v60 = vcombine.high %v9571_v45, %v9578_v41 }
 0x876   :  { %v8832_v51 = vrot.slane %v8825_v17, %v15469_v4 }
 0x877   :  { %v9594_v40 = vrot.slane %v9580_v60, %v15469_v4  ;;  %v9587_v20 = vrot.slane %v9579_v61, %v15469_v4 }
 0x878   :  { %v9250_v52 = vrot.slane %v8832_v51, %v15469_v4 }
 0x879   :  { %v9725_v49 = vpack.c.bf16 %v9594_v40, %v9563_v24  ;;  %v9728_v11 = vpack.c.bf16 %v9587_v20, %v9562_v7 }
 0x87a   :  { %v9251_v2 = vcombine.low %v9243_v39, %v9250_v52  ;;  %v9252_v16 = vcombine.high %v9243_v39, %v9250_v52 }
 0x87b   :  { %9727 = vmatprep.subr.msk.bf16.mxu1 %vm15975_vm6, %v9725_v49 }
 0x87c   :  { %9730 = vmatpush1.bf16.msk.msra.mxu1 %vm15975_vm6, %v9728_v11  ;;  %v9266_v28 = vrot.slane %v9252_v16, %v15469_v4  ;;  %v9259_v56 = vrot.slane %v9251_v2, %v15469_v4 }
 0x87e   :  { %v9715_v24 = vpack.c.bf16 %v9266_v28, %v9235_v53  ;;  %v9718_v7 = vpack.c.bf16 %v9259_v56, %v9234_v35 }
 0x87f   :  { %9705 = vmatmul.mubr.msk.f32.vlgmr.msra.gmra.mrb[0].mxu1 %vm9273_vm7, %v16_v0 }
 0x880   :  { %9717 = vmatprep.subr.msk.bf16.mxu0 %vm15975_vm6, %v9715_v24  ;;  %9675 = vmatprep.mubr.f32.mxu1 %v16207_v15 }
 0x881   :  { %9720 = vmatpush1.bf16.msk.msra.mxu0 %vm15975_vm6, %v9718_v7 }
 0x883   :  { %9706 = vmatmul.mubr.msk.f32.gmra.mrb[2].mxu1 %vm9273_vm7, %v17_v9 }
 0x884   :  { %9697 = vmatmul.mubr.msk.f32.vlgmr.msra.gmra.mrb[0].mxu0 %vm9273_vm7, %v16_v0 }
 0x885   :  { %9354 = vmatprep.mubr.f32.mxu0 %v16207_v15 }
 0x888   :  { %9698 = vmatmul.mubr.msk.f32.gmra.mrb[2].mxu0 %vm9273_vm7, %v17_v9 }
 0x88a   :  { %v9031_v4 = vpop.permute.xlu0 %9030  ;;  %v9036_v46 = vpop.permute.xlu1 %9035 }
 0x952   :  { %v9671_v58 = vpop.f32.mrb[0].mxu1 }
 0x953   :  { %v9673_v36 = vpop.f32.mrb[1].mxu1  ;;  %v9672_v53 = vadd.f32 %v9671_v58, %v9031_v4 }
 0x954   :  { %v9674_v35 = vadd.f32 %v9673_v36, %v9031_v4 }
 0x955   :  { %9707 = vst [vmem:[%s16028_s3 + $0x20] sm:$0xff] %v9672_v53 }
 0x956   :  { %9708 = vst.msk [vmem:[%s16028_s3 + $0x28] sm:$0xff] %vm9362_vm8, %v9674_v35  ;;  %v9677_v57 = vpop.f32.mrb[2].mxu1 }
 0x957   :  { %v9350_v55 = vpop.f32.mrb[0].mxu0  ;;  %v9678_v15 = vadd.f32 %v9677_v57, %v9036_v46  ;;  %v9679_v21 = vpop.f32.mrb[3].mxu1 }
 0x958   :  { %v9351_v25 = vadd.f32 %v9350_v55, %v9031_v4  ;;  %v9352_v54 = vpop.f32.mrb[1].mxu0  ;;  %v9680_v63 = vadd.f32 %v9679_v21, %v9036_v46 }
 0x959   :  { %v9353_v5 = vadd.f32 %v9352_v54, %v9031_v4  ;;  %9709 = vst [vmem:[%s16028_s3 + $0x30] sm:$0xff] %v9678_v15 }
 0x95a   :  { %9361 = vst [vmem:[%s16028_s3] sm:$0xff] %v9351_v25  ;;  %9710 = vst.msk [vmem:[%s16028_s3 + $0x38] sm:$0xff] %vm9362_vm8, %v9680_v63 }
 0x95b   :  { %9363 = vst.msk [vmem:[%s16028_s3 + $0x8] sm:$0xff] %vm9362_vm8, %v9353_v5  ;;  %v9356_v37 = vpop.f32.mrb[2].mxu0 }
 0x95c   :  { %v9357_v26 = vadd.f32 %v9356_v37, %v9036_v46  ;;  %v9358_v12 = vpop.f32.mrb[3].mxu0 }
 0x95d   :  { %v9359_v47 = vadd.f32 %v9358_v12, %v9036_v46 }
 0x95e   :  { %9364 = vst [vmem:[%s16028_s3 + $0x10] sm:$0xff] %v9357_v26 }
 0x95f   :  { %9365 = vst.msk [vmem:[%s16028_s3 + $0x18] sm:$0xff] %vm9362_vm8, %v9359_v47 }

</bundles_post_ra>
